<compile_context>
chip_gen: v7x
topology: tpu7x:2x2x1
jax: 0.10.0
libtpu: 0.0.40
codegen_flags: <defaults>
</compile_context>

<pallas_src>
import functools

import jax
import jax.numpy as jnp
from jax.experimental import pallas as pl
from jax.experimental.pallas import tpu as pltpu


STREAM_COUT = 16           # stream conv output channels
SINGLE_COUT = 128          # single conv output channels
_VMEM_LIMIT = 28 * 1024 * 1024


def _round_up(x, m):
    return -(-x // m) * m


# ---------------------------------------------------------------------------
# Plain-JAX helper: im2col for the tiny "corr" precompute only (runs once on a
# (1,H,W,half) ones image in the wrapper; everything batch-sized is in-kernel).
# ---------------------------------------------------------------------------

def _im2col_3x3(x_nhwc):
    """(N,H,W,C) -> (N*H*W, 9*C), tap-major (dy,dx) outer, channel inner."""
    n, h, w, c = x_nhwc.shape
    xp = jnp.pad(x_nhwc, ((0, 0), (1, 1), (1, 1), (0, 0)))
    taps = [xp[:, dy:dy + h, dx:dx + w, :] for dy in range(3) for dx in range(3)]
    return jnp.concatenate(taps, axis=-1).reshape(n * h * w, 9 * c)


# ---------------------------------------------------------------------------
# Fully fused kernel: stream convs (direct + inverse) -> concat -> pad ->
# single conv -> GAP -> MLP head -> sigmoid
# ---------------------------------------------------------------------------

def _net_fused_kernel(x_ref, ws_ref, bs_ref, corr_ref, wc_ref, bc_ref,
                      gap_ref, w1_ref, b1_ref, w2_ref, b2_ref, w3_ref, b3_ref,
                      o_ref, *, n, h, w):
    """All tensors live in VMEM; single invocation, no grid.

    x_ref   : (2n, h+2, w+2, cin) bf16  zero-padded [reference; test] NHWC
    ws_ref  : (Kp, 16)            bf16  stream conv weights (K 27 -> Kp)
    bs_ref  : (1, 16)             f32   stream bias
    corr_ref: (h*w, 16)           f32   255*conv(ones) + b  per spatial pos
    wc_ref  : (640, 128)          bf16  single conv weights (K 576 -> 640)
    bc_ref  : (1, 128)            f32
    gap_ref : (n, n*h*w)          bf16  block-averaging matrix (GAP as matmul)
    w*/b*   : head weights (bf16) / biases (f32); final layer padded to 128
    o_ref   : (n, 128)            f32   sigmoid(logits); real logit in col 0
    """
    cin = x_ref.shape[-1]
    n2 = 2 * n
    m2 = n2 * h * w            # rows of the stream patch matrix
    m = n * h * w              # rows of the single-conv patch matrix

    # ---- stream stage: in-VMEM im2col + one MXU matmul for all 4 branches
    xp = x_ref[...]                                            # bf16
    taps = [xp[:, dy:dy + h, dx:dx + w, :].reshape(m2, cin)
            for dy in range(3) for dx in range(3)]
    kpad = ws_ref.shape[0] - 9 * cin
    if kpad:
        taps.append(jnp.zeros((m2, kpad), jnp.bfloat16))
    patches = jnp.concatenate(taps, axis=-1)                   # (2m, Kp) bf16

    y = jnp.dot(patches, ws_ref[...], preferred_element_type=jnp.float32)
    y3 = y.reshape(n2, h * w, STREAM_COUT)                     # (2n, h*w, 16)
    # direct  : relu(conv(x) + b)
    # inverse : relu(conv(255-x) + b) == relu(corr - conv(x))   (linearity)
    direct = jnp.maximum(y3 + bs_ref[...], 0.0).astype(jnp.bfloat16)
    inverse = jnp.maximum(corr_ref[...] - y3, 0.0).astype(jnp.bfloat16)

    # torch.cat((reference, reference_inverse, test_inverse, test), dim=1)
    cat = jnp.concatenate(
        [direct[:n], inverse[:n], inverse[n:], direct[n:]], axis=-1)
    cat = cat.reshape(n, h, w, 4 * STREAM_COUT)                # (n,h,w,64) bf16

    # ---- spatial zero-pad in VMEM (value concat, no HBM round trip)
    zw = jnp.zeros((n, h, 1, 4 * STREAM_COUT), jnp.bfloat16)
    zh = jnp.zeros((n, 1, w + 2, 4 * STREAM_COUT), jnp.bfloat16)
    catp = jnp.concatenate([zw, cat, zw], axis=2)
    catp = jnp.concatenate([zh, catp, zh], axis=1)             # (n,h+2,w+2,64)

    # ---- single conv: one lane-dense im2col matmul (K padded to 640)
    c_in = 4 * STREAM_COUT
    taps2 = [catp[:, dy:dy + h, dx:dx + w, :].reshape(m, c_in)
             for dy in range(3) for dx in range(3)]
    kpad2 = wc_ref.shape[0] - 9 * c_in
    if kpad2:
        taps2.append(jnp.zeros((m, kpad2), jnp.bfloat16))
    patches2 = jnp.concatenate(taps2, axis=-1)                 # (m, 640) bf16
    fmap = jnp.maximum(
        jnp.dot(patches2, wc_ref[...], preferred_element_type=jnp.float32)
        + bc_ref[...], 0.0)                                    # (m, 128) f32

    # ---- GAP as an MXU matmul with the block-averaging matrix
    feat = jnp.dot(gap_ref[...], fmap.astype(jnp.bfloat16),
                   preferred_element_type=jnp.float32)         # (n, 128) f32

    # ---- classifier head (bf16 weights, f32 accumulation)
    h1 = jnp.maximum(
        jnp.dot(feat.astype(jnp.bfloat16), w1_ref[...],
                preferred_element_type=jnp.float32) + b1_ref[...], 0.0)
    h2 = jnp.maximum(
        jnp.dot(h1.astype(jnp.bfloat16), w2_ref[...],
                preferred_element_type=jnp.float32) + b2_ref[...], 0.0)
    logit = jnp.dot(h2.astype(jnp.bfloat16), w3_ref[...],
                    preferred_element_type=jnp.float32) + b3_ref[...]
    o_ref[...] = jax.nn.sigmoid(logit)


# ---------------------------------------------------------------------------
# Parameters (deterministic, synthetic)
# ---------------------------------------------------------------------------

def init_params(key, cin_half):
    keys = jax.random.split(key, 8)
    scale = 0.05
    single_cin = 4 * STREAM_COUT
    return {
        # stream conv: shared between the two inputs of stream(a, b)
        "stream_w": scale * jax.random.normal(
            keys[0], (9 * cin_half, STREAM_COUT), jnp.float32),
        "stream_b": scale * jax.random.normal(
            keys[1], (STREAM_COUT,), jnp.float32),
        # single conv: 64 -> 128
        "single_w": scale * jax.random.normal(
            keys[2], (9 * single_cin, SINGLE_COUT), jnp.float32),
        "single_b": scale * jax.random.normal(
            keys[3], (SINGLE_COUT,), jnp.float32),
        # classifier: Linear(128,128) ReLU Linear(128,128) ReLU Linear(128,1) Sigmoid
        "w1": scale * jax.random.normal(keys[4], (128, 128), jnp.float32),
        "b1": jnp.zeros((128,), jnp.float32),
        "w2": scale * jax.random.normal(keys[5], (128, 128), jnp.float32),
        "b2": jnp.zeros((128,), jnp.float32),
        "w3": scale * jax.random.normal(keys[6], (128, 1), jnp.float32),
        "b3": jnp.zeros((1,), jnp.float32),
    }


# ---------------------------------------------------------------------------
# Forward pass (mirrors net.forward / net.sub_forward)
# ---------------------------------------------------------------------------

@jax.jit
def net_forward(params, x_nchw):
    n, c, hgt, wid = x_nchw.shape
    half = c // 2
    hw = hgt * wid
    m = n * hw

    # NHWC halves stacked along batch: [reference; test]  -> (2N, H, W, half),
    # spatially zero-padded once and cast to bf16 (half the input DMA bytes).
    ref_nhwc = jnp.transpose(x_nchw[:, :half], (0, 2, 3, 1))
    test_nhwc = jnp.transpose(x_nchw[:, half:], (0, 2, 3, 1))
    stacked = jnp.concatenate([ref_nhwc, test_nhwc], axis=0)
    xpad = jnp.pad(stacked, ((0, 0), (1, 1), (1, 1), (0, 0))).astype(jnp.bfloat16)

    # stream weights, K padded 27 -> 32
    k_raw = 9 * half
    kp = _round_up(k_raw, 8)
    ws = jnp.pad(params["stream_w"],
                 ((0, kp - k_raw), (0, 0))).astype(jnp.bfloat16)
    bs = params["stream_b"].reshape(1, -1)

    # corr(h,w,:) = 255*conv(ones)(h,w,:) + b  (handles zero-padded borders);
    # per spatial position only — broadcast over batch inside the kernel.
    ones_p = _im2col_3x3(jnp.ones((1, hgt, wid, half), jnp.float32))
    corr = 255.0 * (ones_p @ params["stream_w"]) + params["stream_b"][None, :]

    # single conv weights, K padded 576 -> 640 (lane-dense patch matmul)
    k1 = 9 * 4 * STREAM_COUT
    k1p = _round_up(k1, 128)
    wc = jnp.pad(params["single_w"],
                 ((0, k1p - k1), (0, 0))).astype(jnp.bfloat16)
    bc = params["single_b"].reshape(1, -1)

    # GAP as a (N, m) block-averaging matrix (rides the otherwise idle MXU)
    gap = (jnp.repeat(jnp.eye(n, dtype=jnp.float32), hw, axis=1)
           * (1.0 / hw)).astype(jnp.bfloat16)

    # classifier head; final layer padded to 128 output lanes (lane-dense store)
    w1 = params["w1"].astype(jnp.bfloat16)
    b1 = params["b1"].reshape(1, -1)
    w2 = params["w2"].astype(jnp.bfloat16)
    b2 = params["b2"].reshape(1, -1)
    w3p = jnp.zeros((128, 128), jnp.float32).at[:, 0].set(
        params["w3"][:, 0]).astype(jnp.bfloat16)
    b3p = jnp.zeros((1, 128), jnp.float32).at[0, 0].set(params["b3"][0])

    args = (xpad, ws, bs, corr, wc, bc, gap, w1, b1, w2, b2, w3p, b3p)

    flops = 2 * (2 * m * kp * STREAM_COUT          # stream matmul (both halves)
                 + m * k1p * SINGLE_COUT           # single conv matmul
                 + n * m * SINGLE_COUT             # GAP matmul
                 + n * 128 * 128 * 3)              # head matmuls
    bytes_accessed = int(sum(int(a.size) * a.dtype.itemsize for a in args)
                         + n * 128 * 4)

    vmem = pl.BlockSpec(memory_space=pltpu.MemorySpace.VMEM)
    out128 = pl.pallas_call(
        functools.partial(_net_fused_kernel, n=n, h=hgt, w=wid),
        out_shape=jax.ShapeDtypeStruct((n, 128), jnp.float32),
        in_specs=[vmem] * len(args),
        out_specs=vmem,
        compiler_params=pltpu.CompilerParams(vmem_limit_bytes=_VMEM_LIMIT),
        cost_estimate=pl.CostEstimate(flops=flops,
                                      transcendentals=n * 128,
                                      bytes_accessed=bytes_accessed),
    )(*args)

    return out128[:, :1]                                       # (N, 1)


# ---------------------------------------------------------------------------
# Main
# ---------------------------------------------------------------------------

if __name__ == "__main__":
    key = jax.random.PRNGKey(0)
    k_in, k_par = jax.random.split(key)

    # input: NCHW, 6 channels (half = 3 each for reference / test), 16x16
    x = 255.0 * jax.random.uniform(k_in, (2, 6, 16, 16), jnp.float32)
    params = init_params(k_par, cin_half=3)

    out = net_forward(params, x)
    out = jax.block_until_ready(out)

    assert out.shape == (2, 1)
    assert bool(jnp.all((out >= 0.0) & (out <= 1.0)))
    print("KERNEL_OK")
</pallas_src>

<mosaic_0001>
module attributes {stable_mosaic.version = 11 : i64} {
  func.func @_net_fused_kernel(%arg0: memref<4x18x18x3xbf16, #tpu.memory_space<vmem>>, %arg1: memref<32x16xbf16, #tpu.memory_space<vmem>>, %arg2: memref<1x16xf32, #tpu.memory_space<vmem>>, %arg3: memref<256x16xf32, #tpu.memory_space<vmem>>, %arg4: memref<640x128xbf16, #tpu.memory_space<vmem>>, %arg5: memref<1x128xf32, #tpu.memory_space<vmem>>, %arg6: memref<2x512xbf16, #tpu.memory_space<vmem>>, %arg7: memref<128x128xbf16, #tpu.memory_space<vmem>>, %arg8: memref<1x128xf32, #tpu.memory_space<vmem>>, %arg9: memref<128x128xbf16, #tpu.memory_space<vmem>>, %arg10: memref<1x128xf32, #tpu.memory_space<vmem>>, %arg11: memref<128x128xbf16, #tpu.memory_space<vmem>>, %arg12: memref<1x128xf32, #tpu.memory_space<vmem>>, %arg13: memref<2x128xf32, #tpu.memory_space<vmem>>) attributes {dimension_semantics = [], scalar_prefetch = 0 : i64, scratch_operands = 0 : i64, tpu.core_type = #tpu.core_type<tc>} {
    %c0 = arith.constant 0 : index
    %c0_0 = arith.constant 0 : index
    %c0_1 = arith.constant 0 : index
    %c0_2 = arith.constant 0 : index
    %0 = vector.load %arg0[%c0, %c0_0, %c0_1, %c0_2] : memref<4x18x18x3xbf16, #tpu.memory_space<vmem>>, vector<4x18x18x3xbf16>
    %1 = vector.extract_strided_slice %0 {offsets = [0, 0, 0, 0], sizes = [4, 16, 16, 3], strides = [1, 1, 1, 1]} : vector<4x18x18x3xbf16> to vector<4x16x16x3xbf16>
    %2 = vector.shape_cast %1 : vector<4x16x16x3xbf16> to vector<1024x3xbf16>
    %3 = vector.extract_strided_slice %0 {offsets = [0, 0, 1, 0], sizes = [4, 16, 16, 3], strides = [1, 1, 1, 1]} : vector<4x18x18x3xbf16> to vector<4x16x16x3xbf16>
    %4 = vector.shape_cast %3 : vector<4x16x16x3xbf16> to vector<1024x3xbf16>
    %5 = vector.extract_strided_slice %0 {offsets = [0, 0, 2, 0], sizes = [4, 16, 16, 3], strides = [1, 1, 1, 1]} : vector<4x18x18x3xbf16> to vector<4x16x16x3xbf16>
    %6 = vector.shape_cast %5 : vector<4x16x16x3xbf16> to vector<1024x3xbf16>
    %7 = vector.extract_strided_slice %0 {offsets = [0, 1, 0, 0], sizes = [4, 16, 16, 3], strides = [1, 1, 1, 1]} : vector<4x18x18x3xbf16> to vector<4x16x16x3xbf16>
    %8 = vector.shape_cast %7 : vector<4x16x16x3xbf16> to vector<1024x3xbf16>
    %9 = vector.extract_strided_slice %0 {offsets = [0, 1, 1, 0], sizes = [4, 16, 16, 3], strides = [1, 1, 1, 1]} : vector<4x18x18x3xbf16> to vector<4x16x16x3xbf16>
    %10 = vector.shape_cast %9 : vector<4x16x16x3xbf16> to vector<1024x3xbf16>
    %11 = vector.extract_strided_slice %0 {offsets = [0, 1, 2, 0], sizes = [4, 16, 16, 3], strides = [1, 1, 1, 1]} : vector<4x18x18x3xbf16> to vector<4x16x16x3xbf16>
    %12 = vector.shape_cast %11 : vector<4x16x16x3xbf16> to vector<1024x3xbf16>
    %13 = vector.extract_strided_slice %0 {offsets = [0, 2, 0, 0], sizes = [4, 16, 16, 3], strides = [1, 1, 1, 1]} : vector<4x18x18x3xbf16> to vector<4x16x16x3xbf16>
    %14 = vector.shape_cast %13 : vector<4x16x16x3xbf16> to vector<1024x3xbf16>
    %15 = vector.extract_strided_slice %0 {offsets = [0, 2, 1, 0], sizes = [4, 16, 16, 3], strides = [1, 1, 1, 1]} : vector<4x18x18x3xbf16> to vector<4x16x16x3xbf16>
    %16 = vector.shape_cast %15 : vector<4x16x16x3xbf16> to vector<1024x3xbf16>
    %17 = vector.extract_strided_slice %0 {offsets = [0, 2, 2, 0], sizes = [4, 16, 16, 3], strides = [1, 1, 1, 1]} : vector<4x18x18x3xbf16> to vector<4x16x16x3xbf16>
    %18 = vector.shape_cast %17 : vector<4x16x16x3xbf16> to vector<1024x3xbf16>
    %cst = arith.constant 0.000000e+00 : bf16
    %19 = vector.broadcast %cst : bf16 to vector<1024x5xbf16>
    %20 = tpu.concatenate %2, %4, %6, %8, %10, %12, %14, %16, %18, %19 in 1 : vector<1024x3xbf16>, vector<1024x3xbf16>, vector<1024x3xbf16>, vector<1024x3xbf16>, vector<1024x3xbf16>, vector<1024x3xbf16>, vector<1024x3xbf16>, vector<1024x3xbf16>, vector<1024x3xbf16>, vector<1024x5xbf16> -> vector<1024x32xbf16>
    %c0_3 = arith.constant 0 : index
    %c0_4 = arith.constant 0 : index
    %21 = vector.load %arg1[%c0_3, %c0_4] : memref<32x16xbf16, #tpu.memory_space<vmem>>, vector<32x16xbf16>
    %cst_5 = arith.constant dense<0.000000e+00> : vector<1024x16xf32>
    %22 = tpu.matmul %20, %21, %cst_5 {dimension_numbers = #tpu.dot_dimension_numbers<[1], [0], [0], [1], [0, 0, 1, 1], [], []>} : vector<1024x32xbf16>, vector<32x16xbf16>, vector<1024x16xf32> -> vector<1024x16xf32>
    %23 = vector.shape_cast %22 : vector<1024x16xf32> to vector<4x256x16xf32>
    %c0_6 = arith.constant 0 : index
    %c0_7 = arith.constant 0 : index
    %24 = vector.load %arg2[%c0_6, %c0_7] : memref<1x16xf32, #tpu.memory_space<vmem>>, vector<1x16xf32>
    %25 = vector.shape_cast %24 : vector<1x16xf32> to vector<1x1x16xf32>
    %26 = vector.broadcast %25 : vector<1x1x16xf32> to vector<4x256x16xf32>
    %27 = arith.addf %23, %26 : vector<4x256x16xf32>
    %cst_8 = arith.constant 0.000000e+00 : f32
    %28 = vector.broadcast %cst_8 : f32 to vector<4x256x16xf32>
    %29 = arith.maximumf %27, %28 : vector<4x256x16xf32>
    %30 = arith.truncf %29 : vector<4x256x16xf32> to vector<4x256x16xbf16>
    %c0_9 = arith.constant 0 : index
    %c0_10 = arith.constant 0 : index
    %31 = vector.load %arg3[%c0_9, %c0_10] : memref<256x16xf32, #tpu.memory_space<vmem>>, vector<256x16xf32>
    %32 = vector.shape_cast %31 : vector<256x16xf32> to vector<1x256x16xf32>
    %33 = vector.broadcast %32 : vector<1x256x16xf32> to vector<4x256x16xf32>
    %34 = arith.subf %33, %23 : vector<4x256x16xf32>
    %cst_11 = arith.constant 0.000000e+00 : f32
    %35 = vector.broadcast %cst_11 : f32 to vector<4x256x16xf32>
    %36 = arith.maximumf %34, %35 : vector<4x256x16xf32>
    %37 = arith.truncf %36 : vector<4x256x16xf32> to vector<4x256x16xbf16>
    %38 = vector.extract_strided_slice %30 {offsets = [0, 0, 0], sizes = [2, 256, 16], strides = [1, 1, 1]} : vector<4x256x16xbf16> to vector<2x256x16xbf16>
    %39 = vector.extract_strided_slice %37 {offsets = [0, 0, 0], sizes = [2, 256, 16], strides = [1, 1, 1]} : vector<4x256x16xbf16> to vector<2x256x16xbf16>
    %40 = vector.extract_strided_slice %37 {offsets = [2, 0, 0], sizes = [2, 256, 16], strides = [1, 1, 1]} : vector<4x256x16xbf16> to vector<2x256x16xbf16>
    %41 = vector.extract_strided_slice %30 {offsets = [2, 0, 0], sizes = [2, 256, 16], strides = [1, 1, 1]} : vector<4x256x16xbf16> to vector<2x256x16xbf16>
    %42 = tpu.concatenate %38, %39, %40, %41 in 2 : vector<2x256x16xbf16>, vector<2x256x16xbf16>, vector<2x256x16xbf16>, vector<2x256x16xbf16> -> vector<2x256x64xbf16>
    %43 = vector.shape_cast %42 : vector<2x256x64xbf16> to vector<2x16x16x64xbf16>
    %cst_12 = arith.constant 0.000000e+00 : bf16
    %44 = vector.broadcast %cst_12 : bf16 to vector<2x16x1x64xbf16>
    %cst_13 = arith.constant 0.000000e+00 : bf16
    %45 = vector.broadcast %cst_13 : bf16 to vector<2x1x18x64xbf16>
    %46 = tpu.concatenate %44, %43, %44 in 2 : vector<2x16x1x64xbf16>, vector<2x16x16x64xbf16>, vector<2x16x1x64xbf16> -> vector<2x16x18x64xbf16>
    %47 = tpu.concatenate %45, %46, %45 in 1 : vector<2x1x18x64xbf16>, vector<2x16x18x64xbf16>, vector<2x1x18x64xbf16> -> vector<2x18x18x64xbf16>
    %48 = vector.extract_strided_slice %47 {offsets = [0, 0, 0, 0], sizes = [2, 16, 16, 64], strides = [1, 1, 1, 1]} : vector<2x18x18x64xbf16> to vector<2x16x16x64xbf16>
    %49 = vector.shape_cast %48 : vector<2x16x16x64xbf16> to vector<512x64xbf16>
    %50 = vector.extract_strided_slice %47 {offsets = [0, 0, 1, 0], sizes = [2, 16, 16, 64], strides = [1, 1, 1, 1]} : vector<2x18x18x64xbf16> to vector<2x16x16x64xbf16>
    %51 = vector.shape_cast %50 : vector<2x16x16x64xbf16> to vector<512x64xbf16>
    %52 = vector.extract_strided_slice %47 {offsets = [0, 0, 2, 0], sizes = [2, 16, 16, 64], strides = [1, 1, 1, 1]} : vector<2x18x18x64xbf16> to vector<2x16x16x64xbf16>
    %53 = vector.shape_cast %52 : vector<2x16x16x64xbf16> to vector<512x64xbf16>
    %54 = vector.extract_strided_slice %47 {offsets = [0, 1, 0, 0], sizes = [2, 16, 16, 64], strides = [1, 1, 1, 1]} : vector<2x18x18x64xbf16> to vector<2x16x16x64xbf16>
    %55 = vector.shape_cast %54 : vector<2x16x16x64xbf16> to vector<512x64xbf16>
    %56 = vector.extract_strided_slice %47 {offsets = [0, 1, 1, 0], sizes = [2, 16, 16, 64], strides = [1, 1, 1, 1]} : vector<2x18x18x64xbf16> to vector<2x16x16x64xbf16>
    %57 = vector.shape_cast %56 : vector<2x16x16x64xbf16> to vector<512x64xbf16>
    %58 = vector.extract_strided_slice %47 {offsets = [0, 1, 2, 0], sizes = [2, 16, 16, 64], strides = [1, 1, 1, 1]} : vector<2x18x18x64xbf16> to vector<2x16x16x64xbf16>
    %59 = vector.shape_cast %58 : vector<2x16x16x64xbf16> to vector<512x64xbf16>
    %60 = vector.extract_strided_slice %47 {offsets = [0, 2, 0, 0], sizes = [2, 16, 16, 64], strides = [1, 1, 1, 1]} : vector<2x18x18x64xbf16> to vector<2x16x16x64xbf16>
    %61 = vector.shape_cast %60 : vector<2x16x16x64xbf16> to vector<512x64xbf16>
    %62 = vector.extract_strided_slice %47 {offsets = [0, 2, 1, 0], sizes = [2, 16, 16, 64], strides = [1, 1, 1, 1]} : vector<2x18x18x64xbf16> to vector<2x16x16x64xbf16>
    %63 = vector.shape_cast %62 : vector<2x16x16x64xbf16> to vector<512x64xbf16>
    %64 = vector.extract_strided_slice %47 {offsets = [0, 2, 2, 0], sizes = [2, 16, 16, 64], strides = [1, 1, 1, 1]} : vector<2x18x18x64xbf16> to vector<2x16x16x64xbf16>
    %65 = vector.shape_cast %64 : vector<2x16x16x64xbf16> to vector<512x64xbf16>
    %cst_14 = arith.constant 0.000000e+00 : bf16
    %66 = vector.broadcast %cst_14 : bf16 to vector<512x64xbf16>
    %67 = tpu.concatenate %49, %51, %53, %55, %57, %59, %61, %63, %65, %66 in 1 : vector<512x64xbf16>, vector<512x64xbf16>, vector<512x64xbf16>, vector<512x64xbf16>, vector<512x64xbf16>, vector<512x64xbf16>, vector<512x64xbf16>, vector<512x64xbf16>, vector<512x64xbf16>, vector<512x64xbf16> -> vector<512x640xbf16>
    %c0_15 = arith.constant 0 : index
    %c0_16 = arith.constant 0 : index
    %68 = vector.load %arg4[%c0_15, %c0_16] : memref<640x128xbf16, #tpu.memory_space<vmem>>, vector<640x128xbf16>
    %cst_17 = arith.constant dense<0.000000e+00> : vector<512x128xf32>
    %69 = tpu.matmul %67, %68, %cst_17 {dimension_numbers = #tpu.dot_dimension_numbers<[1], [0], [0], [1], [0, 0, 1, 1], [], []>} : vector<512x640xbf16>, vector<640x128xbf16>, vector<512x128xf32> -> vector<512x128xf32>
    %c0_18 = arith.constant 0 : index
    %c0_19 = arith.constant 0 : index
    %70 = vector.load %arg5[%c0_18, %c0_19] : memref<1x128xf32, #tpu.memory_space<vmem>>, vector<1x128xf32>
    %71 = vector.broadcast %70 : vector<1x128xf32> to vector<512x128xf32>
    %72 = arith.addf %69, %71 : vector<512x128xf32>
    %cst_20 = arith.constant 0.000000e+00 : f32
    %73 = vector.broadcast %cst_20 : f32 to vector<512x128xf32>
    %74 = arith.maximumf %72, %73 : vector<512x128xf32>
    %c0_21 = arith.constant 0 : index
    %c0_22 = arith.constant 0 : index
    %75 = vector.load %arg6[%c0_21, %c0_22] : memref<2x512xbf16, #tpu.memory_space<vmem>>, vector<2x512xbf16>
    %76 = arith.truncf %74 : vector<512x128xf32> to vector<512x128xbf16>
    %cst_23 = arith.constant dense<0.000000e+00> : vector<2x128xf32>
    %77 = tpu.matmul %75, %76, %cst_23 {dimension_numbers = #tpu.dot_dimension_numbers<[1], [0], [0], [1], [0, 0, 1, 1], [], []>} : vector<2x512xbf16>, vector<512x128xbf16>, vector<2x128xf32> -> vector<2x128xf32>
    %78 = arith.truncf %77 : vector<2x128xf32> to vector<2x128xbf16>
    %c0_24 = arith.constant 0 : index
    %c0_25 = arith.constant 0 : index
    %79 = vector.load %arg7[%c0_24, %c0_25] : memref<128x128xbf16, #tpu.memory_space<vmem>>, vector<128x128xbf16>
    %cst_26 = arith.constant dense<0.000000e+00> : vector<2x128xf32>
    %80 = tpu.matmul %78, %79, %cst_26 {dimension_numbers = #tpu.dot_dimension_numbers<[1], [0], [0], [1], [0, 0, 1, 1], [], []>} : vector<2x128xbf16>, vector<128x128xbf16>, vector<2x128xf32> -> vector<2x128xf32>
    %c0_27 = arith.constant 0 : index
    %c0_28 = arith.constant 0 : index
    %81 = vector.load %arg8[%c0_27, %c0_28] : memref<1x128xf32, #tpu.memory_space<vmem>>, vector<1x128xf32>
    %82 = vector.broadcast %81 : vector<1x128xf32> to vector<2x128xf32>
    %83 = arith.addf %80, %82 : vector<2x128xf32>
    %cst_29 = arith.constant 0.000000e+00 : f32
    %84 = vector.broadcast %cst_29 : f32 to vector<2x128xf32>
    %85 = arith.maximumf %83, %84 : vector<2x128xf32>
    %86 = arith.truncf %85 : vector<2x128xf32> to vector<2x128xbf16>
    %c0_30 = arith.constant 0 : index
    %c0_31 = arith.constant 0 : index
    %87 = vector.load %arg9[%c0_30, %c0_31] : memref<128x128xbf16, #tpu.memory_space<vmem>>, vector<128x128xbf16>
    %cst_32 = arith.constant dense<0.000000e+00> : vector<2x128xf32>
    %88 = tpu.matmul %86, %87, %cst_32 {dimension_numbers = #tpu.dot_dimension_numbers<[1], [0], [0], [1], [0, 0, 1, 1], [], []>} : vector<2x128xbf16>, vector<128x128xbf16>, vector<2x128xf32> -> vector<2x128xf32>
    %c0_33 = arith.constant 0 : index
    %c0_34 = arith.constant 0 : index
    %89 = vector.load %arg10[%c0_33, %c0_34] : memref<1x128xf32, #tpu.memory_space<vmem>>, vector<1x128xf32>
    %90 = vector.broadcast %89 : vector<1x128xf32> to vector<2x128xf32>
    %91 = arith.addf %88, %90 : vector<2x128xf32>
    %cst_35 = arith.constant 0.000000e+00 : f32
    %92 = vector.broadcast %cst_35 : f32 to vector<2x128xf32>
    %93 = arith.maximumf %91, %92 : vector<2x128xf32>
    %94 = arith.truncf %93 : vector<2x128xf32> to vector<2x128xbf16>
    %c0_36 = arith.constant 0 : index
    %c0_37 = arith.constant 0 : index
    %95 = vector.load %arg11[%c0_36, %c0_37] : memref<128x128xbf16, #tpu.memory_space<vmem>>, vector<128x128xbf16>
    %cst_38 = arith.constant dense<0.000000e+00> : vector<2x128xf32>
    %96 = tpu.matmul %94, %95, %cst_38 {dimension_numbers = #tpu.dot_dimension_numbers<[1], [0], [0], [1], [0, 0, 1, 1], [], []>} : vector<2x128xbf16>, vector<128x128xbf16>, vector<2x128xf32> -> vector<2x128xf32>
    %c0_39 = arith.constant 0 : index
    %c0_40 = arith.constant 0 : index
    %97 = vector.load %arg12[%c0_39, %c0_40] : memref<1x128xf32, #tpu.memory_space<vmem>>, vector<1x128xf32>
    %98 = vector.broadcast %97 : vector<1x128xf32> to vector<2x128xf32>
    %99 = arith.addf %96, %98 : vector<2x128xf32>
    %100 = arith.negf %99 : vector<2x128xf32>
    %101 = math.exp %100 : vector<2x128xf32>
    %cst_41 = arith.constant 1.000000e+00 : f32
    %102 = vector.broadcast %cst_41 : f32 to vector<2x128xf32>
    %103 = arith.addf %102, %101 : vector<2x128xf32>
    %104 = arith.divf %102, %103 : vector<2x128xf32>
    %c0_42 = arith.constant 0 : index
    %c0_43 = arith.constant 0 : index
    %105 = vector.load %arg13[%c0_42, %c0_43] : memref<2x128xf32, #tpu.memory_space<vmem>>, vector<2x128xf32>
    tpu.vector_store %arg13[%c0_42, %c0_43], %104 {strides = array<i32>} : memref<2x128xf32, #tpu.memory_space<vmem>>, vector<2x128xf32>,
    return
  }
}

</mosaic_0001>

<bundles_post_ra>
// kernel: net_forward.1
= control target key start
LH: loop header
LB: loop body
LE: loop exit
PB: predicated region body
PF: predicated region fallthrough
CT: control target
= control target key end

     0   :  { %vm1992_vm0 = vcmask 1042432   ;;  %vm1993_vm1 = vcmask 1046532   ;;  %vm261_vm2 = vsmask.f32 3328  ;;  %s12046_s18 = smov 9   ;;  %s12047_s27 = smov 6   ;;  %s20455_s0 = inlined_call_operand.vmem [shape: bf16[4,18,18,3], index: 0, kind: input, shape index: {}]   ;;  %s20456_s1 = inlined_call_operand.vmem [shape: bf16[32,16], index: 1, kind: input, shape index: {}]   ;;  %s20457_s2 = inlined_call_operand.vmem [shape: f32[1,16], index: 2, kind: input, shape index: {}]   ;;  %s20458_s3 = inlined_call_operand.vmem [shape: f32[256,16], index: 3, kind: input, shape index: {}]   ;;  %s20459_s4 = inlined_call_operand.vmem [shape: bf16[640,128], index: 4, kind: input, shape index: {}]   ;;  %s20460_s5 = inlined_call_operand.vmem [shape: f32[1,128], index: 5, kind: input, shape index: {}]   ;;  %s20461_s6 = inlined_call_operand.vmem [shape: bf16[2,512], index: 6, kind: input, shape index: {}]   ;;  %s20462_s7 = inlined_call_operand.vmem [shape: bf16[128,128], index: 7, kind: input, shape index: {}]   ;;  %s20463_s9 = inlined_call_operand.vmem [shape: bf16[128,128], index: 9, kind: input, shape index: {}]   ;;  %s20464_s11 = inlined_call_operand.vmem [shape: bf16[128,128], index: 11, kind: input, shape index: {}]   ;;  %s20465_s8 = inlined_call_operand.vmem [shape: f32[1,128], index: 8, kind: input, shape index: {}]   ;;  %s20466_s10 = inlined_call_operand.vmem [shape: f32[1,128], index: 10, kind: input, shape index: {}]   ;;  %s20467_s12 = inlined_call_operand.vmem [shape: f32[1,128], index: 12, kind: input, shape index: {}]   ;;  %s20468_s13 = inlined_call_operand.vmem [shape: f32[2,128], index: 13, kind: output, shape index: {}]  }
   0x1   :  { %v12135_v0 = vld [vmem:[%s20455_s0 + $0x18] sm:$0xf]  ;;  %v12140_v1 = vld [vmem:[%s20455_s0 + $0x1c] sm:$0xf]  ;;  %v48_v2 = vld [vmem:[%s20455_s0 + $0xc] sm:$0xf] }
   0x2   :  { %v326_v3 = vshrl.u32 %v12140_v1, 16  ;;  %v12148_v4 = vcombine.low %v12135_v0, %v12140_v1  ;;  %v313_v5 = vshrl.u32 %v12135_v0, 16  ;;  %v316_v6 = vshll.u32 %v12135_v0, 16  ;;  %v49_v7 = vld [vmem:[%s20455_s0 + $0x10] sm:$0xf]  ;;  %vm12174_vm3 = vmor %vm1992_vm0, %vm1993_vm1  ;;  %s12048_s17 = smov 3  }
   0x3   :  { %v298_v8 = vshll.u32 %v49_v7, 16  ;;  %v302_v9 = vshrl.u32 %v49_v7, 16  ;;  %v12155_v10 = vcombine.low %v48_v2, %v49_v7  ;;  %v289_v11 = vshrl.u32 %v48_v2, 16  ;;  %v12160_v12 = vld [vmem:[%s20455_s0] sm:$0xf]  ;;  %s12049_s19 = smov 12  }
   0x4   :  { %3561 = vrot.lane.b32.xlu1 %v12148_v4, %s12046_s18  ;;  %v292_v13 = vshll.u32 %v48_v2, 16  ;;  %v12167_v14 = vld [vmem:[%s20455_s0 + $0x4] sm:$0xf]  ;;  %v47_v15 = vld [vmem:[%s20455_s0 + $0x8] sm:$0x1]  ;;  %v10673_v17 = vrot.slane %v12160_v12, 9 }
   0x5   :  { %v304_v18 = vrot.slane %v302_v9, 4  ;;  %3559 = vrot.lane.b32.xlu0 %v12155_v10, %s12046_s18  ;;  %v291_v19 = vrot.slane %v289_v11, 4  ;;  %v1997_v20 = vrot.slane %v12167_v14, 5  ;;  %v2000_v21 = vrot.slane %v47_v15, 5  ;;  %v50_v22 = vld [vmem:[%s20455_s0 + $0x14] sm:$0x1] }
   0x6   :  { %v294_v23 = vrot.slane %v292_v13, 5  ;;  %v10674_v24 = vrot.slane %v48_v2, 9  ;;  %v2004_v25 = vrot.slane %v49_v7, 5  ;;  %v2007_v26 = vrot.slane %v50_v22, 5  ;;  %v53_v42 = vld [vmem:[%s20455_s0 + $0x20] sm:$0x1] }
   0x7   :  { %v1998_v27 = vsel %vm12174_vm3, %v10673_v17, %v1997_v20  ;;  %v1999_v28 = vrot.slane %v1997_v20, 4  ;;  %vm262_vm4 = vsmask.f32 7440  ;;  %v265_v29 = vshrl.u32 %v12160_v12, 16  ;;  %v12217_v7 = vld [vmem:[%s20455_s0 + $0x24] sm:$0xf] }
   0x8   :  { %v2005_v30 = vsel %vm12174_vm3, %v10674_v24, %v2004_v25  ;;  %v2006_v31 = vrot.slane %v2004_v25, 4  ;;  %v268_v32 = vshll.u32 %v12160_v12, 16  ;;  %v274_v33 = vshll.u32 %v12167_v14, 16  ;;  %vm12206_vm5 = vmor %vm261_vm2, %vm262_vm4  ;;  %v12230_v20 = vld [vmem:[%s20455_s0 + $0x28] sm:$0xf]  ;;  %s12050_s20 = smov 15  }
   0x9   :  { %v2001_v34 = vsel %vm12174_vm3, %v1999_v28, %v2000_v21  ;;  %v267_v35 = vrot.slane %v265_v29, 4  ;;  %v278_v36 = vshrl.u32 %v12167_v14, 16  ;;  %v284_v37 = vshll.u32 %v47_v15, 16  ;;  %v12239_v24 = vld [vmem:[%s20455_s0 + $0x2c] sm:$0x1]  ;;  %s12051_s28 = smov 18  }
   0xa   :  { %v10873_v38 = vcombine.low %v1998_v27, %v2001_v34  ;;  %v2008_v39 = vsel %vm12174_vm3, %v2006_v31, %v2007_v26  ;;  %v270_v40 = vrot.slane %v268_v32, 5  ;;  %v276_v41 = vrot.slane %v274_v33, 5  ;;  %s12052_s14 = smov 21   ;;  %s12053_s24 = smov 24   ;;  %v11871_v16 = vld [vmem:[%s20459_s4 + $0x110] sm:$0xff]  }
   0xb   :  { %v12200_v43 = vcombine.low %v2005_v30, %v2008_v39  ;;  %v280_v44 = vrot.slane %v278_v36, 4  ;;  %v286_v45 = vrot.slane %v284_v37, 5  ;;  %v315_v46 = vrot.slane %v313_v5, 4  ;;  %s12056_s25 = smov 16   ;;  %s12057_s29 = smov 48  }
   0xc   :  { %3419 = vrot.lane.b32.xlu1 %v10873_v38, %s12047_s27  ;;  %v271_v47 = vor.u32 %v270_v40, %v267_v35  ;;  %v318_v48 = vrot.slane %v316_v6, 5  ;;  %v322_v49 = vshll.u32 %v12140_v1, 16  ;;  %v328_v50 = vrot.slane %v326_v3, 4 }
   0xd   :  { %v281_v52 = vor.u32 %v280_v44, %v276_v41  ;;  %v332_v53 = vshll.u32 %v53_v42, 16  ;;  %v295_v54 = vor.u32 %v294_v23, %v291_v19  ;;  %v300_v55 = vrot.slane %v298_v8, 5  ;;  %v12264_v44 = vld [vmem:[%s20455_s0 + $0x30] sm:$0xf] }
   0xe   :  { %v272_v56 = vrot.slane %v271_v47, 4  ;;  %v319_v57 = vor.u32 %v318_v48, %v315_v46  ;;  %v324_v58 = vrot.slane %v322_v49, 5  ;;  %v308_v59 = vshll.u32 %v50_v22, 16  ;;  %v12275_v48 = vld [vmem:[%s20455_s0 + $0x34] sm:$0xf] }
   0xf   :  { %v282_v60 = vrot.slane %v281_v52, 4  ;;  %v334_v61 = vrot.slane %v332_v53, 5  ;;  %v296_v62 = vrot.slane %v295_v54, 4  ;;  %v305_v63 = vor.u32 %v304_v18, %v300_v55 }
  0x10   :  { %3421 = vrot.lane.b32.xlu1 %v12200_v43, %s12047_s27  ;;  %v277_v2 = vsel %vm12206_vm5, %v272_v56, %v276_v41  ;;  %v320_v3 = vrot.slane %v319_v57, 4  ;;  %v329_v5 = vor.u32 %v328_v50, %v324_v58  ;;  %v310_v6 = vrot.slane %v308_v59, 5 }
  0x11   :  { %v287_v8 = vsel %vm12206_vm5, %v282_v60, %v286_v45  ;;  %v301_v9 = vsel %vm12206_vm5, %v296_v62, %v300_v55  ;;  %v306_v11 = vrot.slane %v305_v63, 4  ;;  %v10675_v13 = vrot.slane %v12135_v0, 9  ;;  %v11806_v45 = vld [vmem:[%s20456_s1] sm:$0xff]   ;;  %v11808_v55 = vld [vmem:[%s20456_s1 + $0x8] sm:$0xff]  }
  0x12   :  { %v10809_v15 = vcombine.low %v277_v2, %v287_v8  ;;  %v325_v17 = vsel %vm12206_vm5, %v320_v3, %v324_v58  ;;  %v330_v18 = vrot.slane %v329_v5, 4  ;;  %v2011_v19 = vrot.slane %v12140_v1, 5  ;;  %11315 = vmatprep.subr.bf16.mxu0 %v11806_v45 }
  0x13   :  { %v311_v21 = vsel %vm12206_vm5, %v306_v11, %v310_v6  ;;  %v2014_v22 = vrot.slane %v53_v42, 5  ;;  %v337_v23 = vshrl.u32 %v12217_v7, 16  ;;  %v340_v0 = vshll.u32 %v12217_v7, 16  ;;  %11316 = vmatpush3.bf16.msra.mxu0 %v11806_v45  ;;  %v12316_v11 = vld [vmem:[%s20455_s0 + $0x40] sm:$0xf] }
  0x14   :  { %3099 = vrot.lane.b32.xlu0 %v10809_v15, %s12048_s17  ;;  %v335_v1 = vsel %vm12206_vm5, %v330_v18, %v334_v61  ;;  %v10810_v25 = vcombine.low %v301_v9, %v311_v21  ;;  %v2012_v26 = vsel %vm12174_vm3, %v10675_v13, %v2011_v19  ;;  %v2013_v27 = vrot.slane %v2011_v19, 4  ;;  %11317 = vmatprep.subr.bf16.mxu0 %v11808_v55  ;;  %v12311_v9 = vld [vmem:[%s20455_s0 + $0x3c] sm:$0xf] }
  0x15   :  { %v10811_v28 = vcombine.low %v325_v17, %v335_v1  ;;  %v350_v29 = vshrl.u32 %v12230_v20, 16  ;;  %v339_v30 = vrot.slane %v337_v23, 4  ;;  %v342_v32 = vrot.slane %v340_v0, 5 }
  0x16   :  { %v2015_v31 = vsel %vm12174_vm3, %v2013_v27, %v2014_v22  ;;  %v346_v33 = vshll.u32 %v12230_v20, 16  ;;  %v356_v34 = vshll.u32 %v12239_v24, 16  ;;  %v12259_v42 = vcombine.low %v12217_v7, %v12230_v20 }
  0x17   :  { %3701 = vrot.lane.b32.xlu1 %v10811_v28, %s12049_s19  ;;  %v12252_v35 = vcombine.low %v2012_v26, %v2015_v31  ;;  %v352_v36 = vrot.slane %v350_v29, 4  ;;  %v343_v37 = vor.u32 %v342_v32, %v339_v30  ;;  %v2018_v52 = vrot.slane %v12230_v20, 5  ;;  %11318 = vmatpush3.bf16.msra.mxu0 %v11808_v55  ;;  %v62_v32 = vld [vmem:[%s20455_s0 + $0x44] sm:$0x1] }
  0x18   :  { %3101 = vrot.lane.b32.xlu0 %v10810_v25, %s12048_s17  ;;  %v348_v38 = vrot.slane %v346_v33, 5  ;;  %v358_v41 = vrot.slane %v356_v34, 5  ;;  %v361_v53 = vshrl.u32 %v12264_v44, 16  ;;  %v364_v54 = vshll.u32 %v12264_v44, 16 }
  0x19   :  { %v344_v39 = vrot.slane %v343_v37, 4  ;;  %v374_v56 = vshrl.u32 %v12275_v48, 16  ;;  %v370_v57 = vshll.u32 %v12275_v48, 16  ;;  %v10676_v58 = vrot.slane %v12217_v7, 9 }
  0x1a   :  { %v353_v40 = vor.u32 %v352_v36, %v348_v38  ;;  %v2020_v59 = vrot.slane %v2018_v52, 4  ;;  %v2021_v60 = vrot.slane %v12239_v24, 5  ;;  %v363_v61 = vrot.slane %v361_v53, 4 }
  0x1b   :  { %3841 = vrot.lane.b32.xlu1 %v12252_v35, %s12050_s20  ;;  %v349_v46 = vsel %vm12206_vm5, %v344_v39, %v348_v38  ;;  %v366_v62 = vrot.slane %v364_v54, 5  ;;  %v372_v63 = vrot.slane %v370_v57, 5  ;;  %v376_v2 = vrot.slane %v374_v56, 4 }
  0x1c   :  { %3699 = vrot.lane.b32.xlu0 %v10810_v25, %s12049_s19  ;;  %v354_v47 = vrot.slane %v353_v40, 4  ;;  %v2019_v3 = vsel %vm12174_vm3, %v10676_v58, %v2018_v52  ;;  %v2022_v5 = vsel %vm12174_vm3, %v2020_v59, %v2021_v60  ;;  %v2025_v18 = vrot.slane %v12275_v48, 5 }
  0x1d   :  { %v367_v6 = vor.u32 %v366_v62, %v363_v61  ;;  %v377_v8 = vor.u32 %v376_v2, %v372_v63  ;;  %v10876_v13 = vcombine.low %v2019_v3, %v2022_v5  ;;  %v385_v19 = vshrl.u32 %v12311_v9, 16 }
  0x1e   :  { %v359_v49 = vsel %vm12206_vm5, %v354_v47, %v358_v41  ;;  %v388_v21 = vshll.u32 %v12311_v9, 16  ;;  %v398_v22 = vshrl.u32 %v12316_v11, 16  ;;  %v394_v23 = vshll.u32 %v12316_v11, 16 }
  0x1f   :  { %3981 = vrot.lane.b32.xlu1 %v12259_v42, %s12051_s28  ;;  %v12281_v50 = vcombine.low %v349_v46, %v359_v49  ;;  %v368_v15 = vrot.slane %v367_v6, 4  ;;  %v378_v20 = vrot.slane %v377_v8, 4  ;;  %v12329_v0 = vcombine.low %v12264_v44, %v12275_v48  ;;  %v63_v48 = vld [vmem:[%s20455_s0 + $0x48] sm:$0xf]  ;;  %v64_v49 = vld [vmem:[%s20455_s0 + $0x4c] sm:$0xf] }
  0x20   :  { %3839 = vrot.lane.b32.xlu0 %v12200_v43, %s12050_s20  ;;  %v59_v43 = vld [vmem:[%s20455_s0 + $0x38] sm:$0x1]  ;;  %v10677_v24 = vrot.slane %v12264_v44, 9  ;;  %v2027_v25 = vrot.slane %v2025_v18, 4  ;;  %v387_v27 = vrot.slane %v385_v19, 4  ;;  %v390_v29 = vrot.slane %v388_v21, 5 }
  0x21   :  { %v380_v7 = vshll.u32 %v59_v43, 16  ;;  %v373_v1 = vsel %vm12206_vm5, %v368_v15, %v372_v63  ;;  %v2028_v26 = vrot.slane %v59_v43, 5  ;;  %v396_v30 = vrot.slane %v394_v23, 5  ;;  %v65_v43 = vld [vmem:[%s20455_s0 + $0x50] sm:$0x1] }
  0x22   :  { %v400_v31 = vrot.slane %v398_v22, 4  ;;  %v2026_v34 = vsel %vm12174_vm3, %v10677_v24, %v2025_v18  ;;  %v391_v37 = vor.u32 %v390_v29, %v387_v27  ;;  %v404_v39 = vshll.u32 %v62_v32, 16 }
  0x23   :  { %4121 = vrot.lane.b32.xlu1 %v12281_v50, %s12052_s14  ;;  %v382_v17 = vrot.slane %v380_v7, 5  ;;  %v2029_v36 = vsel %vm12174_vm3, %v2027_v25, %v2028_v26  ;;  %v10745_v52 = vcombine.low %v12160_v12, %v12167_v14  ;;  %v2032_v53 = vrot.slane %v12316_v11, 5 }
  0x24   :  { %3979 = vrot.lane.b32.xlu0 %v12148_v4, %s12051_s28  ;;  %v401_v38 = vor.u32 %v400_v31, %v396_v30  ;;  %v12350_v40 = vcombine.low %v2026_v34, %v2029_v36  ;;  %v392_v41 = vrot.slane %v391_v37, 4  ;;  %v406_v45 = vrot.slane %v404_v39, 5 }
  0x25   :  { %v409_v54 = vshrl.u32 %v63_v48, 16  ;;  %v412_v55 = vshll.u32 %v63_v48, 16  ;;  %v422_v56 = vshrl.u32 %v64_v49, 16  ;;  %v418_v57 = vshll.u32 %v64_v49, 16 }
  0x26   :  { %v402_v44 = vrot.slane %v401_v38, 4  ;;  %v397_v46 = vsel %vm12206_vm5, %v392_v41, %v396_v30  ;;  %v10678_v58 = vrot.slane %v12311_v9, 9  ;;  %v2034_v59 = vrot.slane %v2032_v53, 4 }
  0x27   :  { %3103 = vrot.lane.b32.xlu1 %v10811_v28, %s12048_s17  ;;  %v2035_v60 = vrot.slane %v62_v32, 5  ;;  %v411_v61 = vrot.slane %v409_v54, 4  ;;  %v414_v62 = vrot.slane %v412_v55, 5  ;;  %v420_v63 = vrot.slane %v418_v57, 5  ;;  %v70_v54 = vld [vmem:[%s20455_s0 + $0x64] sm:$0xf] }
  0x28   :  { %4119 = vrot.lane.b32.xlu0 %v10811_v28, %s12052_s14  ;;  %v383_v28 = vsel %vm12206_vm5, %v378_v20, %v382_v17  ;;  %v407_v47 = vsel %vm12206_vm5, %v402_v44, %v406_v45  ;;  %v424_v2 = vrot.slane %v422_v56, 4  ;;  %v2033_v3 = vsel %vm12174_vm3, %v10678_v58, %v2032_v53  ;;  %v69_v53 = vld [vmem:[%s20455_s0 + $0x60] sm:$0xf] }
  0x29   :  { %v10813_v33 = vcombine.low %v373_v1, %v383_v28  ;;  %v2036_v5 = vsel %vm12174_vm3, %v2034_v59, %v2035_v60  ;;  %v415_v6 = vor.u32 %v414_v62, %v411_v61  ;;  %v428_v7 = vshll.u32 %v65_v43, 16 }
  0x2a   :  { %v425_v8 = vor.u32 %v424_v2, %v420_v63  ;;  %v2039_v18 = vrot.slane %v64_v49, 5  ;;  %v12412_v24 = vcombine.low %v63_v48, %v64_v49  ;;  %v10679_v1 = vrot.slane %v63_v48, 9 }
  0x2b   :  { %3105 = vrot.lane.b32.xlu1 %v12281_v50, %s12048_s17  ;;  %v416_v15 = vrot.slane %v415_v6, 4  ;;  %v430_v17 = vrot.slane %v428_v7, 5  ;;  %v2042_v27 = vrot.slane %v65_v43, 5  ;;  %v457_v56 = vshrl.u32 %v69_v53, 16  ;;  %v71_v43 = vld [vmem:[%s20455_s0 + $0x68] sm:$0x1] }
  0x2c   :  { %4259 = vrot.lane.b32.xlu0 %v12252_v35, %s12053_s24  ;;  %v426_v20 = vrot.slane %v425_v8, 4  ;;  %v2041_v26 = vrot.slane %v2039_v18, 4  ;;  %v2040_v36 = vsel %vm12174_vm3, %v10679_v1, %v2039_v18  ;;  %v460_v57 = vshll.u32 %v69_v53, 16 }
  0x2d   :  { %v421_v25 = vsel %vm12206_vm5, %v416_v15, %v420_v63  ;;  %v470_v58 = vshrl.u32 %v70_v54, 16  ;;  %v466_v59 = vshll.u32 %v70_v54, 16  ;;  %v459_v63 = vrot.slane %v457_v56, 4  ;;  %v12482_v15 = vld [vmem:[%s20455_s0 + $0x70] sm:$0xf] }
  0x2e   :  { %v431_v29 = vsel %vm12206_vm5, %v426_v20, %v430_v17  ;;  %v2043_v37 = vsel %vm12174_vm3, %v2041_v26, %v2042_v27  ;;  %v462_v2 = vrot.slane %v460_v57, 5  ;;  %v476_v8 = vshll.u32 %v71_v43, 16 }
  0x2f   :  { %3425 = vrot.lane.b32.xlu1 %v10876_v13, %s12047_s27  ;;  %v10815_v34 = vcombine.low %v421_v25, %v431_v29  ;;  %v12432_v44 = vcombine.low %v2040_v36, %v2043_v37  ;;  %v494_v1 = vshrl.u32 %v12482_v15, 16  ;;  %v490_v25 = vshll.u32 %v12482_v15, 16  ;;  %v74_v37 = vld [vmem:[%s20455_s0 + $0x74] sm:$0x1] }
  0x30   :  { %4261 = vrot.lane.b32.xlu0 %v10876_v13, %s12053_s24  ;;  %v478_v18 = vrot.slane %v476_v8, 5  ;;  %v12492_v26 = vcombine.low %v69_v53, %v70_v54  ;;  %v10681_v27 = vrot.slane %v69_v53, 9  ;;  %v2056_v29 = vrot.slane %v71_v43, 5 }
  0x31   :  { %v496_v36 = vrot.slane %v494_v1, 4  ;;  %v2063_v8 = vrot.slane %v74_v37, 5  ;;  %v12573_v1 = vld [vmem:[%s20455_s0 + $0x84] sm:$0xf]  ;;  %vm4387_vm6 = vcmask 23552   ;;  %vm4580_vm7 = vcmask 48128  }
  0x32   :  { %vm4709_vm8 = vcmask 72704   ;;  %vm4838_vm9 = vcmask 97280   ;;  %vm4967_vm10 = vcmask 121856   ;;  %vm5096_vm11 = vcmask 146432  }
  0x33   :  { %3565 = vrot.lane.b32.xlu1 %v12329_v0, %s12046_s18  ;;  %vm5354_vm12 = vcmask 195584   ;;  %vm5225_vm13 = vcmask 171008   ;;  %vm5483_vm14 = vcmask 220160   ;;  %vm5565_vm15 = vcmask 261120  }
  0x34   :  { %3423 = vrot.lane.b32.xlu0 %v12252_v35, %s12047_s27  ;;  %v12358_v35 = vcombine.low %v12311_v9, %v12316_v11  ;;  %v12397_v9 = vld [vmem:[%s20455_s0 + $0x54] sm:$0xf]  ;;  %v12402_v11 = vld [vmem:[%s20455_s0 + $0x58] sm:$0xf]  ;;  %vm7206_vm0 = vcmask 130048   ;;  %vm7367_vm1 = vcmask 392192  }
  0x35   :  { %v433_v19 = vshrl.u32 %v12397_v9, 16  ;;  %v436_v21 = vshll.u32 %v12397_v9, 16  ;;  %v446_v22 = vshrl.u32 %v12402_v11, 16  ;;  %v442_v23 = vshll.u32 %v12402_v11, 16 }
  0x36   :  { %v10680_v60 = vrot.slane %v12397_v9, 9  ;;  %vm7688_vm2 = vcmask 1040384  }
  0x37   :  { %3705 = vrot.lane.b32.xlu1 %v10813_v33, %s12049_s19  ;;  %v435_v28 = vrot.slane %v433_v19, 4  ;;  %v438_v30 = vrot.slane %v436_v21, 5  ;;  %v444_v31 = vrot.slane %v442_v23, 5  ;;  %v448_v32 = vrot.slane %v446_v22, 4 }
  0x38   :  { %3563 = vrot.lane.b32.xlu0 %v12259_v42, %s12046_s18  ;;  %v2053_v19 = vrot.slane %v70_v54, 5 }
  0x39   :  { %v439_v38 = vor.u32 %v438_v30, %v435_v28  ;;  %v449_v39 = vor.u32 %v448_v32, %v444_v31 }
  0x3a   :  { %v2055_v28 = vrot.slane %v2053_v19, 4 }
  0x3b   :  { %3845 = vrot.lane.b32.xlu1 %v12350_v40, %s12050_s20  ;;  %v440_v45 = vrot.slane %v439_v38, 4 }
  0x3c   :  { %3703 = vrot.lane.b32.xlu0 %v12281_v50, %s12049_s19  ;;  %v12376_v50 = vcombine.low %v397_v46, %v407_v47  ;;  %v450_v46 = vrot.slane %v449_v39, 4  ;;  %v2054_v39 = vsel %vm12174_vm3, %v10681_v27, %v2053_v19  ;;  %v12580_v27 = vld [vmem:[%s20455_s0 + $0x88] sm:$0xf] }
  0x3d   :  { %v445_v48 = vsel %vm12206_vm5, %v440_v45, %v444_v31 }
  0x3f   :  { %3985 = vrot.lane.b32.xlu1 %v12358_v35, %s12051_s28 }
  0x40   :  { %3843 = vrot.lane.b32.xlu0 %v10876_v13, %s12050_s20  ;;  %v10878_v13 = vcombine.low %v2033_v3, %v2036_v5  ;;  %v468_v3 = vrot.slane %v466_v59, 5  ;;  %v472_v5 = vrot.slane %v470_v58, 4  ;;  %v12533_v58 = vld [vmem:[%s20455_s0 + $0x78] sm:$0xf]  ;;  %v12538_v59 = vld [vmem:[%s20455_s0 + $0x7c] sm:$0xf] }
  0x41   :  { %v508_v43 = vshll.u32 %v12533_v58, 16 }
  0x43   :  { %4125 = vrot.lane.b32.xlu1 %v12376_v50, %s12052_s14 }
  0x44   :  { %3983 = vrot.lane.b32.xlu0 %v12329_v0, %s12051_s28 }
  0x47   :  { %3107 = vrot.lane.b32.xlu1 %v10813_v33, %s12048_s17 }
  0x48   :  { %4123 = vrot.lane.b32.xlu0 %v10813_v33, %s12052_s14  ;;  %v68_v33 = vld [vmem:[%s20455_s0 + $0x5c] sm:$0x1] }
  0x49   :  { %v452_v41 = vshll.u32 %v68_v33, 16  ;;  %v2049_v62 = vrot.slane %v68_v33, 5 }
  0x4b   :  { %3109 = vrot.lane.b32.xlu1 %v12376_v50, %s12048_s17  ;;  %v454_v47 = vrot.slane %v452_v41, 5  ;;  %v2057_v41 = vsel %vm12174_vm3, %v2055_v28, %v2056_v29 }
  0x4c   :  { %4263 = vrot.lane.b32.xlu0 %v12350_v40, %s12053_s24 }
  0x4d   :  { %v455_v49 = vsel %vm12206_vm5, %v450_v46, %v454_v47  ;;  %v500_v47 = vshll.u32 %v74_v37, 16  ;;  %v542_v37 = vshrl.u32 %v12580_v27, 16 }
  0x4e   :  { %v12456_v55 = vcombine.low %v445_v48, %v455_v49  ;;  %v12512_v48 = vcombine.low %v2054_v39, %v2057_v41 }
  0x4f   :  { %3429 = vrot.lane.b32.xlu1 %v10878_v13, %s12047_s27 }
  0x50   :  { %4265 = vrot.lane.b32.xlu0 %v10878_v13, %s12053_s24 }
  0x53   :  { %3569 = vrot.lane.b32.xlu1 %v12412_v24, %s12046_s18 }
  0x54   :  { %3427 = vrot.lane.b32.xlu0 %v12350_v40, %s12047_s27  ;;  %v12440_v40 = vcombine.low %v12397_v9, %v12402_v11  ;;  %v463_v9 = vor.u32 %v462_v2, %v459_v63  ;;  %v518_v2 = vshrl.u32 %v12538_v59, 16 }
  0x56   :  { %v464_v22 = vrot.slane %v463_v9, 4 }
  0x57   :  { %3709 = vrot.lane.b32.xlu1 %v10815_v34, %s12049_s19 }
  0x58   :  { %3567 = vrot.lane.b32.xlu0 %v12358_v35, %s12046_s18  ;;  %v469_v32 = vsel %vm12206_vm5, %v464_v22, %v468_v3 }
  0x5b   :  { %3849 = vrot.lane.b32.xlu1 %v12432_v44, %s12050_s20 }
  0x5c   :  { %3707 = vrot.lane.b32.xlu0 %v12376_v50, %s12049_s19  ;;  %v2046_v50 = vrot.slane %v12402_v11, 5  ;;  %v473_v11 = vor.u32 %v472_v5, %v468_v3  ;;  %v514_v3 = vshll.u32 %v12538_v59, 16 }
  0x5e   :  { %v2048_v61 = vrot.slane %v2046_v50, 4  ;;  %v2047_v6 = vsel %vm12174_vm3, %v10680_v60, %v2046_v50  ;;  %v474_v23 = vrot.slane %v473_v11, 4  ;;  %v502_v50 = vrot.slane %v500_v47, 5 }
  0x5f   :  { %3989 = vrot.lane.b32.xlu1 %v12440_v40, %s12051_s28  ;;  %v510_v11 = vrot.slane %v508_v43, 5 }
  0x60   :  { %3847 = vrot.lane.b32.xlu0 %v10878_v13, %s12050_s20  ;;  %v2050_v7 = vsel %vm12174_vm3, %v2048_v61, %v2049_v62  ;;  %v12477_v13 = vld [vmem:[%s20455_s0 + $0x6c] sm:$0xf]  ;;  %v479_v33 = vsel %vm12206_vm5, %v474_v23, %v478_v18  ;;  %v2060_v61 = vrot.slane %v12482_v15, 5  ;;  %v505_v62 = vshrl.u32 %v12533_v58, 16 }
  0x61   :  { %v10880_v17 = vcombine.low %v2047_v6, %v2050_v7  ;;  %v481_v20 = vshrl.u32 %v12477_v13, 16  ;;  %v484_v21 = vshll.u32 %v12477_v13, 16  ;;  %v10817_v38 = vcombine.low %v469_v32, %v479_v33 }
  0x62   :  { %v10682_v5 = vrot.slane %v12477_v13, 9  ;;  %v2062_v7 = vrot.slane %v2060_v61, 4  ;;  %v507_v9 = vrot.slane %v505_v62, 4  ;;  %v520_v18 = vrot.slane %v518_v2, 4 }
  0x63   :  { %4129 = vrot.lane.b32.xlu1 %v12456_v55, %s12052_s14  ;;  %v483_v30 = vrot.slane %v481_v20, 4  ;;  %v486_v31 = vrot.slane %v484_v21, 5  ;;  %v2067_v32 = vrot.slane %v12538_v59, 5  ;;  %v529_v33 = vshrl.u32 %v12573_v1, 16 }
  0x64   :  { %3987 = vrot.lane.b32.xlu0 %v12412_v24, %s12051_s28  ;;  %v2064_v20 = vsel %vm12174_vm3, %v2062_v7, %v2063_v8  ;;  %v511_v21 = vor.u32 %v510_v11, %v507_v9 }
  0x65   :  { %v487_v45 = vor.u32 %v486_v31, %v483_v30 }
  0x66   :  { %v512_v30 = vrot.slane %v511_v21, 4 }
  0x67   :  { %3111 = vrot.lane.b32.xlu1 %v10815_v34, %s12048_s17  ;;  %v488_v53 = vrot.slane %v487_v45, 4  ;;  %v12597_v45 = vcombine.low %v12533_v58, %v12538_v59 }
  0x68   :  { %4127 = vrot.lane.b32.xlu0 %v10815_v34, %s12052_s14  ;;  %v492_v34 = vrot.slane %v490_v25, 5 }
  0x6a   :  { %v497_v46 = vor.u32 %v496_v36, %v492_v34  ;;  %v493_v56 = vsel %vm12206_vm5, %v488_v53, %v492_v34  ;;  %v532_v36 = vshll.u32 %v12573_v1, 16  ;;  %v2069_v53 = vrot.slane %v2067_v32, 4 }
  0x6b   :  { %3113 = vrot.lane.b32.xlu1 %v12456_v55, %s12048_s17 }
  0x6c   :  { %4267 = vrot.lane.b32.xlu0 %v12432_v44, %s12053_s24  ;;  %v498_v54 = vrot.slane %v497_v46, 4  ;;  %v10683_v46 = vrot.slane %v12533_v58, 9  ;;  %v534_v58 = vrot.slane %v532_v36, 5  ;;  %v2074_v36 = vrot.slane %v12580_v27, 5 }
  0x6e   :  { %v503_v57 = vsel %vm12206_vm5, %v498_v54, %v502_v50  ;;  %v531_v50 = vrot.slane %v529_v33, 4 }
  0x6f   :  { %3433 = vrot.lane.b32.xlu1 %v10880_v17, %s12047_s27 }
  0x70   :  { %4269 = vrot.lane.b32.xlu0 %v10880_v17, %s12053_s24  ;;  %v535_v11 = vor.u32 %v534_v58, %v531_v50 }
  0x73   :  { %3573 = vrot.lane.b32.xlu1 %v12492_v26, %s12046_s18 }
  0x74   :  { %3431 = vrot.lane.b32.xlu0 %v12432_v44, %s12047_s27  ;;  %v12522_v44 = vcombine.low %v12477_v13, %v12482_v15  ;;  %v77_v15 = vld [vmem:[%s20455_s0 + $0x80] sm:$0x1]  ;;  %v2061_v13 = vsel %vm12174_vm3, %v10682_v5, %v2060_v61  ;;  %v544_v61 = vrot.slane %v542_v37, 4 }
  0x75   :  { %v524_v22 = vshll.u32 %v77_v15, 16  ;;  %v12582_v29 = vcombine.low %v2061_v13, %v2064_v20  ;;  %v2070_v54 = vrot.slane %v77_v15, 5 }
  0x76   :  { %v12516_v49 = vpop.permute.xlu1 %3561 }
  0x77   :  { %3713 = vrot.lane.b32.xlu1 %v10817_v38, %s12049_s19  ;;  %v12550_v63 = vpop.permute.xlu0 %3559  ;;  %v526_v31 = vrot.slane %v524_v22, 5  ;;  %v2071_v5 = vsel %vm12174_vm3, %v2069_v53, %v2070_v54  ;;  %v12651_v22 = vcombine.low %v12573_v1, %v12580_v27 }
  0x78   :  { %3571 = vrot.lane.b32.xlu0 %v12440_v40, %s12046_s18 }
  0x7b   :  { %3853 = vrot.lane.b32.xlu1 %v12512_v48, %s12050_s20 }
  0x7c   :  { %3711 = vrot.lane.b32.xlu0 %v12456_v55, %s12049_s19  ;;  %v12544_v55 = vcombine.low %v493_v56, %v503_v57  ;;  %v12611_v57 = vld [vmem:[%s20455_s0 + $0x8c] sm:$0x1] }
  0x7d   :  { %v548_v7 = vshll.u32 %v12611_v57, 16 }
  0x7e   :  { %v12540_v60 = vpop.permute.xlu1 %3419 }
  0x7f   :  { %3993 = vrot.lane.b32.xlu1 %v12522_v44, %s12051_s28 }
  0x80   :  { %3851 = vrot.lane.b32.xlu0 %v10880_v17, %s12050_s20  ;;  %v516_v17 = vrot.slane %v514_v3, 5  ;;  %v2068_v3 = vsel %vm12174_vm3, %v10683_v46, %v2067_v32 }
  0x81   :  { %v12636_v12 = vcombine.low %v2068_v3, %v2071_v5  ;;  %v83_v5 = vld [vmem:[%s20455_s0 + $0x98] sm:$0x1] }
  0x82   :  { %v12557_v6 = vpop.permute.xlu1 %3421  ;;  %v521_v23 = vor.u32 %v520_v18, %v516_v17  ;;  %v517_v47 = vsel %vm12206_vm5, %v512_v30, %v516_v17 }
  0x83   :  { %4133 = vrot.lane.b32.xlu1 %v12544_v55, %s12052_s14 }
  0x84   :  { %3991 = vrot.lane.b32.xlu0 %v12492_v26, %s12051_s28  ;;  %v522_v34 = vrot.slane %v521_v23, 4 }
  0x86   :  { %v3100_v19 = vpop.permute.xlu0 %3099  ;;  %v527_v56 = vsel %vm12206_vm5, %v522_v34, %v526_v31 }
  0x87   :  { %3115 = vrot.lane.b32.xlu1 %v10817_v38, %s12048_s17  ;;  %v12615_v2 = vcombine.low %v517_v47, %v527_v56  ;;  %v4390_v8 = vsel %vm4387_vm6, %v10745_v52, %v3100_v19  ;;  %v550_v52 = vrot.slane %v548_v7, 5 }
  0x88   :  { %4131 = vrot.lane.b32.xlu0 %v10817_v38, %s12052_s14  ;;  %v538_v38 = vshll.u32 %v12580_v27, 16  ;;  %v4582_v13 = vsel %vm4580_vm7, %v4390_v8, %v12540_v60 }
  0x89   :  { %v12575_v25 = vpop.permute.xlu1 %3701 }
  0x8a   :  { %v3102_v28 = vpop.permute.xlu0 %3101  ;;  %v540_v59 = vrot.slane %v538_v38, 5 }
  0x8b   :  { %3117 = vrot.lane.b32.xlu1 %v12544_v55, %s12048_s17  ;;  %v4393_v9 = vsel %vm4387_vm6, %v12155_v10, %v3102_v28  ;;  %v536_v10 = vrot.slane %v535_v11, 4  ;;  %v12663_v28 = vld [vmem:[%s20455_s0 + $0x90] sm:$0xf] }
  0x8c   :  { %4271 = vrot.lane.b32.xlu0 %v12512_v48, %s12053_s24  ;;  %v545_v15 = vor.u32 %v544_v61, %v540_v59  ;;  %v4584_v20 = vsel %vm4580_vm7, %v4393_v9, %v12557_v6  ;;  %v4711_v6 = vsel %vm4709_vm8, %v4582_v13, %v12550_v63  ;;  %v553_v38 = vshrl.u32 %v12663_v28, 16  ;;  %v12721_v13 = vld [vmem:[%s20455_s0 + $0x9c] sm:$0xf] }
  0x8d   :  { %v12593_v39 = vpop.permute.xlu1 %3841  ;;  %v4713_v60 = vsel %vm4709_vm8, %v4584_v20, %v12516_v49  ;;  %v541_v49 = vsel %vm12206_vm5, %v536_v10, %v540_v59  ;;  %v2077_v59 = vrot.slane %v12611_v57, 5  ;;  %v2076_v61 = vrot.slane %v2074_v36, 4  ;;  %v12728_v10 = vld [vmem:[%s20455_s0 + $0xa0] sm:$0xf] }
  0x8e   :  { %v3700_v41 = vpop.permute.xlu0 %3699  ;;  %v546_v14 = vrot.slane %v545_v15, 4  ;;  %v4842_v30 = vsel %vm4838_vm9, %v4713_v60, %v12575_v25 }
  0x8f   :  { %3437 = vrot.lane.b32.xlu1 %v12582_v29, %s12047_s27  ;;  %v4840_v21 = vsel %vm4838_vm9, %v4711_v6, %v3700_v41  ;;  %v556_v41 = vshll.u32 %v12663_v28, 16  ;;  %v4971_v46 = vsel %vm4967_vm10, %v4842_v30, %v12593_v39  ;;  %v10684_v39 = vrot.slane %v12573_v1, 9 }
  0x90   :  { %4273 = vrot.lane.b32.xlu0 %v12582_v29, %s12053_s24  ;;  %v551_v63 = vsel %vm12206_vm5, %v546_v14, %v550_v52  ;;  %v2078_v11 = vsel %vm12174_vm3, %v2076_v61, %v2077_v59 }
  0x91   :  { %v3982_v62 = vpop.permute.xlu1 %3981  ;;  %v12680_v37 = vcombine.low %v541_v49, %v551_v63  ;;  %v558_v3 = vrot.slane %v556_v41, 5  ;;  %v2075_v9 = vsel %vm12174_vm3, %v10684_v39, %v2074_v36  ;;  %v590_v49 = vshrl.u32 %v12728_v10, 16 }
  0x92   :  { %v3840_v43 = vpop.permute.xlu0 %3839  ;;  %v5100_v54 = vsel %vm5096_vm11, %v4971_v46, %v3982_v62  ;;  %v12730_v52 = vcombine.low %v2075_v9, %v2078_v11  ;;  %v586_v63 = vshll.u32 %v12728_v10, 16 }
  0x93   :  { %3577 = vrot.lane.b32.xlu1 %v12597_v45, %s12046_s18  ;;  %v4969_v23 = vsel %vm4967_vm10, %v4840_v21, %v3840_v43  ;;  %v555_v43 = vrot.slane %v553_v38, 4  ;;  %v2084_v38 = vrot.slane %v83_v5, 5 }
  0x94   :  { %3435 = vrot.lane.b32.xlu0 %v12512_v48, %s12047_s27 }
  0x95   :  { %v4122_v17 = vpop.permute.xlu1 %4121  ;;  %v559_v15 = vor.u32 %v558_v3, %v555_v43 }
  0x96   :  { %v3980_v18 = vpop.permute.xlu0 %3979  ;;  %v5229_v56 = vsel %vm5225_vm13, %v5100_v54, %v4122_v17  ;;  %v572_v17 = vshll.u32 %v83_v5, 16 }
  0x97   :  { %3717 = vrot.lane.b32.xlu1 %v12615_v2, %s12049_s19  ;;  %v5098_v31 = vsel %vm5096_vm11, %v4969_v23, %v3980_v18  ;;  %v580_v23 = vshll.u32 %v12721_v13, 16 }
  0x98   :  { %3575 = vrot.lane.b32.xlu0 %v12522_v44, %s12046_s18  ;;  %v574_v60 = vrot.slane %v572_v17, 5 }
  0x99   :  { %v12640_v48 = vpop.permute.xlu1 %3103 }
  0x9a   :  { %v4120_v19 = vpop.permute.xlu0 %4119 }
  0x9b   :  { %3857 = vrot.lane.b32.xlu1 %v12636_v12, %s12050_s20  ;;  %v5227_v33 = vsel %vm5225_vm13, %v5098_v31, %v4120_v19  ;;  %v577_v19 = vshrl.u32 %v12721_v13, 16 }
  0x9c   :  { %3715 = vrot.lane.b32.xlu0 %v12544_v55, %s12049_s19  ;;  %v12673_v55 = vld [vmem:[%s20455_s0 + $0x94] sm:$0xf] }
  0x9d   :  { %v12668_v32 = vpop.permute.xlu1 %3105  ;;  %v566_v27 = vshrl.u32 %v12673_v55, 16  ;;  %v562_v53 = vshll.u32 %v12673_v55, 16  ;;  %v2081_v6 = vrot.slane %v12673_v55, 5  ;;  %v579_v41 = vrot.slane %v577_v19, 4 }
  0x9e   :  { %v4260_v34 = vpop.permute.xlu0 %4259 }
  0x9f   :  { %3997 = vrot.lane.b32.xlu1 %v12651_v22, %s12051_s28  ;;  %v5356_v25 = vsel %vm5354_vm12, %v5227_v33, %v4260_v34  ;;  %v564_v1 = vrot.slane %v562_v53, 5  ;;  %v568_v7 = vrot.slane %v566_v27, 4  ;;  %v12743_v33 = vcombine.low %v12663_v28, %v12673_v55  ;;  %v12757_v55 = vld [vmem:[%s20455_s0 + $0xa4] sm:$0x1] }
  0xa0   :  { %3855 = vrot.lane.b32.xlu0 %v12582_v29, %s12050_s20  ;;  %v5485_v47 = vsel %vm5483_vm14, %v5356_v25, 0  ;;  %v10685_v34 = vrot.slane %v12663_v28, 9  ;;  %v2083_v25 = vrot.slane %v2081_v6, 4  ;;  %v582_v28 = vrot.slane %v580_v23, 5 }
  0xa1   :  { %11319 = vmatprep.mubr.msk.bf16.mxu0 %vm5565_vm15, %v5485_v47  ;;  %v12693_v50 = vpop.permute.xlu1 %3425  ;;  %v569_v18 = vor.u32 %v568_v7, %v564_v1  ;;  %v588_v47 = vrot.slane %v586_v63, 5  ;;  %v592_v27 = vrot.slane %v590_v49, 4  ;;  %v2088_v23 = vrot.slane %v12728_v10, 5 }
  0xa2   :  { %v4262_v58 = vpop.permute.xlu0 %4261  ;;  %v2082_v39 = vsel %vm12174_vm3, %v10685_v34, %v2081_v6  ;;  %v2085_v59 = vsel %vm12174_vm3, %v2083_v25, %v2084_v38  ;;  %v12813_v6 = vld [vmem:[%s20455_s0 + $0xac] sm:$0xf] }
  0xa3   :  { %v5358_v29 = vsel %vm5354_vm12, %v5229_v56, %v4262_v58  ;;  %4137 = vrot.lane.b32.xlu1 %v12680_v37, %s12052_s14  ;;  %v570_v21 = vrot.slane %v569_v18, 4  ;;  %v596_v58 = vshll.u32 %v12757_v55, 16  ;;  %v593_v61 = vor.u32 %v592_v27, %v588_v47 }
  0xa4   :  { %v5486_v62 = vsel %vm5483_vm14, %v5358_v29, 0  ;;  %3995 = vrot.lane.b32.xlu0 %v12597_v45, %s12051_s28  ;;  %v583_v29 = vor.u32 %v582_v28, %v579_v41  ;;  %v10686_v28 = vrot.slane %v12721_v13, 9 }
  0xa5   :  { %11320 = vmatmul.mubr.msk.bf16.vlgmr.msra.gmra.mrb[0].mxu0 %vm5565_vm15, %v5486_v62  ;;  %v12708_v57 = vpop.permute.xlu1 %3565  ;;  %v575_v46 = vsel %vm12206_vm5, %v570_v21, %v574_v60  ;;  %v12772_v62 = vcombine.low %v2082_v39, %v2085_v59  ;;  %v598_v5 = vrot.slane %v596_v58, 5  ;;  %v594_v9 = vrot.slane %v593_v61, 4 }
  0xa6   :  { %v3424_v8 = vpop.permute.xlu0 %3423  ;;  %v584_v7 = vrot.slane %v583_v29, 4  ;;  %v2089_v61 = vsel %vm12174_vm3, %v10686_v28, %v2088_v23 }
  0xa7   :  { %3119 = vrot.lane.b32.xlu1 %v12615_v2, %s12048_s17 }
  0xa8   :  { %4135 = vrot.lane.b32.xlu0 %v12615_v2, %s12052_s14  ;;  %v560_v2 = vrot.slane %v559_v15, 4 }
  0xa9   :  { %v12723_v20 = vpop.permute.xlu1 %3705 }
  0xaa   :  { %v3564_v14 = vpop.permute.xlu0 %3563  ;;  %v565_v36 = vsel %vm12206_vm5, %v560_v2, %v564_v1  ;;  %v4399_v1 = vsel %vm4387_vm6, %v12259_v42, %v12668_v32  ;;  %v12793_v42 = vcombine.low %v12721_v13, %v12728_v10  ;;  %v614_v10 = vshrl.u32 %v12813_v6, 16  ;;  %v89_v13 = vld [vmem:[%s20455_s0 + $0xb0] sm:$0x1] }
  0xab   :  { %3121 = vrot.lane.b32.xlu1 %v12680_v37, %s12048_s17  ;;  %v12761_v56 = vcombine.low %v565_v36, %v575_v46  ;;  %v4588_v2 = vsel %vm4580_vm7, %v4399_v1, %v12693_v50  ;;  %v589_v50 = vsel %vm12206_vm5, %v584_v7, %v588_v47  ;;  %v2091_v47 = vrot.slane %v12757_v55, 5  ;;  %v12864_v1 = vld [vmem:[%s20455_s0 + $0xb4] sm:$0xf] }
  0xac   :  { %4275 = vrot.lane.b32.xlu0 %v12636_v12, %s12053_s24  ;;  %v4717_v19 = vsel %vm4709_vm8, %v4588_v2, %v12708_v57  ;;  %v616_v59 = vrot.slane %v614_v10, 4  ;;  %v2095_v2 = vrot.slane %v12813_v6, 5 }
  0xad   :  { %v3846_v30 = vpop.permute.xlu1 %3845  ;;  %v4846_v63 = vsel %vm4838_vm9, %v4717_v19, %v12723_v20  ;;  %v610_v20 = vshll.u32 %v12813_v6, 16 }
  0xae   :  { %v3704_v31 = vpop.permute.xlu0 %3703  ;;  %v4975_v57 = vsel %vm4967_vm10, %v4846_v63, %v3846_v30  ;;  %v2097_v63 = vrot.slane %v2095_v2, 4 }
  0xaf   :  { %3441 = vrot.lane.b32.xlu1 %v12730_v52, %s12047_s27  ;;  %v612_v39 = vrot.slane %v610_v20, 5 }
  0xb0   :  { %4277 = vrot.lane.b32.xlu0 %v12730_v52, %s12053_s24 }
  0xb1   :  { %v3986_v53 = vpop.permute.xlu1 %3985 }
  0xb2   :  { %v3844_v54 = vpop.permute.xlu0 %3843  ;;  %v5104_v38 = vsel %vm5096_vm11, %v4975_v57, %v3986_v53 }
  0xb3   :  { %3581 = vrot.lane.b32.xlu1 %v12743_v33, %s12046_s18 }
  0xb4   :  { %3439 = vrot.lane.b32.xlu0 %v12636_v12, %s12047_s27  ;;  %v4396_v12 = vsel %vm4387_vm6, %v12148_v4, %v12640_v48  ;;  %v12798_v48 = vld [vmem:[%s20455_s0 + $0xa8] sm:$0xf] }
  0xb5   :  { %v4126_v43 = vpop.permute.xlu1 %4125  ;;  %v4586_v11 = vsel %vm4580_vm7, %v4396_v12, %v3424_v8  ;;  %v599_v8 = vsel %vm12206_vm5, %v594_v9, %v598_v5  ;;  %v601_v49 = vshrl.u32 %v12798_v48, 16  ;;  %v604_v36 = vshll.u32 %v12798_v48, 16  ;;  %v12871_v9 = vld [vmem:[%s20455_s0 + $0xb8] sm:$0xf] }
  0xb6   :  { %v3984_v3 = vpop.permute.xlu0 %3983  ;;  %v4715_v17 = vsel %vm4709_vm8, %v4586_v11, %v3564_v14  ;;  %v12825_v34 = vcombine.low %v589_v50, %v599_v8  ;;  %v5233_v46 = vsel %vm5225_vm13, %v5104_v38, %v4126_v43  ;;  %v620_v5 = vshll.u32 %v89_v13, 16 }
  0xb7   :  { %3721 = vrot.lane.b32.xlu1 %v12761_v56, %s12049_s19  ;;  %v4844_v4 = vsel %vm4838_vm9, %v4715_v17, %v3704_v31  ;;  %v606_v58 = vrot.slane %v604_v36, 5  ;;  %v617_v12 = vor.u32 %v616_v59, %v612_v39  ;;  %v628_v50 = vshll.u32 %v12864_v1, 16 }
  0xb8   :  { %3579 = vrot.lane.b32.xlu0 %v12651_v22, %s12046_s18  ;;  %v4973_v32 = vsel %vm4967_vm10, %v4844_v4, %v3844_v54  ;;  %v603_v54 = vrot.slane %v601_v49, 4  ;;  %v625_v4 = vshrl.u32 %v12864_v1, 16  ;;  %v638_v8 = vshrl.u32 %v12871_v9, 16 }
  0xb9   :  { %v12783_v15 = vpop.permute.xlu1 %3107  ;;  %v5102_v14 = vsel %vm5096_vm11, %v4973_v32, %v3984_v3  ;;  %v618_v32 = vrot.slane %v617_v12, 4 }
  0xba   :  { %v4124_v18 = vpop.permute.xlu0 %4123  ;;  %v607_v3 = vor.u32 %v606_v58, %v603_v54  ;;  %v627_v36 = vrot.slane %v625_v4, 4  ;;  %v640_v10 = vrot.slane %v638_v8, 4 }
  0xbb   :  { %3861 = vrot.lane.b32.xlu1 %v12772_v62, %s12050_s20 }
  0xbc   :  { %3719 = vrot.lane.b32.xlu0 %v12680_v37, %s12049_s19  ;;  %v5231_v37 = vsel %vm5225_vm13, %v5102_v14, %v4124_v18  ;;  %v622_v18 = vrot.slane %v620_v5, 5  ;;  %v634_v14 = vshll.u32 %v12871_v9, 16 }
  0xbd   :  { %v12808_v60 = vpop.permute.xlu1 %3109 }
  0xbe   :  { %v4264_v21 = vpop.permute.xlu0 %4263  ;;  %v623_v57 = vsel %vm12206_vm5, %v618_v32, %v622_v18  ;;  %v2102_v18 = vrot.slane %v12871_v9, 5 }
  0xbf   :  { %v5360_v31 = vsel %vm5354_vm12, %v5231_v37, %v4264_v21  ;;  %4001 = vrot.lane.b32.xlu1 %v12793_v42, %s12051_s28  ;;  %v12888_v21 = vcombine.low %v12798_v48, %v12813_v6  ;;  %v12902_v6 = vld [vmem:[%s20455_s0 + $0xbc] sm:$0x1] }
  0xc0   :  { %v5487_v25 = vsel %vm5483_vm14, %v5360_v31, 0  ;;  %3859 = vrot.lane.b32.xlu0 %v12730_v52, %s12050_s20  ;;  %v2090_v52 = vrot.slane %v2088_v23, 4  ;;  %v10687_v23 = vrot.slane %v12798_v48, 9  ;;  %v2098_v31 = vrot.slane %v89_v13, 5 }
  0xc1   :  { %11323 = vmatprep.mubr.msk.bf16.mxu0 %vm5565_vm15, %v5487_v25  ;;  %v12836_v41 = vpop.permute.xlu1 %3429  ;;  %v630_v48 = vrot.slane %v628_v50, 5  ;;  %v636_v25 = vrot.slane %v634_v14, 5  ;;  %v644_v28 = vshll.u32 %v12902_v6, 16 }
  0xc2   :  { %v4266_v30 = vpop.permute.xlu0 %4265  ;;  %v2092_v43 = vsel %vm12174_vm3, %v2090_v52, %v2091_v47  ;;  %v2099_v47 = vsel %vm12174_vm3, %v2097_v63, %v2098_v31 }
  0xc3   :  { %v5362_v27 = vsel %vm5354_vm12, %v5233_v46, %v4266_v30  ;;  %4141 = vrot.lane.b32.xlu1 %v12825_v34, %s12052_s14  ;;  %v12873_v17 = vcombine.low %v2089_v61, %v2092_v43  ;;  %v2096_v30 = vsel %vm12174_vm3, %v10687_v23, %v2095_v2  ;;  %v641_v52 = vor.u32 %v640_v10, %v636_v25 }
  0xc4   :  { %v5488_v53 = vsel %vm5483_vm14, %v5362_v27, 0  ;;  %3999 = vrot.lane.b32.xlu0 %v12743_v33, %s12051_s28  ;;  %v631_v27 = vor.u32 %v630_v48, %v627_v36  ;;  %v646_v13 = vrot.slane %v644_v28, 5  ;;  %v10688_v36 = vrot.slane %v12864_v1, 9 }
  0xc5   :  { %11324 = vmatmul.mubr.msk.bf16.gmra.mrb[4].mxu0 %vm5565_vm15, %v5488_v53  ;;  %v12851_v55 = vpop.permute.xlu1 %3569  ;;  %v12917_v53 = vcombine.low %v2096_v30, %v2099_v47  ;;  %v642_v61 = vrot.slane %v641_v52, 4  ;;  %v13013_v52 = vld [vmem:[%s20455_s0 + $0xd8] sm:$0xf] }
  0xc6   :  { %v3428_v29 = vpop.permute.xlu0 %3427  ;;  %v632_v59 = vrot.slane %v631_v27, 4  ;;  %v13008_v27 = vld [vmem:[%s20455_s0 + $0xd0] sm:$0xf] }
  0xc7   :  { %3123 = vrot.lane.b32.xlu1 %v12761_v56, %s12048_s17 }
  0xc8   :  { %4139 = vrot.lane.b32.xlu0 %v12761_v56, %s12052_s14  ;;  %v608_v56 = vrot.slane %v607_v3, 4 }
  0xc9   :  { %v12866_v7 = vpop.permute.xlu1 %3709 }
  0xca   :  { %v3568_v11 = vpop.permute.xlu0 %3567  ;;  %v613_v49 = vsel %vm12206_vm5, %v608_v56, %v612_v39  ;;  %v4405_v39 = vsel %vm4387_vm6, %v12358_v35, %v12808_v60  ;;  %v12943_v60 = vcombine.low %v12864_v1, %v12871_v9  ;;  %v647_v56 = vsel %vm12206_vm5, %v642_v61, %v646_v13  ;;  %v12995_v1 = vld [vmem:[%s20455_s0 + $0xc8] sm:$0x1] }
  0xcb   :  { %3125 = vrot.lane.b32.xlu1 %v12825_v34, %s12048_s17  ;;  %v12906_v46 = vcombine.low %v613_v49, %v623_v57  ;;  %v4592_v35 = vsel %vm4580_vm7, %v4405_v39, %v12836_v41  ;;  %v637_v41 = vsel %vm12206_vm5, %v632_v59, %v636_v25  ;;  %v2104_v57 = vrot.slane %v2102_v18, 4  ;;  %v13025_v39 = vld [vmem:[%s20455_s0 + $0xdc] sm:$0xf] }
  0xcc   :  { %4279 = vrot.lane.b32.xlu0 %v12772_v62, %s12053_s24  ;;  %v4721_v8 = vsel %vm4709_vm8, %v4592_v35, %v12851_v55  ;;  %v12973_v63 = vcombine.low %v637_v41, %v647_v56  ;;  %v2105_v25 = vrot.slane %v12902_v6, 5  ;;  %v13000_v6 = vld [vmem:[%s20455_s0 + $0xcc] sm:$0xf]  ;;  %v2593_v35 = vshrl.u32 %v13008_v27, 16 }
  0xcd   :  { %v12884_v19 = vpop.permute.xlu1 %3849  ;;  %v4850_v9 = vsel %vm4838_vm9, %v4721_v8, %v12866_v7  ;;  %v652_v41 = vshll.u32 %v13013_v52, 16  ;;  %v658_v56 = vshll.u32 %v13025_v39, 16 }
  0xce   :  { %v3708_v37 = vpop.permute.xlu0 %3707  ;;  %v4979_v55 = vsel %vm4967_vm10, %v4850_v9, %v12884_v19  ;;  %v2106_v13 = vsel %vm12174_vm3, %v2104_v57, %v2105_v25  ;;  %v13052_v9 = vld [vmem:[%s20455_s0 + $0xe4] sm:$0xf]  ;;  %v13064_v57 = vld [vmem:[%s20455_s0 + $0xd4] sm:$0x1] }
  0xcf   :  { %3445 = vrot.lane.b32.xlu1 %v12873_v17, %s12047_s27 }
  0xd0   :  { %4281 = vrot.lane.b32.xlu0 %v12873_v17, %s12053_s24 }
  0xd1   :  { %v3990_v20 = vpop.permute.xlu1 %3989 }
  0xd2   :  { %v3848_v38 = vpop.permute.xlu0 %3847  ;;  %v5108_v7 = vsel %vm5096_vm11, %v4979_v55, %v3990_v20 }
  0xd3   :  { %3585 = vrot.lane.b32.xlu1 %v12888_v21, %s12046_s18 }
  0xd4   :  { %3443 = vrot.lane.b32.xlu0 %v12772_v62, %s12047_s27  ;;  %v4402_v62 = vsel %vm4387_vm6, %v12329_v0, %v12783_v15  ;;  %v12934_v0 = vld [vmem:[%s20455_s0 + $0xc0] sm:$0xf] }
  0xd5   :  { %v4130_v54 = vpop.permute.xlu1 %4129  ;;  %v4590_v43 = vsel %vm4580_vm7, %v4402_v62, %v3428_v29  ;;  %v12948_v29 = vld [vmem:[%s20455_s0 + $0xc4] sm:$0xf]  ;;  %v2444_v32 = vshrl.u32 %v12934_v0, 16  ;;  %v2447_v50 = vshll.u32 %v12934_v0, 16 }
  0xd6   :  { %v3988_v58 = vpop.permute.xlu0 %3987  ;;  %v4719_v5 = vsel %vm4709_vm8, %v4590_v43, %v3568_v11  ;;  %v2453_v23 = vshll.u32 %v12948_v29, 16  ;;  %v5237_v19 = vsel %vm5225_vm13, %v5108_v7, %v4130_v54  ;;  %v2463_v43 = vshll.u32 %v12995_v1, 16 }
  0xd7   :  { %3725 = vrot.lane.b32.xlu1 %v12906_v46, %s12049_s19  ;;  %v4848_v15 = vsel %vm4838_vm9, %v4719_v5, %v3708_v37  ;;  %v2457_v37 = vshrl.u32 %v12948_v29, 16  ;;  %v2446_v10 = vrot.slane %v2444_v32, 4  ;;  %v2580_v5 = vshrl.u32 %v13000_v6, 16 }
  0xd8   :  { %3583 = vrot.lane.b32.xlu0 %v12793_v42, %s12046_s18  ;;  %v4977_v11 = vsel %vm4967_vm10, %v4848_v15, %v3848_v38  ;;  %v2449_v38 = vrot.slane %v2447_v50, 5  ;;  %v12987_v30 = vrot.slane %v2453_v23, 5  ;;  %v2589_v15 = vshll.u32 %v13008_v27, 16 }
  0xd9   :  { %v12928_v3 = vpop.permute.xlu1 %3111  ;;  %v5106_v2 = vsel %vm5096_vm11, %v4977_v11, %v3988_v58  ;;  %v2459_v47 = vrot.slane %v2457_v37, 4  ;;  %v2103_v58 = vsel %vm12174_vm3, %v10688_v36, %v2102_v18  ;;  %v649_v11 = vshrl.u32 %v13013_v52, 16 }
  0xda   :  { %v4128_v12 = vpop.permute.xlu0 %4127  ;;  %v2450_v62 = vor.u32 %v2449_v38, %v2446_v10  ;;  %v662_v18 = vshrl.u32 %v13025_v39, 16  ;;  %v13045_v32 = vcombine.low %v2103_v58, %v2106_v13  ;;  %v2582_v37 = vrot.slane %v2580_v5, 4  ;;  %v13073_v38 = vld [vmem:[%s20455_s0 + $0xe0] sm:$0x1] }
  0xdb   :  { %3865 = vrot.lane.b32.xlu1 %v12917_v53, %s12050_s20  ;;  %v2460_v61 = vor.u32 %v2459_v47, %v12987_v30  ;;  %v651_v55 = vrot.slane %v649_v11, 4  ;;  %v2553_v36 = vrot.slane %v12948_v29, 5  ;;  %v13066_v7 = vrot.slane %v658_v56, 5 }
  0xdc   :  { %3723 = vrot.lane.b32.xlu0 %v12825_v34, %s12049_s19  ;;  %v5235_v34 = vsel %vm5225_vm13, %v5106_v2, %v4128_v12  ;;  %v2583_v12 = vshll.u32 %v13000_v6, 16  ;;  %v2451_v50 = vrot.slane %v2450_v62, 4  ;;  %v664_v25 = vrot.slane %v662_v18, 4  ;;  %v13090_v62 = vld [vmem:[%s20455_s0 + $0xe8] sm:$0xf] }
  0xdd   :  { %v12959_v4 = vpop.permute.xlu1 %3113  ;;  %v10737_v13 = vrot.slane %v12934_v0, 9  ;;  %v682_v56 = vshll.u32 %v13090_v62, 16  ;;  %v686_v18 = vshrl.u32 %v13090_v62, 16 }
  0xde   :  { %v4268_v14 = vpop.permute.xlu0 %4267  ;;  %v2585_v23 = vrot.slane %v2583_v12, 5  ;;  %v665_v12 = vor.u32 %v664_v25, %v13066_v7 }
  0xdf   :  { %v5364_v49 = vsel %vm5354_vm12, %v5235_v34, %v4268_v14  ;;  %4005 = vrot.lane.b32.xlu1 %v12943_v60, %s12051_s28  ;;  %v2461_v34 = vrot.slane %v2460_v61, 4  ;;  %v2465_v14 = vrot.slane %v2463_v43, 5  ;;  %v2599_v43 = vshll.u32 %v13064_v57, 16 }
  0xe0   :  { %v5489_v31 = vsel %vm5483_vm14, %v5364_v49, 0  ;;  %3863 = vrot.lane.b32.xlu0 %v12873_v17, %s12050_s20  ;;  %v2595_v49 = vrot.slane %v2593_v35, 4  ;;  %v2586_v61 = vor.u32 %v2585_v23, %v2582_v37  ;;  %v668_v35 = vshll.u32 %v13073_v38, 16 }
  0xe1   :  { %11327 = vmatprep.mubr.msk.bf16.mxu0 %vm5565_vm15, %v5489_v31  ;;  %v12983_v48 = vpop.permute.xlu1 %3433  ;;  %v654_v31 = vrot.slane %v652_v41, 5  ;;  %v2466_v58 = vsel %vm12206_vm5, %v2461_v34, %v2465_v14  ;;  %v2601_v37 = vrot.slane %v2599_v43, 5 }
  0xe2   :  { %v4270_v28 = vpop.permute.xlu0 %4269  ;;  %v2587_v14 = vrot.slane %v2586_v61, 4  ;;  %v670_v25 = vrot.slane %v668_v35, 5  ;;  %v688_v61 = vrot.slane %v686_v18, 4  ;;  %v13162_v18 = vld [vmem:[%s20455_s0 + $0xf0] sm:$0xf] }
  0xe3   :  { %v5366_v17 = vsel %vm5354_vm12, %v5237_v19, %v4270_v28  ;;  %4145 = vrot.lane.b32.xlu1 %v12973_v63, %s12052_s14  ;;  %v673_v19 = vshrl.u32 %v13052_v9, 16  ;;  %v676_v28 = vshll.u32 %v13052_v9, 16  ;;  %v655_v5 = vor.u32 %v654_v31, %v651_v55 }
  0xe4   :  { %v5490_v20 = vsel %vm5483_vm14, %v5366_v17, 0  ;;  %4003 = vrot.lane.b32.xlu0 %v12888_v21, %s12051_s28  ;;  %v13079_v17 = vcombine.low %v12934_v0, %v12948_v29  ;;  %v2556_v0 = vrot.slane %v12995_v1, 5  ;;  %v666_v31 = vrot.slane %v665_v12, 4 }
  0xe5   :  { %11328 = vmatmul.mubr.msk.bf16.gmra.mrb[8].mxu0 %vm5565_vm15, %v5490_v20  ;;  %v13016_v54 = vpop.permute.xlu1 %3573  ;;  %v2456_v20 = vsel %vm12206_vm5, %v2451_v50, %v12987_v30  ;;  %v2555_v30 = vrot.slane %v2553_v36, 4  ;;  %v675_v11 = vrot.slane %v673_v19, 4  ;;  %v678_v41 = vrot.slane %v676_v28, 5  ;;  %v13118_v28 = vld [vmem:[%s20455_s0 + $0xec] sm:$0x1] }
  0xe6   :  { %v13027_v59 = vpop.permute.xlu0 %3431  ;;  %v13105_v34 = vcombine.low %v2456_v20, %v2466_v58  ;;  %v656_v23 = vrot.slane %v655_v5, 4  ;;  %v13120_v58 = vrot.slane %v682_v56, 5  ;;  %v4408_v5 = vsel %vm4387_vm6, %v12412_v24, %v12928_v3 }
  0xe7   :  { %3127 = vrot.lane.b32.xlu1 %v12906_v46, %s12048_s17  ;;  %v2557_v55 = vsel %vm12174_vm3, %v2555_v30, %v2556_v0  ;;  %v679_v20 = vor.u32 %v678_v41, %v675_v11  ;;  %v4411_v30 = vsel %vm4387_vm6, %v12440_v40, %v12959_v4  ;;  %v692_v0 = vshll.u32 %v13118_v28, 16 }
  0xe8   :  { %4143 = vrot.lane.b32.xlu0 %v12906_v46, %s12052_s14  ;;  %v13056_v46 = vrot.slane %v2589_v15, 5  ;;  %v661_v43 = vsel %vm12206_vm5, %v656_v23, %v13066_v7  ;;  %v4594_v12 = vsel %vm4580_vm7, %v4408_v5, %v13027_v59  ;;  %v689_v24 = vor.u32 %v688_v61, %v13120_v58 }
  0xe9   :  { %v13043_v2 = vpop.permute.xlu1 %3713  ;;  %v680_v35 = vrot.slane %v679_v20, 4  ;;  %v10949_v4 = vcombine.low %v13000_v6, %v13008_v27  ;;  %v4596_v11 = vsel %vm4580_vm7, %v4411_v30, %v12983_v48  ;;  %v2116_v48 = vrot.slane %v13090_v62, 5 }
  0xea   :  { %v13047_v8 = vpop.permute.xlu0 %3571  ;;  %v2596_v29 = vor.u32 %v2595_v49, %v13056_v46  ;;  %v2554_v49 = vsel %vm12174_vm3, %v10737_v13, %v2553_v36  ;;  %v2592_v36 = vsel %vm12206_vm5, %v2587_v14, %v13056_v46  ;;  %v671_v46 = vsel %vm12206_vm5, %v666_v31, %v670_v25 }
  0xeb   :  { %3129 = vrot.lane.b32.xlu1 %v12973_v63, %s12048_s17  ;;  %v4723_v3 = vsel %vm4709_vm8, %v4594_v12, %v13047_v8  ;;  %v10825_v56 = vcombine.low %v661_v43, %v671_v46  ;;  %v694_v14 = vrot.slane %v692_v0, 5  ;;  %v697_v25 = vshrl.u32 %v13162_v18, 16 }
  0xec   :  { %4283 = vrot.lane.b32.xlu0 %v12917_v53, %s12053_s24  ;;  %v2597_v1 = vrot.slane %v2596_v29, 4  ;;  %v700_v20 = vshll.u32 %v13162_v18, 16  ;;  %v2118_v43 = vrot.slane %v2116_v48, 4  ;;  %v2119_v5 = vrot.slane %v13118_v28, 5 }
  0xed   :  { %v13068_v10 = vpop.permute.xlu1 %3853 }
  0xee   :  { %v3712_v47 = vpop.permute.xlu0 %3711  ;;  %v2602_v13 = vsel %vm12206_vm5, %v2597_v1, %v2601_v37  ;;  %v13172_v1 = vld [vmem:[%s20455_s0 + $0xf4] sm:$0xf]  ;;  %v702_v28 = vrot.slane %v700_v20, 5 }
  0xef   :  { %3449 = vrot.lane.b32.xlu1 %v13045_v32, %s12047_s27  ;;  %v4852_v41 = vsel %vm4838_vm9, %v4723_v3, %v3712_v47  ;;  %v10953_v59 = vcombine.low %v2592_v36, %v2602_v13  ;;  %v2689_v47 = vrot.slane %v13008_v27, 5  ;;  %v706_v36 = vshll.u32 %v13172_v1, 16 }
  0xf0   :  { %4285 = vrot.lane.b32.xlu0 %v13045_v32, %s12053_s24 }
  0xf1   :  { %v13101_v15 = vpop.permute.xlu1 %3993  ;;  %v2691_v0 = vrot.slane %v2689_v47, 4 }
  0xf2   :  { %v3852_v50 = vpop.permute.xlu0 %3851 }
  0xf3   :  { %3589 = vrot.lane.b32.xlu1 %v13079_v17, %s12046_s18  ;;  %v4981_v8 = vsel %vm4967_vm10, %v4852_v41, %v3852_v50  ;;  %v685_v50 = vsel %vm12206_vm5, %v680_v35, %v13120_v58  ;;  %v710_v58 = vshrl.u32 %v13172_v1, 16  ;;  %v2120_v41 = vsel %vm12174_vm3, %v2118_v43, %v2119_v5 }
  0xf4   :  { %3447 = vrot.lane.b32.xlu0 %v12917_v53, %s12047_s27  ;;  %v13124_v53 = vcombine.low %v2554_v49, %v2557_v55  ;;  %v690_v49 = vrot.slane %v689_v24, 4  ;;  %v4725_v55 = vsel %vm4709_vm8, %v4596_v11, %v13016_v54  ;;  %v699_v24 = vrot.slane %v697_v25, 4 }
  0xf5   :  { %v4134_v19 = vpop.permute.xlu1 %4133  ;;  %v4854_v61 = vsel %vm4838_vm9, %v4725_v55, %v13043_v2 }
  0xf6   :  { %v3992_v29 = vpop.permute.xlu0 %3991  ;;  %v4983_v54 = vsel %vm4967_vm10, %v4854_v61, %v13068_v10  ;;  %v695_v46 = vsel %vm12206_vm5, %v690_v49, %v694_v14  ;;  %v10741_v10 = vrot.slane %v13000_v6, 9  ;;  %v107_v6 = vld [vmem:[%s20455_s0 + $0xf8] sm:$0x1]  ;;  %v10689_v14 = vrot.slane %v13013_v52, 9  ;;  %v13247_v52 = vld [vmem:[%s20455_s0 + $0x100] sm:$0xf] }
  0xf7   :  { %3729 = vrot.lane.b32.xlu1 %v13105_v34, %s12049_s19  ;;  %v5110_v37 = vsel %vm5096_vm11, %v4981_v8, %v3992_v29  ;;  %v5112_v2 = vsel %vm5096_vm11, %v4983_v54, %v13101_v15  ;;  %v2109_v15 = vrot.slane %v13025_v39, 5  ;;  %v2112_v49 = vrot.slane %v13073_v38, 5 }
  0xf8   :  { %3587 = vrot.lane.b32.xlu0 %v12943_v60, %s12046_s18  ;;  %v5241_v12 = vsel %vm5225_vm13, %v5112_v2, %v4134_v19  ;;  %v13220_v19 = vcombine.low %v685_v50, %v695_v46  ;;  %v734_v54 = vshrl.u32 %v13247_v52, 16  ;;  %v13268_v2 = vcombine.low %v13162_v18, %v13172_v1 }
  0xf9   :  { %v13147_v7 = vpop.permute.xlu1 %3115  ;;  %v2111_v50 = vrot.slane %v2109_v15, 4 }
  0xfa   :  { %v4132_v40 = vpop.permute.xlu0 %4131 }
  0xfb   :  { %3869 = vrot.lane.b32.xlu1 %v13124_v53, %s12050_s20  ;;  %v5239_v27 = vsel %vm5225_vm13, %v5110_v37, %v4132_v40  ;;  %v708_v40 = vrot.slane %v706_v36, 5  ;;  %v703_v37 = vor.u32 %v702_v28, %v699_v24  ;;  %v2113_v25 = vsel %vm12174_vm3, %v2111_v50, %v2112_v49 }
  0xfc   :  { %3727 = vrot.lane.b32.xlu0 %v12973_v63, %s12049_s19  ;;  %v10690_v63 = vrot.slane %v13052_v9, 9 }
  0xfd   :  { %v13175_v23 = vpop.permute.xlu1 %3117 }
  0xfe   :  { %v4272_v31 = vpop.permute.xlu0 %4271  ;;  %v2117_v39 = vsel %vm12174_vm3, %v10690_v63, %v2116_v48  ;;  %v716_v63 = vshll.u32 %v107_v6, 16  ;;  %v4417_v50 = vsel %vm4387_vm6, %v12522_v44, %v13175_v23  ;;  %v13326_v23 = vld [vmem:[%s20455_s0 + $0x108] sm:$0xf] }
  0xff   :  { %v5368_v29 = vsel %vm5354_vm12, %v5239_v27, %v4272_v31  ;;  %4009 = vrot.lane.b32.xlu1 %v10949_v4, %s12051_s28  ;;  %v712_v4 = vrot.slane %v710_v58, 4  ;;  %v13249_v27 = vcombine.low %v2117_v39, %v2120_v41  ;;  %v2110_v31 = vsel %vm12174_vm3, %v10689_v14, %v2109_v15 }
 0x100   :  { %v5491_v13 = vsel %vm5483_vm14, %v5368_v29, 0  ;;  %3867 = vrot.lane.b32.xlu0 %v13045_v32, %s12050_s20  ;;  %v2692_v32 = vrot.slane %v13064_v57, 5  ;;  %v718_v61 = vrot.slane %v716_v63, 5  ;;  %v2123_v29 = vrot.slane %v13172_v1, 5  ;;  %v13281_v1 = vld [vmem:[%s20455_s0 + $0x104] sm:$0x1] }
 0x101   :  { %11331 = vmatprep.mubr.msk.bf16.mxu0 %vm5565_vm15, %v5491_v13  ;;  %v13201_v30 = vpop.permute.xlu1 %3437  ;;  %v713_v48 = vor.u32 %v712_v4, %v708_v40  ;;  %v730_v13 = vshll.u32 %v13247_v52, 16  ;;  %v10889_v46 = vcombine.low %v2110_v31, %v2113_v25 }
 0x102   :  { %v4274_v35 = vpop.permute.xlu0 %4273  ;;  %v2693_v8 = vsel %vm12174_vm3, %v2691_v0, %v2692_v32  ;;  %v10691_v0 = vrot.slane %v13162_v18, 9  ;;  %v13289_v18 = vcombine.low %v13052_v9, %v13090_v62  ;;  %v4414_v62 = vsel %vm4387_vm6, %v12492_v26, %v13147_v7 }
 0x103   :  { %v5370_v3 = vsel %vm5354_vm12, %v5241_v12, %v4274_v35  ;;  %4149 = vrot.lane.b32.xlu1 %v10953_v59, %s12052_s14  ;;  %v714_v20 = vrot.slane %v713_v48, 4  ;;  %v2125_v12 = vrot.slane %v2123_v29, 4  ;;  %v2126_v35 = vrot.slane %v107_v6, 5 }
 0x104   :  { %v5492_v11 = vsel %vm5483_vm14, %v5370_v3, 0  ;;  %4007 = vrot.lane.b32.xlu0 %v13079_v17, %s12051_s28  ;;  %v2690_v17 = vsel %vm12174_vm3, %v10741_v10, %v2689_v47  ;;  %v13242_v47 = vld [vmem:[%s20455_s0 + $0xfc] sm:$0xf]  ;;  %v732_v28 = vrot.slane %v730_v13, 5  ;;  %v736_v3 = vrot.slane %v734_v54, 4 }
 0x105   :  { %11332 = vmatmul.mubr.msk.bf16.gmra.mrb[12].mxu0 %vm5565_vm15, %v5492_v11  ;;  %v13218_v57 = vpop.permute.xlu1 %3577  ;;  %v10957_v38 = vcombine.low %v2690_v17, %v2693_v8  ;;  %v721_v58 = vshrl.u32 %v13242_v47, 16  ;;  %v724_v36 = vshll.u32 %v13242_v47, 16  ;;  %v740_v11 = vshll.u32 %v13281_v1, 16 }
 0x106   :  { %v13226_v59 = vpop.permute.xlu0 %3435  ;;  %v2124_v6 = vsel %vm12174_vm3, %v10691_v0, %v2123_v29  ;;  %v2127_v39 = vsel %vm12174_vm3, %v2125_v12, %v2126_v35  ;;  %v737_v17 = vor.u32 %v736_v3, %v732_v28  ;;  %v4600_v26 = vsel %vm4580_vm7, %v4417_v50, %v13201_v30  ;;  %v13398_v50 = vld [vmem:[%s20455_s0 + $0x118] sm:$0xf] }
 0x107   :  { %3131 = vrot.lane.b32.xlu1 %v10825_v56, %s12048_s17  ;;  %v723_v32 = vrot.slane %v721_v58, 4  ;;  %v726_v24 = vrot.slane %v724_v36, 5  ;;  %v742_v9 = vrot.slane %v740_v11, 5  ;;  %v4598_v63 = vsel %vm4580_vm7, %v4414_v62, %v13226_v59  ;;  %v13393_v62 = vld [vmem:[%s20455_s0 + $0x114] sm:$0xf] }
 0x108   :  { %4147 = vrot.lane.b32.xlu0 %v13105_v34, %s12052_s14  ;;  %v704_v34 = vrot.slane %v703_v37, 4  ;;  %v13299_v37 = vcombine.low %v2124_v6, %v2127_v39  ;;  %v738_v48 = vrot.slane %v737_v17, 4  ;;  %v13321_v44 = vcombine.low %v13242_v47, %v13247_v52 }
 0x109   :  { %v13237_v55 = vpop.permute.xlu1 %3717  ;;  %v727_v41 = vor.u32 %v726_v24, %v723_v32  ;;  %v4729_v29 = vsel %vm4709_vm8, %v4600_v26, %v13218_v57  ;;  %v745_v36 = vshrl.u32 %v13326_v23, 16  ;;  %v748_v54 = vshll.u32 %v13326_v23, 16 }
 0x10a   :  { %v3576_v56 = vpop.permute.xlu0 %3575  ;;  %v709_v10 = vsel %vm12206_vm5, %v704_v34, %v708_v40  ;;  %v4858_v13 = vsel %vm4838_vm9, %v4729_v29, %v13237_v55  ;;  %v782_v26 = vshrl.u32 %v13398_v50, 16 }
 0x10b   :  { %3133 = vrot.lane.b32.xlu1 %v13220_v19, %s12048_s17  ;;  %v728_v49 = vrot.slane %v727_v41, 4  ;;  %v4727_v31 = vsel %vm4709_vm8, %v4598_v63, %v3576_v56  ;;  %v743_v56 = vsel %vm12206_vm5, %v738_v48, %v742_v9  ;;  %v747_v24 = vrot.slane %v745_v36, 4  ;;  %v113_v41 = vld [vmem:[%s20455_s0 + $0x110] sm:$0x1] }
 0x10c   :  { %4287 = vrot.lane.b32.xlu0 %v13124_v53, %s12053_s24  ;;  %v719_v53 = vsel %vm12206_vm5, %v714_v20, %v718_v61  ;;  %v13341_v61 = vld [vmem:[%s20455_s0 + $0x10c] sm:$0xf]  ;;  %v764_v9 = vshll.u32 %v113_v41, 16 }
 0x10d   :  { %v13264_v43 = vpop.permute.xlu1 %3857  ;;  %v13285_v4 = vcombine.low %v709_v10, %v719_v53  ;;  %v733_v30 = vsel %vm12206_vm5, %v728_v49, %v732_v28  ;;  %v2130_v10 = vrot.slane %v13247_v52, 5  ;;  %v758_v0 = vshrl.u32 %v13341_v61, 16 }
 0x10e   :  { %v3716_v5 = vpop.permute.xlu0 %3715  ;;  %v4987_v57 = vsel %vm4967_vm10, %v4858_v13, %v13264_v43  ;;  %v754_v55 = vshll.u32 %v13341_v61, 16  ;;  %v750_v43 = vrot.slane %v748_v54, 5 }
 0x10f   :  { %3453 = vrot.lane.b32.xlu1 %v13249_v27, %s12047_s27  ;;  %v4856_v7 = vsel %vm4838_vm9, %v4727_v31, %v3716_v5  ;;  %v2132_v3 = vrot.slane %v2130_v10, 4  ;;  %v760_v6 = vrot.slane %v758_v0, 4  ;;  %v13429_v0 = vld [vmem:[%s20455_s0 + $0x11c] sm:$0x1] }
 0x110   :  { %4289 = vrot.lane.b32.xlu0 %v10957_v38, %s12053_s24  ;;  %v756_v11 = vrot.slane %v754_v55, 5 }
 0x111   :  { %v3998_v15 = vpop.permute.xlu1 %3997 }
 0x112   :  { %v3856_v40 = vpop.permute.xlu0 %3855  ;;  %v5116_v12 = vsel %vm5096_vm11, %v4987_v57, %v3998_v15  ;;  %v10693_v57 = vrot.slane %v13326_v23, 9 }
 0x113   :  { %3593 = vrot.lane.b32.xlu1 %v13268_v2, %s12046_s18  ;;  %v4985_v59 = vsel %vm4967_vm10, %v4856_v7, %v3856_v40  ;;  %v2133_v40 = vrot.slane %v13281_v1, 5  ;;  %v778_v7 = vshll.u32 %v13398_v50, 16 }
 0x114   :  { %3451 = vrot.lane.b32.xlu0 %v10889_v46, %s12047_s27  ;;  %v13353_v46 = vcombine.low %v733_v30, %v743_v56  ;;  %v766_v30 = vrot.slane %v764_v9, 5  ;;  %v2137_v56 = vrot.slane %v13341_v61, 5  ;;  %v13460_v9 = vcombine.low %v13393_v62, %v13398_v50 }
 0x115   :  { %v4138_v8 = vpop.permute.xlu1 %4137  ;;  %v780_v13 = vrot.slane %v778_v7, 5 }
 0x116   :  { %v3996_v14 = vpop.permute.xlu0 %3995  ;;  %v5245_v52 = vsel %vm5225_vm13, %v5116_v12, %v4138_v8  ;;  %v2134_v8 = vsel %vm12174_vm3, %v2132_v3, %v2133_v40 }
 0x117   :  { %3733 = vrot.lane.b32.xlu1 %v13285_v4, %s12049_s19  ;;  %v5114_v25 = vsel %vm5096_vm11, %v4985_v59, %v3996_v14  ;;  %v761_v14 = vor.u32 %v760_v6, %v756_v11 }
 0x118   :  { %3591 = vrot.lane.b32.xlu0 %v13289_v18, %s12046_s18 }
 0x119   :  { %v13311_v38 = vpop.permute.xlu1 %3119  ;;  %v762_v59 = vrot.slane %v761_v14, 4 }
 0x11a   :  { %v4136_v34 = vpop.permute.xlu0 %4135 }
 0x11b   :  { %3873 = vrot.lane.b32.xlu1 %v13299_v37, %s12050_s20 }
 0x11c   :  { %3731 = vrot.lane.b32.xlu0 %v13220_v19, %s12049_s19  ;;  %v5243_v19 = vsel %vm5225_vm13, %v5114_v25, %v4136_v34  ;;  %v772_v34 = vshll.u32 %v13393_v62, 16 }
 0x11d   :  { %v13336_v20 = vpop.permute.xlu1 %3121 }
 0x11e   :  { %v4276_v58 = vpop.permute.xlu0 %4275  ;;  %v774_v54 = vrot.slane %v772_v34, 5 }
 0x11f   :  { %v5372_v5 = vsel %vm5354_vm12, %v5243_v19, %v4276_v58  ;;  %4013 = vrot.lane.b32.xlu1 %v13321_v44, %s12051_s28  ;;  %v13415_v19 = vcombine.low %v13326_v23, %v13341_v61  ;;  %v2139_v61 = vrot.slane %v2137_v56, 4  ;;  %v2138_v23 = vsel %vm12174_vm3, %v10693_v57, %v2137_v56 }
 0x120   :  { %v5493_v53 = vsel %vm5483_vm14, %v5372_v5, 0  ;;  %3871 = vrot.lane.b32.xlu0 %v13249_v27, %s12050_s20  ;;  %v10692_v27 = vrot.slane %v13242_v47, 9  ;;  %v751_v47 = vor.u32 %v750_v43, %v747_v24  ;;  %v784_v5 = vrot.slane %v782_v26, 4 }
 0x121   :  { %11335 = vmatprep.mubr.msk.bf16.mxu0 %vm5565_vm15, %v5493_v53  ;;  %v13365_v35 = vpop.permute.xlu1 %3441  ;;  %v2140_v53 = vrot.slane %v113_v41, 5  ;;  %v788_v43 = vshll.u32 %v13429_v0, 16  ;;  %v4423_v41 = vsel %vm4387_vm6, %v12651_v22, %v13336_v20 }
 0x122   :  { %v4278_v32 = vpop.permute.xlu0 %4277  ;;  %v2131_v1 = vsel %vm12174_vm3, %v10692_v27, %v2130_v10  ;;  %v752_v31 = vrot.slane %v751_v47, 4  ;;  %v767_v10 = vsel %vm12206_vm5, %v762_v59, %v766_v30  ;;  %v785_v24 = vor.u32 %v784_v5, %v780_v13 }
 0x123   :  { %v5374_v28 = vsel %vm5354_vm12, %v5245_v52, %v4278_v32  ;;  %4153 = vrot.lane.b32.xlu1 %v13353_v46, %s12052_s14  ;;  %v13402_v63 = vcombine.low %v2131_v1, %v2134_v8  ;;  %v790_v6 = vrot.slane %v788_v43, 5  ;;  %v2144_v59 = vrot.slane %v13398_v50, 5  ;;  %v119_v43 = vld [vmem:[%s20455_s0 + $0x128] sm:$0x1] }
 0x124   :  { %v5494_v15 = vsel %vm5483_vm14, %v5374_v28, 0  ;;  %4011 = vrot.lane.b32.xlu0 %v13268_v2, %s12051_s28  ;;  %v757_v58 = vsel %vm12206_vm5, %v752_v31, %v756_v11  ;;  %v2141_v28 = vsel %vm12174_vm3, %v2139_v61, %v2140_v53  ;;  %v786_v11 = vrot.slane %v785_v24, 4 }
 0x125   :  { %11336 = vmatmul.mubr.msk.bf16.gmra.mrb[16].mxu0 %vm5565_vm15, %v5494_v15  ;;  %v13377_v39 = vpop.permute.xlu1 %3581  ;;  %v13433_v52 = vcombine.low %v757_v58, %v767_v10  ;;  %v13444_v40 = vcombine.low %v2138_v23, %v2141_v28 }
 0x126   :  { %v3440_v17 = vpop.permute.xlu0 %3439  ;;  %v791_v20 = vsel %vm12206_vm5, %v786_v11, %v790_v6  ;;  %v812_v6 = vshll.u32 %v119_v43, 16 }
 0x127   :  { %3135 = vrot.lane.b32.xlu1 %v13285_v4, %s12048_s17 }
 0x128   :  { %4151 = vrot.lane.b32.xlu0 %v13285_v4, %s12052_s14  ;;  %v769_v4 = vshrl.u32 %v13393_v62, 16 }
 0x129   :  { %v13400_v49 = vpop.permute.xlu1 %3721 }
 0x12a   :  { %v3580_v48 = vpop.permute.xlu0 %3579  ;;  %v771_v36 = vrot.slane %v769_v4, 4  ;;  %v13485_v4 = vld [vmem:[%s20455_s0 + $0x124] sm:$0xf] }
 0x12b   :  { %3137 = vrot.lane.b32.xlu1 %v13353_v46, %s12048_s17  ;;  %v806_v50 = vshrl.u32 %v13485_v4, 16 }
 0x12c   :  { %4291 = vrot.lane.b32.xlu0 %v13299_v37, %s12053_s24  ;;  %v775_v32 = vor.u32 %v774_v54, %v771_v36 }
 0x12d   :  { %v3862_v25 = vpop.permute.xlu1 %3861  ;;  %v808_v24 = vrot.slane %v806_v50, 4 }
 0x12e   :  { %v3720_v29 = vpop.permute.xlu0 %3719  ;;  %v776_v15 = vrot.slane %v775_v32, 4 }
 0x12f   :  { %3457 = vrot.lane.b32.xlu1 %v13402_v63, %s12047_s27 }
 0x130   :  { %4293 = vrot.lane.b32.xlu0 %v13402_v63, %s12053_s24  ;;  %v781_v22 = vsel %vm12206_vm5, %v776_v15, %v780_v13 }
 0x131   :  { %v4002_v55 = vpop.permute.xlu1 %4001  ;;  %v13490_v7 = vcombine.low %v781_v22, %v791_v20  ;;  %v814_v20 = vrot.slane %v812_v6, 5 }
 0x132   :  { %v3860_v12 = vpop.permute.xlu0 %3859 }
 0x133   :  { %3597 = vrot.lane.b32.xlu1 %v13415_v19, %s12046_s18 }
 0x134   :  { %3455 = vrot.lane.b32.xlu0 %v13299_v37, %s12047_s27  ;;  %v4420_v37 = vsel %vm4387_vm6, %v12597_v45, %v13311_v38  ;;  %v4604_v45 = vsel %vm4580_vm7, %v4423_v41, %v13365_v35  ;;  %v13477_v35 = vld [vmem:[%s20455_s0 + $0x120] sm:$0xf] }
 0x135   :  { %v4142_v27 = vpop.permute.xlu1 %4141  ;;  %v4602_v47 = vsel %vm4580_vm7, %v4420_v37, %v3440_v17  ;;  %v4733_v34 = vsel %vm4709_vm8, %v4604_v45, %v13377_v39  ;;  %v796_v58 = vshll.u32 %v13477_v35, 16 }
 0x136   :  { %v4000_v3 = vpop.permute.xlu0 %3999  ;;  %v4731_v8 = vsel %vm4709_vm8, %v4602_v47, %v3580_v48  ;;  %v4862_v30 = vsel %vm4838_vm9, %v4733_v34, %v13400_v49  ;;  %v802_v49 = vshll.u32 %v13485_v4, 16 }
 0x137   :  { %3737 = vrot.lane.b32.xlu1 %v13433_v52, %s12049_s19  ;;  %v4860_v38 = vsel %vm4838_vm9, %v4731_v8, %v3720_v29  ;;  %v793_v29 = vshrl.u32 %v13477_v35, 16  ;;  %v4991_v39 = vsel %vm4967_vm10, %v4862_v30, %v3862_v25  ;;  %v10694_v25 = vrot.slane %v13393_v62, 9 }
 0x138   :  { %3595 = vrot.lane.b32.xlu0 %v13321_v44, %s12046_s18  ;;  %v4989_v17 = vsel %vm4967_vm10, %v4860_v38, %v3860_v12  ;;  %v5120_v54 = vsel %vm5096_vm11, %v4991_v39, %v4002_v55  ;;  %v798_v53 = vrot.slane %v796_v58, 5  ;;  %v2147_v55 = vrot.slane %v13429_v0, 5  ;;  %v13535_v0 = vld [vmem:[%s20455_s0 + $0x130] sm:$0xf]  ;;  %v13569_v58 = vld [vmem:[%s20455_s0 + $0x134] sm:$0x1] }
 0x139   :  { %v13455_v1 = vpop.permute.xlu1 %3123  ;;  %v5118_v48 = vsel %vm5096_vm11, %v4989_v17, %v4000_v3  ;;  %v5249_v5 = vsel %vm5225_vm13, %v5120_v54, %v4142_v27  ;;  %v795_v61 = vrot.slane %v793_v29, 4  ;;  %v804_v32 = vrot.slane %v802_v49, 5  ;;  %v13530_v27 = vld [vmem:[%s20455_s0 + $0x12c] sm:$0xf] }
 0x13a   :  { %v4140_v14 = vpop.permute.xlu0 %4139  ;;  %v2145_v3 = vsel %vm12174_vm3, %v10694_v25, %v2144_v59  ;;  %v817_v47 = vshrl.u32 %v13530_v27, 16  ;;  %v820_v8 = vshll.u32 %v13530_v27, 16  ;;  %v826_v45 = vshll.u32 %v13535_v0, 16 }
 0x13b   :  { %3877 = vrot.lane.b32.xlu1 %v13444_v40, %s12050_s20  ;;  %v5247_v26 = vsel %vm5225_vm13, %v5118_v48, %v4140_v14  ;;  %v799_v28 = vor.u32 %v798_v53, %v795_v61  ;;  %v809_v11 = vor.u32 %v808_v24, %v804_v32  ;;  %v830_v14 = vshrl.u32 %v13535_v0, 16 }
 0x13c   :  { %3735 = vrot.lane.b32.xlu0 %v13353_v46, %s12049_s19  ;;  %v2151_v17 = vrot.slane %v13485_v4, 5  ;;  %v2154_v49 = vrot.slane %v119_v43, 5  ;;  %v836_v25 = vshll.u32 %v13569_v58, 16 }
 0x13d   :  { %v13480_v31 = vpop.permute.xlu1 %3125  ;;  %v800_v38 = vrot.slane %v799_v28, 4  ;;  %v810_v22 = vrot.slane %v809_v11, 4  ;;  %v832_v30 = vrot.slane %v830_v14, 4 }
 0x13e   :  { %v4280_v46 = vpop.permute.xlu0 %4279  ;;  %v2153_v50 = vrot.slane %v2151_v17, 4  ;;  %v4429_v43 = vsel %vm4387_vm6, %v12793_v42, %v13480_v31  ;;  %v13614_v31 = vcombine.low %v13530_v27, %v13535_v0 }
 0x13f   :  { %v5376_v56 = vsel %vm5354_vm12, %v5247_v26, %v4280_v46  ;;  %4017 = vrot.lane.b32.xlu1 %v13460_v9, %s12051_s28  ;;  %v819_v26 = vrot.slane %v817_v47, 4  ;;  %v822_v46 = vrot.slane %v820_v8, 5  ;;  %v805_v29 = vsel %vm12206_vm5, %v800_v38, %v804_v32 }
 0x140   :  { %v5495_v36 = vsel %vm5483_vm14, %v5376_v56, 0  ;;  %3875 = vrot.lane.b32.xlu0 %v13402_v63, %s12050_s20  ;;  %v2146_v63 = vrot.slane %v2144_v59, 4  ;;  %v828_v59 = vrot.slane %v826_v45, 5  ;;  %v13562_v56 = vcombine.low %v13477_v35, %v13485_v4 }
 0x141   :  { %11339 = vmatprep.mubr.msk.bf16.mxu0 %vm5565_vm15, %v5495_v36  ;;  %v13508_v13 = vpop.permute.xlu1 %3445  ;;  %v815_v39 = vsel %vm12206_vm5, %v810_v22, %v814_v20  ;;  %v10695_v36 = vrot.slane %v13477_v35, 9  ;;  %v2155_v35 = vsel %vm12174_vm3, %v2153_v50, %v2154_v49  ;;  %v838_v32 = vrot.slane %v836_v25, 5 }
 0x142   :  { %v4282_v10 = vpop.permute.xlu0 %4281  ;;  %v2148_v15 = vsel %vm12174_vm3, %v2146_v63, %v2147_v55  ;;  %v2158_v45 = vrot.slane %v13535_v0, 5  ;;  %v2161_v49 = vrot.slane %v13569_v58, 5  ;;  %v125_v58 = vld [vmem:[%s20455_s0 + $0x140] sm:$0x1] }
 0x143   :  { %v5378_v57 = vsel %vm5354_vm12, %v5249_v5, %v4282_v10  ;;  %4157 = vrot.lane.b32.xlu1 %v13490_v7, %s12052_s14  ;;  %v823_v5 = vor.u32 %v822_v46, %v819_v26  ;;  %v833_v10 = vor.u32 %v832_v30, %v828_v59  ;;  %v2152_v63 = vsel %vm12174_vm3, %v10695_v36, %v2151_v17 }
 0x144   :  { %v5496_v12 = vsel %vm5483_vm14, %v5378_v57, 0  ;;  %4015 = vrot.lane.b32.xlu0 %v13415_v19, %s12051_s28  ;;  %v13579_v57 = vcombine.low %v805_v29, %v815_v39  ;;  %v13589_v24 = vcombine.low %v2152_v63, %v2155_v35  ;;  %v10696_v39 = vrot.slane %v13530_v27, 9 }
 0x145   :  { %11340 = vmatmul.mubr.msk.bf16.gmra.mrb[20].mxu0 %vm5565_vm15, %v5496_v12  ;;  %v13520_v62 = vpop.permute.xlu1 %3585  ;;  %v824_v12 = vrot.slane %v823_v5, 4  ;;  %v834_v55 = vrot.slane %v833_v10, 4  ;;  %v2160_v36 = vrot.slane %v2158_v45, 4 }
 0x146   :  { %v3444_v23 = vpop.permute.xlu0 %3443 }
 0x147   :  { %3139 = vrot.lane.b32.xlu1 %v13433_v52, %s12048_s17  ;;  %v829_v6 = vsel %vm12206_vm5, %v824_v12, %v828_v59 }
 0x148   :  { %4155 = vrot.lane.b32.xlu0 %v13433_v52, %s12052_s14  ;;  %v13551_v52 = vcombine.low %v2145_v3, %v2148_v15 }
 0x149   :  { %v13543_v37 = vpop.permute.xlu1 %3725 }
 0x14a   :  { %v3584_v41 = vpop.permute.xlu0 %3583 }
 0x14b   :  { %3141 = vrot.lane.b32.xlu1 %v13490_v7, %s12048_s17 }
 0x14c   :  { %4295 = vrot.lane.b32.xlu0 %v13444_v40, %s12053_s24 }
 0x14d   :  { %v13556_v48 = vpop.permute.xlu1 %3865 }
 0x14e   :  { %v3724_v34 = vpop.permute.xlu0 %3723 }
 0x14f   :  { %3461 = vrot.lane.b32.xlu1 %v13551_v52, %s12047_s27 }
 0x150   :  { %4297 = vrot.lane.b32.xlu0 %v13551_v52, %s12053_s24 }
 0x151   :  { %v4006_v4 = vpop.permute.xlu1 %4005 }
 0x152   :  { %v3864_v54 = vpop.permute.xlu0 %3863 }
 0x153   :  { %3601 = vrot.lane.b32.xlu1 %v13562_v56, %s12046_s18 }
 0x154   :  { %3459 = vrot.lane.b32.xlu0 %v13444_v40, %s12047_s27  ;;  %v4426_v40 = vsel %vm4387_vm6, %v12743_v33, %v13455_v1  ;;  %v839_v33 = vsel %vm12206_vm5, %v834_v55, %v838_v32  ;;  %v4608_v1 = vsel %vm4580_vm7, %v4429_v43, %v13508_v13  ;;  %v13627_v13 = vld [vmem:[%s20455_s0 + $0x13c] sm:$0xf]  ;;  %v2159_v32 = vsel %vm12174_vm3, %v10696_v39, %v2158_v45 }
 0x155   :  { %v4146_v61 = vpop.permute.xlu1 %4145  ;;  %v4606_v28 = vsel %vm4580_vm7, %v4426_v40, %v3444_v23  ;;  %v13619_v23 = vld [vmem:[%s20455_s0 + $0x138] sm:$0xf]  ;;  %v13632_v14 = vcombine.low %v829_v6, %v839_v33  ;;  %v4737_v38 = vsel %vm4709_vm8, %v4608_v1, %v13520_v62  ;;  %v854_v0 = vshrl.u32 %v13627_v13, 16 }
 0x156   :  { %v4004_v53 = vpop.permute.xlu0 %4003  ;;  %v4735_v15 = vsel %vm4709_vm8, %v4606_v28, %v3584_v41  ;;  %v844_v17 = vshll.u32 %v13619_v23, 16  ;;  %v850_v46 = vshll.u32 %v13627_v13, 16  ;;  %v2162_v40 = vsel %vm12174_vm3, %v2160_v36, %v2161_v49 }
 0x157   :  { %3741 = vrot.lane.b32.xlu1 %v13579_v57, %s12049_s19  ;;  %v4864_v42 = vsel %vm4838_vm9, %v4735_v15, %v3724_v34  ;;  %v4866_v34 = vsel %vm4838_vm9, %v4737_v38, %v13543_v37  ;;  %v13655_v37 = vld [vmem:[%s20455_s0 + $0x144] sm:$0xf]  ;;  %v856_v27 = vrot.slane %v854_v0, 4  ;;  %v860_v15 = vshll.u32 %v125_v58, 16 }
 0x158   :  { %3599 = vrot.lane.b32.xlu0 %v13460_v9, %s12046_s18  ;;  %v4993_v41 = vsel %vm4967_vm10, %v4864_v42, %v3864_v54  ;;  %v4995_v62 = vsel %vm4967_vm10, %v4866_v34, %v13556_v48  ;;  %v13665_v48 = vld [vmem:[%s20455_s0 + $0x148] sm:$0xf]  ;;  %v846_v5 = vrot.slane %v844_v17, 5  ;;  %v852_v10 = vrot.slane %v850_v46, 5 }
 0x159   :  { %v13600_v3 = vpop.permute.xlu1 %3127  ;;  %v5122_v47 = vsel %vm5096_vm11, %v4993_v41, %v4004_v53  ;;  %v5124_v30 = vsel %vm5096_vm11, %v4995_v62, %v4006_v4  ;;  %v865_v25 = vshrl.u32 %v13655_v37, 16  ;;  %v868_v35 = vshll.u32 %v13655_v37, 16  ;;  %v13700_v41 = vld [vmem:[%s20455_s0 + $0x14c] sm:$0x1] }
 0x15a   :  { %v4144_v11 = vpop.permute.xlu0 %4143  ;;  %v874_v53 = vshll.u32 %v13665_v48, 16  ;;  %v857_v28 = vor.u32 %v856_v27, %v852_v10  ;;  %v13704_v45 = vcombine.low %v2159_v32, %v2162_v40  ;;  %v884_v34 = vshll.u32 %v13700_v41, 16  ;;  %v6566_v32 = vld [vmem:[%s20458_s3] sm:$0xff] }
 0x15b   :  { %3881 = vrot.lane.b32.xlu1 %v13589_v24, %s12050_s20  ;;  %v5251_v22 = vsel %vm5225_vm13, %v5122_v47, %v4144_v11  ;;  %v867_v11 = vrot.slane %v865_v25, 4  ;;  %v870_v6 = vrot.slane %v868_v35, 5  ;;  %v13714_v46 = vcombine.low %v13619_v23, %v13627_v13 }
 0x15c   :  { %3739 = vrot.lane.b32.xlu0 %v13490_v7, %s12049_s19  ;;  %v841_v7 = vshrl.u32 %v13619_v23, 16  ;;  %v876_v33 = vrot.slane %v874_v53, 5  ;;  %v2168_v39 = vrot.slane %v125_v58, 5  ;;  %v13749_v58 = vld [vmem:[%s20455_s0 + $0x150] sm:$0xf]  ;;  %v13776_v40 = vcombine.low %v13655_v37, %v13665_v48 }
 0x15d   :  { %v13630_v8 = vpop.permute.xlu1 %3129 }
 0x15e   :  { %v4284_v20 = vpop.permute.xlu0 %4283  ;;  %v843_v54 = vrot.slane %v841_v7, 4  ;;  %v871_v7 = vor.u32 %v870_v6, %v867_v11  ;;  %v4435_v25 = vsel %vm4387_vm6, %v12943_v60, %v13630_v8  ;;  %v13764_v60 = vld [vmem:[%s20455_s0 + $0x154] sm:$0xf]  ;;  %v4432_v8 = vsel %vm4387_vm6, %v12888_v21, %v13600_v3  ;;  %v6569_v11 = vld [vmem:[%s20458_s3 + $0x18] sm:$0xff] }
 0x15f   :  { %v5380_v26 = vsel %vm5354_vm12, %v5251_v22, %v4284_v20  ;;  %4021 = vrot.lane.b32.xlu1 %v13614_v31, %s12051_s28  ;;  %v862_v22 = vrot.slane %v860_v15, 5  ;;  %v858_v20 = vrot.slane %v857_v28, 4  ;;  %v2172_v28 = vrot.slane %v13665_v48, 5 }
 0x160   :  { %v5497_v59 = vsel %vm5483_vm14, %v5380_v26, 0  ;;  %3879 = vrot.lane.b32.xlu0 %v13551_v52, %s12050_s20  ;;  %v5253_v52 = vsel %vm5225_vm13, %v5124_v30, %v4146_v61  ;;  %v878_v61 = vshrl.u32 %v13665_v48, 16  ;;  %v847_v43 = vor.u32 %v846_v5, %v843_v54 }
 0x161   :  { %11343 = vmatprep.mubr.msk.bf16.mxu0 %vm5565_vm15, %v5497_v59  ;;  %v13659_v29 = vpop.permute.xlu1 %3449  ;;  %v10697_v59 = vrot.slane %v13619_v23, 9  ;;  %v863_v36 = vsel %vm12206_vm5, %v858_v20, %v862_v22  ;;  %v889_v6 = vshrl.u32 %v13749_v58, 16 }
 0x162   :  { %v4286_v50 = vpop.permute.xlu0 %4285  ;;  %v880_v1 = vrot.slane %v878_v61, 4  ;;  %v848_v38 = vrot.slane %v847_v43, 4  ;;  %v6568_v61 = vld [vmem:[%s20458_s3 + $0x10] sm:$0xff]  ;;  %v4612_v15 = vsel %vm4580_vm7, %v4435_v25, %v13659_v29 }
 0x163   :  { %v5382_v4 = vsel %vm5354_vm12, %v5253_v52, %v4286_v50  ;;  %4161 = vrot.lane.b32.xlu1 %v13632_v14, %s12052_s14  ;;  %v872_v52 = vrot.slane %v871_v7, 4 }
 0x164   :  { %v5498_v63 = vsel %vm5483_vm14, %v5382_v4, 0  ;;  %4019 = vrot.lane.b32.xlu0 %v13562_v56, %s12051_s28  ;;  %v881_v17 = vor.u32 %v880_v1, %v876_v33  ;;  %v853_v62 = vsel %vm12206_vm5, %v848_v38, %v852_v10 }
 0x165   :  { %11344 = vmatmul.mubr.msk.bf16.gmra.mrb[24].mxu0 %vm5565_vm15, %v5498_v63  ;;  %v13683_v12 = vpop.permute.xlu1 %3589  ;;  %v13729_v5 = vcombine.low %v853_v62, %v863_v36  ;;  %v877_v10 = vsel %vm12206_vm5, %v872_v52, %v876_v33  ;;  %v892_v33 = vshll.u32 %v13749_v58, 16 }
 0x166   :  { %v13685_v55 = vpop.permute.xlu0 %3447  ;;  %v882_v50 = vrot.slane %v881_v17, 4 }
 0x167   :  { %3143 = vrot.lane.b32.xlu1 %v13579_v57, %s12048_s17  ;;  %v4610_v21 = vsel %vm4580_vm7, %v4432_v8, %v13685_v55  ;;  %v902_v55 = vshrl.u32 %v13764_v60, 16 }
 0x168   :  { %4159 = vrot.lane.b32.xlu0 %v13579_v57, %s12052_s14  ;;  %v2165_v57 = vrot.slane %v13627_v13, 5  ;;  %v886_v13 = vrot.slane %v884_v34, 5 }
 0x169   :  { %v13695_v42 = vpop.permute.xlu1 %3729 }
 0x16a   :  { %v3588_v47 = vpop.permute.xlu0 %3587  ;;  %v2167_v30 = vrot.slane %v2165_v57, 4  ;;  %v2166_v23 = vsel %vm12174_vm3, %v10697_v59, %v2165_v57  ;;  %v887_v27 = vsel %vm12206_vm5, %v882_v50, %v886_v13  ;;  %v6567_v59 = vld [vmem:[%s20458_s3 + $0x8] sm:$0xff] }
 0x16b   :  { %3145 = vrot.lane.b32.xlu1 %v13632_v14, %s12048_s17  ;;  %v13778_v43 = vcombine.low %v877_v10, %v887_v27  ;;  %v4739_v1 = vsel %vm4709_vm8, %v4610_v21, %v3588_v47  ;;  %v898_v47 = vshll.u32 %v13764_v60, 16 }
 0x16c   :  { %4299 = vrot.lane.b32.xlu0 %v13589_v24, %s12053_s24  ;;  %v2169_v4 = vsel %vm12174_vm3, %v2167_v30, %v2168_v39  ;;  %v4741_v30 = vsel %vm4709_vm8, %v4612_v15, %v13683_v12 }
 0x16d   :  { %v13710_v26 = vpop.permute.xlu1 %3869  ;;  %v13759_v53 = vcombine.low %v2166_v23, %v2169_v4  ;;  %v4870_v50 = vsel %vm4838_vm9, %v4741_v30, %v13695_v42  ;;  %v894_v30 = vrot.slane %v892_v33, 5 }
 0x16e   :  { %v3728_v0 = vpop.permute.xlu0 %3727 }
 0x16f   :  { %3465 = vrot.lane.b32.xlu1 %v13704_v45, %s12047_s27  ;;  %v4868_v20 = vsel %vm4838_vm9, %v4739_v1, %v3728_v0 }
 0x170   :  { %4301 = vrot.lane.b32.xlu0 %v13704_v45, %s12053_s24 }
 0x171   :  { %v13725_v49 = vpop.permute.xlu1 %4009 }
 0x172   :  { %v3868_v54 = vpop.permute.xlu0 %3867 }
 0x173   :  { %3605 = vrot.lane.b32.xlu1 %v13714_v46, %s12046_s18  ;;  %v4997_v39 = vsel %vm4967_vm10, %v4868_v20, %v3868_v54 }
 0x174   :  { %3463 = vrot.lane.b32.xlu0 %v13589_v24, %s12047_s27  ;;  %v13754_v24 = vld [vmem:[%s20457_s2] ss:$0 sm:$0xff] }
 0x175   :  { %v13744_v63 = vpop.permute.xlu1 %4149 }
 0x176   :  { %v4008_v35 = vpop.permute.xlu0 %4007 }
 0x177   :  { %3745 = vrot.lane.b32.xlu1 %v13729_v5, %s12049_s19  ;;  %v5126_v13 = vsel %vm5096_vm11, %v4997_v39, %v4008_v35 }
 0x178   :  { %v11321_v3 = vpop.f32.mrb[0].mxu0  ;;  %3603 = vrot.lane.b32.xlu0 %v13614_v31, %s12046_s18 }
 0x179   :  { %v6248_v38 = vadd.f32 %v11321_v3, %v13754_v24  ;;  %v6600_v29 = vsub.f32 %v6568_v61, %v11321_v3  ;;  %v5728_v22 = vpop.f32.mrb[1].mxu0  ;;  %v13794_v57 = vpop.permute.xlu1 %3131 }
 0x17a   :  { %v6246_v7 = vadd.f32 %v13754_v24, %v5728_v22  ;;  %v6598_v17 = vsub.f32 %v6566_v32, %v5728_v22  ;;  %v11322_v34 = vpop.f32.mrb[2].mxu0  ;;  %v4148_v62 = vpop.permute.xlu0 %4147 }
 0x17b   :  { %v6249_v36 = vadd.f32 %v11322_v34, %v13754_v24  ;;  %v6601_v52 = vsub.f32 %v6569_v11, %v11322_v34  ;;  %v5731_v0 = vpop.f32.mrb[3].mxu0  ;;  %3885 = vrot.lane.b32.xlu1 %v13759_v53, %s12050_s20  ;;  %v6376_v23 = vmax.f32 %v6248_v38, 0.0  ;;  %v13815_v12 = vmax.f32 %v6600_v29, 0.0  ;;  %v13843_v29 = vld [vmem:[%s20455_s0 + $0x15c] sm:$0xf] }
 0x17c   :  { %v6247_v4 = vadd.f32 %v13754_v24, %v5731_v0  ;;  %3743 = vrot.lane.b32.xlu0 %v13632_v14, %s12049_s19  ;;  %v6599_v27 = vsub.f32 %v6567_v59, %v5731_v0  ;;  %v6374_v61 = vmax.f32 %v6246_v7, 0.0  ;;  %v13821_v8 = vmax.f32 %v6598_v17, 0.0  ;;  %v13858_v17 = vld [vmem:[%s20455_s0 + $0x160] sm:$0xf]  ;;  %v6575_v14 = vld [vmem:[%s20458_s3 + $0x48] sm:$0xff] }
 0x17d   :  { %20608 = vst [vmem:[#allocation2_spill] sm:$0xff] %v13815_v12  ;;  %v6377_v54 = vmax.f32 %v6249_v36, 0.0  ;;  %v13817_v10 = vmax.f32 %v6601_v52, 0.0  ;;  %v13819_v25 = vpop.permute.xlu1 %3133  ;;  %v5255_v42 = vsel %vm5225_vm13, %v5126_v13, %v4148_v62  ;;  %v4999_v11 = vsel %vm4967_vm10, %v4870_v50, %v13710_v26 }
 0x17e   :  { %20610 = vst [vmem:[#allocation4_spill] sm:$0xff] %v13821_v8  ;;  %v6375_v35 = vmax.f32 %v6247_v4, 0.0  ;;  %v4288_v32 = vpop.permute.xlu0 %4287  ;;  %v13828_v21 = vmax.f32 %v6599_v27, 0.0  ;;  %v5128_v22 = vsel %vm5096_vm11, %v4999_v11, %v13725_v49  ;;  %v10698_v7 = vrot.slane %v13655_v37, 9 }
 0x17f   :  { %20609 = vst [vmem:[#allocation3_spill] sm:$0xff] %v13817_v10  ;;  %v13824_v15 = vpack.c.bf16 %v6377_v54, %v6376_v23  ;;  %v5384_v3 = vsel %vm5354_vm12, %v5255_v42, %v4288_v32  ;;  %4025 = vrot.lane.b32.xlu1 %v13776_v40, %s12051_s28  ;;  %v5257_v49 = vsel %vm5225_vm13, %v5128_v22, %v13744_v63  ;;  %v2175_v62 = vrot.slane %v13700_v41, 5  ;;  %v131_v41 = vld [vmem:[%s20455_s0 + $0x158] sm:$0x1] }
 0x180   :  { %20612 = vst [vmem:[#allocation6_spill] sm:$0xff] %v13828_v21  ;;  %v13835_v1 = vpack.c.bf16 %v6375_v35, %v6374_v61  ;;  %v5499_v38 = vsel %vm5483_vm14, %v5384_v3, 0  ;;  %3883 = vrot.lane.b32.xlu0 %v13704_v45, %s12050_s20  ;;  %v2174_v45 = vrot.slane %v2172_v28, 4  ;;  %v891_v59 = vrot.slane %v889_v6, 4 }
 0x181   :  { %20611 = vst [vmem:[#allocation5_spill] sm:$0xff] %v13824_v15  ;;  %11347 = vmatprep.mubr.msk.bf16.mxu0 %vm5565_vm15, %v5499_v38  ;;  %v13850_v26 = vpop.permute.xlu1 %3453  ;;  %v900_v37 = vrot.slane %v898_v47, 5  ;;  %v904_v36 = vrot.slane %v902_v55, 4  ;;  %v913_v52 = vshrl.u32 %v13843_v29, 16  ;;  %v916_v63 = vshll.u32 %v13843_v29, 16 }
 0x182   :  { %20613 = vst [vmem:[#allocation7_spill] sm:$0xff] %v13835_v1  ;;  %v4290_v34 = vpop.permute.xlu0 %4289  ;;  %v926_v6 = vshrl.u32 %v13858_v17, 16  ;;  %v922_v33 = vshll.u32 %v13858_v17, 16  ;;  %v2173_v50 = vsel %vm12174_vm3, %v10698_v7, %v2172_v28  ;;  %v2176_v13 = vsel %vm12174_vm3, %v2174_v45, %v2175_v62  ;;  %v13896_v28 = vld [vmem:[%s20455_s0 + $0x164] sm:$0x1] }
 0x183   :  { %v5386_v39 = vsel %vm5354_vm12, %v5257_v49, %v4290_v34  ;;  %4165 = vrot.lane.b32.xlu1 %v13778_v43, %s12052_s14  ;;  %v895_v23 = vor.u32 %v894_v30, %v891_v59  ;;  %v905_v4 = vor.u32 %v904_v36, %v900_v37  ;;  %v908_v54 = vshll.u32 %v131_v41, 16 }
 0x184   :  { %v5500_v0 = vsel %vm5483_vm14, %v5386_v39, 0  ;;  %4023 = vrot.lane.b32.xlu0 %v13714_v46, %s12051_s28  ;;  %v915_v27 = vrot.slane %v913_v52, 4  ;;  %v918_v61 = vrot.slane %v916_v63, 5  ;;  %v924_v42 = vrot.slane %v922_v33, 5 }
 0x185   :  { %11348 = vmatmul.mubr.msk.bf16.gmra.mrb[28].mxu0 %vm5565_vm15, %v5500_v0  ;;  %v13877_v55 = vpop.permute.xlu1 %3593  ;;  %v928_v35 = vrot.slane %v926_v6, 4  ;;  %v13900_v3 = vcombine.low %v2173_v50, %v2176_v13  ;;  %v896_v11 = vrot.slane %v895_v23, 4  ;;  %v910_v38 = vrot.slane %v908_v54, 5 }
 0x186   :  { %v13879_v47 = vpop.permute.xlu0 %3451  ;;  %v906_v22 = vrot.slane %v905_v4, 4  ;;  %v919_v7 = vor.u32 %v918_v61, %v915_v27  ;;  %v932_v49 = vshll.u32 %v13896_v28, 16  ;;  %v13910_v59 = vcombine.low %v13749_v58, %v13764_v60 }
 0x187   :  { %3147 = vrot.lane.b32.xlu1 %v13729_v5, %s12048_s17  ;;  %v929_v45 = vor.u32 %v928_v35, %v924_v42  ;;  %v901_v30 = vsel %vm12206_vm5, %v896_v11, %v900_v37  ;;  %v10699_v39 = vrot.slane %v13749_v58, 9  ;;  %v2182_v52 = vrot.slane %v131_v41, 5  ;;  %v11937_v37 = vld [vmem:[%s20455_s0 + $0xd8] sm:$0xf]  ;;  %v11938_v58 = vld [vmem:[%s20455_s0 + $0xdc] sm:$0xf] }
 0x188   :  { %4163 = vrot.lane.b32.xlu0 %v13729_v5, %s12052_s14  ;;  %v2179_v5 = vrot.slane %v13764_v60, 5  ;;  %v911_v0 = vsel %vm12206_vm5, %v906_v22, %v910_v38  ;;  %v920_v63 = vrot.slane %v919_v7, 4  ;;  %v934_v60 = vrot.slane %v932_v49, 5  ;;  %v13951_v11 = vld [vmem:[%s20455_s0 + $0x168] sm:$0xf] }
 0x189   :  { %v13891_v48 = vpop.permute.xlu1 %3733  ;;  %v930_v6 = vrot.slane %v929_v45, 4  ;;  %v10761_v41 = vcombine.low %v11937_v37, %v11938_v58  ;;  %v13931_v13 = vcombine.low %v901_v30, %v911_v0  ;;  %v4441_v61 = vsel %vm4387_vm6, %v13289_v18, %v13819_v25  ;;  %v6570_v25 = vld [vmem:[%s20458_s3 + $0x20] sm:$0xff] }
 0x18a   :  { %v3592_v32 = vpop.permute.xlu0 %3591  ;;  %v2181_v36 = vrot.slane %v2179_v5, 4  ;;  %v2180_v23 = vsel %vm12174_vm3, %v10699_v39, %v2179_v5  ;;  %v925_v54 = vsel %vm12206_vm5, %v920_v63, %v924_v42  ;;  %v13961_v5 = vld [vmem:[%s20455_s0 + $0x16c] sm:$0xf]  ;;  %v13972_v22 = vcombine.low %v13843_v29, %v13858_v17  ;;  %v6573_v39 = vld [vmem:[%s20458_s3 + $0x38] sm:$0xff] }
 0x18b   :  { %3149 = vrot.lane.b32.xlu1 %v13778_v43, %s12048_s17  ;;  %v935_v27 = vsel %vm12206_vm5, %v930_v6, %v934_v60  ;;  %v4438_v18 = vsel %vm4387_vm6, %v10761_v41, %v13794_v57  ;;  %v2186_v45 = vrot.slane %v13858_v17, 5  ;;  %v4616_v49 = vsel %vm4580_vm7, %v4441_v61, %v13850_v26 }
 0x18c   :  { %4303 = vrot.lane.b32.xlu0 %v13759_v53, %s12053_s24  ;;  %v2183_v4 = vsel %vm12174_vm3, %v2181_v36, %v2182_v52  ;;  %v13974_v7 = vcombine.low %v925_v54, %v935_v27  ;;  %v4614_v57 = vsel %vm4580_vm7, %v4438_v18, %v13879_v47  ;;  %v937_v36 = vshrl.u32 %v13951_v11, 16  ;;  %v6571_v54 = vld [vmem:[%s20458_s3 + $0x28] sm:$0xff] }
 0x18d   :  { %v13906_v34 = vpop.permute.xlu1 %3873  ;;  %v13956_v42 = vcombine.low %v2180_v23, %v2183_v4  ;;  %v940_v52 = vshll.u32 %v13951_v11, 16  ;;  %v4743_v0 = vsel %vm4709_vm8, %v4614_v57, %v3592_v32  ;;  %v950_v47 = vshrl.u32 %v13961_v5, 16 }
 0x18e   :  { %v3732_v62 = vpop.permute.xlu0 %3731  ;;  %v946_v32 = vshll.u32 %v13961_v5, 16  ;;  %v4745_v27 = vsel %vm4709_vm8, %v4616_v49, %v13877_v55 }
 0x18f   :  { %3469 = vrot.lane.b32.xlu1 %v13900_v3, %s12047_s27  ;;  %v4872_v37 = vsel %vm4838_vm9, %v4743_v0, %v3732_v62 }
 0x190   :  { %4305 = vrot.lane.b32.xlu0 %v13900_v3, %s12053_s24 }
 0x191   :  { %v13921_v33 = vpop.permute.xlu1 %4013 }
 0x192   :  { %v3872_v50 = vpop.permute.xlu0 %3871 }
 0x193   :  { %3609 = vrot.lane.b32.xlu1 %v13910_v59, %s12046_s18  ;;  %v5001_v61 = vsel %vm4967_vm10, %v4872_v37, %v3872_v50 }
 0x194   :  { %3467 = vrot.lane.b32.xlu0 %v13759_v53, %s12047_s27  ;;  %v6572_v53 = vld [vmem:[%s20458_s3 + $0x30] sm:$0xff] }
 0x195   :  { %v13946_v35 = vpop.permute.xlu1 %4153 }
 0x196   :  { %v4012_v38 = vpop.permute.xlu0 %4011 }
 0x197   :  { %3749 = vrot.lane.b32.xlu1 %v13931_v13, %s12049_s19  ;;  %v5130_v57 = vsel %vm5096_vm11, %v5001_v61, %v4012_v38 }
 0x198   :  { %v11325_v30 = vpop.f32.mrb[4].mxu0  ;;  %3607 = vrot.lane.b32.xlu0 %v13776_v40, %s12046_s18 }
 0x199   :  { %v6252_v63 = vadd.f32 %v11325_v30, %v13754_v24  ;;  %v6604_v26 = vsub.f32 %v6572_v53, %v11325_v30  ;;  %v5744_v6 = vpop.f32.mrb[5].mxu0  ;;  %v13990_v60 = vpop.permute.xlu1 %3135 }
 0x19a   :  { %v6250_v58 = vadd.f32 %v13754_v24, %v5744_v6  ;;  %v6602_v41 = vsub.f32 %v6570_v25, %v5744_v6  ;;  %v11326_v23 = vpop.f32.mrb[6].mxu0  ;;  %v4152_v4 = vpop.permute.xlu0 %4151  ;;  %v4874_v25 = vsel %vm4838_vm9, %v4745_v27, %v13891_v48 }
 0x19b   :  { %v6253_v53 = vadd.f32 %v11326_v23, %v13754_v24  ;;  %v6605_v18 = vsub.f32 %v6573_v39, %v11326_v23  ;;  %v5747_v62 = vpop.f32.mrb[7].mxu0  ;;  %3889 = vrot.lane.b32.xlu1 %v13956_v42, %s12050_s20  ;;  %v6380_v30 = vmax.f32 %v6252_v63, 0.0  ;;  %v14011_v55 = vmax.f32 %v6604_v26, 0.0 }
 0x19c   :  { %v6251_v0 = vadd.f32 %v13754_v24, %v5747_v62  ;;  %3747 = vrot.lane.b32.xlu0 %v13778_v43, %s12049_s19  ;;  %v6603_v39 = vsub.f32 %v6571_v54, %v5747_v62  ;;  %v6378_v37 = vmax.f32 %v6250_v58, 0.0  ;;  %v14017_v23 = vmax.f32 %v6602_v41, 0.0  ;;  %v14039_v54 = vld [vmem:[%s20455_s0 + $0x174] sm:$0xf] }
 0x19d   :  { %20614 = vst [vmem:[#allocation8_spill] sm:$0xff] %v14011_v55  ;;  %v6381_v50 = vmax.f32 %v6253_v53, 0.0  ;;  %v14013_v49 = vmax.f32 %v6605_v18, 0.0  ;;  %v14015_v6 = vpop.permute.xlu1 %3137  ;;  %v5259_v48 = vsel %vm5225_vm13, %v5130_v57, %v4152_v4  ;;  %v5003_v58 = vsel %vm4967_vm10, %v4874_v25, %v13906_v34  ;;  %v14054_v25 = vld [vmem:[%s20455_s0 + $0x178] sm:$0xf] }
 0x19e   :  { %20616 = vst [vmem:[#allocation10_spill] sm:$0xff] %v14017_v23  ;;  %v6379_v38 = vmax.f32 %v6251_v0, 0.0  ;;  %v4292_v63 = vpop.permute.xlu0 %4291  ;;  %v14024_v26 = vmax.f32 %v6603_v39, 0.0  ;;  %v5132_v53 = vsel %vm5096_vm11, %v5003_v58, %v13921_v33  ;;  %v10700_v62 = vrot.slane %v13843_v29, 9 }
 0x19f   :  { %20615 = vst [vmem:[#allocation9_spill] sm:$0xff] %v14013_v49  ;;  %v14020_v27 = vpack.c.bf16 %v6381_v50, %v6380_v30  ;;  %v5388_v61 = vsel %vm5354_vm12, %v5259_v48, %v4292_v63  ;;  %4029 = vrot.lane.b32.xlu1 %v13972_v22, %s12051_s28  ;;  %v5261_v33 = vsel %vm5225_vm13, %v5132_v53, %v13946_v35  ;;  %v2189_v30 = vrot.slane %v13896_v28, 5  ;;  %v137_v28 = vld [vmem:[%s20455_s0 + $0x170] sm:$0x1] }
 0x1a0   :  { %20618 = vst [vmem:[#allocation12_spill] sm:$0xff] %v14024_v26  ;;  %v14031_v41 = vpack.c.bf16 %v6379_v38, %v6378_v37  ;;  %v5501_v4 = vsel %vm5483_vm14, %v5388_v61, 0  ;;  %3887 = vrot.lane.b32.xlu0 %v13900_v3, %s12050_s20  ;;  %v2188_v3 = vrot.slane %v2186_v45, 4  ;;  %v939_v0 = vrot.slane %v937_v36, 4 }
 0x1a1   :  { %20617 = vst [vmem:[#allocation11_spill] sm:$0xff] %v14020_v27  ;;  %11351 = vmatprep.mubr.msk.bf16.mxu0 %vm5565_vm15, %v5501_v4  ;;  %v14046_v34 = vpop.permute.xlu1 %3457  ;;  %v942_v50 = vrot.slane %v940_v52, 5  ;;  %v948_v29 = vrot.slane %v946_v32, 5  ;;  %v952_v37 = vrot.slane %v950_v47, 4  ;;  %v961_v48 = vshrl.u32 %v14039_v54, 16 }
 0x1a2   :  { %20619 = vst [vmem:[#allocation13_spill] sm:$0xff] %v14031_v41  ;;  %v4294_v57 = vpop.permute.xlu0 %4293  ;;  %v964_v35 = vshll.u32 %v14039_v54, 16  ;;  %v974_v36 = vshrl.u32 %v14054_v25, 16  ;;  %v970_v52 = vshll.u32 %v14054_v25, 16  ;;  %v2187_v63 = vsel %vm12174_vm3, %v10700_v62, %v2186_v45  ;;  %v14090_v45 = vld [vmem:[%s20455_s0 + $0x17c] sm:$0x1] }
 0x1a3   :  { %v5390_v39 = vsel %vm5354_vm12, %v5261_v33, %v4294_v57  ;;  %4169 = vrot.lane.b32.xlu1 %v13974_v7, %s12052_s14  ;;  %v2190_v61 = vsel %vm12174_vm3, %v2188_v3, %v2189_v30  ;;  %v943_v58 = vor.u32 %v942_v50, %v939_v0  ;;  %v953_v4 = vor.u32 %v952_v37, %v948_v29 }
 0x1a4   :  { %v5502_v38 = vsel %vm5483_vm14, %v5390_v39, 0  ;;  %4027 = vrot.lane.b32.xlu0 %v13910_v59, %s12051_s28  ;;  %v956_v53 = vshll.u32 %v137_v28, 16  ;;  %v963_v33 = vrot.slane %v961_v48, 4  ;;  %v966_v57 = vrot.slane %v964_v35, 5 }
 0x1a5   :  { %11352 = vmatmul.mubr.msk.bf16.gmra.mrb[32].mxu0 %vm5565_vm15, %v5502_v38  ;;  %v14073_v47 = vpop.permute.xlu1 %3597  ;;  %v972_v39 = vrot.slane %v970_v52, 5  ;;  %v976_v38 = vrot.slane %v974_v36, 4  ;;  %v14092_v18 = vcombine.low %v2187_v63, %v2190_v61  ;;  %v944_v3 = vrot.slane %v943_v58, 4 }
 0x1a6   :  { %v3456_v32 = vpop.permute.xlu0 %3455  ;;  %v954_v30 = vrot.slane %v953_v4, 4  ;;  %v2193_v0 = vrot.slane %v13961_v5, 5  ;;  %v967_v50 = vor.u32 %v966_v57, %v963_v33  ;;  %v980_v48 = vshll.u32 %v14090_v45, 16 }
 0x1a7   :  { %3151 = vrot.lane.b32.xlu1 %v13931_v13, %s12048_s17  ;;  %v977_v37 = vor.u32 %v976_v38, %v972_v39  ;;  %v14104_v52 = vcombine.low %v13951_v11, %v13961_v5  ;;  %v949_v63 = vsel %vm12206_vm5, %v944_v3, %v948_v29  ;;  %v10701_v58 = vrot.slane %v13951_v11, 9 }
 0x1a8   :  { %4167 = vrot.lane.b32.xlu0 %v13931_v13, %s12052_s14  ;;  %v958_v13 = vrot.slane %v956_v53, 5  ;;  %v2195_v4 = vrot.slane %v2193_v0, 4  ;;  %v2196_v53 = vrot.slane %v137_v28, 5  ;;  %v968_v33 = vrot.slane %v967_v50, 4 }
 0x1a9   :  { %v14085_v17 = vpop.permute.xlu1 %3737  ;;  %v978_v57 = vrot.slane %v977_v37, 4  ;;  %v982_v5 = vrot.slane %v980_v48, 5  ;;  %v2194_v11 = vsel %vm12174_vm3, %v10701_v58, %v2193_v0  ;;  %v6576_v37 = vld [vmem:[%s20458_s3 + $0x50] sm:$0xff] }
 0x1aa   :  { %v3596_v62 = vpop.permute.xlu0 %3595  ;;  %v959_v61 = vsel %vm12206_vm5, %v954_v30, %v958_v13  ;;  %v2197_v28 = vsel %vm12174_vm3, %v2195_v4, %v2196_v53  ;;  %v973_v3 = vsel %vm12206_vm5, %v968_v33, %v972_v39  ;;  %v4447_v13 = vsel %vm4387_vm6, %v13321_v44, %v14015_v6  ;;  %v14147_v39 = vld [vmem:[%s20455_s0 + $0x184] sm:$0xf]  ;;  %v6577_v4 = vld [vmem:[%s20458_s3 + $0x58] sm:$0xff] }
 0x1ab   :  { %3153 = vrot.lane.b32.xlu1 %v13974_v7, %s12048_s17  ;;  %v14119_v29 = vcombine.low %v949_v63, %v959_v61  ;;  %v983_v30 = vsel %vm12206_vm5, %v978_v57, %v982_v5  ;;  %v4444_v44 = vsel %vm4387_vm6, %v13268_v2, %v13990_v60  ;;  %v6574_v6 = vld [vmem:[%s20458_s3 + $0x40] sm:$0xff]  ;;  %v14157_v48 = vcombine.low %v2194_v11, %v2197_v28 }
 0x1ac   :  { %4307 = vrot.lane.b32.xlu0 %v13956_v42, %s12053_s24  ;;  %v14161_v63 = vcombine.low %v14039_v54, %v14054_v25  ;;  %v14163_v61 = vcombine.low %v973_v3, %v983_v30  ;;  %v4620_v58 = vsel %vm4580_vm7, %v4447_v13, %v14046_v34  ;;  %v4618_v2 = vsel %vm4580_vm7, %v4444_v44, %v3456_v32 }
 0x1ad   :  { %v14100_v35 = vpop.permute.xlu1 %3877  ;;  %v4747_v57 = vsel %vm4709_vm8, %v4618_v2, %v3596_v62  ;;  %v998_v32 = vshrl.u32 %v14147_v39, 16  ;;  %v994_v62 = vshll.u32 %v14147_v39, 16 }
 0x1ae   :  { %v3736_v36 = vpop.permute.xlu0 %3735 }
 0x1af   :  { %3473 = vrot.lane.b32.xlu1 %v14092_v18, %s12047_s27  ;;  %v4876_v3 = vsel %vm4838_vm9, %v4747_v57, %v3736_v36 }
 0x1b0   :  { %4309 = vrot.lane.b32.xlu0 %v14092_v18, %s12053_s24 }
 0x1b1   :  { %v14115_v38 = vpop.permute.xlu1 %4017 }
 0x1b2   :  { %v3876_v43 = vpop.permute.xlu0 %3875 }
 0x1b3   :  { %3613 = vrot.lane.b32.xlu1 %v14104_v52, %s12046_s18  ;;  %v5005_v2 = vsel %vm4967_vm10, %v4876_v3, %v3876_v43 }
 0x1b4   :  { %3471 = vrot.lane.b32.xlu0 %v13956_v42, %s12047_s27  ;;  %v14139_v42 = vld [vmem:[%s20455_s0 + $0x180] sm:$0xf] }
 0x1b5   :  { %v14134_v50 = vpop.permute.xlu1 %4157  ;;  %v985_v53 = vshrl.u32 %v14139_v42, 16  ;;  %v988_v33 = vshll.u32 %v14139_v42, 16 }
 0x1b6   :  { %v4016_v0 = vpop.permute.xlu0 %4015 }
 0x1b7   :  { %3753 = vrot.lane.b32.xlu1 %v14119_v29, %s12049_s19  ;;  %v5134_v57 = vsel %vm5096_vm11, %v5005_v2, %v4016_v0  ;;  %v14232_v2 = vld [vmem:[%s20455_s0 + $0x190] sm:$0xf] }
 0x1b8   :  { %v11329_v60 = vpop.f32.mrb[8].mxu0  ;;  %3611 = vrot.lane.b32.xlu0 %v13972_v22, %s12046_s18 }
 0x1b9   :  { %v6256_v5 = vadd.f32 %v11329_v60, %v13754_v24  ;;  %v6608_v11 = vsub.f32 %v6576_v37, %v11329_v60  ;;  %v5760_v34 = vpop.f32.mrb[9].mxu0  ;;  %v14177_v28 = vpop.permute.xlu1 %3139  ;;  %v4749_v37 = vsel %vm4709_vm8, %v4620_v58, %v14073_v47 }
 0x1ba   :  { %v6254_v30 = vadd.f32 %v13754_v24, %v5760_v34  ;;  %v6606_v13 = vsub.f32 %v6574_v6, %v5760_v34  ;;  %v11330_v44 = vpop.f32.mrb[10].mxu0  ;;  %v4156_v20 = vpop.permute.xlu0 %4155  ;;  %v4878_v6 = vsel %vm4838_vm9, %v4749_v37, %v14085_v17 }
 0x1bb   :  { %v6257_v60 = vadd.f32 %v11330_v44, %v13754_v24  ;;  %v6609_v27 = vsub.f32 %v6577_v4, %v11330_v44  ;;  %v5763_v36 = vpop.f32.mrb[11].mxu0  ;;  %3893 = vrot.lane.b32.xlu1 %v14157_v48, %s12050_s20  ;;  %v6384_v34 = vmax.f32 %v6256_v5, 0.0  ;;  %v14198_v47 = vmax.f32 %v6608_v11, 0.0 }
 0x1bc   :  { %v6255_v41 = vadd.f32 %v13754_v24, %v5763_v36  ;;  %3751 = vrot.lane.b32.xlu0 %v13974_v7, %s12049_s19  ;;  %v6607_v4 = vsub.f32 %v6575_v14, %v5763_v36  ;;  %v6382_v44 = vmax.f32 %v6254_v30, 0.0  ;;  %v14204_v15 = vmax.f32 %v6606_v13, 0.0  ;;  %v14219_v14 = vld [vmem:[%s20455_s0 + $0x18c] sm:$0xf] }
 0x1bd   :  { %20620 = vst [vmem:[#allocation14_spill] sm:$0xff] %v14198_v47  ;;  %v6385_v43 = vmax.f32 %v6257_v60, 0.0  ;;  %v14200_v58 = vmax.f32 %v6609_v27, 0.0  ;;  %v14202_v3 = vpop.permute.xlu1 %3141  ;;  %v5263_v17 = vsel %vm5225_vm13, %v5134_v57, %v4156_v20  ;;  %v5007_v20 = vsel %vm4967_vm10, %v4878_v6, %v14100_v35  ;;  %v6579_v47 = vld [vmem:[%s20458_s3 + $0x68] sm:$0xff] }
 0x1be   :  { %20622 = vst [vmem:[#allocation16_spill] sm:$0xff] %v14204_v15  ;;  %v6383_v0 = vmax.f32 %v6255_v41, 0.0  ;;  %v4296_v5 = vpop.permute.xlu0 %4295  ;;  %v14211_v11 = vmax.f32 %v6607_v4, 0.0  ;;  %v2200_v13 = vrot.slane %v14054_v25, 5  ;;  %v5136_v60 = vsel %vm5096_vm11, %v5007_v20, %v14115_v38  ;;  %v143_v38 = vld [vmem:[%s20455_s0 + $0x188] sm:$0x1] }
 0x1bf   :  { %20621 = vst [vmem:[#allocation15_spill] sm:$0xff] %v14200_v58  ;;  %v14207_v37 = vpack.c.bf16 %v6385_v43, %v6384_v34  ;;  %v5392_v27 = vsel %vm5354_vm12, %v5263_v17, %v4296_v5  ;;  %4033 = vrot.lane.b32.xlu1 %v14161_v63, %s12051_s28  ;;  %v987_v6 = vrot.slane %v985_v53, 4  ;;  %v990_v57 = vrot.slane %v988_v33, 5 }
 0x1c0   :  { %20624 = vst [vmem:[#allocation18_spill] sm:$0xff] %v14211_v11  ;;  %v14223_v41 = vpack.c.bf16 %v6383_v0, %v6382_v44  ;;  %v5503_v30 = vsel %vm5483_vm14, %v5392_v27, 0  ;;  %3891 = vrot.lane.b32.xlu0 %v14092_v18, %s12050_s20  ;;  %v5265_v18 = vsel %vm5225_vm13, %v5136_v60, %v14134_v50  ;;  %v996_v34 = vrot.slane %v994_v62, 5 }
 0x1c1   :  { %20623 = vst [vmem:[#allocation17_spill] sm:$0xff] %v14207_v37  ;;  %11355 = vmatprep.mubr.msk.bf16.mxu0 %vm5565_vm15, %v5503_v30  ;;  %v14239_v36 = vpop.permute.xlu1 %3461  ;;  %v1000_v43 = vrot.slane %v998_v32, 4  ;;  %v1009_v4 = vshrl.u32 %v14219_v14, 16  ;;  %v1012_v53 = vshll.u32 %v14219_v14, 16  ;;  %v1022_v33 = vshrl.u32 %v14232_v2, 16 }
 0x1c2   :  { %20625 = vst [vmem:[#allocation19_spill] sm:$0xff] %v14223_v41  ;;  %v4298_v25 = vpop.permute.xlu0 %4297  ;;  %v1018_v50 = vshll.u32 %v14232_v2, 16  ;;  %v10702_v32 = vrot.slane %v14039_v54, 9  ;;  %v2202_v17 = vrot.slane %v2200_v13, 4  ;;  %v2203_v0 = vrot.slane %v14090_v45, 5 }
 0x1c3   :  { %v5394_v44 = vsel %vm5354_vm12, %v5265_v18, %v4298_v25  ;;  %4173 = vrot.lane.b32.xlu1 %v14163_v61, %s12052_s14  ;;  %v991_v20 = vor.u32 %v990_v57, %v987_v6  ;;  %v1001_v30 = vor.u32 %v1000_v43, %v996_v34  ;;  %v1004_v60 = vshll.u32 %v143_v38, 16  ;;  %v14274_v6 = vld [vmem:[%s20455_s0 + $0x194] sm:$0x1] }
 0x1c4   :  { %v5504_v62 = vsel %vm5483_vm14, %v5394_v44, 0  ;;  %4031 = vrot.lane.b32.xlu0 %v14104_v52, %s12051_s28  ;;  %v1011_v18 = vrot.slane %v1009_v4, 4  ;;  %v1014_v25 = vrot.slane %v1012_v53, 5  ;;  %v1020_v44 = vrot.slane %v1018_v50, 5 }
 0x1c5   :  { %11356 = vmatmul.mubr.msk.bf16.gmra.mrb[36].mxu0 %vm5565_vm15, %v5504_v62  ;;  %v14259_v5 = vpop.permute.xlu1 %3601  ;;  %v1024_v35 = vrot.slane %v1022_v33, 4  ;;  %v2201_v54 = vsel %vm12174_vm3, %v10702_v32, %v2200_v13  ;;  %v2204_v45 = vsel %vm12174_vm3, %v2202_v17, %v2203_v0  ;;  %v992_v4 = vrot.slane %v991_v20, 4 }
 0x1c6   :  { %v14261_v27 = vpop.permute.xlu0 %3459  ;;  %v1002_v53 = vrot.slane %v1001_v30, 4  ;;  %v1006_v33 = vrot.slane %v1004_v60, 5  ;;  %v2207_v50 = vrot.slane %v14147_v39, 5  ;;  %v1015_v13 = vor.u32 %v1014_v25, %v1011_v18 }
 0x1c7   :  { %3155 = vrot.lane.b32.xlu1 %v14119_v29, %s12048_s17  ;;  %v1025_v62 = vor.u32 %v1024_v35, %v1020_v44  ;;  %v1028_v32 = vshll.u32 %v14274_v6, 16  ;;  %v14290_v0 = vcombine.low %v14139_v42, %v14147_v39  ;;  %v997_v30 = vsel %vm12206_vm5, %v992_v4, %v996_v34  ;;  %v14306_v34 = vld [vmem:[%s20455_s0 + $0x198] sm:$0xf] }
 0x1c8   :  { %4171 = vrot.lane.b32.xlu0 %v14119_v29, %s12052_s14  ;;  %v14281_v29 = vcombine.low %v2201_v54, %v2204_v45  ;;  %v1007_v60 = vsel %vm12206_vm5, %v1002_v53, %v1006_v33  ;;  %v10703_v35 = vrot.slane %v14139_v42, 9  ;;  %v2209_v18 = vrot.slane %v2207_v50, 4 }
 0x1c9   :  { %v14276_v57 = vpop.permute.xlu1 %3741  ;;  %v2210_v25 = vrot.slane %v143_v38, 5  ;;  %v1016_v54 = vrot.slane %v1015_v13, 4  ;;  %v1026_v45 = vrot.slane %v1025_v62, 4  ;;  %v1030_v7 = vrot.slane %v1028_v32, 5  ;;  %v14324_v32 = vld [vmem:[%s20455_s0 + $0x19c] sm:$0xf] }
 0x1ca   :  { %v3600_v43 = vpop.permute.xlu0 %3599  ;;  %v14308_v42 = vcombine.low %v997_v30, %v1007_v60  ;;  %v2208_v53 = vsel %vm12174_vm3, %v10703_v35, %v2207_v50  ;;  %v20469_v62 = vrot.slane %v14232_v2, 5  ;;  %v2468_v50 = vshrl.u32 %v14306_v34, 16  ;;  %v6580_v35 = vld [vmem:[%s20458_s3 + $0x70] sm:$0xff] }
 0x1cb   :  { %3157 = vrot.lane.b32.xlu1 %v14163_v61, %s12048_s17  ;;  %v2211_v38 = vsel %vm12174_vm3, %v2209_v18, %v2210_v25  ;;  %v1021_v33 = vsel %vm12206_vm5, %v1016_v54, %v1020_v44  ;;  %v1031_v13 = vsel %vm12206_vm5, %v1026_v45, %v1030_v7  ;;  %v4453_v30 = vsel %vm4387_vm6, %v13460_v9, %v14202_v3  ;;  %v6578_v3 = vld [vmem:[%s20458_s3 + $0x60] sm:$0xff] }
 0x1cc   :  { %4311 = vrot.lane.b32.xlu0 %v14157_v48, %s12053_s24  ;;  %v2471_v7 = vshll.u32 %v14306_v34, 16  ;;  %v14338_v18 = vcombine.low %v2208_v53, %v2211_v38  ;;  %v14344_v25 = vcombine.low %v1021_v33, %v1031_v13  ;;  %v2481_v54 = vshrl.u32 %v14324_v32, 16  ;;  %v6581_v13 = vld [vmem:[%s20458_s3 + $0x78] sm:$0xff] }
 0x1cd   :  { %v14286_v17 = vpop.permute.xlu1 %3881  ;;  %v4450_v9 = vsel %vm4387_vm6, %v13415_v19, %v14177_v28  ;;  %v14358_v53 = vrot.slane %v20469_v62, 4  ;;  %v4624_v33 = vsel %vm4580_vm7, %v4453_v30, %v14239_v36  ;;  %v14370_v45 = vrot.slane %v2468_v50, 4 }
 0x1ce   :  { %v3740_v20 = vpop.permute.xlu0 %3739  ;;  %v4622_v19 = vsel %vm4580_vm7, %v4450_v9, %v14261_v27  ;;  %v2477_v62 = vshll.u32 %v14324_v32, 16  ;;  %v14377_v27 = vrot.slane %v2471_v7, 5 }
 0x1cf   :  { %3477 = vrot.lane.b32.xlu1 %v14281_v29, %s12047_s27  ;;  %v4751_v38 = vsel %vm4709_vm8, %v4622_v19, %v3600_v43  ;;  %v14384_v43 = vrot.slane %v2481_v54, 4 }
 0x1d0   :  { %4313 = vrot.lane.b32.xlu0 %v14281_v29, %s12053_s24  ;;  %v4880_v9 = vsel %vm4838_vm9, %v4751_v38, %v3740_v20 }
 0x1d1   :  { %v14301_v39 = vpop.permute.xlu1 %4021 }
 0x1d2   :  { %v3880_v4 = vpop.permute.xlu0 %3879 }
 0x1d3   :  { %3617 = vrot.lane.b32.xlu1 %v14290_v0, %s12046_s18  ;;  %v5009_v19 = vsel %vm4967_vm10, %v4880_v9, %v3880_v4 }
 0x1d4   :  { %3475 = vrot.lane.b32.xlu0 %v14157_v48, %s12047_s27  ;;  %v14342_v48 = vcombine.low %v14219_v14, %v14232_v2 }
 0x1d5   :  { %v14332_v44 = vpop.permute.xlu1 %4161 }
 0x1d6   :  { %v4020_v60 = vpop.permute.xlu0 %4019 }
 0x1d7   :  { %3757 = vrot.lane.b32.xlu1 %v14308_v42, %s12049_s19  ;;  %v5138_v38 = vsel %vm5096_vm11, %v5009_v19, %v4020_v60 }
 0x1d8   :  { %v11333_v28 = vpop.f32.mrb[12].mxu0  ;;  %3615 = vrot.lane.b32.xlu0 %v14161_v63, %s12046_s18 }
 0x1d9   :  { %v6260_v37 = vadd.f32 %v11333_v28, %v13754_v24  ;;  %v6612_v36 = vsub.f32 %v6580_v35, %v11333_v28  ;;  %v5776_v30 = vpop.f32.mrb[13].mxu0  ;;  %v14375_v41 = vpop.permute.xlu1 %3143  ;;  %v4753_v35 = vsel %vm4709_vm8, %v4624_v33, %v14259_v5 }
 0x1da   :  { %v6258_v1 = vadd.f32 %v13754_v24, %v5776_v30  ;;  %v6610_v15 = vsub.f32 %v6578_v3, %v5776_v30  ;;  %v11334_v11 = vpop.f32.mrb[14].mxu0  ;;  %v4160_v50 = vpop.permute.xlu0 %4159  ;;  %v4882_v3 = vsel %vm4838_vm9, %v4753_v35, %v14276_v57 }
 0x1db   :  { %v6261_v7 = vadd.f32 %v11334_v11, %v13754_v24  ;;  %v6613_v28 = vsub.f32 %v6581_v13, %v11334_v11  ;;  %v5779_v20 = vpop.f32.mrb[15].mxu0  ;;  %3897 = vrot.lane.b32.xlu1 %v14338_v18, %s12050_s20  ;;  %v6388_v30 = vmax.f32 %v6260_v37, 0.0  ;;  %v14398_v5 = vmax.f32 %v6612_v36, 0.0 }
 0x1dc   :  { %v6259_v54 = vadd.f32 %v13754_v24, %v5779_v20  ;;  %3755 = vrot.lane.b32.xlu0 %v14163_v61, %s12049_s19  ;;  %v6611_v11 = vsub.f32 %v6579_v47, %v5779_v20  ;;  %v6386_v9 = vmax.f32 %v6258_v1, 0.0  ;;  %v14404_v58 = vmax.f32 %v6610_v15, 0.0  ;;  %v14410_v24 = vld [vmem:[%s20455_s0 + $0x1a4] sm:$0xf]  ;;  %v14424_v15 = vld [vmem:[%s20455_s0 + $0x1a8] sm:$0xf] }
 0x1dd   :  { %20626 = vst [vmem:[#allocation20_spill] sm:$0xff] %v14398_v5  ;;  %v6389_v4 = vmax.f32 %v6261_v7, 0.0  ;;  %v14400_v33 = vmax.f32 %v6613_v28, 0.0  ;;  %v14402_v13 = vpop.permute.xlu1 %3145  ;;  %v5267_v57 = vsel %vm5225_vm13, %v5138_v38, %v4160_v50  ;;  %v14429_v50 = vld [vmem:[%s20455_s0 + $0x1b0] sm:$0xf]  ;;  %v5011_v35 = vsel %vm4967_vm10, %v4882_v3, %v14286_v17 }
 0x1de   :  { %20628 = vst [vmem:[#allocation22_spill] sm:$0xff] %v14404_v58  ;;  %v6387_v60 = vmax.f32 %v6259_v54, 0.0  ;;  %v4300_v37 = vpop.permute.xlu0 %4299  ;;  %v14416_v47 = vmax.f32 %v6611_v11, 0.0  ;;  %v14438_v28 = vrot.slane %v2477_v62, 5  ;;  %v14443_v20 = vld [vmem:[%s20455_s0 + $0x1b4] sm:$0xf]  ;;  %v5140_v38 = vsel %vm5096_vm11, %v5011_v35, %v14301_v39 }
 0x1df   :  { %20627 = vst [vmem:[#allocation21_spill] sm:$0xff] %v14400_v33  ;;  %v14412_v61 = vpack.c.bf16 %v6389_v4, %v6388_v30  ;;  %v5396_v1 = vsel %vm5354_vm12, %v5267_v57, %v4300_v37  ;;  %4037 = vrot.lane.b32.xlu1 %v14342_v48, %s12051_s28  ;;  %v2604_v62 = vshrl.u32 %v14410_v24, 16  ;;  %v2607_v30 = vshll.u32 %v14410_v24, 16 }
 0x1e0   :  { %20630 = vst [vmem:[#allocation24_spill] sm:$0xff] %v14416_v47  ;;  %v14433_v19 = vpack.c.bf16 %v6387_v60, %v6386_v9  ;;  %v5505_v7 = vsel %vm5483_vm14, %v5396_v1, 0  ;;  %3895 = vrot.lane.b32.xlu0 %v14281_v29, %s12050_s20  ;;  %v14455_v29 = vld [vmem:[%s20455_s0 + $0x1a0] sm:$0x1]  ;;  %v5269_v54 = vsel %vm5225_vm13, %v5140_v38, %v14332_v44  ;;  %v2617_v4 = vshrl.u32 %v14424_v15, 16 }
 0x1e1   :  { %20629 = vst [vmem:[#allocation23_spill] sm:$0xff] %v14412_v61  ;;  %11359 = vmatprep.mubr.msk.bf16.mxu0 %vm5565_vm15, %v5505_v7  ;;  %v14450_v3 = vpop.permute.xlu1 %3465  ;;  %v2613_v11 = vshll.u32 %v14424_v15, 16  ;;  %v1033_v9 = vshrl.u32 %v14429_v50, 16  ;;  %v1036_v60 = vshll.u32 %v14429_v50, 16  ;;  %v1042_v37 = vshll.u32 %v14443_v20, 16 }
 0x1e2   :  { %20631 = vst [vmem:[#allocation25_spill] sm:$0xff] %v14433_v19  ;;  %v4302_v39 = vpop.permute.xlu0 %4301  ;;  %v1046_v1 = vshrl.u32 %v14443_v20, 16  ;;  %v2474_v35 = vor.u32 %v14377_v27, %v14370_v45  ;;  %v2484_v7 = vor.u32 %v14384_v43, %v14438_v28  ;;  %v2487_v38 = vshll.u32 %v14455_v29, 16  ;;  %v14497_v43 = vld [vmem:[%s20455_s0 + $0x1ac] sm:$0x1] }
 0x1e3   :  { %v5398_v57 = vsel %vm5354_vm12, %v5269_v54, %v4302_v39  ;;  %4177 = vrot.lane.b32.xlu1 %v14344_v25, %s12052_s14  ;;  %v20632_v39 = vrot.slane %v14232_v2, 5  ;;  %v20633_v17 = vrot.slane %v14219_v14, 9  ;;  %v20634_v36 = vrot.slane %v14274_v6, 5  ;;  %v14506_v6 = vld [vmem:[%s20455_s0 + $0x1b8] sm:$0x1] }
 0x1e4   :  { %v5506_v44 = vsel %vm5483_vm14, %v5398_v57, 0  ;;  %4035 = vrot.lane.b32.xlu0 %v14290_v0, %s12051_s28  ;;  %v2609_v2 = vrot.slane %v2607_v30, 5  ;;  %v14499_v61 = vrot.slane %v2613_v11, 5  ;;  %v2619_v14 = vrot.slane %v2617_v4, 4  ;;  %v14515_v4 = vld [vmem:[%s20455_s0 + $0x1bc] sm:$0xf] }
 0x1e5   :  { %11360 = vmatmul.mubr.msk.bf16.gmra.mrb[40].mxu0 %vm5565_vm15, %v5506_v44  ;;  %v14479_v54 = vpop.permute.xlu1 %3605  ;;  %v2215_v57 = vsel %vm12174_vm3, %v20633_v17, %v20632_v39  ;;  %v2218_v45 = vsel %vm12174_vm3, %v14358_v53, %v20634_v36  ;;  %v2606_v44 = vrot.slane %v2604_v62, 4  ;;  %v1035_v53 = vrot.slane %v1033_v9, 4 }
 0x1e6   :  { %v14492_v27 = vpop.permute.xlu0 %3463  ;;  %v1038_v36 = vrot.slane %v1036_v60, 5  ;;  %v14508_v17 = vrot.slane %v1042_v37, 5  ;;  %v1048_v39 = vrot.slane %v1046_v1, 4  ;;  %v2475_v62 = vrot.slane %v2474_v35, 4 }
 0x1e7   :  { %3159 = vrot.lane.b32.xlu1 %v14308_v42, %s12048_s17  ;;  %v2485_v30 = vrot.slane %v2484_v7, 4  ;;  %v2489_v11 = vrot.slane %v2487_v38, 5  ;;  %v14519_v58 = vcombine.low %v2215_v57, %v2218_v45  ;;  %v2560_v9 = vrot.slane %v14324_v32, 5  ;;  %v14530_v7 = vld [vmem:[%s20455_s0 + $0x1c0] sm:$0xf] }
 0x1e8   :  { %4175 = vrot.lane.b32.xlu0 %v14308_v42, %s12052_s14  ;;  %v2610_v37 = vor.u32 %v2609_v2, %v2606_v44  ;;  %v2620_v1 = vor.u32 %v2619_v14, %v14499_v61  ;;  %v2623_v42 = vshll.u32 %v14497_v43, 16  ;;  %v1052_v35 = vshll.u32 %v14506_v6, 16 }
 0x1e9   :  { %v14517_v19 = vpop.permute.xlu1 %3745  ;;  %v1039_v38 = vor.u32 %v1038_v36, %v1035_v53  ;;  %v1049_v57 = vor.u32 %v1048_v39, %v14508_v17  ;;  %v1057_v45 = vshrl.u32 %v14515_v4, 16  ;;  %v1060_v44 = vshll.u32 %v14515_v4, 16 }
 0x1ea   :  { %v14522_v60 = vpop.permute.xlu0 %3603  ;;  %v14541_v2 = vcombine.low %v14306_v34, %v14324_v32  ;;  %v2480_v14 = vsel %vm12206_vm5, %v2475_v62, %v14438_v28  ;;  %v2490_v53 = vsel %vm12206_vm5, %v2485_v30, %v2489_v11  ;;  %v10738_v36 = vrot.slane %v14306_v34, 9 }
 0x1eb   :  { %3161 = vrot.lane.b32.xlu1 %v14344_v25, %s12048_s17  ;;  %v2562_v47 = vrot.slane %v2560_v9, 4  ;;  %v2563_v5 = vrot.slane %v14455_v29, 5  ;;  %v1066_v33 = vshll.u32 %v14530_v7, 16  ;;  %v1070_v23 = vshrl.u32 %v14530_v7, 16  ;;  %v14563_v29 = vld [vmem:[%s20455_s0 + $0x1c4] sm:$0x1] }
 0x1ec   :  { %4315 = vrot.lane.b32.xlu0 %v14338_v18, %s12053_s24  ;;  %v2611_v26 = vrot.slane %v2610_v37, 4  ;;  %v2621_v55 = vrot.slane %v2620_v1, 4  ;;  %v2625_v49 = vrot.slane %v2623_v42, 5  ;;  %v1054_v28 = vrot.slane %v1052_v35, 5 }
 0x1ed   :  { %v14549_v39 = vpop.permute.xlu1 %3885  ;;  %v1040_v62 = vrot.slane %v1039_v38, 4  ;;  %v1050_v34 = vrot.slane %v1049_v57, 4  ;;  %v1059_v30 = vrot.slane %v1057_v45, 4  ;;  %v1062_v11 = vrot.slane %v1060_v44, 5 }
 0x1ee   :  { %v14554_v32 = vpop.permute.xlu0 %3743  ;;  %v2561_v37 = vsel %vm12174_vm3, %v10738_v36, %v2560_v9  ;;  %v2564_v1 = vsel %vm12174_vm3, %v2562_v47, %v2563_v5  ;;  %v14571_v42 = vrot.slane %v1066_v33, 5  ;;  %v1072_v35 = vrot.slane %v1070_v23, 4 }
 0x1ef   :  { %3481 = vrot.lane.b32.xlu1 %v14519_v58, %s12047_s27  ;;  %v14573_v57 = vcombine.low %v2480_v14, %v2490_v53  ;;  %v2616_v45 = vsel %vm12206_vm5, %v2611_v26, %v14499_v61  ;;  %v2626_v44 = vsel %vm12206_vm5, %v2621_v55, %v2625_v49  ;;  %v1045_v5 = vsel %vm12206_vm5, %v1040_v62, %v14508_v17  ;;  %v14597_v49 = vld [vmem:[%s20455_s0 + $0x1c8] sm:$0xf]  ;;  %v14611_v53 = vld [vmem:[%s20455_s0 + $0x1cc] sm:$0xf] }
 0x1f0   :  { %4317 = vrot.lane.b32.xlu0 %v14519_v58, %s12053_s24  ;;  %v1055_v23 = vsel %vm12206_vm5, %v1050_v34, %v1054_v28  ;;  %v1063_v33 = vor.u32 %v1062_v11, %v1059_v30  ;;  %v1076_v47 = vshll.u32 %v14563_v29, 16  ;;  %v14590_v26 = vcombine.low %v2561_v37, %v2564_v1  ;;  %v6584_v28 = vld [vmem:[%s20458_s3 + $0x90] sm:$0xff]  ;;  %v6582_v11 = vld [vmem:[%s20458_s3 + $0x80] sm:$0xff] }
 0x1f1   :  { %v14565_v8 = vpop.permute.xlu1 %4025  ;;  %v4459_v61 = vsel %vm4387_vm6, %v13614_v31, %v14402_v13  ;;  %v14604_v9 = vcombine.low %v2616_v45, %v2626_v44  ;;  %v14616_v62 = vcombine.low %v1045_v5, %v1055_v23  ;;  %v4456_v30 = vsel %vm4387_vm6, %v13562_v56, %v14375_v41  ;;  %v6585_v41 = vld [vmem:[%s20458_s3 + $0x98] sm:$0xff]  ;;  %v6583_v31 = vld [vmem:[%s20458_s3 + $0x88] sm:$0xff] }
 0x1f2   :  { %v3884_v38 = vpop.permute.xlu0 %3883  ;;  %v14629_v37 = vrot.slane %v1063_v33, 4  ;;  %v14631_v1 = vrot.slane %v1076_v47, 5  ;;  %v4628_v45 = vsel %vm4580_vm7, %v4459_v61, %v14450_v3  ;;  %v4626_v44 = vsel %vm4580_vm7, %v4456_v30, %v14492_v27  ;;  %v14650_v3 = vld [vmem:[%s20457_s2] ss:$0 sm:$0xff] }
 0x1f3   :  { %3621 = vrot.lane.b32.xlu1 %v14541_v2, %s12046_s18  ;;  %v1084_v5 = vshll.u32 %v14597_v49, 16  ;;  %v1094_v23 = vshrl.u32 %v14611_v53, 16  ;;  %v4755_v33 = vsel %vm4709_vm8, %v4626_v44, %v14522_v60  ;;  %v1090_v55 = vshll.u32 %v14611_v53, 16 }
 0x1f4   :  { %3479 = vrot.lane.b32.xlu0 %v14338_v18, %s12047_s27  ;;  %v1073_v18 = vor.u32 %v1072_v35, %v14571_v42  ;;  %v4884_v13 = vsel %vm4838_vm9, %v4755_v33, %v14554_v32 }
 0x1f5   :  { %v14602_v17 = vpop.permute.xlu1 %4165 }
 0x1f6   :  { %v4024_v36 = vpop.permute.xlu0 %4023  ;;  %v14655_v34 = vrot.slane %v1073_v18, 4  ;;  %v5013_v18 = vsel %vm4967_vm10, %v4884_v13, %v3884_v38 }
 0x1f7   :  { %3761 = vrot.lane.b32.xlu1 %v14573_v57, %s12049_s19  ;;  %v5142_v33 = vsel %vm5096_vm11, %v5013_v18, %v4024_v36 }
 0x1f8   :  { %v11337_v56 = vpop.f32.mrb[16].mxu0  ;;  %3619 = vrot.lane.b32.xlu0 %v14342_v48, %s12046_s18 }
 0x1f9   :  { %v6264_v27 = vadd.f32 %v14650_v3, %v11337_v56  ;;  %v6616_v47 = vsub.f32 %v6584_v28, %v11337_v56  ;;  %v5792_v61 = vpop.f32.mrb[17].mxu0  ;;  %v14653_v30 = vpop.permute.xlu1 %3147  ;;  %v4757_v28 = vsel %vm4709_vm8, %v4628_v45, %v14479_v54 }
 0x1fa   :  { %v6262_v14 = vadd.f32 %v14650_v3, %v5792_v61  ;;  %v6614_v35 = vsub.f32 %v6582_v11, %v5792_v61  ;;  %v11338_v60 = vpop.f32.mrb[18].mxu0  ;;  %v4164_v44 = vpop.permute.xlu0 %4163  ;;  %v4886_v11 = vsel %vm4838_vm9, %v4757_v28, %v14517_v19 }
 0x1fb   :  { %v6265_v56 = vadd.f32 %v14650_v3, %v11338_v60  ;;  %v6617_v21 = vsub.f32 %v6585_v41, %v11338_v60  ;;  %v5795_v32 = vpop.f32.mrb[19].mxu0  ;;  %3901 = vrot.lane.b32.xlu1 %v14590_v26, %s12050_s20  ;;  %v6392_v61 = vmax.f32 %v6264_v27, 0.0  ;;  %v14676_v54 = vmax.f32 %v6616_v47, 0.0 }
 0x1fc   :  { %v6263_v12 = vadd.f32 %v14650_v3, %v5795_v32  ;;  %3759 = vrot.lane.b32.xlu0 %v14344_v25, %s12049_s19  ;;  %v6615_v45 = vsub.f32 %v6583_v31, %v5795_v32  ;;  %v6390_v60 = vmax.f32 %v6262_v14, 0.0  ;;  %v14682_v10 = vmax.f32 %v6614_v35, 0.0 }
 0x1fd   :  { %20635 = vst [vmem:[#allocation26_spill] sm:$0xff] %v14676_v54  ;;  %v6393_v38 = vmax.f32 %v6265_v56, 0.0  ;;  %v14678_v13 = vmax.f32 %v6617_v21, 0.0  ;;  %v14680_v41 = vpop.permute.xlu1 %3149  ;;  %v5271_v19 = vsel %vm5225_vm13, %v5142_v33, %v4164_v44  ;;  %v20640_v31 = vcombine.low %v14410_v24, %v14424_v15  ;;  %v14708_v56 = vld [vmem:[%s20455_s0 + $0x1d4] sm:$0xf] }
 0x1fe   :  { %20637 = vst [vmem:[#allocation28_spill] sm:$0xff] %v14682_v10  ;;  %v6391_v36 = vmax.f32 %v6263_v12, 0.0  ;;  %v4304_v27 = vpop.permute.xlu0 %4303  ;;  %v14689_v47 = vmax.f32 %v6615_v45, 0.0  ;;  %v5015_v14 = vsel %vm4967_vm10, %v4886_v11, %v14549_v39  ;;  %v20642_v44 = vrot.slane %v14530_v7, 5 }
 0x1ff   :  { %20636 = vst [vmem:[#allocation27_spill] sm:$0xff] %v14678_v13  ;;  %v14685_v28 = vpack.c.bf16 %v6393_v38, %v6392_v61  ;;  %v5400_v21 = vsel %vm5354_vm12, %v5271_v19, %v4304_v27  ;;  %4041 = vrot.lane.b32.xlu1 %v20640_v31, %s12051_s28  ;;  %v5144_v32 = vsel %vm5096_vm11, %v5015_v14, %v14565_v8  ;;  %v2696_v33 = vrot.slane %v14424_v15, 5  ;;  %v14725_v61 = vld [vmem:[%s20455_s0 + $0x1d8] sm:$0xf] }
 0x200   :  { %20639 = vst [vmem:[#allocation30_spill] sm:$0xff] %v14689_v47  ;;  %v14698_v35 = vpack.c.bf16 %v6391_v36, %v6390_v60  ;;  %v5507_v12 = vsel %vm5483_vm14, %v5400_v21, 0  ;;  %3899 = vrot.lane.b32.xlu0 %v14519_v58, %s12050_s20  ;;  %v2230_v18 = vrot.slane %v20642_v44, 4  ;;  %v1069_v58 = vsel %vm12206_vm5, %v14629_v37, %v14571_v42 }
 0x201   :  { %20638 = vst [vmem:[#allocation29_spill] sm:$0xff] %v14685_v28  ;;  %11363 = vmatprep.mubr.msk.bf16.mxu0 %vm5565_vm15, %v5507_v12  ;;  %v14715_v11 = vpop.permute.xlu1 %3469  ;;  %v5273_v8 = vsel %vm5225_vm13, %v5144_v32, %v14602_v17  ;;  %v1079_v45 = vsel %vm12206_vm5, %v14655_v34, %v14631_v1  ;;  %v20643_v60 = vshrl.u32 %v14597_v49, 16  ;;  %v1086_v42 = vrot.slane %v1084_v5, 5  ;;  %v14747_v34 = vld [vmem:[%s20455_s0 + $0x1d0] sm:$0x1] }
 0x202   :  { %20641 = vst [vmem:[#allocation31_spill] sm:$0xff] %v14698_v35  ;;  %v4306_v38 = vpop.permute.xlu0 %4305  ;;  %v14738_v37 = vrot.slane %v1090_v55, 5  ;;  %v1096_v36 = vrot.slane %v1094_v23, 4  ;;  %v1105_v17 = vshrl.u32 %v14708_v56, 16  ;;  %v1108_v1 = vshll.u32 %v14708_v56, 16 }
 0x203   :  { %v1083_v19 = vrot.slane %v20643_v60, 4  ;;  %v5402_v15 = vsel %vm5354_vm12, %v5273_v8, %v4306_v38  ;;  %4181 = vrot.lane.b32.xlu1 %v14604_v9, %s12052_s14  ;;  %v1118_v5 = vshrl.u32 %v14725_v61, 16  ;;  %v1114_v55 = vshll.u32 %v14725_v61, 16 }
 0x204   :  { %v5508_v27 = vsel %vm5483_vm14, %v5402_v15, 0  ;;  %4039 = vrot.lane.b32.xlu0 %v14541_v2, %s12051_s28  ;;  %v2698_v23 = vrot.slane %v2696_v33, 4  ;;  %v2699_v21 = vrot.slane %v14497_v43, 5  ;;  %v2221_v2 = vrot.slane %v14443_v20, 5 }
 0x205   :  { %11364 = vmatmul.mubr.msk.bf16.gmra.mrb[44].mxu0 %vm5565_vm15, %v5508_v27  ;;  %v14753_v9 = vpop.permute.xlu1 %3609  ;;  %v20644_v14 = vmov %v20642_v44  ;;  %v20645_v12 = vrot.slane %v14515_v4, 9  ;;  %v20646_v32 = vrot.slane %v14563_v29, 5  ;;  %v1087_v38 = vor.u32 %v1086_v42, %v1083_v19 }
 0x206   :  { %v14757_v31 = vpop.permute.xlu0 %3467  ;;  %v14771_v43 = vcombine.low %v1069_v58, %v1079_v45  ;;  %v20647_v20 = vrot.slane %v14410_v24, 9  ;;  %v1097_v15 = vor.u32 %v1096_v36, %v14738_v37  ;;  %v1100_v27 = vshll.u32 %v14747_v34, 16  ;;  %v164_v45 = vld [vmem:[%s20455_s0 + $0x1dc] sm:$0x1] }
 0x207   :  { %v2229_v44 = vsel %vm12174_vm3, %v20645_v12, %v20644_v14  ;;  %v2232_v8 = vsel %vm12174_vm3, %v2230_v18, %v20646_v32  ;;  %3163 = vrot.lane.b32.xlu1 %v14616_v62, %s12048_s17  ;;  %v1107_v29 = vrot.slane %v1105_v17, 4  ;;  %v1110_v18 = vrot.slane %v1108_v1, 5 }
 0x208   :  { %v2697_v60 = vsel %vm12174_vm3, %v20647_v20, %v2696_v33  ;;  %4179 = vrot.lane.b32.xlu0 %v14573_v57, %s12052_s14  ;;  %v1116_v19 = vrot.slane %v1114_v55, 5  ;;  %v1120_v42 = vrot.slane %v1118_v5, 4  ;;  %v2700_v62 = vsel %vm12174_vm3, %v2698_v23, %v2699_v21 }
 0x209   :  { %v14781_v14 = vpop.permute.xlu1 %3749  ;;  %v10705_v24 = vrot.slane %v14429_v50, 9  ;;  %v2223_v58 = vrot.slane %v2221_v2, 4  ;;  %v2224_v33 = vrot.slane %v14506_v6, 5  ;;  %v1088_v57 = vrot.slane %v1087_v38, 4 }
 0x20a   :  { %v14790_v36 = vpop.permute.xlu0 %3607  ;;  %v14794_v17 = vcombine.low %v2229_v44, %v2232_v8  ;;  %v1098_v1 = vrot.slane %v1097_v15, 4  ;;  %v1102_v5 = vrot.slane %v1100_v27, 5  ;;  %v2235_v55 = vrot.slane %v14611_v53, 5 }
 0x20b   :  { %3165 = vrot.lane.b32.xlu1 %v14771_v43, %s12048_s17  ;;  %v10958_v50 = vcombine.low %v2697_v60, %v2700_v62  ;;  %v1111_v6 = vor.u32 %v1110_v18, %v1107_v29  ;;  %v1121_v23 = vor.u32 %v1120_v42, %v1116_v19  ;;  %v1124_v21 = vshll.u32 %v164_v45, 16 }
 0x20c   :  { %4319 = vrot.lane.b32.xlu0 %v14590_v26, %s12053_s24  ;;  %v2222_v32 = vsel %vm12174_vm3, %v10705_v24, %v2221_v2  ;;  %v2225_v44 = vsel %vm12174_vm3, %v2223_v58, %v2224_v33  ;;  %v14807_v38 = vcombine.low %v14597_v49, %v14611_v53  ;;  %v1093_v26 = vsel %vm12206_vm5, %v1088_v57, %v14738_v37 }
 0x20d   :  { %v14799_v12 = vpop.permute.xlu1 %3889  ;;  %v10707_v20 = vrot.slane %v14597_v49, 9  ;;  %v1103_v2 = vsel %vm12206_vm5, %v1098_v1, %v1102_v5  ;;  %v2237_v60 = vrot.slane %v2235_v55, 4  ;;  %v2238_v15 = vrot.slane %v14747_v34, 5 }
 0x20e   :  { %v3748_v8 = vpop.permute.xlu0 %3747  ;;  %v2242_v27 = vrot.slane %v14725_v61, 5  ;;  %v10905_v53 = vcombine.low %v2222_v32, %v2225_v44  ;;  %v1112_v29 = vrot.slane %v1111_v6, 4  ;;  %v1122_v18 = vrot.slane %v1121_v23, 4 }
 0x20f   :  { %3485 = vrot.lane.b32.xlu1 %v14794_v17, %s12047_s27  ;;  %v1126_v42 = vrot.slane %v1124_v21, 5  ;;  %v14822_v62 = vcombine.low %v1093_v26, %v1103_v2  ;;  %v2236_v24 = vsel %vm12174_vm3, %v10707_v20, %v2235_v55  ;;  %v2239_v34 = vsel %vm12174_vm3, %v2237_v60, %v2238_v15  ;;  %v6586_v21 = vld [vmem:[%s20458_s3 + $0xa0] sm:$0xff]  ;;  %v6589_v26 = vld [vmem:[%s20458_s3 + $0xb8] sm:$0xff] }
 0x210   :  { %4321 = vrot.lane.b32.xlu0 %v10958_v50, %s12053_s24  ;;  %v10708_v58 = vrot.slane %v14708_v56, 9  ;;  %v2244_v33 = vrot.slane %v2242_v27, 4  ;;  %v2245_v57 = vrot.slane %v164_v45, 5  ;;  %v14834_v1 = vcombine.low %v14515_v4, %v14530_v7  ;;  %v14848_v45 = vld [vmem:[%s20455_s0 + $0x1e0] sm:$0xf]  ;;  %v6588_v4 = vld [vmem:[%s20458_s3 + $0xb0] sm:$0xff] }
 0x211   :  { %v14820_v37 = vpop.permute.xlu1 %4029  ;;  %v1117_v5 = vsel %vm12206_vm5, %v1112_v29, %v1116_v19  ;;  %v1127_v55 = vsel %vm12206_vm5, %v1122_v18, %v1126_v42  ;;  %v4465_v50 = vsel %vm4387_vm6, %v13776_v40, %v14680_v41  ;;  %v14853_v7 = vcombine.low %v2236_v24, %v2239_v34  ;;  %v14862_v40 = vld [vmem:[%s20455_s0 + $0x1e4] sm:$0xf] }
 0x212   :  { %v3888_v49 = vpop.permute.xlu0 %3887  ;;  %v14857_v19 = vcombine.low %v14708_v56, %v14725_v61  ;;  %v4462_v41 = vsel %vm4387_vm6, %v13714_v46, %v14653_v30  ;;  %v14872_v32 = vcombine.low %v1117_v5, %v1127_v55  ;;  %v2243_v56 = vsel %vm12174_vm3, %v10708_v58, %v2242_v27  ;;  %v6587_v58 = vld [vmem:[%s20458_s3 + $0xa8] sm:$0xff] }
 0x213   :  { %3625 = vrot.lane.b32.xlu1 %v14807_v38, %s12046_s18  ;;  %v2246_v61 = vsel %vm12174_vm3, %v2244_v33, %v2245_v57  ;;  %v4632_v44 = vsel %vm4580_vm7, %v4465_v50, %v14715_v11  ;;  %v4630_v46 = vsel %vm4580_vm7, %v4462_v41, %v14757_v31  ;;  %v1129_v20 = vshrl.u32 %v14848_v45, 16 }
 0x214   :  { %3483 = vrot.lane.b32.xlu0 %v10905_v53, %s12047_s27  ;;  %v1132_v2 = vshll.u32 %v14848_v45, 16  ;;  %v4759_v60 = vsel %vm4709_vm8, %v4630_v46, %v14790_v36  ;;  %v1142_v53 = vshrl.u32 %v14862_v40, 16  ;;  %v1138_v36 = vshll.u32 %v14862_v40, 16 }
 0x215   :  { %v14843_v6 = vpop.permute.xlu1 %4169  ;;  %v4888_v29 = vsel %vm4838_vm9, %v4759_v60, %v3748_v8  ;;  %v4761_v33 = vsel %vm4709_vm8, %v4632_v44, %v14753_v9 }
 0x216   :  { %v4028_v23 = vpop.permute.xlu0 %4027  ;;  %v5017_v57 = vsel %vm4967_vm10, %v4888_v29, %v3888_v49  ;;  %v4890_v50 = vsel %vm4838_vm9, %v4761_v33, %v14781_v14 }
 0x217   :  { %3765 = vrot.lane.b32.xlu1 %v14822_v62, %s12049_s19 }
 0x218   :  { %v11341_v30 = vpop.f32.mrb[20].mxu0  ;;  %3623 = vrot.lane.b32.xlu0 %v14834_v1, %s12046_s18 }
 0x219   :  { %v6268_v11 = vadd.f32 %v14650_v3, %v11341_v30  ;;  %v6620_v15 = vsub.f32 %v6588_v4, %v11341_v30  ;;  %v5808_v27 = vpop.f32.mrb[21].mxu0  ;;  %v14892_v31 = vpop.permute.xlu1 %3151  ;;  %v5146_v4 = vsel %vm5096_vm11, %v5017_v57, %v4028_v23  ;;  %v14953_v57 = vld [vmem:[%s20455_s0 + $0x1f0] sm:$0xf] }
 0x21a   :  { %v6266_v18 = vadd.f32 %v14650_v3, %v5808_v27  ;;  %v6618_v42 = vsub.f32 %v6586_v21, %v5808_v27  ;;  %v11342_v24 = vpop.f32.mrb[22].mxu0  ;;  %v4168_v34 = vpop.permute.xlu0 %4167 }
 0x21b   :  { %v6269_v5 = vadd.f32 %v14650_v3, %v11342_v24  ;;  %v6621_v55 = vsub.f32 %v6589_v26, %v11342_v24  ;;  %v5811_v8 = vpop.f32.mrb[23].mxu0  ;;  %3905 = vrot.lane.b32.xlu1 %v14853_v7, %s12050_s20  ;;  %v6396_v41 = vmax.f32 %v6268_v11, 0.0  ;;  %v14913_v9 = vmax.f32 %v6620_v15, 0.0 }
 0x21c   :  { %v6267_v21 = vadd.f32 %v14650_v3, %v5811_v8  ;;  %3763 = vrot.lane.b32.xlu0 %v14771_v43, %s12049_s19  ;;  %v6619_v46 = vsub.f32 %v6587_v58, %v5811_v8  ;;  %v6394_v26 = vmax.f32 %v6266_v18, 0.0  ;;  %v14919_v60 = vmax.f32 %v6618_v42, 0.0 }
 0x21d   :  { %20648 = vst [vmem:[#allocation32_spill] sm:$0xff] %v14913_v9  ;;  %v6397_v49 = vmax.f32 %v6269_v5, 0.0  ;;  %v14915_v44 = vmax.f32 %v6621_v55, 0.0  ;;  %v14917_v30 = vpop.permute.xlu1 %3153  ;;  %v5275_v14 = vsel %vm5225_vm13, %v5146_v4, %v4168_v34  ;;  %v5019_v18 = vsel %vm4967_vm10, %v4890_v50, %v14799_v12  ;;  %v14941_v34 = vld [vmem:[%s20455_s0 + $0x1ec] sm:$0xf] }
 0x21e   :  { %20650 = vst [vmem:[#allocation34_spill] sm:$0xff] %v14919_v60  ;;  %v6395_v23 = vmax.f32 %v6267_v21, 0.0  ;;  %v4308_v11 = vpop.permute.xlu0 %4307  ;;  %v14926_v15 = vmax.f32 %v6619_v46, 0.0  ;;  %v5148_v58 = vsel %vm5096_vm11, %v5019_v18, %v14820_v37  ;;  %v14957_v55 = vcombine.low %v2243_v56, %v2246_v61 }
 0x21f   :  { %20649 = vst [vmem:[#allocation33_spill] sm:$0xff] %v14915_v44  ;;  %v14922_v27 = vpack.c.bf16 %v6397_v49, %v6396_v41  ;;  %v5404_v29 = vsel %vm5354_vm12, %v5275_v14, %v4308_v11  ;;  %4045 = vrot.lane.b32.xlu1 %v14857_v19, %s12051_s28  ;;  %v1131_v8 = vrot.slane %v1129_v20, 4  ;;  %v1134_v37 = vrot.slane %v1132_v2, 5  ;;  %v16130_v44 = vld [vmem:[%s20455_s0 + $0x28c] sm:$0xf] }
 0x220   :  { %20652 = vst [vmem:[#allocation36_spill] sm:$0xff] %v14926_v15  ;;  %v14933_v42 = vpack.c.bf16 %v6395_v23, %v6394_v26  ;;  %v5509_v24 = vsel %vm5483_vm14, %v5404_v29, 0  ;;  %3903 = vrot.lane.b32.xlu0 %v14794_v17, %s12050_s20  ;;  %v5277_v17 = vsel %vm5225_vm13, %v5148_v58, %v14843_v6  ;;  %v1140_v4 = vrot.slane %v1138_v36, 5  ;;  %v167_v6 = vld [vmem:[%s20455_s0 + $0x1e8] sm:$0x1] }
 0x221   :  { %20651 = vst [vmem:[#allocation35_spill] sm:$0xff] %v14922_v27  ;;  %11367 = vmatprep.mubr.msk.bf16.mxu0 %vm5565_vm15, %v5509_v24  ;;  %v14948_v12 = vpop.permute.xlu1 %3473  ;;  %v1144_v41 = vrot.slane %v1142_v53, 4  ;;  %v1153_v21 = vshrl.u32 %v14941_v34, 16  ;;  %v1156_v56 = vshll.u32 %v14941_v34, 16  ;;  %v1166_v61 = vshrl.u32 %v14953_v57, 16 }
 0x222   :  { %20653 = vst [vmem:[#allocation37_spill] sm:$0xff] %v14933_v42  ;;  %v4310_v5 = vpop.permute.xlu0 %4309  ;;  %v1162_v20 = vshll.u32 %v14953_v57, 16  ;;  %v1135_v36 = vor.u32 %v1134_v37, %v1131_v8  ;;  %v1148_v26 = vshll.u32 %v167_v6, 16  ;;  %v170_v24 = vld [vmem:[%s20455_s0 + $0x1f4] sm:$0x1]  ;;  %v2249_v37 = vrot.slane %v14862_v40, 5 }
 0x223   :  { %v5406_v50 = vsel %vm5354_vm12, %v5277_v17, %v4310_v5  ;;  %4185 = vrot.lane.b32.xlu1 %v14872_v32, %s12052_s14  ;;  %v1145_v46 = vor.u32 %v1144_v41, %v1140_v4  ;;  %v1155_v14 = vrot.slane %v1153_v21, 4  ;;  %v1158_v23 = vrot.slane %v1156_v56, 5 }
 0x224   :  { %v5510_v49 = vsel %vm5483_vm14, %v5406_v50, 0  ;;  %4043 = vrot.lane.b32.xlu0 %v14807_v38, %s12051_s28  ;;  %v1164_v11 = vrot.slane %v1162_v20, 5  ;;  %v1168_v29 = vrot.slane %v1166_v61, 4  ;;  %v1136_v17 = vrot.slane %v1135_v36, 4 }
 0x225   :  { %11368 = vmatmul.mubr.msk.bf16.gmra.mrb[48].mxu0 %vm5565_vm15, %v5510_v49  ;;  %v14973_v2 = vpop.permute.xlu1 %3613  ;;  %v1146_v5 = vrot.slane %v1145_v46, 4  ;;  %v1150_v8 = vrot.slane %v1148_v26, 5  ;;  %v1159_v50 = vor.u32 %v1158_v23, %v1155_v14  ;;  %v1172_v21 = vshll.u32 %v170_v24, 16 }
 0x226   :  { %v14975_v53 = vpop.permute.xlu0 %3471  ;;  %v1169_v41 = vor.u32 %v1168_v29, %v1164_v11  ;;  %v14995_v61 = vcombine.low %v14848_v45, %v14862_v40  ;;  %v1141_v20 = vsel %vm12206_vm5, %v1136_v17, %v1140_v4  ;;  %v10709_v36 = vrot.slane %v14848_v45, 9 }
 0x227   :  { %4325 = vrot.lane.b32.xlu1 %v14957_v55, %s12053_s24  ;;  %v1151_v46 = vsel %vm12206_vm5, %v1146_v5, %v1150_v8  ;;  %v2251_v26 = vrot.slane %v2249_v37, 4  ;;  %v2252_v14 = vrot.slane %v167_v6, 5  ;;  %v2256_v23 = vrot.slane %v14953_v57, 5 }
 0x228   :  { %4183 = vrot.lane.b32.xlu0 %v14822_v62, %s12052_s14  ;;  %v1160_v40 = vrot.slane %v1159_v50, 4  ;;  %v1170_v29 = vrot.slane %v1169_v41, 4  ;;  %v1174_v43 = vrot.slane %v1172_v21, 5  ;;  %v15009_v45 = vcombine.low %v1141_v20, %v1151_v46  ;;  %v15032_v20 = vld [vmem:[%s20455_s0 + $0x1f8] sm:$0xf] }
 0x229   :  { %v14981_v18 = vpop.permute.xlu1 %3753  ;;  %v2250_v17 = vsel %vm12174_vm3, %v10709_v36, %v2249_v37  ;;  %v2253_v6 = vsel %vm12174_vm3, %v2251_v26, %v2252_v14  ;;  %v10710_v5 = vrot.slane %v14941_v34, 9  ;;  %v2259_v8 = vrot.slane %v170_v24, 5  ;;  %v6590_v36 = vld [vmem:[%s20458_s3 + $0xc0] sm:$0xff]  ;;  %v6593_v14 = vld [vmem:[%s20458_s3 + $0xd8] sm:$0xff] }
 0x22a   :  { %v3612_v58 = vpop.permute.xlu0 %3611  ;;  %v1165_v50 = vsel %vm12206_vm5, %v1160_v40, %v1164_v11  ;;  %v1175_v41 = vsel %vm12206_vm5, %v1170_v29, %v1174_v43  ;;  %v4471_v37 = vsel %vm4387_vm6, %v13972_v22, %v14917_v30  ;;  %v15037_v11 = vcombine.low %v2250_v17, %v2253_v6  ;;  %v15046_v22 = vld [vmem:[%s20455_s0 + $0x1fc] sm:$0xf] }
 0x22b   :  { %3169 = vrot.lane.b32.xlu1 %v14872_v32, %s12048_s17  ;;  %v15041_v43 = vcombine.low %v14941_v34, %v14953_v57  ;;  %v4468_v30 = vsel %vm4387_vm6, %v13910_v59, %v14892_v31  ;;  %v15056_v46 = vcombine.low %v1165_v50, %v1175_v41  ;;  %v2257_v34 = vsel %vm12174_vm3, %v10710_v5, %v2256_v23 }
 0x22c   :  { %4323 = vrot.lane.b32.xlu0 %v14853_v7, %s12053_s24  ;;  %v4636_v26 = vsel %vm4580_vm7, %v4471_v37, %v14948_v12  ;;  %v4634_v59 = vsel %vm4580_vm7, %v4468_v30, %v14975_v53  ;;  %v1177_v40 = vshrl.u32 %v15032_v20, 16  ;;  %v1190_v53 = vshrl.u32 %v15046_v22, 16  ;;  %v6591_v30 = vld [vmem:[%s20458_s3 + $0xc8] sm:$0xff] }
 0x22d   :  { %v14991_v49 = vpop.permute.xlu1 %3893  ;;  %v4763_v29 = vsel %vm4709_vm8, %v4634_v59, %v3612_v58  ;;  %v1186_v58 = vshll.u32 %v15046_v22, 16 }
 0x22e   :  { %v3752_v56 = vpop.permute.xlu0 %3751 }
 0x22f   :  { %3489 = vrot.lane.b32.xlu1 %v14957_v55, %s12047_s27 }
 0x230   :  { %3167 = vrot.lane.b32.xlu0 %v14822_v62, %s12048_s17  ;;  %v2258_v62 = vrot.slane %v2256_v23, 4  ;;  %v1180_v23 = vshll.u32 %v15032_v20, 16 }
 0x231   :  { %v15007_v33 = vpop.permute.xlu1 %4033 }
 0x232   :  { %v3892_v4 = vpop.permute.xlu0 %3891  ;;  %v2260_v57 = vsel %vm12174_vm3, %v2258_v62, %v2259_v8  ;;  %v4892_v62 = vsel %vm4838_vm9, %v4763_v29, %v3752_v56 }
 0x233   :  { %3629 = vrot.lane.b32.xlu1 %v14995_v61, %s12046_s18  ;;  %v5021_v59 = vsel %vm4967_vm10, %v4892_v62, %v3892_v4 }
 0x234   :  { %3487 = vrot.lane.b32.xlu0 %v14853_v7, %s12047_s27  ;;  %v6592_v7 = vld [vmem:[%s20458_s3 + $0xd0] sm:$0xff] }
 0x235   :  { %v15027_v21 = vpop.permute.xlu1 %4173 }
 0x236   :  { %v4032_v24 = vpop.permute.xlu0 %4031 }
 0x237   :  { %3769 = vrot.lane.b32.xlu1 %v15009_v45, %s12049_s19  ;;  %v5150_v29 = vsel %vm5096_vm11, %v5021_v59, %v4032_v24  ;;  %v15178_v59 = vcombine.low %v15032_v20, %v15046_v22 }
 0x238   :  { %v11345_v31 = vpop.f32.mrb[24].mxu0  ;;  %3627 = vrot.lane.b32.xlu0 %v14857_v19, %s12046_s18 }
 0x239   :  { %v6272_v17 = vadd.f32 %v14650_v3, %v11345_v31  ;;  %v6624_v12 = vsub.f32 %v6592_v7, %v11345_v31  ;;  %v5824_v6 = vpop.f32.mrb[25].mxu0  ;;  %v15075_v5 = vpop.permute.xlu1 %3155  ;;  %v4765_v7 = vsel %vm4709_vm8, %v4636_v26, %v14973_v2 }
 0x23a   :  { %v6270_v8 = vadd.f32 %v14650_v3, %v5824_v6  ;;  %v6622_v50 = vsub.f32 %v6590_v36, %v5824_v6  ;;  %v11346_v41 = vpop.f32.mrb[26].mxu0  ;;  %v4172_v37 = vpop.permute.xlu0 %4171  ;;  %v4894_v36 = vsel %vm4838_vm9, %v4765_v7, %v14981_v18 }
 0x23b   :  { %v6273_v31 = vadd.f32 %v14650_v3, %v11346_v41  ;;  %v6625_v25 = vsub.f32 %v6593_v14, %v11346_v41  ;;  %v5827_v56 = vpop.f32.mrb[27].mxu0  ;;  %3909 = vrot.lane.b32.xlu1 %v15037_v11, %s12050_s20  ;;  %v6400_v6 = vmax.f32 %v6272_v17, 0.0  ;;  %v15096_v2 = vmax.f32 %v6624_v12, 0.0 }
 0x23c   :  { %v6271_v39 = vadd.f32 %v14650_v3, %v5827_v56  ;;  %3767 = vrot.lane.b32.xlu0 %v14872_v32, %s12049_s19  ;;  %v6623_v14 = vsub.f32 %v6591_v30, %v5827_v56  ;;  %v6398_v41 = vmax.f32 %v6270_v8, 0.0  ;;  %v15102_v27 = vmax.f32 %v6622_v50, 0.0 }
 0x23d   :  { %20654 = vst [vmem:[#allocation38_spill] sm:$0xff] %v15096_v2  ;;  %v6401_v4 = vmax.f32 %v6273_v31, 0.0  ;;  %v15098_v26 = vmax.f32 %v6625_v25, 0.0  ;;  %v15100_v62 = vpop.permute.xlu1 %3157  ;;  %v5279_v18 = vsel %vm5225_vm13, %v5150_v29, %v4172_v37  ;;  %v5023_v8 = vsel %vm4967_vm10, %v4894_v36, %v14991_v49  ;;  %v15124_v37 = vld [vmem:[%s20455_s0 + $0x204] sm:$0xf] }
 0x23e   :  { %20656 = vst [vmem:[#allocation40_spill] sm:$0xff] %v15102_v27  ;;  %v6399_v24 = vmax.f32 %v6271_v39, 0.0  ;;  %v4312_v17 = vpop.permute.xlu0 %4311  ;;  %v15109_v12 = vmax.f32 %v6623_v14, 0.0  ;;  %v5152_v30 = vsel %vm5096_vm11, %v5023_v8, %v15007_v33  ;;  %v15136_v31 = vld [vmem:[%s20455_s0 + $0x208] sm:$0xf]  ;;  %v15140_v36 = vcombine.low %v2257_v34, %v2260_v57 }
 0x23f   :  { %20655 = vst [vmem:[#allocation39_spill] sm:$0xff] %v15098_v26  ;;  %v15105_v7 = vpack.c.bf16 %v6401_v4, %v6400_v6  ;;  %v5408_v25 = vsel %vm5354_vm12, %v5279_v18, %v4312_v17  ;;  %4049 = vrot.lane.b32.xlu1 %v15041_v43, %s12051_s28  ;;  %v1179_v29 = vrot.slane %v1177_v40, 4  ;;  %v1182_v33 = vrot.slane %v1180_v23, 5 }
 0x240   :  { %20658 = vst [vmem:[#allocation42_spill] sm:$0xff] %v15109_v12  ;;  %v15116_v50 = vpack.c.bf16 %v6399_v24, %v6398_v41  ;;  %v5511_v39 = vsel %vm5483_vm14, %v5408_v25, 0  ;;  %3907 = vrot.lane.b32.xlu0 %v14957_v55, %s12050_s20  ;;  %v5281_v55 = vsel %vm5225_vm13, %v5152_v30, %v15027_v21  ;;  %v1188_v4 = vrot.slane %v1186_v58, 5  ;;  %v173_v21 = vld [vmem:[%s20455_s0 + $0x200] sm:$0x1] }
 0x241   :  { %20657 = vst [vmem:[#allocation41_spill] sm:$0xff] %v15105_v7  ;;  %11371 = vmatprep.mubr.msk.bf16.mxu0 %vm5565_vm15, %v5511_v39  ;;  %v15131_v49 = vpop.permute.xlu1 %3477  ;;  %v1192_v14 = vrot.slane %v1190_v53, 4  ;;  %v1201_v41 = vshrl.u32 %v15124_v37, 16  ;;  %v1204_v34 = vshll.u32 %v15124_v37, 16  ;;  %v1214_v57 = vshrl.u32 %v15136_v31, 16 }
 0x242   :  { %20659 = vst [vmem:[#allocation43_spill] sm:$0xff] %v15116_v50  ;;  %v4314_v56 = vpop.permute.xlu0 %4313  ;;  %v1210_v40 = vshll.u32 %v15136_v31, 16  ;;  %v1183_v58 = vor.u32 %v1182_v33, %v1179_v29  ;;  %v1196_v17 = vshll.u32 %v173_v21, 16 }
 0x243   :  { %v5410_v6 = vsel %vm5354_vm12, %v5281_v55, %v4314_v56  ;;  %4189 = vrot.lane.b32.xlu1 %v15056_v46, %s12052_s14  ;;  %v1193_v24 = vor.u32 %v1192_v14, %v1188_v4  ;;  %v1203_v25 = vrot.slane %v1201_v41, 4  ;;  %v1206_v8 = vrot.slane %v1204_v34, 5  ;;  %v176_v56 = vld [vmem:[%s20455_s0 + $0x20c] sm:$0x1] }
 0x244   :  { %v5512_v18 = vsel %vm5483_vm14, %v5410_v6, 0  ;;  %4047 = vrot.lane.b32.xlu0 %v14995_v61, %s12051_s28  ;;  %v1212_v39 = vrot.slane %v1210_v40, 5  ;;  %v1216_v30 = vrot.slane %v1214_v57, 4  ;;  %v1184_v29 = vrot.slane %v1183_v58, 4 }
 0x245   :  { %11372 = vmatmul.mubr.msk.bf16.gmra.mrb[52].mxu0 %vm5565_vm15, %v5512_v18  ;;  %v15156_v23 = vpop.permute.xlu1 %3617  ;;  %v1194_v33 = vrot.slane %v1193_v24, 4  ;;  %v1198_v14 = vrot.slane %v1196_v17, 5  ;;  %v2263_v18 = vrot.slane %v15046_v22, 5  ;;  %v1207_v41 = vor.u32 %v1206_v8, %v1203_v25 }
 0x246   :  { %v15158_v53 = vpop.permute.xlu0 %3475  ;;  %v1217_v34 = vor.u32 %v1216_v30, %v1212_v39  ;;  %v1220_v57 = vshll.u32 %v176_v56, 16  ;;  %v1189_v58 = vsel %vm12206_vm5, %v1184_v29, %v1188_v4  ;;  %v10711_v24 = vrot.slane %v15032_v20, 9 }
 0x247   :  { %4329 = vrot.lane.b32.xlu1 %v15140_v36, %s12053_s24  ;;  %v1199_v17 = vsel %vm12206_vm5, %v1194_v33, %v1198_v14  ;;  %v2265_v25 = vrot.slane %v2263_v18, 4  ;;  %v2266_v8 = vrot.slane %v173_v21, 5  ;;  %v2270_v30 = vrot.slane %v15136_v31, 5 }
 0x248   :  { %4187 = vrot.lane.b32.xlu0 %v15009_v45, %s12052_s14  ;;  %v1208_v22 = vrot.slane %v1207_v41, 4  ;;  %v1218_v7 = vrot.slane %v1217_v34, 4  ;;  %v1222_v50 = vrot.slane %v1220_v57, 5  ;;  %v15192_v20 = vcombine.low %v1189_v58, %v1199_v17  ;;  %v15215_v58 = vld [vmem:[%s20455_s0 + $0x210] sm:$0xf] }
 0x249   :  { %v15164_v55 = vpop.permute.xlu1 %3757  ;;  %v2264_v29 = vsel %vm12174_vm3, %v10711_v24, %v2263_v18  ;;  %v2267_v21 = vsel %vm12174_vm3, %v2265_v25, %v2266_v8  ;;  %v10712_v33 = vrot.slane %v15124_v37, 9  ;;  %v2273_v14 = vrot.slane %v176_v56, 5  ;;  %v6597_v25 = vld [vmem:[%s20458_s3 + $0xf8] sm:$0xff] }
 0x24a   :  { %v3616_v6 = vpop.permute.xlu0 %3615  ;;  %v1213_v41 = vsel %vm12206_vm5, %v1208_v22, %v1212_v39  ;;  %v1223_v34 = vsel %vm12206_vm5, %v1218_v7, %v1222_v50  ;;  %v4477_v18 = vsel %vm4387_vm6, %v14161_v63, %v15100_v62  ;;  %v15220_v39 = vcombine.low %v2264_v29, %v2267_v21  ;;  %v15229_v63 = vld [vmem:[%s20455_s0 + $0x214] sm:$0xf]  ;;  %v6594_v50 = vld [vmem:[%s20458_s3 + $0xe0] sm:$0xff] }
 0x24b   :  { %3173 = vrot.lane.b32.xlu1 %v15056_v46, %s12048_s17  ;;  %v15224_v7 = vcombine.low %v15124_v37, %v15136_v31  ;;  %v4474_v62 = vsel %vm4387_vm6, %v14104_v52, %v15075_v5  ;;  %v15239_v24 = vcombine.low %v1213_v41, %v1223_v34  ;;  %v2271_v37 = vsel %vm12174_vm3, %v10712_v33, %v2270_v30 }
 0x24c   :  { %4327 = vrot.lane.b32.xlu0 %v15037_v11, %s12053_s24  ;;  %v4640_v17 = vsel %vm4580_vm7, %v4477_v18, %v15131_v49  ;;  %v4638_v52 = vsel %vm4580_vm7, %v4474_v62, %v15158_v53  ;;  %v1225_v8 = vshrl.u32 %v15215_v58, 16  ;;  %v1238_v53 = vshrl.u32 %v15229_v63, 16  ;;  %v6595_v62 = vld [vmem:[%s20458_s3 + $0xe8] sm:$0xff] }
 0x24d   :  { %v15174_v40 = vpop.permute.xlu1 %3897  ;;  %v4767_v22 = vsel %vm4709_vm8, %v4638_v52, %v3616_v6  ;;  %v1234_v6 = vshll.u32 %v15229_v63, 16 }
 0x24e   :  { %v3756_v32 = vpop.permute.xlu0 %3755 }
 0x24f   :  { %3493 = vrot.lane.b32.xlu1 %v15140_v36, %s12047_s27 }
 0x250   :  { %3171 = vrot.lane.b32.xlu0 %v15009_v45, %s12048_s17  ;;  %v2272_v45 = vrot.slane %v2270_v30, 4  ;;  %v1228_v30 = vshll.u32 %v15215_v58, 16 }
 0x251   :  { %v15190_v42 = vpop.permute.xlu1 %4037 }
 0x252   :  { %v3896_v4 = vpop.permute.xlu0 %3895  ;;  %v2274_v31 = vsel %vm12174_vm3, %v2272_v45, %v2273_v14  ;;  %v4896_v45 = vsel %vm4838_vm9, %v4767_v22, %v3756_v32 }
 0x253   :  { %3633 = vrot.lane.b32.xlu1 %v15178_v59, %s12046_s18  ;;  %v5025_v52 = vsel %vm4967_vm10, %v4896_v45, %v3896_v4 }
 0x254   :  { %3491 = vrot.lane.b32.xlu0 %v15037_v11, %s12047_s27  ;;  %v6596_v11 = vld [vmem:[%s20458_s3 + $0xf0] sm:$0xff] }
 0x255   :  { %v15210_v57 = vpop.permute.xlu1 %4177 }
 0x256   :  { %v4036_v56 = vpop.permute.xlu0 %4035 }
 0x257   :  { %3773 = vrot.lane.b32.xlu1 %v15192_v20, %s12049_s19  ;;  %v5154_v22 = vsel %vm5096_vm11, %v5025_v52, %v4036_v56  ;;  %v15319_v52 = vld [vmem:[%s20455_s0 + $0x220] sm:$0xf] }
 0x258   :  { %v11349_v5 = vpop.f32.mrb[28].mxu0  ;;  %3631 = vrot.lane.b32.xlu0 %v15041_v43, %s12046_s18 }
 0x259   :  { %v6276_v29 = vadd.f32 %v14650_v3, %v11349_v5  ;;  %v6628_v49 = vsub.f32 %v6596_v11, %v11349_v5  ;;  %v5840_v21 = vpop.f32.mrb[29].mxu0  ;;  %v15258_v33 = vpop.permute.xlu1 %3159  ;;  %v4769_v11 = vsel %vm4709_vm8, %v4640_v17, %v15156_v23 }
 0x25a   :  { %v6274_v14 = vadd.f32 %v14650_v3, %v5840_v21  ;;  %v6626_v41 = vsub.f32 %v6594_v50, %v5840_v21  ;;  %v11350_v34 = vpop.f32.mrb[30].mxu0  ;;  %v4176_v18 = vpop.permute.xlu0 %4175  ;;  %v4898_v50 = vsel %vm4838_vm9, %v4769_v11, %v15164_v55 }
 0x25b   :  { %v6277_v5 = vadd.f32 %v14650_v3, %v11350_v34  ;;  %v6629_v28 = vsub.f32 %v6597_v25, %v11350_v34  ;;  %v5843_v32 = vpop.f32.mrb[31].mxu0  ;;  %3913 = vrot.lane.b32.xlu1 %v15220_v39, %s12050_s20  ;;  %v6404_v21 = vmax.f32 %v6276_v29, 0.0  ;;  %v15279_v23 = vmax.f32 %v6628_v49, 0.0 }
 0x25c   :  { %v6275_v2 = vadd.f32 %v14650_v3, %v5843_v32  ;;  %3771 = vrot.lane.b32.xlu0 %v15056_v46, %s12049_s19  ;;  %v6627_v25 = vsub.f32 %v6595_v62, %v5843_v32  ;;  %v6402_v34 = vmax.f32 %v6274_v14, 0.0  ;;  %v15285_v26 = vmax.f32 %v6626_v41, 0.0  ;;  %v15307_v41 = vld [vmem:[%s20455_s0 + $0x21c] sm:$0xf] }
 0x25d   :  { %20660 = vst [vmem:[#allocation44_spill] sm:$0xff] %v15279_v23  ;;  %v6405_v4 = vmax.f32 %v6277_v5, 0.0  ;;  %v15281_v17 = vmax.f32 %v6629_v28, 0.0  ;;  %v15283_v45 = vpop.permute.xlu1 %3161  ;;  %v5283_v55 = vsel %vm5225_vm13, %v5154_v22, %v4176_v18  ;;  %v5027_v49 = vsel %vm4967_vm10, %v4898_v50, %v15174_v40 }
 0x25e   :  { %20662 = vst [vmem:[#allocation46_spill] sm:$0xff] %v15285_v26  ;;  %v6403_v56 = vmax.f32 %v6275_v2, 0.0  ;;  %v4316_v29 = vpop.permute.xlu0 %4315  ;;  %v15292_v46 = vmax.f32 %v6627_v25, 0.0  ;;  %v5156_v18 = vsel %vm5096_vm11, %v5027_v49, %v15190_v42  ;;  %v15323_v32 = vcombine.low %v2271_v37, %v2274_v31 }
 0x25f   :  { %20661 = vst [vmem:[#allocation45_spill] sm:$0xff] %v15281_v17  ;;  %v15288_v11 = vpack.c.bf16 %v6405_v4, %v6404_v21  ;;  %v5412_v28 = vsel %vm5354_vm12, %v5283_v55, %v4316_v29  ;;  %4053 = vrot.lane.b32.xlu1 %v15224_v7, %s12051_s28  ;;  %v1227_v50 = vrot.slane %v1225_v8, 4  ;;  %v1230_v42 = vrot.slane %v1228_v30, 5 }
 0x260   :  { %20664 = vst [vmem:[#allocation48_spill] sm:$0xff] %v15292_v46  ;;  %v15299_v14 = vpack.c.bf16 %v6403_v56, %v6402_v34  ;;  %v5513_v2 = vsel %vm5483_vm14, %v5412_v28, 0  ;;  %3911 = vrot.lane.b32.xlu0 %v15140_v36, %s12050_s20  ;;  %v5285_v36 = vsel %vm5225_vm13, %v5156_v18, %v15210_v57  ;;  %v1236_v21 = vrot.slane %v1234_v6, 5  ;;  %v179_v57 = vld [vmem:[%s20455_s0 + $0x218] sm:$0x1] }
 0x261   :  { %20663 = vst [vmem:[#allocation47_spill] sm:$0xff] %v15288_v11  ;;  %11375 = vmatprep.mubr.msk.bf16.mxu0 %vm5565_vm15, %v5513_v2  ;;  %v15314_v40 = vpop.permute.xlu1 %3481  ;;  %v1240_v4 = vrot.slane %v1238_v53, 4  ;;  %v1249_v25 = vshrl.u32 %v15307_v41, 16  ;;  %v1252_v37 = vshll.u32 %v15307_v41, 16  ;;  %v1262_v31 = vshrl.u32 %v15319_v52, 16 }
 0x262   :  { %20665 = vst [vmem:[#allocation49_spill] sm:$0xff] %v15299_v14  ;;  %v4318_v5 = vpop.permute.xlu0 %4317  ;;  %v1258_v8 = vshll.u32 %v15319_v52, 16  ;;  %v1231_v6 = vor.u32 %v1230_v42, %v1227_v50  ;;  %v1244_v56 = vshll.u32 %v179_v57, 16  ;;  %v15359_v3 = vcombine.low %v15215_v58, %v15229_v63 }
 0x263   :  { %v5414_v22 = vsel %vm5354_vm12, %v5285_v36, %v4318_v5  ;;  %4193 = vrot.lane.b32.xlu1 %v15239_v24, %s12052_s14  ;;  %v1241_v55 = vor.u32 %v1240_v4, %v1236_v21  ;;  %v1251_v29 = vrot.slane %v1249_v25, 4  ;;  %v1254_v28 = vrot.slane %v1252_v37, 5  ;;  %v182_v36 = vld [vmem:[%s20455_s0 + $0x224] sm:$0x1] }
 0x264   :  { %v5514_v34 = vsel %vm5483_vm14, %v5414_v22, 0  ;;  %4051 = vrot.lane.b32.xlu0 %v15178_v59, %s12051_s28  ;;  %v1260_v49 = vrot.slane %v1258_v8, 5  ;;  %v1264_v2 = vrot.slane %v1262_v31, 4  ;;  %v1232_v50 = vrot.slane %v1231_v6, 4 }
 0x265   :  { %11376 = vmatmul.mubr.msk.bf16.gmra.mrb[56].mxu0 %vm5565_vm15, %v5514_v34  ;;  %v15339_v30 = vpop.permute.xlu1 %3621  ;;  %v1242_v42 = vrot.slane %v1241_v55, 4  ;;  %v1246_v22 = vrot.slane %v1244_v56, 5  ;;  %v2277_v4 = vrot.slane %v15229_v63, 5  ;;  %v1255_v25 = vor.u32 %v1254_v28, %v1251_v29 }
 0x266   :  { %v3480_v53 = vpop.permute.xlu0 %3479  ;;  %v1265_v34 = vor.u32 %v1264_v2, %v1260_v49  ;;  %v1268_v37 = vshll.u32 %v182_v36, 16  ;;  %v1237_v6 = vsel %vm12206_vm5, %v1232_v50, %v1236_v21  ;;  %v10713_v55 = vrot.slane %v15215_v58, 9 }
 0x267   :  { %4333 = vrot.lane.b32.xlu1 %v15323_v32, %s12053_s24  ;;  %v1247_v56 = vsel %vm12206_vm5, %v1242_v42, %v1246_v22  ;;  %v2279_v29 = vrot.slane %v2277_v4, 4  ;;  %v2280_v28 = vrot.slane %v179_v57, 5  ;;  %v2284_v2 = vrot.slane %v15319_v52, 5 }
 0x268   :  { %4191 = vrot.lane.b32.xlu0 %v15192_v20, %s12052_s14  ;;  %v1256_v63 = vrot.slane %v1255_v25, 4  ;;  %v1266_v62 = vrot.slane %v1265_v34, 4  ;;  %v1270_v11 = vrot.slane %v1268_v37, 5  ;;  %v15373_v58 = vcombine.low %v1237_v6, %v1247_v56  ;;  %v15396_v6 = vld [vmem:[%s20455_s0 + $0x228] sm:$0xf] }
 0x269   :  { %v15345_v18 = vpop.permute.xlu1 %3761  ;;  %v2278_v50 = vsel %vm12174_vm3, %v10713_v55, %v2277_v4  ;;  %v2281_v57 = vsel %vm12174_vm3, %v2279_v29, %v2280_v28  ;;  %v10714_v42 = vrot.slane %v15307_v41, 9  ;;  %v2287_v22 = vrot.slane %v182_v36, 5  ;;  %v15433_v28 = vld [vmem:[%s20457_s2] ss:$0 sm:$0xff] }
 0x26a   :  { %v3620_v5 = vpop.permute.xlu0 %3619  ;;  %v1261_v25 = vsel %vm12206_vm5, %v1256_v63, %v1260_v49  ;;  %v1271_v34 = vsel %vm12206_vm5, %v1266_v62, %v1270_v11  ;;  %v4483_v4 = vsel %vm4387_vm6, %v14342_v48, %v15283_v45  ;;  %v15398_v55 = vcombine.low %v2278_v50, %v2281_v57  ;;  %v15407_v11 = vld [vmem:[%s20455_s0 + $0x22c] sm:$0xf] }
 0x26b   :  { %3177 = vrot.lane.b32.xlu1 %v15239_v24, %s12048_s17  ;;  %v4480_v48 = vsel %vm4387_vm6, %v14290_v0, %v15258_v33  ;;  %v15414_v45 = vcombine.low %v1261_v25, %v1271_v34  ;;  %v15418_v62 = vsel %vm12174_vm3, %v10714_v42, %v2284_v2  ;;  %v1273_v0 = vshrl.u32 %v15396_v6, 16 }
 0x26c   :  { %4331 = vrot.lane.b32.xlu0 %v15220_v39, %s12053_s24  ;;  %v4642_v49 = vsel %vm4580_vm7, %v4480_v48, %v3480_v53  ;;  %v1276_v33 = vshll.u32 %v15396_v6, 16  ;;  %v1286_v57 = vshrl.u32 %v15407_v11, 16 }
 0x26d   :  { %v15355_v31 = vpop.permute.xlu1 %3901  ;;  %v4771_v29 = vsel %vm4709_vm8, %v4642_v49, %v3620_v5 }
 0x26e   :  { %v3760_v8 = vpop.permute.xlu0 %3759 }
 0x26f   :  { %3497 = vrot.lane.b32.xlu1 %v15323_v32, %s12047_s27  ;;  %v4900_v42 = vsel %vm4838_vm9, %v4771_v29, %v3760_v8  ;;  %v11943_v8 = vld [vmem:[%s20458_s3 + $0x18] sm:$0xff] }
 0x270   :  { %3175 = vrot.lane.b32.xlu0 %v15192_v20, %s12048_s17  ;;  %v2286_v20 = vrot.slane %v2284_v2, 4 }
 0x271   :  { %v15371_v14 = vpop.permute.xlu1 %4041 }
 0x272   :  { %v3900_v21 = vpop.permute.xlu0 %3899 }
 0x273   :  { %3637 = vrot.lane.b32.xlu1 %v15359_v3, %s12046_s18  ;;  %v5029_v49 = vsel %vm4967_vm10, %v4900_v42, %v3900_v21 }
 0x274   :  { %3495 = vrot.lane.b32.xlu0 %v15220_v39, %s12047_s27  ;;  %v15402_v39 = vcombine.low %v15307_v41, %v15319_v52  ;;  %v2288_v41 = vsel %vm12174_vm3, %v2286_v20, %v2287_v22  ;;  %v4644_v52 = vsel %vm4580_vm7, %v4483_v4, %v15314_v40  ;;  %v11941_v40 = vld [vmem:[%s20458_s3 + $0x10] sm:$0xff]  ;;  %v11942_v20 = vld [vmem:[%s20458_s3] sm:$0xff]  ;;  %v1282_v4 = vshll.u32 %v15407_v11, 16 }
 0x275   :  { %v15391_v37 = vpop.permute.xlu1 %4181  ;;  %v4773_v48 = vsel %vm4709_vm8, %v4644_v52, %v15339_v30 }
 0x276   :  { %v4040_v36 = vpop.permute.xlu0 %4039 }
 0x277   :  { %3777 = vrot.lane.b32.xlu1 %v15373_v58, %s12049_s19 }
 0x278   :  { %v11353_v56 = vpop.f32.mrb[32].mxu0  ;;  %3635 = vrot.lane.b32.xlu0 %v15224_v7, %s12046_s18 }
 0x279   :  { %v6280_v2 = vadd.f32 %v15433_v28, %v11353_v56  ;;  %v6632_v53 = vsub.f32 %v11941_v40, %v11353_v56  ;;  %v5856_v63 = vpop.f32.mrb[33].mxu0  ;;  %v15439_v50 = vpop.permute.xlu1 %3163 }
 0x27a   :  { %v6278_v5 = vadd.f32 %v15433_v28, %v5856_v63  ;;  %v6630_v22 = vsub.f32 %v11942_v20, %v5856_v63  ;;  %v11354_v25 = vpop.f32.mrb[34].mxu0  ;;  %v4180_v34 = vpop.permute.xlu0 %4179  ;;  %v4902_v63 = vsel %vm4838_vm9, %v4773_v48, %v15345_v18  ;;  %v5158_v20 = vsel %vm5096_vm11, %v5029_v49, %v4040_v36 }
 0x27b   :  { %v6281_v56 = vadd.f32 %v15433_v28, %v11354_v25  ;;  %v6633_v29 = vsub.f32 %v11943_v8, %v11354_v25  ;;  %v5859_v40 = vpop.f32.mrb[35].mxu0  ;;  %3917 = vrot.lane.b32.xlu1 %v15398_v55, %s12050_s20  ;;  %v6408_v23 = vmax.f32 %v6280_v2, 0.0  ;;  %v15463_v21 = vmax.f32 %v6632_v53, 0.0  ;;  %v11944_v25 = vld [vmem:[%s20458_s3 + $0x8] sm:$0xff] }
 0x27c   :  { %v6279_v30 = vadd.f32 %v15433_v28, %v5859_v40  ;;  %3775 = vrot.lane.b32.xlu0 %v15239_v24, %s12049_s19  ;;  %v6631_v8 = vsub.f32 %v11944_v25, %v5859_v40  ;;  %v6406_v18 = vmax.f32 %v6278_v5, 0.0  ;;  %v15472_v36 = vmax.f32 %v6630_v22, 0.0 }
 0x27d   :  { %20666 = vst [vmem:[#allocation50_spill] sm:$0xff] %v15463_v21  ;;  %v6409_v52 = vmax.f32 %v6281_v56, 0.0  ;;  %v15465_v42 = vmax.f32 %v6633_v29, 0.0  ;;  %v15470_v17 = vpop.permute.xlu1 %3165  ;;  %v5287_v2 = vsel %vm5225_vm13, %v5158_v20, %v4180_v34  ;;  %v5031_v5 = vsel %vm4967_vm10, %v4902_v63, %v15355_v31  ;;  %v15506_v63 = vld [vmem:[%s20455_s0 + $0x238] sm:$0xf] }
 0x27e   :  { %20668 = vst [vmem:[#allocation52_spill] sm:$0xff] %v15472_v36  ;;  %v6407_v48 = vmax.f32 %v6279_v30, 0.0  ;;  %v4320_v49 = vpop.permute.xlu0 %4319  ;;  %v15479_v56 = vmax.f32 %v6631_v8, 0.0  ;;  %v5160_v40 = vsel %vm5096_vm11, %v5031_v5, %v15371_v14  ;;  %v1275_v14 = vrot.slane %v1273_v0, 4 }
 0x27f   :  { %20667 = vst [vmem:[#allocation51_spill] sm:$0xff] %v15465_v42  ;;  %v15475_v24 = vpack.c.bf16 %v6409_v52, %v6408_v23  ;;  %v5416_v29 = vsel %vm5354_vm12, %v5287_v2, %v4320_v49  ;;  %4057 = vrot.lane.b32.xlu1 %v15402_v39, %s12051_s28  ;;  %v15494_v23 = vld [vmem:[%s20455_s0 + $0x234] sm:$0xf]  ;;  %v15511_v52 = vcombine.low %v15418_v62, %v2288_v41  ;;  %v1278_v25 = vrot.slane %v1276_v33, 5 }
 0x280   :  { %20670 = vst [vmem:[#allocation54_spill] sm:$0xff] %v15479_v56  ;;  %v15486_v22 = vpack.c.bf16 %v6407_v48, %v6406_v18  ;;  %v5515_v34 = vsel %vm5483_vm14, %v5416_v29, 0  ;;  %3915 = vrot.lane.b32.xlu0 %v15323_v32, %s12050_s20  ;;  %v5289_v32 = vsel %vm5225_vm13, %v5160_v40, %v15391_v37  ;;  %v1284_v18 = vrot.slane %v1282_v4, 5  ;;  %v185_v37 = vld [vmem:[%s20455_s0 + $0x230] sm:$0x1] }
 0x281   :  { %20669 = vst [vmem:[#allocation53_spill] sm:$0xff] %v15475_v24  ;;  %11379 = vmatprep.mubr.msk.bf16.mxu0 %vm5565_vm15, %v5515_v34  ;;  %v15501_v31 = vpop.permute.xlu1 %3485  ;;  %v1288_v2 = vrot.slane %v1286_v57, 4  ;;  %v1297_v48 = vshrl.u32 %v15494_v23, 16  ;;  %v1300_v62 = vshll.u32 %v15494_v23, 16  ;;  %v1310_v41 = vshrl.u32 %v15506_v63, 16 }
 0x282   :  { %20671 = vst [vmem:[#allocation55_spill] sm:$0xff] %v15486_v22  ;;  %v4322_v30 = vpop.permute.xlu0 %4321  ;;  %v1306_v0 = vshll.u32 %v15506_v63, 16  ;;  %v1279_v4 = vor.u32 %v1278_v25, %v1275_v14  ;;  %v1292_v5 = vshll.u32 %v185_v37, 16  ;;  %v2291_v20 = vrot.slane %v15407_v11, 5 }
 0x283   :  { %v5418_v8 = vsel %vm5354_vm12, %v5289_v32, %v4322_v30  ;;  %4197 = vrot.lane.b32.xlu1 %v15414_v45, %s12052_s14  ;;  %v1289_v29 = vor.u32 %v1288_v2, %v1284_v18  ;;  %v1299_v34 = vrot.slane %v1297_v48, 4  ;;  %v1302_v40 = vrot.slane %v1300_v62, 5 }
 0x284   :  { %v5516_v49 = vsel %vm5483_vm14, %v5418_v8, 0  ;;  %4055 = vrot.lane.b32.xlu0 %v15359_v3, %s12051_s28  ;;  %v1308_v32 = vrot.slane %v1306_v0, 5  ;;  %v1312_v30 = vrot.slane %v1310_v41, 4  ;;  %v1280_v14 = vrot.slane %v1279_v4, 4 }
 0x285   :  { %11380 = vmatmul.mubr.msk.bf16.gmra.mrb[60].mxu0 %vm5565_vm15, %v5516_v49  ;;  %v3626_v33 = vpop.permute.xlu1 %3625  ;;  %v15536_v49 = vld [vmem:[%s20455_s0 + $0x23c] sm:$0x1]  ;;  %v1294_v25 = vrot.slane %v1292_v5, 5  ;;  %v1290_v2 = vrot.slane %v1289_v29, 4  ;;  %v1303_v48 = vor.u32 %v1302_v40, %v1299_v34  ;;  %v10715_v22 = vrot.slane %v15396_v6, 9 }
 0x286   :  { %v15527_v57 = vpop.permute.xlu0 %3483  ;;  %v1313_v62 = vor.u32 %v1312_v30, %v1308_v32  ;;  %v1316_v41 = vshll.u32 %v15536_v49, 16  ;;  %v2293_v21 = vrot.slane %v2291_v20, 4  ;;  %v2294_v42 = vrot.slane %v185_v37, 5 }
 0x287   :  { %4337 = vrot.lane.b32.xlu1 %v15511_v52, %s12053_s24  ;;  %v15549_v4 = vcombine.low %v15396_v6, %v15407_v11  ;;  %v1285_v29 = vsel %vm12206_vm5, %v1280_v14, %v1284_v18  ;;  %v1295_v5 = vsel %vm12206_vm5, %v1290_v2, %v1294_v25  ;;  %v1304_v34 = vrot.slane %v1303_v48, 4  ;;  %v11945_v18 = vld [vmem:[%s20455_s0 + $0x1b0] sm:$0xf]  ;;  %v11946_v14 = vld [vmem:[%s20455_s0 + $0x1b4] sm:$0xf] }
 0x288   :  { %4195 = vrot.lane.b32.xlu0 %v15373_v58, %s12052_s14  ;;  %v1314_v40 = vrot.slane %v1313_v62, 4  ;;  %v1318_v30 = vrot.slane %v1316_v41, 5  ;;  %v4489_v37 = vsel %vm4387_vm6, %v14834_v1, %v15470_v17  ;;  %v2292_v6 = vsel %vm12174_vm3, %v10715_v22, %v2291_v20  ;;  %v15586_v22 = vld [vmem:[%s20455_s0 + $0x240] sm:$0xf] }
 0x289   :  { %v3766_v8 = vpop.permute.xlu1 %3765  ;;  %v2295_v11 = vsel %vm12174_vm3, %v2293_v21, %v2294_v42  ;;  %v10777_v25 = vcombine.low %v11945_v18, %v11946_v14  ;;  %v15573_v1 = vcombine.low %v1285_v29, %v1295_v5  ;;  %v4648_v17 = vsel %vm4580_vm7, %v4489_v37, %v15501_v31  ;;  %v15593_v31 = vld [vmem:[%s20455_s0 + $0x244] sm:$0xf] }
 0x28a   :  { %v3624_v53 = vpop.permute.xlu0 %3623  ;;  %v1309_v21 = vsel %vm12206_vm5, %v1304_v34, %v1308_v32  ;;  %v1319_v42 = vsel %vm12206_vm5, %v1314_v40, %v1318_v30  ;;  %v15588_v2 = vcombine.low %v2292_v6, %v2295_v11  ;;  %v15597_v32 = vcombine.low %v15494_v23, %v15506_v63 }
 0x28b   :  { %3181 = vrot.lane.b32.xlu1 %v15414_v45, %s12048_s17  ;;  %v10716_v48 = vrot.slane %v15494_v23, 9  ;;  %v2301_v41 = vrot.slane %v15536_v49, 5  ;;  %v4486_v29 = vsel %vm4387_vm6, %v10777_v25, %v15439_v50  ;;  %v4777_v5 = vsel %vm4709_vm8, %v4648_v17, %v3626_v33 }
 0x28c   :  { %4335 = vrot.lane.b32.xlu0 %v15398_v55, %s12053_s24  ;;  %v15608_v34 = vcombine.low %v1309_v21, %v1319_v42  ;;  %v1321_v40 = vshrl.u32 %v15586_v22, 16  ;;  %v4646_v23 = vsel %vm4580_vm7, %v4486_v29, %v15527_v57  ;;  %v4906_v30 = vsel %vm4838_vm9, %v4777_v5, %v3766_v8  ;;  %v11947_v57 = vld [vmem:[%s20458_s3 + $0x30] sm:$0xff] }
 0x28d   :  { %v3906_v0 = vpop.permute.xlu1 %3905  ;;  %v1324_v50 = vshll.u32 %v15586_v22, 16  ;;  %v1334_v33 = vshrl.u32 %v15593_v31, 16  ;;  %v4775_v49 = vsel %vm4709_vm8, %v4646_v23, %v3624_v53  ;;  %v11948_v53 = vld [vmem:[%s20458_s3 + $0x20] sm:$0xff] }
 0x28e   :  { %v3764_v24 = vpop.permute.xlu0 %3763  ;;  %v5035_v6 = vsel %vm4967_vm10, %v4906_v30, %v3906_v0 }
 0x28f   :  { %3501 = vrot.lane.b32.xlu1 %v15511_v52, %s12047_s27  ;;  %v4904_v25 = vsel %vm4838_vm9, %v4775_v49, %v3764_v24 }
 0x290   :  { %3179 = vrot.lane.b32.xlu0 %v15373_v58, %s12048_s17  ;;  %v2298_v58 = vrot.slane %v15506_v63, 5  ;;  %v15685_v63 = vld [vmem:[%s20455_s0 + $0x24c] sm:$0xf] }
 0x291   :  { %v4046_v36 = vpop.permute.xlu1 %4045 }
 0x292   :  { %v3904_v56 = vpop.permute.xlu0 %3903  ;;  %v2300_v62 = vrot.slane %v2298_v58, 4  ;;  %v5164_v17 = vsel %vm5096_vm11, %v5035_v6, %v4046_v36  ;;  %v1330_v36 = vshll.u32 %v15593_v31, 16 }
 0x293   :  { %3641 = vrot.lane.b32.xlu1 %v15549_v4, %s12046_s18  ;;  %v5033_v5 = vsel %vm4967_vm10, %v4904_v25, %v3904_v56 }
 0x294   :  { %3499 = vrot.lane.b32.xlu0 %v15398_v55, %s12047_s27 }
 0x295   :  { %v4186_v20 = vpop.permute.xlu1 %4185 }
 0x296   :  { %v4044_v55 = vpop.permute.xlu0 %4043  ;;  %v5293_v23 = vsel %vm5225_vm13, %v5164_v17, %v4186_v20 }
 0x297   :  { %3781 = vrot.lane.b32.xlu1 %v15573_v1, %s12049_s19  ;;  %v5162_v24 = vsel %vm5096_vm11, %v5033_v5, %v4044_v55  ;;  %v11950_v55 = vld [vmem:[%s20458_s3 + $0x28] sm:$0xff] }
 0x298   :  { %v11357_v37 = vpop.f32.mrb[36].mxu0  ;;  %3639 = vrot.lane.b32.xlu0 %v15402_v39, %s12046_s18 }
 0x299   :  { %v6284_v11 = vadd.f32 %v15433_v28, %v11357_v37  ;;  %v6636_v18 = vsub.f32 %v11947_v57, %v11357_v37  ;;  %v5872_v8 = vpop.f32.mrb[37].mxu0  ;;  %v4326_v14 = vpop.permute.xlu1 %4325  ;;  %v11949_v57 = vld [vmem:[%s20458_s3 + $0x38] sm:$0xff] }
 0x29a   :  { %v6282_v21 = vadd.f32 %v15433_v28, %v5872_v8  ;;  %v6634_v0 = vsub.f32 %v11948_v53, %v5872_v8  ;;  %v11358_v42 = vpop.f32.mrb[38].mxu0  ;;  %v4184_v29 = vpop.permute.xlu0 %4183  ;;  %v5422_v6 = vsel %vm5354_vm12, %v5293_v23, %v4326_v14 }
 0x29b   :  { %v6285_v30 = vadd.f32 %v15433_v28, %v11358_v42  ;;  %v5875_v37 = vpop.f32.mrb[39].mxu0  ;;  %3921 = vrot.lane.b32.xlu1 %v15588_v2, %s12050_s20  ;;  %v6412_v49 = vmax.f32 %v6284_v11, 0.0  ;;  %v6637_v56 = vsub.f32 %v11949_v57, %v11358_v42  ;;  %v15643_v20 = vmax.f32 %v6636_v18, 0.0 }
 0x29c   :  { %3779 = vrot.lane.b32.xlu0 %v15414_v45, %s12049_s19  ;;  %v6283_v25 = vadd.f32 %v15433_v28, %v5875_v37  ;;  %v6635_v11 = vsub.f32 %v11950_v55, %v5875_v37  ;;  %v6410_v14 = vmax.f32 %v6282_v21, 0.0  ;;  %v15651_v53 = vmax.f32 %v6634_v0, 0.0  ;;  %v191_v55 = vld [vmem:[%s20455_s0 + $0x248] sm:$0x1]  ;;  %v194_v21 = vld [vmem:[%s20455_s0 + $0x254] sm:$0x1] }
 0x29d   :  { %20672 = vst [vmem:[#allocation56_spill] sm:$0xff] %v15643_v20  ;;  %v6413_v8 = vmax.f32 %v6285_v30, 0.0  ;;  %v15649_v17 = vpop.permute.xlu1 %3169  ;;  %v15653_v5 = vmax.f32 %v6637_v56, 0.0  ;;  %v5291_v42 = vsel %vm5225_vm13, %v5162_v24, %v4184_v29  ;;  %v2299_v29 = vsel %vm12174_vm3, %v10716_v48, %v2298_v58 }
 0x29e   :  { %20673 = vst [vmem:[#allocation57_spill] sm:$0xff] %v15651_v53  ;;  %v4324_v45 = vpop.permute.xlu0 %4323  ;;  %v6411_v23 = vmax.f32 %v6283_v25, 0.0  ;;  %v15658_v30 = vmax.f32 %v6635_v11, 0.0  ;;  %v2302_v37 = vsel %vm12174_vm3, %v2300_v62, %v2301_v41  ;;  %v5518_v24 = vsel %vm5483_vm14, %v5422_v6, 0 }
 0x29f   :  { %20674 = vst [vmem:[#allocation58_spill] sm:$0xff] %v15653_v5  ;;  %v15656_v18 = vpack.c.bf16 %v6413_v8, %v6412_v49  ;;  %v5420_v57 = vsel %vm5354_vm12, %v5291_v42, %v4324_v45  ;;  %4061 = vrot.lane.b32.xlu1 %v15597_v32, %s12051_s28  ;;  %v1323_v48 = vrot.slane %v1321_v40, 4  ;;  %v1326_v62 = vrot.slane %v1324_v50, 5 }
 0x2a0   :  { %20676 = vst [vmem:[#allocation60_spill] sm:$0xff] %v15658_v30  ;;  %v5517_v0 = vsel %vm5483_vm14, %v5420_v57, 0  ;;  %3919 = vrot.lane.b32.xlu0 %v15511_v52, %s12050_s20  ;;  %v15675_v49 = vpack.c.bf16 %v6411_v23, %v6410_v14  ;;  %v15690_v52 = vld [vmem:[%s20455_s0 + $0x250] sm:$0xf]  ;;  %v1332_v41 = vrot.slane %v1330_v36, 5  ;;  %v1336_v6 = vrot.slane %v1334_v33, 4 }
 0x2a1   :  { %20675 = vst [vmem:[#allocation59_spill] sm:$0xff] %v15656_v18  ;;  %11383 = vmatprep.mubr.msk.bf16.mxu0 %vm5565_vm15, %v5517_v0  ;;  %v15680_v8 = vpop.permute.xlu1 %3489  ;;  %v15697_v25 = vcombine.low %v2299_v29, %v2302_v37  ;;  %v1345_v11 = vshrl.u32 %v15685_v63, 16  ;;  %v1348_v14 = vshll.u32 %v15685_v63, 16  ;;  %v1358_v40 = vshrl.u32 %v15690_v52, 16 }
 0x2a2   :  { %20677 = vst [vmem:[#allocation61_spill] sm:$0xff] %v15675_v49  ;;  %11384 = vmatmul.mubr.msk.bf16.gmra.mrb[64].mxu0 %vm5565_vm15, %v5518_v24  ;;  %v15693_v58 = vpop.permute.xlu0 %3167  ;;  %v1354_v50 = vshll.u32 %v15690_v52, 16  ;;  %v1327_v42 = vor.u32 %v1326_v62, %v1323_v48  ;;  %v1337_v45 = vor.u32 %v1336_v6, %v1332_v41  ;;  %v1340_v23 = vshll.u32 %v191_v55, 16 }
 0x2a3   :  { %4201 = vrot.lane.b32.xlu1 %v15608_v34, %s12052_s14  ;;  %v1347_v57 = vrot.slane %v1345_v11, 4  ;;  %v1350_v0 = vrot.slane %v1348_v14, 5  ;;  %v1360_v37 = vrot.slane %v1358_v40, 4  ;;  %v2305_v6 = vrot.slane %v15593_v31, 5 }
 0x2a4   :  { %4059 = vrot.lane.b32.xlu0 %v15549_v4, %s12051_s28  ;;  %v1356_v29 = vrot.slane %v1354_v50, 5  ;;  %v1328_v18 = vrot.slane %v1327_v42, 4  ;;  %v1338_v48 = vrot.slane %v1337_v45, 4  ;;  %v1342_v62 = vrot.slane %v1340_v23, 5 }
 0x2a5   :  { %v3630_v33 = vpop.permute.xlu1 %3629  ;;  %v1351_v11 = vor.u32 %v1350_v0, %v1347_v57  ;;  %v1364_v40 = vshll.u32 %v194_v21, 16  ;;  %v15722_v20 = vcombine.low %v15586_v22, %v15593_v31  ;;  %v10717_v23 = vrot.slane %v15586_v22, 9 }
 0x2a6   :  { %v3488_v36 = vpop.permute.xlu0 %3487  ;;  %v1361_v14 = vor.u32 %v1360_v37, %v1356_v29  ;;  %v1333_v42 = vsel %vm12206_vm5, %v1328_v18, %v1332_v41  ;;  %v1343_v45 = vsel %vm12206_vm5, %v1338_v48, %v1342_v62  ;;  %v2307_v57 = vrot.slane %v2305_v6, 4 }
 0x2a7   :  { %4341 = vrot.lane.b32.xlu1 %v15697_v25, %s12053_s24  ;;  %v2308_v0 = vrot.slane %v191_v55, 5  ;;  %v2312_v37 = vrot.slane %v15690_v52, 5  ;;  %v1352_v31 = vrot.slane %v1351_v11, 4  ;;  %v1366_v53 = vrot.slane %v1364_v40, 5 }
 0x2a8   :  { %4199 = vrot.lane.b32.xlu0 %v15573_v1, %s12052_s14  ;;  %v1362_v5 = vrot.slane %v1361_v14, 4  ;;  %v4495_v18 = vsel %vm4387_vm6, %v14857_v19, %v15649_v17  ;;  %v15737_v62 = vcombine.low %v1333_v42, %v1343_v45  ;;  %v10718_v22 = vrot.slane %v15685_v63, 9 }
 0x2a9   :  { %v3770_v24 = vpop.permute.xlu1 %3769  ;;  %v2306_v55 = vsel %vm12174_vm3, %v10717_v23, %v2305_v6  ;;  %v2314_v11 = vrot.slane %v2312_v37, 4  ;;  %v2315_v14 = vrot.slane %v194_v21, 5  ;;  %v4652_v19 = vsel %vm4580_vm7, %v4495_v18, %v15680_v8  ;;  %v15757_v6 = vld [vmem:[%s20455_s0 + $0x258] sm:$0xf] }
 0x2aa   :  { %v3628_v56 = vpop.permute.xlu0 %3627  ;;  %v1357_v17 = vsel %vm12206_vm5, %v1352_v31, %v1356_v29  ;;  %v1367_v40 = vsel %vm12206_vm5, %v1362_v5, %v1366_v53  ;;  %v15763_v8 = vcombine.low %v15685_v63, %v15690_v52  ;;  %v4492_v53 = vsel %vm4387_vm6, %v14807_v38, %v15693_v58  ;;  %v15788_v38 = vld [vmem:[%s20455_s0 + $0x25c] sm:$0xf] }
 0x2ab   :  { %3185 = vrot.lane.b32.xlu1 %v15608_v34, %s12048_s17  ;;  %v4781_v5 = vsel %vm4709_vm8, %v4652_v19, %v3630_v33  ;;  %v15775_v29 = vcombine.low %v1357_v17, %v1367_v40  ;;  %v15779_v23 = vsel %vm12174_vm3, %v2314_v11, %v2315_v14  ;;  %v4650_v63 = vsel %vm4580_vm7, %v4492_v53, %v3488_v36 }
 0x2ac   :  { %4339 = vrot.lane.b32.xlu0 %v15588_v2, %s12053_s24  ;;  %v4910_v52 = vsel %vm4838_vm9, %v4781_v5, %v3770_v24  ;;  %v1369_v58 = vshrl.u32 %v15757_v6, 16  ;;  %v1372_v33 = vshll.u32 %v15757_v6, 16  ;;  %v11951_v24 = vld [vmem:[%s20458_s3 + $0x50] sm:$0xff] }
 0x2ad   :  { %v3910_v50 = vpop.permute.xlu1 %3909 }
 0x2ae   :  { %v3768_v49 = vpop.permute.xlu0 %3767 }
 0x2af   :  { %3505 = vrot.lane.b32.xlu1 %v15697_v25, %s12047_s27 }
 0x2b0   :  { %3183 = vrot.lane.b32.xlu0 %v15573_v1, %s12048_s17  ;;  %v2309_v1 = vsel %vm12174_vm3, %v2307_v57, %v2308_v0  ;;  %v4779_v0 = vsel %vm4709_vm8, %v4650_v63, %v3628_v56  ;;  %v11952_v56 = vld [vmem:[%s20458_s3 + $0x40] sm:$0xff] }
 0x2b1   :  { %v4050_v41 = vpop.permute.xlu1 %4049  ;;  %v15759_v21 = vcombine.low %v2306_v55, %v2309_v1  ;;  %v4908_v55 = vsel %vm4838_vm9, %v4779_v0, %v3768_v49  ;;  %v1382_v49 = vshrl.u32 %v15788_v38, 16 }
 0x2b2   :  { %v3908_v48 = vpop.permute.xlu0 %3907 }
 0x2b3   :  { %3645 = vrot.lane.b32.xlu1 %v15722_v20, %s12046_s18  ;;  %v5037_v17 = vsel %vm4967_vm10, %v4908_v55, %v3908_v48 }
 0x2b4   :  { %3503 = vrot.lane.b32.xlu0 %v15588_v2, %s12047_s27  ;;  %v15767_v2 = vsel %vm12174_vm3, %v10718_v22, %v2312_v37  ;;  %v5039_v37 = vsel %vm4967_vm10, %v4910_v52, %v3910_v50 }
 0x2b5   :  { %v4190_v42 = vpop.permute.xlu1 %4189  ;;  %v5168_v1 = vsel %vm5096_vm11, %v5039_v37, %v4050_v41 }
 0x2b6   :  { %v4048_v45 = vpop.permute.xlu0 %4047  ;;  %v5297_v40 = vsel %vm5225_vm13, %v5168_v1, %v4190_v42 }
 0x2b7   :  { %3785 = vrot.lane.b32.xlu1 %v15737_v62, %s12049_s19  ;;  %v5166_v41 = vsel %vm5096_vm11, %v5037_v17, %v4048_v45  ;;  %v11954_v45 = vld [vmem:[%s20458_s3 + $0x48] sm:$0xff] }
 0x2b8   :  { %v11361_v57 = vpop.f32.mrb[40].mxu0  ;;  %3643 = vrot.lane.b32.xlu0 %v15597_v32, %s12046_s18 }
 0x2b9   :  { %v6288_v36 = vadd.f32 %v15433_v28, %v11361_v57  ;;  %v6640_v31 = vsub.f32 %v11951_v24, %v11361_v57  ;;  %v5888_v18 = vpop.f32.mrb[41].mxu0  ;;  %v4330_v22 = vpop.permute.xlu1 %4329  ;;  %v11953_v57 = vld [vmem:[%s20458_s3 + $0x58] sm:$0xff] }
 0x2ba   :  { %v6286_v11 = vadd.f32 %v15433_v28, %v5888_v18  ;;  %v6638_v50 = vsub.f32 %v11952_v56, %v5888_v18  ;;  %v11362_v14 = vpop.f32.mrb[42].mxu0  ;;  %v4188_v19 = vpop.permute.xlu0 %4187  ;;  %v5426_v52 = vsel %vm5354_vm12, %v5297_v40, %v4330_v22  ;;  %v15846_v40 = vld [vmem:[%s20455_s0 + $0x264] sm:$0xf] }
 0x2bb   :  { %v6289_v53 = vadd.f32 %v15433_v28, %v11362_v14  ;;  %v5891_v5 = vpop.f32.mrb[43].mxu0  ;;  %3925 = vrot.lane.b32.xlu1 %v15759_v21, %s12050_s20  ;;  %v6416_v63 = vmax.f32 %v6288_v36, 0.0  ;;  %v6641_v48 = vsub.f32 %v11953_v57, %v11362_v14  ;;  %v15817_v42 = vmax.f32 %v6640_v31, 0.0 }
 0x2bc   :  { %3783 = vrot.lane.b32.xlu0 %v15608_v34, %s12049_s19  ;;  %v6287_v37 = vadd.f32 %v15433_v28, %v5891_v5  ;;  %v6639_v36 = vsub.f32 %v11954_v45, %v5891_v5  ;;  %v6414_v18 = vmax.f32 %v6286_v11, 0.0  ;;  %v15825_v22 = vmax.f32 %v6638_v50, 0.0  ;;  %v200_v11 = vld [vmem:[%s20455_s0 + $0x26c] sm:$0x1] }
 0x2bd   :  { %20678 = vst [vmem:[#allocation62_spill] sm:$0xff] %v15817_v42  ;;  %v6417_v0 = vmax.f32 %v6289_v53, 0.0  ;;  %v15823_v24 = vpop.permute.xlu1 %3173  ;;  %v15827_v55 = vmax.f32 %v6641_v48, 0.0  ;;  %v5295_v1 = vsel %vm5225_vm13, %v5166_v41, %v4188_v19  ;;  %v1378_v19 = vshll.u32 %v15788_v38, 16  ;;  %v15851_v53 = vld [vmem:[%s20455_s0 + $0x268] sm:$0xf] }
 0x2be   :  { %20679 = vst [vmem:[#allocation63_spill] sm:$0xff] %v15825_v22  ;;  %v4328_v34 = vpop.permute.xlu0 %4327  ;;  %v6415_v56 = vmax.f32 %v6287_v37, 0.0  ;;  %v15832_v14 = vmax.f32 %v6639_v36, 0.0  ;;  %v5520_v5 = vsel %vm5483_vm14, %v5426_v52, 0  ;;  %v15866_v48 = vcombine.low %v15767_v2, %v15779_v23 }
 0x2bf   :  { %20680 = vst [vmem:[#allocation64_spill] sm:$0xff] %v15827_v55  ;;  %v15830_v31 = vpack.c.bf16 %v6417_v0, %v6416_v63  ;;  %v5424_v17 = vsel %vm5354_vm12, %v5295_v1, %v4328_v34  ;;  %4065 = vrot.lane.b32.xlu1 %v15763_v8, %s12051_s28  ;;  %v1393_v52 = vshrl.u32 %v15846_v40, 16  ;;  %v1396_v0 = vshll.u32 %v15846_v40, 16  ;;  %v197_v34 = vld [vmem:[%s20455_s0 + $0x260] sm:$0x1] }
 0x2c0   :  { %20682 = vst [vmem:[#allocation66_spill] sm:$0xff] %v15832_v14  ;;  %v5519_v50 = vsel %vm5483_vm14, %v5424_v17, 0  ;;  %3923 = vrot.lane.b32.xlu0 %v15697_v25, %s12050_s20  ;;  %v15854_v41 = vpack.c.bf16 %v6415_v56, %v6414_v18  ;;  %v1406_v37 = vshrl.u32 %v15851_v53, 16  ;;  %v1402_v45 = vshll.u32 %v15851_v53, 16 }
 0x2c1   :  { %20681 = vst [vmem:[#allocation65_spill] sm:$0xff] %v15830_v31  ;;  %11387 = vmatprep.mubr.msk.bf16.mxu0 %vm5565_vm15, %v5519_v50  ;;  %v15859_v25 = vpop.permute.xlu1 %3493  ;;  %v1371_v36 = vrot.slane %v1369_v58, 4  ;;  %v1374_v2 = vrot.slane %v1372_v33, 5  ;;  %v1380_v23 = vrot.slane %v1378_v19, 5  ;;  %v1384_v18 = vrot.slane %v1382_v49, 4 }
 0x2c2   :  { %20683 = vst [vmem:[#allocation67_spill] sm:$0xff] %v15854_v41  ;;  %11388 = vmatmul.mubr.msk.bf16.gmra.mrb[68].mxu0 %vm5565_vm15, %v5520_v5  ;;  %v15862_v57 = vpop.permute.xlu0 %3171  ;;  %v1395_v17 = vrot.slane %v1393_v52, 4  ;;  %v1398_v50 = vrot.slane %v1396_v0, 5  ;;  %v1404_v5 = vrot.slane %v1402_v45, 5  ;;  %v1408_v58 = vrot.slane %v1406_v37, 4 }
 0x2c3   :  { %4205 = vrot.lane.b32.xlu1 %v15775_v29, %s12052_s14  ;;  %v1375_v33 = vor.u32 %v1374_v2, %v1371_v36  ;;  %v1385_v49 = vor.u32 %v1384_v18, %v1380_v23  ;;  %v1388_v19 = vshll.u32 %v197_v34, 16  ;;  %v2319_v41 = vrot.slane %v15788_v38, 5 }
 0x2c4   :  { %4063 = vrot.lane.b32.xlu0 %v15722_v20, %s12051_s28  ;;  %v1399_v52 = vor.u32 %v1398_v50, %v1395_v17  ;;  %v1409_v0 = vor.u32 %v1408_v58, %v1404_v5  ;;  %v1412_v37 = vshll.u32 %v200_v11, 16  ;;  %v10719_v42 = vrot.slane %v15757_v6, 9 }
 0x2c5   :  { %v15880_v1 = vpop.permute.xlu1 %3633  ;;  %v1376_v45 = vrot.slane %v1375_v33, 4  ;;  %v1386_v36 = vrot.slane %v1385_v49, 4  ;;  %v1390_v2 = vrot.slane %v1388_v19, 5  ;;  %v2321_v22 = vrot.slane %v2319_v41, 4 }
 0x2c6   :  { %v15885_v56 = vpop.permute.xlu0 %3491  ;;  %v2322_v14 = vrot.slane %v197_v34, 5  ;;  %v2326_v30 = vrot.slane %v15851_v53, 5  ;;  %v15905_v17 = vcombine.low %v15757_v6, %v15788_v38  ;;  %v1400_v50 = vrot.slane %v1399_v52, 4  ;;  %v15921_v38 = vld [vmem:[%s20455_s0 + $0x270] sm:$0xf] }
 0x2c7   :  { %4345 = vrot.lane.b32.xlu1 %v15866_v48, %s12053_s24  ;;  %v1410_v58 = vrot.slane %v1409_v0, 4  ;;  %v1414_v33 = vrot.slane %v1412_v37, 5  ;;  %v1381_v49 = vsel %vm12206_vm5, %v1376_v45, %v1380_v23  ;;  %v1391_v34 = vsel %vm12206_vm5, %v1386_v36, %v1390_v2 }
 0x2c8   :  { %4203 = vrot.lane.b32.xlu0 %v15737_v62, %s12052_s14  ;;  %v4501_v19 = vsel %vm4387_vm6, %v15041_v43, %v15823_v24  ;;  %v2320_v6 = vsel %vm12174_vm3, %v10719_v42, %v2319_v41  ;;  %v2323_v23 = vsel %vm12174_vm3, %v2321_v22, %v2322_v14  ;;  %v10720_v52 = vrot.slane %v15846_v40, 9  ;;  %v15941_v22 = vld [vmem:[%s20455_s0 + $0x274] sm:$0xf] }
 0x2c9   :  { %v3774_v63 = vpop.permute.xlu1 %3773  ;;  %v2328_v0 = vrot.slane %v2326_v30, 4  ;;  %v2329_v37 = vrot.slane %v200_v11, 5  ;;  %v15928_v43 = vcombine.low %v1381_v49, %v1391_v34  ;;  %v1405_v42 = vsel %vm12206_vm5, %v1400_v50, %v1404_v5 }
 0x2ca   :  { %v3632_v31 = vpop.permute.xlu0 %3631  ;;  %v1415_v24 = vsel %vm12206_vm5, %v1410_v58, %v1414_v33  ;;  %v4656_v41 = vsel %vm4580_vm7, %v4501_v19, %v15859_v25  ;;  %v2492_v14 = vshrl.u32 %v15921_v38, 16  ;;  %v2495_v11 = vshll.u32 %v15921_v38, 16 }
 0x2cb   :  { %3189 = vrot.lane.b32.xlu1 %v15775_v29, %s12048_s17  ;;  %v15945_v5 = vcombine.low %v2320_v6, %v2323_v23  ;;  %v15949_v2 = vcombine.low %v15846_v40, %v15851_v53  ;;  %v15951_v25 = vcombine.low %v1405_v42, %v1415_v24  ;;  %v15959_v50 = vsel %vm12174_vm3, %v2328_v0, %v2329_v37 }
 0x2cc   :  { %4343 = vrot.lane.b32.xlu0 %v15759_v21, %s12053_s24  ;;  %v4498_v58 = vsel %vm4387_vm6, %v14995_v61, %v15862_v57  ;;  %v4785_v33 = vsel %vm4709_vm8, %v4656_v41, %v15880_v1  ;;  %v2505_v40 = vshrl.u32 %v15941_v22, 16  ;;  %v2501_v53 = vshll.u32 %v15941_v22, 16  ;;  %v15982_v1 = vld [vmem:[%s20455_s0 + $0x27c] sm:$0xf] }
 0x2cd   :  { %v3914_v18 = vpop.permute.xlu1 %3913  ;;  %v4914_v49 = vsel %vm4838_vm9, %v4785_v33, %v3774_v63  ;;  %v15975_v61 = vrot.slane %v2492_v14, 4  ;;  %v15977_v57 = vrot.slane %v2495_v11, 5  ;;  %v11955_v63 = vld [vmem:[%s20458_s3 + $0x70] sm:$0xff] }
 0x2ce   :  { %v3772_v55 = vpop.permute.xlu0 %3771  ;;  %v5043_v6 = vsel %vm4967_vm10, %v4914_v49, %v3914_v18 }
 0x2cf   :  { %3509 = vrot.lane.b32.xlu1 %v15866_v48, %s12047_s27 }
 0x2d0   :  { %3187 = vrot.lane.b32.xlu0 %v15737_v62, %s12048_s17 }
 0x2d1   :  { %v4054_v26 = vpop.permute.xlu1 %4053 }
 0x2d2   :  { %v3912_v62 = vpop.permute.xlu0 %3911  ;;  %v5172_v42 = vsel %vm5096_vm11, %v5043_v6, %v4054_v26  ;;  %v2628_v26 = vshrl.u32 %v15982_v1, 16 }
 0x2d3   :  { %3649 = vrot.lane.b32.xlu1 %v15905_v17, %s12046_s18 }
 0x2d4   :  { %3507 = vrot.lane.b32.xlu0 %v15759_v21, %s12047_s27  ;;  %v15955_v21 = vsel %vm12174_vm3, %v10720_v52, %v2326_v30  ;;  %v4654_v30 = vsel %vm4580_vm7, %v4498_v58, %v15885_v56 }
 0x2d5   :  { %v4194_v45 = vpop.permute.xlu1 %4193  ;;  %v4783_v19 = vsel %vm4709_vm8, %v4654_v30, %v3632_v31  ;;  %v11956_v31 = vld [vmem:[%s20458_s3 + $0x60] sm:$0xff] }
 0x2d6   :  { %v4052_v36 = vpop.permute.xlu0 %4051  ;;  %v4912_v37 = vsel %vm4838_vm9, %v4783_v19, %v3772_v55  ;;  %v5301_v58 = vsel %vm5225_vm13, %v5172_v42, %v4194_v45  ;;  %v11957_v19 = vld [vmem:[%s20458_s3 + $0x78] sm:$0xff] }
 0x2d7   :  { %3789 = vrot.lane.b32.xlu1 %v15928_v43, %s12049_s19  ;;  %v5041_v11 = vsel %vm4967_vm10, %v4912_v37, %v3912_v62 }
 0x2d8   :  { %v11365_v34 = vpop.f32.mrb[44].mxu0  ;;  %3647 = vrot.lane.b32.xlu0 %v15763_v8, %s12046_s18  ;;  %v5170_v55 = vsel %vm5096_vm11, %v5041_v11, %v4052_v36  ;;  %v11958_v36 = vld [vmem:[%s20458_s3 + $0x68] sm:$0xff] }
 0x2d9   :  { %v6292_v56 = vadd.f32 %v15433_v28, %v11365_v34  ;;  %v6644_v23 = vsub.f32 %v11955_v63, %v11365_v34  ;;  %v5904_v52 = vpop.f32.mrb[45].mxu0  ;;  %v4334_v0 = vpop.permute.xlu1 %4333 }
 0x2da   :  { %v6290_v24 = vadd.f32 %v15433_v28, %v5904_v52  ;;  %v6642_v18 = vsub.f32 %v11956_v31, %v5904_v52  ;;  %v11366_v41 = vpop.f32.mrb[46].mxu0  ;;  %v4192_v14 = vpop.permute.xlu0 %4191  ;;  %v5430_v34 = vsel %vm5354_vm12, %v5301_v58, %v4334_v0  ;;  %v16020_v0 = vld [vmem:[%s20455_s0 + $0x280] sm:$0xf] }
 0x2db   :  { %v6293_v33 = vadd.f32 %v15433_v28, %v11366_v41  ;;  %v5907_v30 = vpop.f32.mrb[47].mxu0  ;;  %3929 = vrot.lane.b32.xlu1 %v15945_v5, %s12050_s20  ;;  %v6420_v49 = vmax.f32 %v6292_v56, 0.0  ;;  %v6645_v62 = vsub.f32 %v11957_v19, %v11366_v41  ;;  %v16009_v45 = vmax.f32 %v6644_v23, 0.0 }
 0x2dc   :  { %3787 = vrot.lane.b32.xlu0 %v15775_v29, %s12049_s19  ;;  %v6291_v63 = vadd.f32 %v15433_v28, %v5907_v30  ;;  %v6643_v56 = vsub.f32 %v11958_v36, %v5907_v30  ;;  %v6418_v37 = vmax.f32 %v6290_v24, 0.0  ;;  %v16022_v42 = vmax.f32 %v6642_v18, 0.0  ;;  %v203_v36 = vld [vmem:[%s20455_s0 + $0x278] sm:$0x1] }
 0x2dd   :  { %20684 = vst [vmem:[#allocation68_spill] sm:$0xff] %v16009_v45  ;;  %v6421_v6 = vmax.f32 %v6293_v33, 0.0  ;;  %v16015_v52 = vpop.permute.xlu1 %3177  ;;  %v16024_v29 = vmax.f32 %v6645_v62, 0.0  ;;  %v5299_v23 = vsel %vm5225_vm13, %v5170_v55, %v4192_v14  ;;  %v2631_v14 = vshll.u32 %v15982_v1, 16 }
 0x2de   :  { %20685 = vst [vmem:[#allocation69_spill] sm:$0xff] %v16022_v42  ;;  %v4332_v28 = vpop.permute.xlu0 %4331  ;;  %v6419_v41 = vmax.f32 %v6291_v63, 0.0  ;;  %v16029_v11 = vmax.f32 %v6643_v56, 0.0  ;;  %v2641_v33 = vshrl.u32 %v16020_v0, 16  ;;  %v5522_v30 = vsel %vm5483_vm14, %v5430_v34, 0 }
 0x2df   :  { %20686 = vst [vmem:[#allocation70_spill] sm:$0xff] %v16024_v29  ;;  %v16027_v31 = vpack.c.bf16 %v6421_v6, %v6420_v49  ;;  %v5428_v58 = vsel %vm5354_vm12, %v5299_v23, %v4332_v28  ;;  %4069 = vrot.lane.b32.xlu1 %v15949_v2, %s12051_s28  ;;  %v2637_v62 = vshll.u32 %v16020_v0, 16  ;;  %v16055_v6 = vrot.slane %v2501_v53, 5 }
 0x2e0   :  { %20688 = vst [vmem:[#allocation72_spill] sm:$0xff] %v16029_v11  ;;  %v5521_v18 = vsel %vm5483_vm14, %v5428_v58, 0  ;;  %3927 = vrot.lane.b32.xlu0 %v15866_v48, %s12050_s20  ;;  %v16042_v55 = vpack.c.bf16 %v6419_v41, %v6418_v37  ;;  %v2507_v34 = vrot.slane %v2505_v40, 4  ;;  %v16063_v63 = vcombine.low %v15955_v21, %v15959_v50  ;;  %v206_v58 = vld [vmem:[%s20455_s0 + $0x284] sm:$0x1] }
 0x2e1   :  { %20687 = vst [vmem:[#allocation71_spill] sm:$0xff] %v16027_v31  ;;  %11391 = vmatprep.mubr.msk.bf16.mxu0 %vm5565_vm15, %v5521_v18  ;;  %v16047_v19 = vpop.permute.xlu1 %3497  ;;  %v2498_v53 = vor.u32 %v15977_v57, %v15975_v61  ;;  %v2630_v56 = vrot.slane %v2628_v26, 4  ;;  %v2633_v37 = vrot.slane %v2631_v14, 5  ;;  %v16074_v23 = vrot.slane %v2637_v62, 5  ;;  %v16085_v61 = vld [vmem:[%s20455_s0 + $0x294] sm:$0xf] }
 0x2e2   :  { %20689 = vst [vmem:[#allocation73_spill] sm:$0xff] %v16042_v55  ;;  %11392 = vmatmul.mubr.msk.bf16.gmra.mrb[72].mxu0 %vm5565_vm15, %v5522_v30  ;;  %v16051_v48 = vpop.permute.xlu0 %3175  ;;  %v2643_v28 = vrot.slane %v2641_v33, 4  ;;  %v2508_v21 = vor.u32 %v2507_v34, %v16055_v6  ;;  %v2511_v50 = vshll.u32 %v203_v36, 16  ;;  %v2567_v57 = vrot.slane %v15941_v22, 5  ;;  %v16093_v26 = vld [vmem:[%s20455_s0 + $0x298] sm:$0xf] }
 0x2e3   :  { %4209 = vrot.lane.b32.xlu1 %v15951_v25, %s12052_s14  ;;  %v16099_v18 = vcombine.low %v15921_v38, %v15941_v22  ;;  %v2499_v14 = vrot.slane %v2498_v53, 4  ;;  %v2634_v33 = vor.u32 %v2633_v37, %v2630_v56  ;;  %v2703_v30 = vrot.slane %v16020_v0, 5  ;;  %v16118_v11 = vld [vmem:[%s20455_s0 + $0x288] sm:$0xf] }
 0x2e4   :  { %4067 = vrot.lane.b32.xlu0 %v15905_v17, %s12051_s28  ;;  %v2644_v34 = vor.u32 %v2643_v28, %v16074_v23  ;;  %v2647_v24 = vshll.u32 %v206_v58, 16  ;;  %v1441_v49 = vshrl.u32 %v16085_v61, 16  ;;  %v1444_v31 = vshll.u32 %v16085_v61, 16 }
 0x2e5   :  { %v16072_v40 = vpop.permute.xlu1 %3637  ;;  %v2509_v45 = vrot.slane %v2508_v21, 4  ;;  %v2513_v29 = vrot.slane %v2511_v50, 5  ;;  %v1450_v22 = vshll.u32 %v16093_v26, 16  ;;  %v1454_v53 = vshrl.u32 %v16093_v26, 16 }
 0x2e6   :  { %v16076_v41 = vpop.permute.xlu0 %3495  ;;  %v10739_v56 = vrot.slane %v15921_v38, 9  ;;  %v2569_v37 = vrot.slane %v2567_v57, 4  ;;  %v2570_v28 = vrot.slane %v203_v36, 5  ;;  %v10743_v42 = vrot.slane %v15982_v1, 9 }
 0x2e7   :  { %4349 = vrot.lane.b32.xlu1 %v16063_v63, %s12053_s24  ;;  %v2504_v21 = vsel %vm12206_vm5, %v2499_v14, %v16055_v6  ;;  %v2635_v50 = vrot.slane %v2634_v33, 4  ;;  %v2705_v46 = vrot.slane %v2703_v30, 4  ;;  %v2706_v35 = vrot.slane %v206_v58, 5  ;;  %v16137_v6 = vld [vmem:[%s20455_s0 + $0x29c] sm:$0x1] }
 0x2e8   :  { %4207 = vrot.lane.b32.xlu0 %v15928_v43, %s12052_s14  ;;  %v2645_v36 = vrot.slane %v2644_v34, 4  ;;  %v2649_v27 = vrot.slane %v2647_v24, 5  ;;  %v1443_v12 = vrot.slane %v1441_v49, 4  ;;  %v1446_v9 = vrot.slane %v1444_v31, 5 }
 0x2e9   :  { %v16102_v62 = vpop.permute.xlu1 %3777  ;;  %v16139_v14 = vrot.slane %v1450_v22, 5  ;;  %v1456_v58 = vrot.slane %v1454_v53, 4  ;;  %v1417_v33 = vshrl.u32 %v16118_v11, 16  ;;  %v1420_v24 = vshll.u32 %v16118_v11, 16 }
 0x2ea   :  { %v16107_v55 = vpop.permute.xlu0 %3635  ;;  %v2514_v31 = vsel %vm12206_vm5, %v2509_v45, %v2513_v29  ;;  %v2568_v49 = vsel %vm12174_vm3, %v10739_v56, %v2567_v57  ;;  %v2571_v34 = vsel %vm12174_vm3, %v2569_v37, %v2570_v28  ;;  %v16153_v22 = vsel %vm12174_vm3, %v10743_v42, %v2703_v30 }
 0x2eb   :  { %3193 = vrot.lane.b32.xlu1 %v15951_v25, %s12048_s17  ;;  %v2640_v53 = vsel %vm12206_vm5, %v2635_v50, %v16074_v23  ;;  %v16162_v45 = vsel %vm12174_vm3, %v2705_v46, %v2706_v35  ;;  %v1426_v29 = vshll.u32 %v16130_v44, 16  ;;  %v1430_v57 = vshrl.u32 %v16130_v44, 16 }
 0x2ec   :  { %4347 = vrot.lane.b32.xlu0 %v15945_v5, %s12053_s24  ;;  %v4507_v42 = vsel %vm4387_vm6, %v15224_v7, %v16015_v52  ;;  %v1447_v56 = vor.u32 %v1446_v9, %v1443_v12  ;;  %v1460_v37 = vshll.u32 %v16137_v6, 16  ;;  %v1457_v28 = vor.u32 %v1456_v58, %v16139_v14  ;;  %v16190_v12 = vld [vmem:[%s20455_s0 + $0x290] sm:$0x1] }
 0x2ed   :  { %v16125_v38 = vpop.permute.xlu1 %3917  ;;  %v16173_v35 = vrot.slane %v1417_v33, 4  ;;  %v16175_v46 = vrot.slane %v1420_v24, 5  ;;  %v16179_v50 = vcombine.low %v2504_v21, %v2514_v31  ;;  %v16181_v7 = vcombine.low %v2568_v49, %v2571_v34  ;;  %v16205_v33 = vld [vmem:[%s20455_s0 + $0x2a0] sm:$0xf]  ;;  %v16216_v34 = vld [vmem:[%s20455_s0 + $0x2a4] sm:$0xf] }
 0x2ee   :  { %v16132_v60 = vpop.permute.xlu0 %3775  ;;  %v4660_v52 = vsel %vm4580_vm7, %v4507_v42, %v16047_v19  ;;  %v16200_v58 = vrot.slane %v1430_v57, 4  ;;  %v16207_v31 = vrot.slane %v1447_v56, 4  ;;  %v16209_v49 = vrot.slane %v1460_v37, 5 }
 0x2ef   :  { %3513 = vrot.lane.b32.xlu1 %v16063_v63, %s12047_s27  ;;  %v4504_v56 = vsel %vm4387_vm6, %v15178_v59, %v16051_v48  ;;  %v4789_v37 = vsel %vm4709_vm8, %v4660_v52, %v16072_v40 }
 0x2f0   :  { %3191 = vrot.lane.b32.xlu0 %v15928_v43, %s12048_s17  ;;  %v2650_v43 = vsel %vm12206_vm5, %v2645_v36, %v2649_v27  ;;  %v16198_v36 = vrot.slane %v1426_v29, 5  ;;  %v16218_v29 = vrot.slane %v1457_v28, 4  ;;  %v4658_v57 = vsel %vm4580_vm7, %v4504_v56, %v16076_v41  ;;  %v16249_v41 = vld [vmem:[%s20457_s2] ss:$0 sm:$0xff]  ;;  %v11960_v56 = vld [vmem:[%s20458_s3 + $0x90] sm:$0xff] }
 0x2f1   :  { %v4058_v30 = vpop.permute.xlu1 %4057  ;;  %v16196_v21 = vcombine.low %v2640_v53, %v2650_v43  ;;  %v4918_v19 = vsel %vm4838_vm9, %v4789_v37, %v16102_v62  ;;  %v4787_v40 = vsel %vm4709_vm8, %v4658_v57, %v16107_v55 }
 0x2f2   :  { %v3916_v23 = vpop.permute.xlu0 %3915  ;;  %v1433_v59 = vor.u32 %v16200_v58, %v16198_v36  ;;  %v5047_v52 = vsel %vm4967_vm10, %v4918_v19, %v16125_v38  ;;  %v4916_v55 = vsel %vm4838_vm9, %v4787_v40, %v16132_v60  ;;  %v11961_v19 = vld [vmem:[%s20458_s3 + $0x80] sm:$0xff]  ;;  %v1474_v60 = vshll.u32 %v16216_v34, 16 }
 0x2f3   :  { %3653 = vrot.lane.b32.xlu1 %v16099_v18, %s12046_s18  ;;  %v5176_v57 = vsel %vm5096_vm11, %v5047_v52, %v4058_v30 }
 0x2f4   :  { %3511 = vrot.lane.b32.xlu0 %v15945_v5, %s12047_s27  ;;  %v5045_v5 = vsel %vm4967_vm10, %v4916_v55, %v3916_v23 }
 0x2f5   :  { %v4198_v24 = vpop.permute.xlu1 %4197 }
 0x2f6   :  { %v4056_v53 = vpop.permute.xlu0 %4055 }
 0x2f7   :  { %3793 = vrot.lane.b32.xlu1 %v16179_v50, %s12049_s19  ;;  %v5174_v30 = vsel %vm5096_vm11, %v5045_v5, %v4056_v53  ;;  %v11963_v5 = vld [vmem:[%s20458_s3 + $0x88] sm:$0xff] }
 0x2f8   :  { %v11369_v43 = vpop.f32.mrb[48].mxu0  ;;  %3651 = vrot.lane.b32.xlu0 %v15949_v2, %s12046_s18 }
 0x2f9   :  { %v6296_v62 = vadd.f32 %v16249_v41, %v11369_v43  ;;  %v6648_v58 = vsub.f32 %v11960_v56, %v11369_v43  ;;  %v5920_v37 = vpop.f32.mrb[49].mxu0  ;;  %v4338_v48 = vpop.permute.xlu1 %4337  ;;  %v5305_v43 = vsel %vm5225_vm13, %v5176_v57, %v4198_v24 }
 0x2fa   :  { %v6294_v38 = vadd.f32 %v16249_v41, %v5920_v37  ;;  %v6646_v9 = vsub.f32 %v11961_v19, %v5920_v37  ;;  %v11370_v28 = vpop.f32.mrb[50].mxu0  ;;  %v4196_v42 = vpop.permute.xlu0 %4195  ;;  %v5434_v52 = vsel %vm5354_vm12, %v5305_v43, %v4338_v48  ;;  %v11962_v37 = vld [vmem:[%s20458_s3 + $0x98] sm:$0xff] }
 0x2fb   :  { %v6297_v56 = vadd.f32 %v16249_v41, %v11370_v28  ;;  %v5923_v27 = vpop.f32.mrb[51].mxu0  ;;  %3933 = vrot.lane.b32.xlu1 %v16181_v7, %s12050_s20  ;;  %v6424_v40 = vmax.f32 %v6296_v62, 0.0  ;;  %v6649_v23 = vsub.f32 %v11962_v37, %v11370_v28  ;;  %v16275_v24 = vmax.f32 %v6648_v58, 0.0 }
 0x2fc   :  { %3791 = vrot.lane.b32.xlu0 %v15951_v25, %s12049_s19  ;;  %v6295_v57 = vadd.f32 %v16249_v41, %v5923_v27  ;;  %v6647_v53 = vsub.f32 %v11963_v5, %v5923_v27  ;;  %v6422_v48 = vmax.f32 %v6294_v38, 0.0  ;;  %v16283_v19 = vmax.f32 %v6646_v9, 0.0 }
 0x2fd   :  { %20690 = vst [vmem:[#allocation74_spill] sm:$0xff] %v16275_v24  ;;  %v6425_v55 = vmax.f32 %v6297_v56, 0.0  ;;  %v16281_v62 = vpop.permute.xlu1 %3181  ;;  %v16285_v43 = vmax.f32 %v6649_v23, 0.0  ;;  %v5303_v28 = vsel %vm5225_vm13, %v5174_v30, %v4196_v42  ;;  %v20695_v27 = vcombine.low %v15982_v1, %v16020_v0 }
 0x2fe   :  { %20691 = vst [vmem:[#allocation75_spill] sm:$0xff] %v16283_v19  ;;  %v4336_v25 = vpop.permute.xlu0 %4335  ;;  %v6423_v56 = vmax.f32 %v6295_v57, 0.0  ;;  %v16290_v37 = vmax.f32 %v6647_v53, 0.0  ;;  %v1453_v42 = vsel %vm12206_vm5, %v16207_v31, %v16139_v14  ;;  %v20696_v30 = vrot.slane %v16093_v26, 5  ;;  %v16323_v14 = vld [vmem:[%s20455_s0 + $0x2ac] sm:$0xf] }
 0x2ff   :  { %20692 = vst [vmem:[#allocation76_spill] sm:$0xff] %v16285_v43  ;;  %v16288_v58 = vpack.c.bf16 %v6425_v55, %v6424_v40  ;;  %v5432_v15 = vsel %vm5354_vm12, %v5303_v28, %v4336_v25  ;;  %4073 = vrot.lane.b32.xlu1 %v20695_v27, %s12051_s28  ;;  %v5524_v23 = vsel %vm5483_vm14, %v5434_v52, 0  ;;  %v16328_v31 = vld [vmem:[%s20455_s0 + $0x2b0] sm:$0xf]  ;;  %v20698_v55 = vor.u32 %v16175_v46, %v16173_v35  ;;  %v17325_v43 = vld [vmem:[%s20455_s0 + $0x32c] sm:$0x1] }
 0x300   :  { %20694 = vst [vmem:[#allocation78_spill] sm:$0xff] %v16290_v37  ;;  %v5523_v38 = vsel %vm5483_vm14, %v5432_v15, 0  ;;  %3931 = vrot.lane.b32.xlu0 %v16063_v63, %s12050_s20  ;;  %v2342_v40 = vrot.slane %v20696_v30, 4  ;;  %v16309_v1 = vpack.c.bf16 %v6423_v56, %v6422_v48  ;;  %v1463_v63 = vsel %vm12206_vm5, %v16218_v29, %v16209_v49 }
 0x301   :  { %20693 = vst [vmem:[#allocation77_spill] sm:$0xff] %v16288_v58  ;;  %11395 = vmatprep.mubr.msk.bf16.mxu0 %vm5565_vm15, %v5523_v38  ;;  %v16314_v15 = vpop.permute.xlu1 %3501  ;;  %v1424_v57 = vrot.slane %v20698_v55, 4  ;;  %v1434_v5 = vrot.slane %v1433_v59, 4  ;;  %v20699_v49 = vshll.u32 %v16190_v12, 16  ;;  %v2333_v53 = vrot.slane %v16130_v44, 5 }
 0x302   :  { %20697 = vst [vmem:[#allocation79_spill] sm:$0xff] %v16309_v1  ;;  %11396 = vmatmul.mubr.msk.bf16.gmra.mrb[76].mxu0 %vm5565_vm15, %v5524_v23  ;;  %v16331_v52 = vpop.permute.xlu0 %3179  ;;  %v20700_v48 = vshrl.u32 %v16205_v33, 16  ;;  %v20701_v25 = vshll.u32 %v16205_v33, 16  ;;  %v16345_v27 = vrot.slane %v1474_v60, 5  ;;  %v20702_v35 = vshrl.u32 %v16216_v34, 16 }
 0x303   :  { %v1438_v29 = vrot.slane %v20699_v49, 5  ;;  %4213 = vrot.lane.b32.xlu1 %v16196_v21, %s12052_s14  ;;  %v16354_v44 = vld [vmem:[%s20455_s0 + $0x2a8] sm:$0x1]  ;;  %v1489_v21 = vshrl.u32 %v16323_v14, 16  ;;  %v1492_v59 = vshll.u32 %v16323_v14, 16  ;;  %v1502_v38 = vshrl.u32 %v16328_v31, 16 }
 0x304   :  { %v1467_v28 = vrot.slane %v20700_v48, 4  ;;  %v1470_v56 = vrot.slane %v20701_v25, 5  ;;  %v1480_v46 = vrot.slane %v20702_v35, 4  ;;  %4071 = vrot.lane.b32.xlu0 %v16099_v18, %s12051_s28  ;;  %v1498_v60 = vshll.u32 %v16328_v31, 16 }
 0x305   :  { %v16360_v30 = vpop.permute.xlu1 %3641  ;;  %v16362_v23 = vcombine.low %v1453_v42, %v1463_v63  ;;  %v20703_v55 = vrot.slane %v16093_v26, 5  ;;  %v20704_v18 = vrot.slane %v16085_v61, 9  ;;  %v20705_v48 = vrot.slane %v16137_v6, 5 }
 0x306   :  { %v16374_v35 = vpop.permute.xlu0 %3499  ;;  %v1429_v9 = vsel %vm12206_vm5, %v1424_v57, %v16198_v36  ;;  %v1439_v42 = vsel %vm12206_vm5, %v1434_v5, %v1438_v29  ;;  %v10721_v63 = vrot.slane %v16118_v11, 9  ;;  %v2336_v0 = vrot.slane %v16190_v12, 5  ;;  %v218_v12 = vld [vmem:[%s20455_s0 + $0x2b4] sm:$0x1] }
 0x307   :  { %v2341_v49 = vsel %vm12174_vm3, %v20704_v18, %v20703_v55  ;;  %v2344_v25 = vsel %vm12174_vm3, %v2342_v40, %v20705_v48  ;;  %v20706_v6 = vcombine.low %v16153_v22, %v16162_v45  ;;  %v2335_v55 = vrot.slane %v2333_v53, 4 }
 0x308   :  { %v1471_v40 = vor.u32 %v1470_v56, %v1467_v28  ;;  %v1481_v18 = vor.u32 %v1480_v46, %v16345_v27  ;;  %v1484_v48 = vshll.u32 %v16354_v44, 16  ;;  %4211 = vrot.lane.b32.xlu0 %v16179_v50, %s12052_s14  ;;  %v1491_v36 = vrot.slane %v1489_v21, 4 }
 0x309   :  { %4353 = vrot.lane.b32.xlu1 %v20706_v6, %s12053_s24  ;;  %v1494_v57 = vrot.slane %v1492_v59, 5  ;;  %v1500_v5 = vrot.slane %v1498_v60, 5  ;;  %v1504_v11 = vrot.slane %v1502_v38, 4  ;;  %v3782_v29 = vpop.permute.xlu1 %3781  ;;  %v16396_v45 = vcombine.low %v2341_v49, %v2344_v25 }
 0x30a   :  { %v16394_v22 = vpop.permute.xlu0 %3639  ;;  %v10857_v28 = vcombine.low %v1429_v9, %v1439_v42  ;;  %v2334_v56 = vsel %vm12174_vm3, %v10721_v63, %v2333_v53  ;;  %v2337_v50 = vsel %vm12174_vm3, %v2335_v55, %v2336_v0  ;;  %v1472_v46 = vrot.slane %v1471_v40, 4 }
 0x30b   :  { %v1482_v21 = vrot.slane %v1481_v18, 4  ;;  %v2347_v59 = vrot.slane %v16216_v34, 5  ;;  %v1486_v38 = vrot.slane %v1484_v48, 5  ;;  %v1495_v60 = vor.u32 %v1494_v57, %v1491_v36 }
 0x30c   :  { %4351 = vrot.lane.b32.xlu0 %v16181_v7, %s12053_s24  ;;  %v1505_v49 = vor.u32 %v1504_v11, %v1500_v5  ;;  %v1508_v9 = vshll.u32 %v218_v12, 16  ;;  %v16409_v53 = vcombine.low %v16205_v33, %v16216_v34  ;;  %v10723_v63 = vrot.slane %v16205_v33, 9 }
 0x30d   :  { %3197 = vrot.lane.b32.xlu1 %v16362_v23, %s12048_s17  ;;  %v3922_v25 = vpop.permute.xlu1 %3921  ;;  %v2354_v0 = vrot.slane %v16328_v31, 5  ;;  %v10921_v6 = vcombine.low %v2334_v56, %v2337_v50  ;;  %v1477_v7 = vsel %vm12206_vm5, %v1472_v46, %v16345_v27  ;;  %v2349_v55 = vrot.slane %v2347_v59, 4 }
 0x30e   :  { %v3780_v42 = vpop.permute.xlu0 %3779  ;;  %v2350_v40 = vrot.slane %v16354_v44, 5  ;;  %v1487_v34 = vsel %vm12206_vm5, %v1482_v21, %v1486_v38  ;;  %v1496_v18 = vrot.slane %v1495_v60, 4  ;;  %v1506_v33 = vrot.slane %v1505_v49, 4 }
 0x30f   :  { %v1510_v48 = vrot.slane %v1508_v9, 5  ;;  %v4513_v36 = vsel %vm4387_vm6, %v15402_v39, %v16281_v62  ;;  %v10724_v56 = vrot.slane %v16323_v14, 9  ;;  %v2356_v27 = vrot.slane %v2354_v0, 4 }
 0x310   :  { %3195 = vrot.lane.b32.xlu0 %v10857_v28, %s12048_s17  ;;  %v2357_v50 = vrot.slane %v218_v12, 5  ;;  %v16428_v44 = vcombine.low %v1477_v7, %v1487_v34  ;;  %v2348_v28 = vsel %vm12174_vm3, %v10723_v63, %v2347_v59  ;;  %v2351_v46 = vsel %vm12174_vm3, %v2349_v55, %v2350_v40  ;;  %v16448_v59 = vld [vmem:[%s20455_s0 + $0x2b8] sm:$0xf] }
 0x311   :  { %3517 = vrot.lane.b32.xlu1 %v16396_v45, %s12047_s27  ;;  %v4062_v57 = vpop.permute.xlu1 %4061  ;;  %v4664_v39 = vsel %vm4580_vm7, %v4513_v36, %v16314_v15  ;;  %v16439_v62 = vcombine.low %v16085_v61, %v16093_v26  ;;  %v1501_v12 = vsel %vm12206_vm5, %v1496_v18, %v1500_v5  ;;  %v1511_v21 = vsel %vm12206_vm5, %v1506_v33, %v1510_v48  ;;  %v16453_v15 = vld [vmem:[%s20455_s0 + $0x2bc] sm:$0xf] }
 0x312   :  { %v3920_v11 = vpop.permute.xlu0 %3919  ;;  %v16455_v61 = vcombine.low %v2348_v28, %v2351_v46  ;;  %v16459_v26 = vcombine.low %v16323_v14, %v16328_v31  ;;  %v16463_v5 = vsel %vm12174_vm3, %v10724_v56, %v2354_v0  ;;  %v16467_v49 = vsel %vm12174_vm3, %v2356_v27, %v2357_v50 }
 0x313   :  { %v4510_v9 = vsel %vm4387_vm6, %v15359_v3, %v16331_v52  ;;  %v4793_v63 = vsel %vm4709_vm8, %v4664_v39, %v16360_v30  ;;  %v16476_v14 = vcombine.low %v1501_v12, %v1511_v21  ;;  %v1513_v31 = vshrl.u32 %v16448_v59, 16 }
 0x314   :  { %3515 = vrot.lane.b32.xlu0 %v10921_v6, %s12047_s27  ;;  %v4662_v0 = vsel %vm4580_vm7, %v4510_v9, %v16374_v35  ;;  %v4922_v6 = vsel %vm4838_vm9, %v4793_v63, %v3782_v29  ;;  %v1516_v3 = vshll.u32 %v16448_v59, 16  ;;  %v1526_v52 = vshrl.u32 %v16453_v15, 16  ;;  %v11964_v35 = vld [vmem:[%s20458_s3 + $0xb0] sm:$0xff]  ;;  %v11966_v9 = vld [vmem:[%s20458_s3 + $0xb8] sm:$0xff] }
 0x315   :  { %3657 = vrot.lane.b32.xlu1 %v16409_v53, %s12046_s18  ;;  %v4202_v38 = vpop.permute.xlu1 %4201  ;;  %v4791_v30 = vsel %vm4709_vm8, %v4662_v0, %v16394_v22  ;;  %v5051_v55 = vsel %vm4967_vm10, %v4922_v6, %v3922_v25  ;;  %v11965_v22 = vld [vmem:[%s20458_s3 + $0xa0] sm:$0xff]  ;;  %v1748_v13 = vshll.u32 %v17325_v43, 16 }
 0x316   :  { %v4060_v60 = vpop.permute.xlu0 %4059  ;;  %v4920_v33 = vsel %vm4838_vm9, %v4791_v30, %v3780_v42  ;;  %v5180_v48 = vsel %vm5096_vm11, %v5051_v55, %v4062_v57  ;;  %v1522_v42 = vshll.u32 %v16453_v15, 16 }
 0x317   :  { %v5049_v50 = vsel %vm4967_vm10, %v4920_v33, %v3920_v11  ;;  %v5309_v28 = vsel %vm5225_vm13, %v5180_v48, %v4202_v38  ;;  %v10725_v48 = vrot.slane %v16448_v59, 9 }
 0x318   :  { %v11373_v7 = vpop.f32.mrb[52].mxu0  ;;  %3655 = vrot.lane.b32.xlu0 %v16439_v62, %s12046_s18  ;;  %v5178_v57 = vsel %vm5096_vm11, %v5049_v50, %v4060_v60  ;;  %v11967_v60 = vld [vmem:[%s20458_s3 + $0xa8] sm:$0xff]  ;;  %v16546_v50 = vld [vmem:[%s20455_s0 + $0x2c4] sm:$0xf] }
 0x319   :  { %3797 = vrot.lane.b32.xlu1 %v16428_v44, %s12049_s19  ;;  %v6300_v40 = vadd.f32 %v16249_v41, %v11373_v7  ;;  %v6652_v29 = vsub.f32 %v11964_v35, %v11373_v7  ;;  %v5936_v34 = vpop.f32.mrb[53].mxu0  ;;  %v4342_v18 = vpop.permute.xlu1 %4341 }
 0x31a   :  { %v6298_v36 = vadd.f32 %v16249_v41, %v5936_v34  ;;  %v6650_v25 = vsub.f32 %v11965_v22, %v5936_v34  ;;  %v11374_v56 = vpop.f32.mrb[54].mxu0  ;;  %v4200_v27 = vpop.permute.xlu0 %4199  ;;  %v5438_v21 = vsel %vm5354_vm12, %v5309_v28, %v4342_v18  ;;  %v16551_v28 = vld [vmem:[%s20455_s0 + $0x2c8] sm:$0xf] }
 0x31b   :  { %v6301_v46 = vadd.f32 %v16249_v41, %v11374_v56  ;;  %v5939_v39 = vpop.f32.mrb[55].mxu0  ;;  %v6428_v12 = vmax.f32 %v6300_v40, 0.0  ;;  %v6653_v11 = vsub.f32 %v11966_v9, %v11374_v56  ;;  %v16512_v38 = vmax.f32 %v6652_v29, 0.0  ;;  %v221_v9 = vld [vmem:[%s20455_s0 + $0x2c0] sm:$0x1] }
 0x31c   :  { %3795 = vrot.lane.b32.xlu0 %v16362_v23, %s12049_s19  ;;  %v6299_v0 = vadd.f32 %v16249_v41, %v5939_v39  ;;  %v6651_v6 = vsub.f32 %v11967_v60, %v5939_v39  ;;  %v6426_v30 = vmax.f32 %v6298_v36, 0.0  ;;  %v16520_v55 = vmax.f32 %v6650_v25, 0.0 }
 0x31d   :  { %3937 = vrot.lane.b32.xlu1 %v16455_v61, %s12050_s20  ;;  %20707 = vst [vmem:[#allocation80_spill] sm:$0xff] %v16512_v38  ;;  %v6429_v63 = vmax.f32 %v6301_v46, 0.0  ;;  %v16518_v7 = vpop.permute.xlu1 %3185  ;;  %v16522_v40 = vmax.f32 %v6653_v11, 0.0  ;;  %v5307_v35 = vsel %vm5225_vm13, %v5178_v57, %v4200_v27  ;;  %v5526_v22 = vsel %vm5483_vm14, %v5438_v21, 0 }
 0x31e   :  { %20708 = vst [vmem:[#allocation81_spill] sm:$0xff] %v16520_v55  ;;  %v4340_v23 = vpop.permute.xlu0 %4339  ;;  %v6427_v34 = vmax.f32 %v6299_v0, 0.0  ;;  %v16527_v18 = vmax.f32 %v6651_v6, 0.0  ;;  %v16558_v46 = vcombine.low %v16463_v5, %v16467_v49  ;;  %v1515_v39 = vrot.slane %v1513_v31, 4 }
 0x31f   :  { %20709 = vst [vmem:[#allocation82_spill] sm:$0xff] %v16522_v40  ;;  %v16525_v29 = vpack.c.bf16 %v6429_v63, %v6428_v12  ;;  %v5436_v33 = vsel %vm5354_vm12, %v5307_v35, %v4340_v23  ;;  %v1518_v57 = vrot.slane %v1516_v3, 5  ;;  %v1524_v12 = vrot.slane %v1522_v42, 5 }
 0x320   :  { %20711 = vst [vmem:[#allocation84_spill] sm:$0xff] %v16527_v18  ;;  %v5525_v36 = vsel %vm5483_vm14, %v5436_v33, 0  ;;  %3935 = vrot.lane.b32.xlu0 %v16396_v45, %s12050_s20  ;;  %v16538_v25 = vpack.c.bf16 %v6427_v34, %v6426_v30  ;;  %v1528_v21 = vrot.slane %v1526_v52, 4  ;;  %v1537_v11 = vshrl.u32 %v16546_v50, 16  ;;  %v16578_v34 = vld [vmem:[%s20455_s0 + $0x2cc] sm:$0x1] }
 0x321   :  { %20710 = vst [vmem:[#allocation83_spill] sm:$0xff] %v16525_v29  ;;  %4077 = vrot.lane.b32.xlu1 %v16459_v26, %s12051_s28  ;;  %11399 = vmatprep.mubr.msk.bf16.mxu0 %vm5565_vm15, %v5525_v36  ;;  %v3506_v27 = vpop.permute.xlu1 %3505  ;;  %v1540_v63 = vshll.u32 %v16546_v50, 16  ;;  %v1550_v5 = vshrl.u32 %v16551_v28, 16  ;;  %v1546_v49 = vshll.u32 %v16551_v28, 16  ;;  %v1519_v3 = vor.u32 %v1518_v57, %v1515_v39 }
 0x322   :  { %20712 = vst [vmem:[#allocation85_spill] sm:$0xff] %v16538_v25  ;;  %11400 = vmatmul.mubr.msk.bf16.gmra.mrb[80].mxu0 %vm5565_vm15, %v5526_v22  ;;  %v16554_v45 = vpop.permute.xlu0 %3183  ;;  %v1529_v52 = vor.u32 %v1528_v21, %v1524_v12  ;;  %v1532_v42 = vshll.u32 %v221_v9, 16  ;;  %v1539_v60 = vrot.slane %v1537_v11, 4  ;;  %v2361_v36 = vrot.slane %v16453_v15, 5 }
 0x323   :  { %v1542_v6 = vrot.slane %v1540_v63, 5  ;;  %v1548_v30 = vrot.slane %v1546_v49, 5  ;;  %v1552_v35 = vrot.slane %v1550_v5, 4  ;;  %v1520_v22 = vrot.slane %v1519_v3, 4 }
 0x324   :  { %4075 = vrot.lane.b32.xlu0 %v16409_v53, %s12051_s28  ;;  %v1534_v39 = vrot.slane %v1532_v42, 5  ;;  %v1530_v57 = vrot.slane %v1529_v52, 4  ;;  %v1556_v63 = vshll.u32 %v16578_v34, 16  ;;  %v2363_v56 = vrot.slane %v2361_v36, 4 }
 0x325   :  { %4217 = vrot.lane.b32.xlu1 %v16476_v14, %s12052_s14  ;;  %v3646_v0 = vpop.permute.xlu1 %3645  ;;  %v1543_v21 = vor.u32 %v1542_v6, %v1539_v60  ;;  %v1553_v11 = vor.u32 %v1552_v35, %v1548_v30  ;;  %v2364_v29 = vrot.slane %v221_v9, 5  ;;  %v16591_v3 = vcombine.low %v16448_v59, %v16453_v15 }
 0x326   :  { %v3504_v31 = vpop.permute.xlu0 %3503  ;;  %v1525_v52 = vsel %vm12206_vm5, %v1520_v22, %v1524_v12  ;;  %v1535_v42 = vsel %vm12206_vm5, %v1530_v57, %v1534_v39  ;;  %v1558_v35 = vrot.slane %v1556_v63, 5  ;;  %v4519_v9 = vsel %vm4387_vm6, %v15597_v32, %v16518_v7 }
 0x327   :  { %v1544_v60 = vrot.slane %v1543_v21, 4  ;;  %v1554_v6 = vrot.slane %v1553_v11, 4  ;;  %v2362_v59 = vsel %vm12174_vm3, %v10725_v48, %v2361_v36  ;;  %v2365_v15 = vsel %vm12174_vm3, %v2363_v56, %v2364_v29  ;;  %v16621_v29 = vld [vmem:[%s20455_s0 + $0x2d0] sm:$0xf] }
 0x328   :  { %4215 = vrot.lane.b32.xlu0 %v16428_v44, %s12052_s14  ;;  %v16609_v12 = vcombine.low %v1525_v52, %v1535_v42  ;;  %v4668_v22 = vsel %vm4580_vm7, %v4519_v9, %v3506_v27  ;;  %v16623_v56 = vcombine.low %v2362_v59, %v2365_v15  ;;  %v16628_v27 = vld [vmem:[%s20455_s0 + $0x2d4] sm:$0xf]  ;;  %v10726_v36 = vrot.slane %v16546_v50, 9 }
 0x329   :  { %4357 = vrot.lane.b32.xlu1 %v16558_v46, %s12053_s24  ;;  %v3786_v23 = vpop.permute.xlu1 %3785  ;;  %v1549_v32 = vsel %vm12206_vm5, %v1544_v60, %v1548_v30  ;;  %v1559_v7 = vsel %vm12206_vm5, %v1554_v6, %v1558_v35  ;;  %v16632_v30 = vcombine.low %v16546_v50, %v16551_v28  ;;  %v2371_v57 = vrot.slane %v16578_v34, 5 }
 0x32a   :  { %v3644_v33 = vpop.permute.xlu0 %3643  ;;  %v4516_v21 = vsel %vm4387_vm6, %v15549_v4, %v16554_v45  ;;  %v4797_v11 = vsel %vm4709_vm8, %v4668_v22, %v3646_v0  ;;  %v16644_v63 = vcombine.low %v1549_v32, %v1559_v7  ;;  %v1561_v52 = vshrl.u32 %v16621_v29, 16 }
 0x32b   :  { %v4666_v50 = vsel %vm4580_vm7, %v4516_v21, %v3504_v31  ;;  %v4926_v42 = vsel %vm4838_vm9, %v4797_v11, %v3786_v23  ;;  %v1564_v34 = vshll.u32 %v16621_v29, 16  ;;  %v1574_v4 = vshrl.u32 %v16628_v27, 16  ;;  %v11968_v31 = vld [vmem:[%s20458_s3 + $0xd0] sm:$0xff] }
 0x32c   :  { %4355 = vrot.lane.b32.xlu0 %v16455_v61, %s12053_s24  ;;  %v4795_v45 = vsel %vm4709_vm8, %v4666_v50, %v3644_v33  ;;  %v11969_v33 = vld [vmem:[%s20458_s3 + $0xc0] sm:$0xff] }
 0x32d   :  { %3201 = vrot.lane.b32.xlu1 %v16476_v14, %s12048_s17  ;;  %v3926_v5 = vpop.permute.xlu1 %3925 }
 0x32e   :  { %v3784_v49 = vpop.permute.xlu0 %3783  ;;  %v5055_v0 = vsel %vm4967_vm10, %v4926_v42, %v3926_v5 }
 0x32f   :  { %v4924_v59 = vsel %vm4838_vm9, %v4795_v45, %v3784_v49 }
 0x330   :  { %3199 = vrot.lane.b32.xlu0 %v16428_v44, %s12048_s17  ;;  %v2368_v44 = vrot.slane %v16551_v28, 5 }
 0x331   :  { %3521 = vrot.lane.b32.xlu1 %v16558_v46, %s12047_s27  ;;  %v4066_v25 = vpop.permute.xlu1 %4065 }
 0x332   :  { %v3924_v58 = vpop.permute.xlu0 %3923  ;;  %v2370_v39 = vrot.slane %v2368_v44, 4  ;;  %v5184_v15 = vsel %vm5096_vm11, %v5055_v0, %v4066_v25  ;;  %v1570_v25 = vshll.u32 %v16628_v27, 16  ;;  %v11970_v0 = vld [vmem:[%s20458_s3 + $0xd8] sm:$0xff] }
 0x333   :  { %v5053_v21 = vsel %vm4967_vm10, %v4924_v59, %v3924_v58 }
 0x334   :  { %3519 = vrot.lane.b32.xlu0 %v16455_v61, %s12047_s27 }
 0x335   :  { %3661 = vrot.lane.b32.xlu1 %v16591_v3, %s12046_s18  ;;  %v4206_v48 = vpop.permute.xlu1 %4205 }
 0x336   :  { %v4064_v61 = vpop.permute.xlu0 %4063  ;;  %v5313_v11 = vsel %vm5225_vm13, %v5184_v15, %v4206_v48 }
 0x337   :  { %v5182_v49 = vsel %vm5096_vm11, %v5053_v21, %v4064_v61  ;;  %v11971_v61 = vld [vmem:[%s20458_s3 + $0xc8] sm:$0xff] }
 0x338   :  { %v11377_v60 = vpop.f32.mrb[56].mxu0  ;;  %3659 = vrot.lane.b32.xlu0 %v16459_v26, %s12046_s18 }
 0x339   :  { %3801 = vrot.lane.b32.xlu1 %v16609_v12, %s12049_s19  ;;  %v6304_v6 = vadd.f32 %v16249_v41, %v11377_v60  ;;  %v6656_v35 = vsub.f32 %v11968_v31, %v11377_v60  ;;  %v5952_v23 = vpop.f32.mrb[57].mxu0  ;;  %v4346_v9 = vpop.permute.xlu1 %4345 }
 0x33a   :  { %v6302_v22 = vadd.f32 %v16249_v41, %v5952_v23  ;;  %v6654_v5 = vsub.f32 %v11969_v33, %v5952_v23  ;;  %v11378_v32 = vpop.f32.mrb[58].mxu0  ;;  %v4204_v7 = vpop.permute.xlu0 %4203  ;;  %v5442_v45 = vsel %vm5354_vm12, %v5313_v11, %v4346_v9 }
 0x33b   :  { %v6305_v50 = vadd.f32 %v16249_v41, %v11378_v32  ;;  %v5955_v42 = vpop.f32.mrb[59].mxu0  ;;  %v6432_v60 = vmax.f32 %v6304_v6, 0.0  ;;  %v6657_v58 = vsub.f32 %v11970_v0, %v11378_v32  ;;  %v16678_v48 = vmax.f32 %v6656_v35, 0.0  ;;  %v230_v0 = vld [vmem:[%s20455_s0 + $0x2e4] sm:$0x1] }
 0x33c   :  { %3799 = vrot.lane.b32.xlu0 %v16476_v14, %s12049_s19  ;;  %v6303_v23 = vadd.f32 %v16249_v41, %v5955_v42  ;;  %v6655_v6 = vsub.f32 %v11971_v61, %v5955_v42  ;;  %v6430_v9 = vmax.f32 %v6302_v22, 0.0  ;;  %v16686_v15 = vmax.f32 %v6654_v5, 0.0 }
 0x33d   :  { %3941 = vrot.lane.b32.xlu1 %v16623_v56, %s12050_s20  ;;  %20713 = vst [vmem:[#allocation86_spill] sm:$0xff] %v16678_v48  ;;  %v6433_v31 = vmax.f32 %v6305_v50, 0.0  ;;  %v16684_v59 = vpop.permute.xlu1 %3189  ;;  %v16688_v33 = vmax.f32 %v6657_v58, 0.0  ;;  %v5311_v32 = vsel %vm5225_vm13, %v5182_v49, %v4204_v7  ;;  %v2369_v7 = vsel %vm12174_vm3, %v10726_v36, %v2368_v44  ;;  %v16723_v36 = vld [vmem:[%s20455_s0 + $0x2dc] sm:$0xf] }
 0x33e   :  { %20714 = vst [vmem:[#allocation87_spill] sm:$0xff] %v16686_v15  ;;  %v4344_v14 = vpop.permute.xlu0 %4343  ;;  %v6431_v21 = vmax.f32 %v6303_v23, 0.0  ;;  %v16693_v11 = vmax.f32 %v6655_v6, 0.0  ;;  %v2372_v42 = vsel %vm12174_vm3, %v2370_v39, %v2371_v57  ;;  %v5528_v49 = vsel %vm5483_vm14, %v5442_v45, 0  ;;  %v16728_v39 = vld [vmem:[%s20455_s0 + $0x2e0] sm:$0xf] }
 0x33f   :  { %20715 = vst [vmem:[#allocation88_spill] sm:$0xff] %v16688_v33  ;;  %v16691_v35 = vpack.c.bf16 %v6433_v31, %v6432_v60  ;;  %v5440_v50 = vsel %vm5354_vm12, %v5311_v32, %v4344_v14  ;;  %v1566_v44 = vrot.slane %v1564_v34, 5  ;;  %v16732_v57 = vcombine.low %v2369_v7, %v2372_v42  ;;  %v17129_v15 = vld [vmem:[%s20455_s0 + $0x314] sm:$0x1] }
 0x340   :  { %20717 = vst [vmem:[#allocation90_spill] sm:$0xff] %v16693_v11  ;;  %v5527_v5 = vsel %vm5483_vm14, %v5440_v50, 0  ;;  %3939 = vrot.lane.b32.xlu0 %v16558_v46, %s12050_s20  ;;  %v16710_v60 = vpack.c.bf16 %v6431_v21, %v6430_v9  ;;  %v1563_v46 = vrot.slane %v1561_v52, 4  ;;  %v1572_v45 = vrot.slane %v1570_v25, 5  ;;  %v227_v52 = vld [vmem:[%s20455_s0 + $0x2d8] sm:$0x1] }
 0x341   :  { %20716 = vst [vmem:[#allocation89_spill] sm:$0xff] %v16691_v35  ;;  %4081 = vrot.lane.b32.xlu1 %v16632_v30, %s12051_s28  ;;  %11403 = vmatprep.mubr.msk.bf16.mxu0 %vm5565_vm15, %v5527_v5  ;;  %v16715_v58 = vpop.permute.xlu1 %3509  ;;  %v1576_v31 = vrot.slane %v1574_v4, 4  ;;  %v1585_v23 = vshrl.u32 %v16723_v36, 16  ;;  %v1588_v61 = vshll.u32 %v16723_v36, 16  ;;  %v1598_v6 = vshrl.u32 %v16728_v39, 16 }
 0x342   :  { %20718 = vst [vmem:[#allocation91_spill] sm:$0xff] %v16710_v60  ;;  %11404 = vmatmul.mubr.msk.bf16.gmra.mrb[84].mxu0 %vm5565_vm15, %v5528_v49  ;;  %v16718_v28 = vpop.permute.xlu0 %3187  ;;  %v1594_v9 = vshll.u32 %v16728_v39, 16  ;;  %v1567_v14 = vor.u32 %v1566_v44, %v1563_v46  ;;  %v1580_v25 = vshll.u32 %v227_v52, 16  ;;  %v1700_v55 = vshll.u32 %v17129_v15, 16 }
 0x343   :  { %v1577_v4 = vor.u32 %v1576_v31, %v1572_v45  ;;  %v1587_v50 = vrot.slane %v1585_v23, 4  ;;  %v1590_v5 = vrot.slane %v1588_v61, 5  ;;  %v1600_v42 = vrot.slane %v1598_v6, 4 }
 0x344   :  { %4079 = vrot.lane.b32.xlu0 %v16591_v3, %s12051_s28  ;;  %v1596_v7 = vrot.slane %v1594_v9, 5  ;;  %v1568_v22 = vrot.slane %v1567_v14, 4  ;;  %v1582_v44 = vrot.slane %v1580_v25, 5  ;;  %v2375_v31 = vrot.slane %v16628_v27, 5 }
 0x345   :  { %4221 = vrot.lane.b32.xlu1 %v16644_v63, %s12052_s14  ;;  %v3650_v34 = vpop.permute.xlu1 %3649  ;;  %v1578_v46 = vrot.slane %v1577_v4, 4  ;;  %v1591_v61 = vor.u32 %v1590_v5, %v1587_v50  ;;  %v1604_v6 = vshll.u32 %v230_v0, 16  ;;  %v16757_v14 = vcombine.low %v16621_v29, %v16628_v27 }
 0x346   :  { %v3508_v32 = vpop.permute.xlu0 %3507  ;;  %v1601_v9 = vor.u32 %v1600_v42, %v1596_v7  ;;  %v1573_v60 = vsel %vm12206_vm5, %v1568_v22, %v1572_v45  ;;  %v10727_v4 = vrot.slane %v16621_v29, 9  ;;  %v2377_v1 = vrot.slane %v2375_v31, 4 }
 0x347   :  { %v1583_v25 = vsel %vm12206_vm5, %v1578_v46, %v1582_v44  ;;  %v2378_v50 = vrot.slane %v227_v52, 5  ;;  %v2382_v5 = vrot.slane %v16728_v39, 5  ;;  %v4525_v27 = vsel %vm4387_vm6, %v15763_v8, %v16684_v59 }
 0x348   :  { %4219 = vrot.lane.b32.xlu0 %v16609_v12, %s12052_s14  ;;  %v1592_v45 = vrot.slane %v1591_v61, 4  ;;  %v1602_v29 = vrot.slane %v1601_v9, 4  ;;  %v1606_v42 = vrot.slane %v1604_v6, 5  ;;  %v16772_v33 = vcombine.low %v1573_v60, %v1583_v25 }
 0x349   :  { %4361 = vrot.lane.b32.xlu1 %v16732_v57, %s12053_s24  ;;  %v3790_v21 = vpop.permute.xlu1 %3789  ;;  %v2376_v46 = vsel %vm12174_vm3, %v10727_v4, %v2375_v31  ;;  %v10728_v52 = vrot.slane %v16723_v36, 9  ;;  %v2384_v44 = vrot.slane %v2382_v5, 4  ;;  %v2385_v8 = vrot.slane %v230_v0, 5 }
 0x34a   :  { %v3648_v49 = vpop.permute.xlu0 %3647  ;;  %v4672_v59 = vsel %vm4580_vm7, %v4525_v27, %v16715_v58  ;;  %v1597_v31 = vsel %vm12206_vm5, %v1592_v45, %v1596_v7  ;;  %v1607_v61 = vsel %vm12206_vm5, %v1602_v29, %v1606_v42  ;;  %v16798_v58 = vcombine.low %v16723_v36, %v16728_v39 }
 0x34b   :  { %v4801_v7 = vsel %vm4709_vm8, %v4672_v59, %v3650_v34  ;;  %v16808_v6 = vsel %vm12174_vm3, %v10728_v52, %v2382_v5  ;;  %v16812_v4 = vsel %vm12174_vm3, %v2384_v44, %v2385_v8 }
 0x34c   :  { %4359 = vrot.lane.b32.xlu0 %v16623_v56, %s12053_s24  ;;  %v4930_v39 = vsel %vm4838_vm9, %v4801_v7, %v3790_v21  ;;  %v11974_v7 = vld [vmem:[%s20458_s3 + $0xf8] sm:$0xff] }
 0x34d   :  { %3205 = vrot.lane.b32.xlu1 %v16644_v63, %s12048_s17  ;;  %v3930_v23 = vpop.permute.xlu1 %3929 }
 0x34e   :  { %v3788_v35 = vpop.permute.xlu0 %3787 }
 0x350   :  { %3203 = vrot.lane.b32.xlu0 %v16609_v12, %s12048_s17  ;;  %v2379_v12 = vsel %vm12174_vm3, %v2377_v1, %v2378_v50  ;;  %v16792_v1 = vld [vmem:[%s20455_s0 + $0x2e8] sm:$0xf]  ;;  %v5059_v50 = vsel %vm4967_vm10, %v4930_v39, %v3930_v23 }
 0x351   :  { %3525 = vrot.lane.b32.xlu1 %v16732_v57, %s12047_s27  ;;  %v4070_v22 = vpop.permute.xlu1 %4069  ;;  %v16794_v0 = vcombine.low %v2376_v46, %v2379_v12 }
 0x352   :  { %v3928_v48 = vpop.permute.xlu0 %3927  ;;  %v5188_v42 = vsel %vm5096_vm11, %v5059_v50, %v4070_v22  ;;  %v16857_v50 = vld [vmem:[%s20455_s0 + $0x2ec] sm:$0xf] }
 0x354   :  { %3523 = vrot.lane.b32.xlu0 %v16623_v56, %s12047_s27  ;;  %v4522_v56 = vsel %vm4387_vm6, %v15722_v20, %v16718_v28  ;;  %v16818_v20 = vcombine.low %v1597_v31, %v1607_v61  ;;  %v1609_v28 = vshrl.u32 %v16792_v1, 16 }
 0x355   :  { %3665 = vrot.lane.b32.xlu1 %v16757_v14, %s12046_s18  ;;  %v4210_v60 = vpop.permute.xlu1 %4209  ;;  %v4670_v36 = vsel %vm4580_vm7, %v4522_v56, %v3508_v32  ;;  %v11972_v32 = vld [vmem:[%s20458_s3 + $0xf0] sm:$0xff] }
 0x356   :  { %v4068_v9 = vpop.permute.xlu0 %4067  ;;  %v4799_v34 = vsel %vm4709_vm8, %v4670_v36, %v3648_v49  ;;  %v11973_v49 = vld [vmem:[%s20458_s3 + $0xe0] sm:$0xff]  ;;  %v5317_v8 = vsel %vm5225_vm13, %v5188_v42, %v4210_v60 }
 0x357   :  { %v4928_v29 = vsel %vm4838_vm9, %v4799_v34, %v3788_v35  ;;  %v1612_v35 = vshll.u32 %v16792_v1, 16 }
 0x358   :  { %v11381_v25 = vpop.f32.mrb[60].mxu0  ;;  %3663 = vrot.lane.b32.xlu0 %v16632_v30, %s12046_s18  ;;  %v5057_v44 = vsel %vm4967_vm10, %v4928_v29, %v3928_v48 }
 0x359   :  { %3805 = vrot.lane.b32.xlu1 %v16772_v33, %s12049_s19  ;;  %v6308_v5 = vadd.f32 %v16249_v41, %v11381_v25  ;;  %v6660_v27 = vsub.f32 %v11972_v32, %v11381_v25  ;;  %v5968_v21 = vpop.f32.mrb[61].mxu0  ;;  %v4350_v45 = vpop.permute.xlu1 %4349  ;;  %v5186_v22 = vsel %vm5096_vm11, %v5057_v44, %v4068_v9  ;;  %v11975_v9 = vld [vmem:[%s20458_s3 + $0xe8] sm:$0xff] }
 0x35a   :  { %v6306_v46 = vadd.f32 %v16249_v41, %v5968_v21  ;;  %v6658_v23 = vsub.f32 %v11973_v49, %v5968_v21  ;;  %v11382_v12 = vpop.f32.mrb[62].mxu0  ;;  %v4208_v52 = vpop.permute.xlu0 %4207  ;;  %v5446_v56 = vsel %vm5354_vm12, %v5317_v8, %v4350_v45  ;;  %v16930_v8 = vld [vmem:[%s20455_s0 + $0x2fc] sm:$0x1] }
 0x35b   :  { %v6309_v59 = vadd.f32 %v16249_v41, %v11382_v12  ;;  %v5971_v31 = vpop.f32.mrb[63].mxu0  ;;  %v6436_v61 = vmax.f32 %v6308_v5, 0.0  ;;  %v6661_v48 = vsub.f32 %v11974_v7, %v11382_v12  ;;  %v16846_v60 = vmax.f32 %v6660_v27, 0.0 }
 0x35c   :  { %3803 = vrot.lane.b32.xlu0 %v16644_v63, %s12049_s19  ;;  %v6307_v39 = vadd.f32 %v16249_v41, %v5971_v31  ;;  %v6659_v25 = vsub.f32 %v11975_v9, %v5971_v31  ;;  %v6434_v5 = vmax.f32 %v6306_v46, 0.0  ;;  %v16859_v32 = vmax.f32 %v6658_v23, 0.0  ;;  %v233_v9 = vld [vmem:[%s20455_s0 + $0x2f0] sm:$0x1] }
 0x35d   :  { %3945 = vrot.lane.b32.xlu1 %v16794_v0, %s12050_s20  ;;  %20719 = vst [vmem:[#allocation92_spill] sm:$0xff] %v16846_v60  ;;  %v6437_v36 = vmax.f32 %v6309_v59, 0.0  ;;  %v16852_v34 = vpop.permute.xlu1 %3193  ;;  %v16861_v63 = vmax.f32 %v6661_v48, 0.0  ;;  %v5315_v27 = vsel %vm5225_vm13, %v5186_v22, %v4208_v52  ;;  %v1622_v23 = vshrl.u32 %v16857_v50, 16 }
 0x35e   :  { %20720 = vst [vmem:[#allocation93_spill] sm:$0xff] %v16859_v32  ;;  %v4348_v41 = vpop.permute.xlu0 %4347  ;;  %v6435_v45 = vmax.f32 %v6307_v39, 0.0  ;;  %v16866_v29 = vmax.f32 %v6659_v25, 0.0  ;;  %v1618_v12 = vshll.u32 %v16857_v50, 16  ;;  %v5530_v52 = vsel %vm5483_vm14, %v5446_v56, 0 }
 0x35f   :  { %20721 = vst [vmem:[#allocation94_spill] sm:$0xff] %v16861_v63  ;;  %v16864_v21 = vpack.c.bf16 %v6437_v36, %v6436_v61  ;;  %v5444_v42 = vsel %vm5354_vm12, %v5315_v27, %v4348_v41  ;;  %v16896_v22 = vcombine.low %v16808_v6, %v16812_v4  ;;  %v16901_v61 = vld [vmem:[%s20455_s0 + $0x2f8] sm:$0xf]  ;;  %v1611_v56 = vrot.slane %v1609_v28, 4 }
 0x360   :  { %20723 = vst [vmem:[#allocation96_spill] sm:$0xff] %v16866_v29  ;;  %v5529_v49 = vsel %vm5483_vm14, %v5444_v42, 0  ;;  %3943 = vrot.lane.b32.xlu0 %v16732_v57, %s12050_s20  ;;  %v16879_v44 = vpack.c.bf16 %v6435_v45, %v6434_v5  ;;  %v16890_v57 = vld [vmem:[%s20455_s0 + $0x2f4] sm:$0xf]  ;;  %v1614_v7 = vrot.slane %v1612_v35, 5  ;;  %v1620_v48 = vrot.slane %v1618_v12, 5 }
 0x361   :  { %20722 = vst [vmem:[#allocation95_spill] sm:$0xff] %v16864_v21  ;;  %4085 = vrot.lane.b32.xlu1 %v16798_v58, %s12051_s28  ;;  %11407 = vmatprep.mubr.msk.bf16.mxu0 %vm5565_vm15, %v5529_v49  ;;  %v3514_v59 = vpop.permute.xlu1 %3513  ;;  %v1624_v36 = vrot.slane %v1622_v23, 4  ;;  %v1633_v6 = vshrl.u32 %v16890_v57, 16  ;;  %v1636_v4 = vshll.u32 %v16890_v57, 16  ;;  %v1646_v5 = vshrl.u32 %v16901_v61, 16 }
 0x362   :  { %20724 = vst [vmem:[#allocation97_spill] sm:$0xff] %v16879_v44  ;;  %11408 = vmatmul.mubr.msk.bf16.gmra.mrb[88].mxu0 %vm5565_vm15, %v5530_v52  ;;  %v16885_v31 = vpop.permute.xlu0 %3191  ;;  %v1642_v27 = vshll.u32 %v16901_v61, 16  ;;  %v1615_v28 = vor.u32 %v1614_v7, %v1611_v56  ;;  %v1628_v41 = vshll.u32 %v233_v9, 16  ;;  %v2389_v42 = vrot.slane %v16857_v50, 5 }
 0x363   :  { %v1625_v35 = vor.u32 %v1624_v36, %v1620_v48  ;;  %v1635_v49 = vrot.slane %v1633_v6, 4  ;;  %v1638_v23 = vrot.slane %v1636_v4, 5  ;;  %v1648_v46 = vrot.slane %v1646_v5, 4 }
 0x364   :  { %4083 = vrot.lane.b32.xlu0 %v16757_v14, %s12051_s28  ;;  %v16923_v52 = vrot.slane %v1642_v27, 5  ;;  %v1616_v56 = vrot.slane %v1615_v28, 4  ;;  %v1630_v36 = vrot.slane %v1628_v41, 5  ;;  %v10729_v6 = vrot.slane %v16792_v1, 9 }
 0x365   :  { %4225 = vrot.lane.b32.xlu1 %v16818_v20, %s12052_s14  ;;  %v16905_v39 = vpop.permute.xlu1 %3653  ;;  %v1626_v7 = vrot.slane %v1625_v35, 4  ;;  %v2391_v27 = vrot.slane %v2389_v42, 4  ;;  %v2392_v21 = vrot.slane %v233_v9, 5  ;;  %v1639_v5 = vor.u32 %v1638_v23, %v1635_v49 }
 0x366   :  { %v16912_v25 = vpop.permute.xlu0 %3511  ;;  %v1649_v60 = vor.u32 %v1648_v46, %v16923_v52  ;;  %v1652_v63 = vshll.u32 %v16930_v8, 16  ;;  %v16941_v32 = vcombine.low %v16792_v1, %v16857_v50  ;;  %v1621_v28 = vsel %vm12206_vm5, %v1616_v56, %v1620_v48 }
 0x367   :  { %v1631_v9 = vsel %vm12206_vm5, %v1626_v7, %v1630_v36  ;;  %v2390_v46 = vsel %vm12174_vm3, %v10729_v6, %v2389_v42  ;;  %v4531_v35 = vsel %vm4387_vm6, %v15949_v2, %v16852_v34  ;;  %v2393_v1 = vsel %vm12174_vm3, %v2391_v27, %v2392_v21  ;;  %v16990_v6 = vld [vmem:[%s20457_s2] ss:$0 sm:$0xff] }
 0x368   :  { %4223 = vrot.lane.b32.xlu0 %v16772_v33, %s12052_s14  ;;  %v16956_v50 = vrot.slane %v1639_v5, 4  ;;  %v16959_v48 = vrot.slane %v1649_v60, 4  ;;  %v16961_v23 = vrot.slane %v1652_v63, 5  ;;  %v16965_v42 = vcombine.low %v1621_v28, %v1631_v9 }
 0x369   :  { %4365 = vrot.lane.b32.xlu1 %v16896_v22, %s12053_s24  ;;  %v16920_v45 = vpop.permute.xlu1 %3793  ;;  %v4676_v2 = vsel %vm4580_vm7, %v4531_v35, %v3514_v59  ;;  %v16970_v34 = vcombine.low %v2390_v46, %v2393_v1  ;;  %v16974_v21 = vcombine.low %v16890_v57, %v16901_v61  ;;  %v10730_v7 = vrot.slane %v16890_v57, 9  ;;  %v11977_v57 = vld [vmem:[%s20458_s3 + $0x10] sm:$0xff]  ;;  %v11978_v46 = vld [vmem:[%s20458_s3] sm:$0xff] }
 0x36a   :  { %v3652_v12 = vpop.permute.xlu0 %3651  ;;  %v1645_v63 = vsel %vm12206_vm5, %v16956_v50, %v16923_v52  ;;  %v4528_v36 = vsel %vm4387_vm6, %v15905_v17, %v16885_v31  ;;  %v4805_v17 = vsel %vm4709_vm8, %v4676_v2, %v16905_v39 }
 0x36b   :  { %v4674_v31 = vsel %vm4580_vm7, %v4528_v36, %v16912_v25  ;;  %v4934_v50 = vsel %vm4838_vm9, %v4805_v17, %v16920_v45  ;;  %v11979_v25 = vld [vmem:[%s20458_s3 + $0x18] sm:$0xff]  ;;  %v11980_v45 = vld [vmem:[%s20458_s3 + $0x8] sm:$0xff] }
 0x36c   :  { %4363 = vrot.lane.b32.xlu0 %v16794_v0, %s12053_s24 }
 0x36d   :  { %3209 = vrot.lane.b32.xlu1 %v16818_v20, %s12048_s17  ;;  %v3934_v4 = vpop.permute.xlu1 %3933 }
 0x36e   :  { %v3792_v44 = vpop.permute.xlu0 %3791 }
 0x370   :  { %3207 = vrot.lane.b32.xlu0 %v16772_v33, %s12048_s17  ;;  %v20519_v33 = vrot.slane %v16901_v61, 5 }
 0x371   :  { %3529 = vrot.lane.b32.xlu1 %v16896_v22, %s12047_s27  ;;  %v4074_v41 = vpop.permute.xlu1 %4073 }
 0x372   :  { %v3932_v49 = vpop.permute.xlu0 %3931  ;;  %v2398_v59 = vrot.slane %v20519_v33, 4 }
 0x374   :  { %3527 = vrot.lane.b32.xlu0 %v16794_v0, %s12047_s27  ;;  %v2399_v0 = vrot.slane %v16930_v8, 5  ;;  %v1655_v8 = vsel %vm12206_vm5, %v16959_v48, %v16961_v23  ;;  %v4803_v48 = vsel %vm4709_vm8, %v4674_v31, %v3652_v12 }
 0x375   :  { %3669 = vrot.lane.b32.xlu1 %v16941_v32, %s12046_s18  ;;  %v11385_v60 = vpop.f32.mrb[64].mxu0  ;;  %v4214_v56 = vpop.permute.xlu1 %4213  ;;  %v4932_v36 = vsel %vm4838_vm9, %v4803_v48, %v3792_v44 }
 0x376   :  { %v6312_v27 = vadd.f32 %v16990_v6, %v11385_v60  ;;  %v6664_v52 = vsub.f32 %v11977_v57, %v11385_v60  ;;  %v5984_v5 = vpop.f32.mrb[65].mxu0  ;;  %v4072_v28 = vpop.permute.xlu0 %4071  ;;  %v5063_v60 = vsel %vm4967_vm10, %v4934_v50, %v3934_v4  ;;  %v5061_v48 = vsel %vm4967_vm10, %v4932_v36, %v3932_v49 }
 0x377   :  { %v6310_v9 = vadd.f32 %v16990_v6, %v5984_v5  ;;  %v6662_v35 = vsub.f32 %v11978_v46, %v5984_v5  ;;  %v11386_v1 = vpop.f32.mrb[66].mxu0  ;;  %v5192_v50 = vsel %vm5096_vm11, %v5063_v60, %v4074_v41 }
 0x378   :  { %v6313_v39 = vadd.f32 %v16990_v6, %v11386_v1  ;;  %v6665_v23 = vsub.f32 %v11979_v25, %v11386_v1  ;;  %v5987_v2 = vpop.f32.mrb[67].mxu0  ;;  %3667 = vrot.lane.b32.xlu0 %v16798_v58, %s12046_s18  ;;  %v6440_v17 = vmax.f32 %v6312_v27, 0.0  ;;  %v17025_v31 = vmax.f32 %v6664_v52, 0.0 }
 0x379   :  { %3809 = vrot.lane.b32.xlu1 %v16965_v42, %s12049_s19  ;;  %v6311_v57 = vadd.f32 %v16990_v6, %v5987_v2  ;;  %v6663_v12 = vsub.f32 %v11980_v45, %v5987_v2  ;;  %v6438_v33 = vmax.f32 %v6310_v9, 0.0  ;;  %v17029_v29 = vmax.f32 %v6662_v35, 0.0  ;;  %v17046_v9 = vld [vmem:[%s20455_s0 + $0x300] sm:$0xf] }
 0x37a   :  { %v6441_v46 = vmax.f32 %v6313_v39, 0.0  ;;  %v17027_v1 = vmax.f32 %v6665_v23, 0.0  ;;  %v4212_v25 = vpop.permute.xlu0 %4211  ;;  %v5321_v35 = vsel %vm5225_vm13, %v5192_v50, %v4214_v56  ;;  %v5190_v39 = vsel %vm5096_vm11, %v5061_v48, %v4072_v28 }
 0x37b   :  { %v4354_v5 = vpop.permute.xlu1 %4353  ;;  %v6439_v4 = vmax.f32 %v6311_v57, 0.0  ;;  %v17031_v44 = vmax.f32 %v6663_v12, 0.0  ;;  %v5319_v60 = vsel %vm5225_vm13, %v5190_v39, %v4212_v25  ;;  %v20725_v56 = vrot.slane %v16901_v61, 5  ;;  %v239_v39 = vld [vmem:[%s20455_s0 + $0x308] sm:$0x1] }
 0x37c   :  { %v17037_v27 = vpack.c.bf16 %v6441_v46, %v6440_v17  ;;  %3807 = vrot.lane.b32.xlu0 %v16818_v20, %s12049_s19  ;;  %v17059_v20 = vld [vmem:[%s20455_s0 + $0x304] sm:$0xf]  ;;  %v5450_v2 = vsel %vm5354_vm12, %v5321_v35, %v4354_v5  ;;  %v17070_v57 = vcombine.low %v1645_v63, %v1655_v8  ;;  %v2400_v45 = vsel %vm12174_vm3, %v2398_v59, %v2399_v0  ;;  %v17100_v8 = vld [vmem:[%s20455_s0 + $0x310] sm:$0xf] }
 0x37d   :  { %3949 = vrot.lane.b32.xlu1 %v16970_v34, %s12050_s20  ;;  %v17050_v41 = vpack.c.bf16 %v6439_v4, %v6438_v33  ;;  %v2397_v33 = vsel %vm12174_vm3, %v10730_v7, %v20725_v56  ;;  %v1657_v12 = vshrl.u32 %v17046_v9, 16  ;;  %v1660_v61 = vshll.u32 %v17046_v9, 16 }
 0x37e   :  { %v4352_v36 = vpop.permute.xlu0 %4351  ;;  %v1670_v7 = vshrl.u32 %v17059_v20, 16  ;;  %v1666_v17 = vshll.u32 %v17059_v20, 16  ;;  %v5532_v46 = vsel %vm5483_vm14, %v5450_v2, 0  ;;  %v17095_v0 = vcombine.low %v2397_v33, %v2400_v45 }
 0x37f   :  { %v17054_v23 = vpop.permute.xlu1 %3197  ;;  %v5448_v28 = vsel %vm5354_vm12, %v5319_v60, %v4352_v36  ;;  %v1659_v25 = vrot.slane %v1657_v12, 4  ;;  %v1662_v4 = vrot.slane %v1660_v61, 5  ;;  %v1694_v56 = vshrl.u32 %v17100_v8, 16 }
 0x380   :  { %v5531_v5 = vsel %vm5483_vm14, %v5448_v28, 0  ;;  %3947 = vrot.lane.b32.xlu0 %v16896_v22, %s12050_s20  ;;  %v17091_v22 = vld [vmem:[%s20455_s0 + $0x30c] sm:$0xf]  ;;  %v1668_v50 = vrot.slane %v1666_v17, 5  ;;  %v1672_v48 = vrot.slane %v1670_v7, 4  ;;  %v1690_v33 = vshll.u32 %v17100_v8, 16 }
 0x381   :  { %4089 = vrot.lane.b32.xlu1 %v16974_v21, %s12051_s28  ;;  %11411 = vmatprep.mubr.msk.bf16.mxu0 %vm5565_vm15, %v5531_v5  ;;  %v1681_v2 = vshrl.u32 %v17091_v22, 16  ;;  %v1684_v60 = vshll.u32 %v17091_v22, 16  ;;  %v1663_v28 = vor.u32 %v1662_v4, %v1659_v25  ;;  %v1676_v12 = vshll.u32 %v239_v39, 16 }
 0x382   :  { %11412 = vmatmul.mubr.msk.bf16.gmra.mrb[92].mxu0 %vm5565_vm15, %v5532_v46  ;;  %v17086_v59 = vpop.permute.xlu0 %3195  ;;  %v1673_v45 = vor.u32 %v1672_v48, %v1668_v50  ;;  %v2403_v61 = vrot.slane %v17059_v20, 5  ;;  %v17122_v52 = vrot.slane %v1690_v33, 5  ;;  %v1696_v49 = vrot.slane %v1694_v56, 4 }
 0x383   :  { %v17083_v63 = vpop.permute.xlu1 %3517  ;;  %v1683_v7 = vrot.slane %v1681_v2, 4  ;;  %v1686_v17 = vrot.slane %v1684_v60, 5  ;;  %v1664_v25 = vrot.slane %v1663_v28, 4  ;;  %v1678_v48 = vrot.slane %v1676_v12, 5 }
 0x384   :  { %4087 = vrot.lane.b32.xlu0 %v16941_v32, %s12051_s28  ;;  %v1674_v4 = vrot.slane %v1673_v45, 4  ;;  %v10731_v2 = vrot.slane %v17046_v9, 9  ;;  %v2405_v33 = vrot.slane %v2403_v61, 4  ;;  %v2406_v11 = vrot.slane %v239_v39, 5 }
 0x385   :  { %4229 = vrot.lane.b32.xlu1 %v17070_v57, %s12052_s14  ;;  %v1687_v56 = vor.u32 %v1686_v17, %v1683_v7  ;;  %v1697_v40 = vor.u32 %v1696_v49, %v17122_v52  ;;  %v17140_v18 = vcombine.low %v17046_v9, %v17059_v20  ;;  %v1669_v28 = vsel %vm12206_vm5, %v1664_v25, %v1668_v50  ;;  %v11981_v50 = vld [vmem:[%s20455_s0 + $0x288] sm:$0xf] }
 0x386   :  { %v17111_v36 = vpop.permute.xlu0 %3515  ;;  %v1679_v39 = vsel %vm12206_vm5, %v1674_v4, %v1678_v48  ;;  %v2404_v49 = vsel %vm12174_vm3, %v10731_v2, %v2403_v61  ;;  %v4537_v45 = vsel %vm4387_vm6, %v16439_v62, %v17054_v23  ;;  %v2407_v9 = vsel %vm12174_vm3, %v2405_v33, %v2406_v11  ;;  %v11982_v61 = vld [vmem:[%s20455_s0 + $0x28c] sm:$0xf] }
 0x387   :  { %v17104_v35 = vpop.permute.xlu1 %3657  ;;  %20726 = vst [vmem:[#allocation98_spill] sm:$0xff] %v17140_v18  ;;  %v17155_v20 = vrot.slane %v1687_v56, 4  ;;  %v10793_v7 = vcombine.low %v11981_v50, %v11982_v61  ;;  %v17164_v25 = vrot.slane %v1697_v40, 4  ;;  %v17166_v62 = vrot.slane %v1700_v55, 5 }
 0x388   :  { %4227 = vrot.lane.b32.xlu0 %v16965_v42, %s12052_s14  ;;  %v17170_v11 = vcombine.low %v1669_v28, %v1679_v39  ;;  %v4680_v23 = vsel %vm4580_vm7, %v4537_v45, %v17083_v63  ;;  %v17176_v4 = vcombine.low %v2404_v49, %v2407_v9  ;;  %v17180_v48 = vcombine.low %v17091_v22, %v17100_v8  ;;  %v11983_v39 = vld [vmem:[%s20458_s3 + $0x30] sm:$0xff] }
 0x389   :  { %4369 = vrot.lane.b32.xlu1 %v17095_v0, %s12053_s24  ;;  %v1693_v2 = vsel %vm12206_vm5, %v17155_v20, %v17122_v52  ;;  %v10732_v33 = vrot.slane %v17091_v22, 9  ;;  %v4534_v56 = vsel %vm4387_vm6, %v10793_v7, %v17086_v59  ;;  %v1703_v52 = vsel %vm12206_vm5, %v17164_v25, %v17166_v62  ;;  %v11984_v20 = vld [vmem:[%s20458_s3 + $0x20] sm:$0xff] }
 0x38a   :  { %v3656_v46 = vpop.permute.xlu0 %3655  ;;  %20727 = vst [vmem:[#allocation99_spill] sm:$0xff] %v17180_v48  ;;  %v4678_v59 = vsel %vm4580_vm7, %v4534_v56, %v17111_v36  ;;  %v11985_v36 = vld [vmem:[%s20458_s3 + $0x38] sm:$0xff] }
 0x38b   :  { %v17119_v5 = vpop.permute.xlu1 %3797  ;;  %v4807_v25 = vsel %vm4709_vm8, %v4678_v59, %v3656_v46 }
 0x38c   :  { %4367 = vrot.lane.b32.xlu0 %v16970_v34, %s12053_s24 }
 0x38d   :  { %3213 = vrot.lane.b32.xlu1 %v17070_v57, %s12048_s17 }
 0x38e   :  { %v3796_v38 = vpop.permute.xlu0 %3795 }
 0x38f   :  { %v3938_v60 = vpop.permute.xlu1 %3937  ;;  %v4936_v56 = vsel %vm4838_vm9, %v4807_v25, %v3796_v38 }
 0x390   :  { %3211 = vrot.lane.b32.xlu0 %v16965_v42, %s12048_s17  ;;  %v20527_v42 = vrot.slane %v17100_v8, 5 }
 0x391   :  { %3533 = vrot.lane.b32.xlu1 %v17095_v0, %s12047_s27 }
 0x392   :  { %v3936_v17 = vpop.permute.xlu0 %3935  ;;  %v2412_v63 = vrot.slane %v20527_v42, 4 }
 0x393   :  { %v4078_v12 = vpop.permute.xlu1 %4077  ;;  %v5065_v25 = vsel %vm4967_vm10, %v4936_v56, %v3936_v17 }
 0x394   :  { %3531 = vrot.lane.b32.xlu0 %v16970_v34, %s12047_s27  ;;  %v2413_v34 = vrot.slane %v17129_v15, 5  ;;  %v4809_v15 = vsel %vm4709_vm8, %v4680_v23, %v17104_v35 }
 0x395   :  { %3673 = vrot.lane.b32.xlu1 %v17140_v18, %s12046_s18  ;;  %v11389_v40 = vpop.f32.mrb[68].mxu0  ;;  %v4938_v7 = vsel %vm4838_vm9, %v4809_v15, %v17119_v5  ;;  %v11986_v5 = vld [vmem:[%s20458_s3 + $0x28] sm:$0xff] }
 0x396   :  { %v6316_v28 = vadd.f32 %v16990_v6, %v11389_v40  ;;  %v6668_v49 = vsub.f32 %v11983_v39, %v11389_v40  ;;  %v6000_v45 = vpop.f32.mrb[69].mxu0  ;;  %v4076_v9 = vpop.permute.xlu0 %4075  ;;  %v5067_v40 = vsel %vm4967_vm10, %v4938_v7, %v3938_v60 }
 0x397   :  { %v4218_v55 = vpop.permute.xlu1 %4217  ;;  %v6314_v22 = vadd.f32 %v16990_v6, %v6000_v45  ;;  %v6666_v50 = vsub.f32 %v11984_v20, %v6000_v45  ;;  %v11390_v61 = vpop.f32.mrb[70].mxu0  ;;  %v5196_v7 = vsel %vm5096_vm11, %v5067_v40, %v4078_v12 }
 0x398   :  { %v6317_v35 = vadd.f32 %v16990_v6, %v11390_v61  ;;  %v6669_v62 = vsub.f32 %v11985_v36, %v11390_v61  ;;  %v6003_v23 = vpop.f32.mrb[71].mxu0  ;;  %3671 = vrot.lane.b32.xlu0 %v16974_v21, %s12046_s18  ;;  %v6444_v15 = vmax.f32 %v6316_v28, 0.0  ;;  %v17225_v59 = vmax.f32 %v6668_v49, 0.0 }
 0x399   :  { %3813 = vrot.lane.b32.xlu1 %v17170_v11, %s12049_s19  ;;  %v6315_v39 = vadd.f32 %v16990_v6, %v6003_v23  ;;  %v6667_v46 = vsub.f32 %v11986_v5, %v6003_v23  ;;  %v6442_v42 = vmax.f32 %v6314_v22, 0.0  ;;  %v17229_v24 = vmax.f32 %v6666_v50, 0.0  ;;  %v17246_v22 = vld [vmem:[%s20455_s0 + $0x318] sm:$0xf] }
 0x39a   :  { %v6445_v20 = vmax.f32 %v6317_v35, 0.0  ;;  %v17227_v61 = vmax.f32 %v6669_v62, 0.0  ;;  %v4216_v36 = vpop.permute.xlu0 %4215  ;;  %v5325_v50 = vsel %vm5225_vm13, %v5196_v7, %v4218_v55  ;;  %v5194_v35 = vsel %vm5096_vm11, %v5065_v25, %v4076_v9 }
 0x39b   :  { %v4358_v45 = vpop.permute.xlu1 %4357  ;;  %v6443_v60 = vmax.f32 %v6315_v39, 0.0  ;;  %v17231_v38 = vmax.f32 %v6667_v46, 0.0  ;;  %v5323_v40 = vsel %vm5225_vm13, %v5194_v35, %v4216_v36  ;;  %v20728_v55 = vrot.slane %v17100_v8, 5  ;;  %v245_v35 = vld [vmem:[%s20455_s0 + $0x320] sm:$0x1] }
 0x39c   :  { %v17237_v28 = vpack.c.bf16 %v6445_v20, %v6444_v15  ;;  %3811 = vrot.lane.b32.xlu0 %v17070_v57, %s12049_s19  ;;  %v17259_v57 = vld [vmem:[%s20455_s0 + $0x31c] sm:$0xf]  ;;  %v5454_v23 = vsel %vm5354_vm12, %v5325_v50, %v4358_v45  ;;  %v17270_v39 = vcombine.low %v1693_v2, %v1703_v52  ;;  %v2414_v5 = vsel %vm12174_vm3, %v2412_v63, %v2413_v34  ;;  %v17289_v34 = vld [vmem:[%s20455_s0 + $0x324] sm:$0xf]  ;;  %v17298_v52 = vld [vmem:[%s20455_s0 + $0x328] sm:$0xf] }
 0x39d   :  { %3953 = vrot.lane.b32.xlu1 %v17176_v4, %s12050_s20  ;;  %v17250_v12 = vpack.c.bf16 %v6443_v60, %v6442_v42  ;;  %v2411_v42 = vsel %vm12174_vm3, %v10732_v33, %v20728_v55  ;;  %v1705_v46 = vshrl.u32 %v17246_v22, 16  ;;  %v1708_v8 = vshll.u32 %v17246_v22, 16 }
 0x39e   :  { %v4356_v56 = vpop.permute.xlu0 %4355  ;;  %v1718_v33 = vshrl.u32 %v17259_v57, 16  ;;  %v1714_v15 = vshll.u32 %v17259_v57, 16  ;;  %v5534_v20 = vsel %vm5483_vm14, %v5454_v23, 0  ;;  %v1729_v23 = vshrl.u32 %v17289_v34, 16 }
 0x39f   :  { %v17254_v62 = vpop.permute.xlu1 %3201  ;;  %v5452_v9 = vsel %vm5354_vm12, %v5323_v40, %v4356_v56  ;;  %v1707_v36 = vrot.slane %v1705_v46, 4  ;;  %v1710_v60 = vrot.slane %v1708_v8, 5  ;;  %v1732_v40 = vshll.u32 %v17289_v34, 16 }
 0x3a0   :  { %v5533_v45 = vsel %vm5483_vm14, %v5452_v9, 0  ;;  %3951 = vrot.lane.b32.xlu0 %v17095_v0, %s12050_s20  ;;  %v17293_v0 = vcombine.low %v2411_v42, %v2414_v5  ;;  %v1716_v7 = vrot.slane %v1714_v15, 5  ;;  %v1720_v25 = vrot.slane %v1718_v33, 4 }
 0x3a1   :  { %4093 = vrot.lane.b32.xlu1 %v17180_v48, %s12051_s28  ;;  %11415 = vmatprep.mubr.msk.bf16.mxu0 %vm5565_vm15, %v5533_v45  ;;  %v1742_v55 = vshrl.u32 %v17298_v52, 16  ;;  %v1738_v42 = vshll.u32 %v17298_v52, 16  ;;  %v1711_v9 = vor.u32 %v1710_v60, %v1707_v36  ;;  %v1724_v46 = vshll.u32 %v245_v35, 16 }
 0x3a2   :  { %11416 = vmatmul.mubr.msk.bf16.gmra.mrb[96].mxu0 %vm5565_vm15, %v5534_v20  ;;  %v17284_v63 = vpop.permute.xlu0 %3199  ;;  %v1721_v5 = vor.u32 %v1720_v25, %v1716_v7  ;;  %v2417_v8 = vrot.slane %v17259_v57, 5  ;;  %v1731_v33 = vrot.slane %v1729_v23, 4  ;;  %v1734_v15 = vrot.slane %v1732_v40, 5 }
 0x3a3   :  { %v3522_v2 = vpop.permute.xlu1 %3521  ;;  %v17318_v49 = vrot.slane %v1738_v42, 5  ;;  %v1744_v17 = vrot.slane %v1742_v55, 4  ;;  %v1712_v36 = vrot.slane %v1711_v9, 4  ;;  %v1726_v25 = vrot.slane %v1724_v46, 5 }
 0x3a4   :  { %4091 = vrot.lane.b32.xlu0 %v17140_v18, %s12051_s28  ;;  %v1722_v60 = vrot.slane %v1721_v5, 4  ;;  %v10733_v23 = vrot.slane %v17246_v22, 9  ;;  %v2419_v42 = vrot.slane %v2417_v8, 4  ;;  %v2420_v19 = vrot.slane %v245_v35, 5 }
 0x3a5   :  { %4233 = vrot.lane.b32.xlu1 %v17270_v39, %s12052_s14  ;;  %v1735_v55 = vor.u32 %v1734_v15, %v1731_v33  ;;  %v1745_v54 = vor.u32 %v1744_v17, %v17318_v49  ;;  %v17336_v10 = vcombine.low %v17246_v22, %v17259_v57  ;;  %v1717_v9 = vsel %vm12206_vm5, %v1712_v36, %v1716_v7 }
 0x3a6   :  { %v17309_v56 = vpop.permute.xlu0 %3519  ;;  %v1727_v35 = vsel %vm12206_vm5, %v1722_v60, %v1726_v25  ;;  %v2418_v17 = vsel %vm12174_vm3, %v10733_v23, %v2417_v8  ;;  %v4543_v5 = vsel %vm4387_vm6, %v16459_v26, %v17254_v62  ;;  %v2421_v22 = vsel %vm12174_vm3, %v2419_v42, %v2420_v19  ;;  %v11987_v42 = vld [vmem:[%s20458_s3 + $0x50] sm:$0xff] }
 0x3a7   :  { %v17302_v50 = vpop.permute.xlu1 %3661  ;;  %20729 = vst [vmem:[#allocation100_spill] sm:$0xff] %v17336_v10  ;;  %v17351_v57 = vrot.slane %v1735_v55, 4  ;;  %v17354_v7 = vrot.slane %v1745_v54, 4  ;;  %v17356_v15 = vrot.slane %v1748_v13, 5  ;;  %v17360_v8 = vcombine.low %v1717_v9, %v1727_v35  ;;  %v11988_v35 = vld [vmem:[%s20458_s3 + $0x40] sm:$0xff] }
 0x3a8   :  { %4231 = vrot.lane.b32.xlu0 %v17170_v11, %s12052_s14  ;;  %v4684_v26 = vsel %vm4580_vm7, %v4543_v5, %v3522_v2  ;;  %v17365_v19 = vcombine.low %v2418_v17, %v2421_v22  ;;  %v17369_v62 = vcombine.low %v17289_v34, %v17298_v52  ;;  %v10734_v60 = vrot.slane %v17289_v34, 9 }
 0x3a9   :  { %4373 = vrot.lane.b32.xlu1 %v17293_v0, %s12053_s24  ;;  %v1741_v13 = vsel %vm12206_vm5, %v17351_v57, %v17318_v49  ;;  %v4540_v25 = vsel %vm4387_vm6, %v16409_v53, %v17284_v63  ;;  %v1751_v34 = vsel %vm12206_vm5, %v17354_v7, %v17356_v15 }
 0x3aa   :  { %v3660_v20 = vpop.permute.xlu0 %3659  ;;  %20730 = vst [vmem:[#allocation101_spill] sm:$0xff] %v17369_v62  ;;  %v4682_v53 = vsel %vm4580_vm7, %v4540_v25, %v17309_v56  ;;  %v11989_v56 = vld [vmem:[%s20458_s3 + $0x58] sm:$0xff] }
 0x3ab   :  { %v3802_v45 = vpop.permute.xlu1 %3801  ;;  %v4811_v57 = vsel %vm4709_vm8, %v4682_v53, %v3660_v20 }
 0x3ac   :  { %4371 = vrot.lane.b32.xlu0 %v17176_v4, %s12053_s24 }
 0x3ad   :  { %3217 = vrot.lane.b32.xlu1 %v17270_v39, %s12048_s17 }
 0x3ae   :  { %v3800_v37 = vpop.permute.xlu0 %3799 }
 0x3af   :  { %v3942_v40 = vpop.permute.xlu1 %3941 }
 0x3b0   :  { %3215 = vrot.lane.b32.xlu0 %v17170_v11, %s12048_s17  ;;  %v20535_v11 = vrot.slane %v17298_v52, 5 }
 0x3b1   :  { %3537 = vrot.lane.b32.xlu1 %v17293_v0, %s12047_s27 }
 0x3b2   :  { %v3940_v33 = vpop.permute.xlu0 %3939  ;;  %v2426_v2 = vrot.slane %v20535_v11, 4 }
 0x3b3   :  { %v4082_v46 = vpop.permute.xlu1 %4081 }
 0x3b4   :  { %3535 = vrot.lane.b32.xlu0 %v17176_v4, %s12047_s27  ;;  %v2427_v4 = vrot.slane %v17325_v43, 5  ;;  %v4813_v43 = vsel %vm4709_vm8, %v4684_v26, %v17302_v50 }
 0x3b5   :  { %3677 = vrot.lane.b32.xlu1 %v17336_v10, %s12046_s18  ;;  %v11393_v54 = vpop.f32.mrb[72].mxu0  ;;  %v4942_v22 = vsel %vm4838_vm9, %v4813_v43, %v3802_v45  ;;  %v11990_v45 = vld [vmem:[%s20458_s3 + $0x48] sm:$0xff] }
 0x3b6   :  { %v6320_v23 = vadd.f32 %v16990_v6, %v11393_v54  ;;  %v6672_v55 = vsub.f32 %v11987_v42, %v11393_v54  ;;  %v6016_v9 = vpop.f32.mrb[73].mxu0  ;;  %v4080_v49 = vpop.permute.xlu0 %4079  ;;  %v5071_v26 = vsel %vm4967_vm10, %v4942_v22, %v3942_v40  ;;  %v4940_v54 = vsel %vm4838_vm9, %v4811_v57, %v3800_v37 }
 0x3b7   :  { %v4222_v36 = vpop.permute.xlu1 %4221  ;;  %v6318_v63 = vadd.f32 %v16990_v6, %v6016_v9  ;;  %v6670_v17 = vsub.f32 %v11988_v35, %v6016_v9  ;;  %v11394_v5 = vpop.f32.mrb[74].mxu0  ;;  %v5200_v22 = vsel %vm5096_vm11, %v5071_v26, %v4082_v46  ;;  %v5069_v57 = vsel %vm4967_vm10, %v4940_v54, %v3940_v33 }
 0x3b8   :  { %v6321_v50 = vadd.f32 %v16990_v6, %v11394_v5  ;;  %v6673_v7 = vsub.f32 %v11989_v56, %v11394_v5  ;;  %v6019_v15 = vpop.f32.mrb[75].mxu0  ;;  %3675 = vrot.lane.b32.xlu0 %v17180_v48, %s12046_s18  ;;  %v6448_v9 = vmax.f32 %v6320_v23, 0.0  ;;  %v17414_v43 = vmax.f32 %v6672_v55, 0.0 }
 0x3b9   :  { %3817 = vrot.lane.b32.xlu1 %v17360_v8, %s12049_s19  ;;  %v6319_v25 = vadd.f32 %v16990_v6, %v6019_v15  ;;  %v6671_v20 = vsub.f32 %v11990_v45, %v6019_v15  ;;  %v6446_v56 = vmax.f32 %v6318_v63, 0.0  ;;  %v17418_v11 = vmax.f32 %v6670_v17, 0.0  ;;  %v17435_v63 = vld [vmem:[%s20455_s0 + $0x330] sm:$0xf] }
 0x3ba   :  { %20731 = vst [vmem:[#allocation102_spill] sm:$0xff] %v17414_v43  ;;  %v6449_v53 = vmax.f32 %v6321_v50, 0.0  ;;  %v17416_v35 = vmax.f32 %v6673_v7, 0.0  ;;  %v4220_v5 = vpop.permute.xlu0 %4219  ;;  %v5329_v17 = vsel %vm5225_vm13, %v5200_v22, %v4222_v36  ;;  %v5198_v50 = vsel %vm5096_vm11, %v5069_v57, %v4080_v49 }
 0x3bb   :  { %v4362_v42 = vpop.permute.xlu1 %4361  ;;  %v6447_v40 = vmax.f32 %v6319_v25, 0.0  ;;  %v17420_v37 = vmax.f32 %v6671_v20, 0.0  ;;  %v5327_v26 = vsel %vm5225_vm13, %v5198_v50, %v4220_v5  ;;  %v20733_v36 = vrot.slane %v17298_v52, 5  ;;  %v251_v50 = vld [vmem:[%s20455_s0 + $0x338] sm:$0x1] }
 0x3bc   :  { %20732 = vst [vmem:[#allocation103_spill] sm:$0xff] %v17416_v35  ;;  %v17426_v23 = vpack.c.bf16 %v6449_v53, %v6448_v9  ;;  %3815 = vrot.lane.b32.xlu0 %v17270_v39, %s12049_s19  ;;  %v17448_v39 = vld [vmem:[%s20455_s0 + $0x334] sm:$0xf]  ;;  %v5458_v15 = vsel %vm5354_vm12, %v5329_v17, %v4362_v42  ;;  %v17459_v45 = vcombine.low %v1741_v13, %v1751_v34  ;;  %v1753_v42 = vshrl.u32 %v17435_v63, 16  ;;  %v17489_v34 = vld [vmem:[%s20455_s0 + $0x340] sm:$0xf] }
 0x3bd   :  { %3957 = vrot.lane.b32.xlu1 %v17365_v19, %s12050_s20  ;;  %v17439_v46 = vpack.c.bf16 %v6447_v40, %v6446_v56  ;;  %v2425_v49 = vsel %vm12174_vm3, %v10734_v60, %v20733_v36  ;;  %v2428_v20 = vsel %vm12174_vm3, %v2426_v2, %v2427_v4  ;;  %v1756_v52 = vshll.u32 %v17435_v63, 16 }
 0x3be   :  { %v4360_v54 = vpop.permute.xlu0 %4359  ;;  %v1766_v60 = vshrl.u32 %v17448_v39, 16  ;;  %v1762_v53 = vshll.u32 %v17448_v39, 16  ;;  %v5536_v5 = vsel %vm5483_vm14, %v5458_v15, 0  ;;  %v17484_v4 = vcombine.low %v2425_v49, %v2428_v20 }
 0x3bf   :  { %v17443_v7 = vpop.permute.xlu1 %3205  ;;  %v5456_v25 = vsel %vm5354_vm12, %v5327_v26, %v4360_v54  ;;  %v1755_v56 = vrot.slane %v1753_v42, 4  ;;  %v1758_v40 = vrot.slane %v1756_v52, 5  ;;  %v1790_v36 = vshrl.u32 %v17489_v34, 16 }
 0x3c0   :  { %v5535_v9 = vsel %vm5483_vm14, %v5456_v25, 0  ;;  %3955 = vrot.lane.b32.xlu0 %v17293_v0, %s12050_s20  ;;  %v17480_v0 = vld [vmem:[%s20455_s0 + $0x33c] sm:$0xf]  ;;  %v1764_v22 = vrot.slane %v1762_v53, 5  ;;  %v1768_v57 = vrot.slane %v1766_v60, 4  ;;  %v1786_v49 = vshll.u32 %v17489_v34, 16 }
 0x3c1   :  { %4097 = vrot.lane.b32.xlu1 %v17369_v62, %s12051_s28  ;;  %11419 = vmatprep.mubr.msk.bf16.mxu0 %vm5565_vm15, %v5535_v9  ;;  %v1777_v15 = vshrl.u32 %v17480_v0, 16  ;;  %v1780_v26 = vshll.u32 %v17480_v0, 16  ;;  %v20537_v25 = vmov 0   ;;  %v1759_v20 = vor.u32 %v1758_v40, %v1755_v56 }
 0x3c2   :  { %11420 = vmatmul.mubr.msk.bf16.gmra.mrb[100].mxu0 %vm5565_vm15, %v5536_v5  ;;  %v17475_v2 = vpop.permute.xlu0 %3203  ;;  %9251 = vmatprep.subr.bf16.mxu1 %v20537_v25  ;;  %v1769_v42 = vor.u32 %v1768_v57, %v1764_v22  ;;  %v1772_v9 = vshll.u32 %v251_v50, 16  ;;  %v2431_v60 = vrot.slane %v17448_v39, 5  ;;  %v17510_v33 = vrot.slane %v1786_v49, 5  ;;  %v17517_v25 = vld [vmem:[%s20455_s0 + $0x344] sm:$0x1] }
 0x3c3   :  { %v17472_v13 = vpop.permute.xlu1 %3525  ;;  %v1779_v53 = vrot.slane %v1777_v15, 4  ;;  %v1782_v5 = vrot.slane %v1780_v26, 5  ;;  %v1760_v56 = vrot.slane %v1759_v20, 4  ;;  %v10735_v15 = vrot.slane %v17435_v63, 9 }
 0x3c4   :  { %4095 = vrot.lane.b32.xlu0 %v17336_v10, %s12051_s28  ;;  %v1792_v10 = vrot.slane %v1790_v36, 4  ;;  %v1770_v40 = vrot.slane %v1769_v42, 4  ;;  %v1774_v57 = vrot.slane %v1772_v9, 5  ;;  %v2433_v49 = vrot.slane %v2431_v60, 4 }
 0x3c5   :  { %4237 = vrot.lane.b32.xlu1 %v17459_v45, %s12052_s14  ;;  %v2434_v47 = vrot.slane %v251_v50, 5  ;;  %v1783_v36 = vor.u32 %v1782_v5, %v1779_v53  ;;  %v1796_v43 = vshll.u32 %v17517_v25, 16  ;;  %v17528_v35 = vcombine.low %v17435_v63, %v17448_v39 }
 0x3c6   :  { %v17500_v54 = vpop.permute.xlu0 %3523  ;;  %v1793_v48 = vor.u32 %v1792_v10, %v17510_v33  ;;  %v1765_v20 = vsel %vm12206_vm5, %v1760_v56, %v1764_v22  ;;  %v1775_v50 = vsel %vm12206_vm5, %v1770_v40, %v1774_v57  ;;  %v2432_v10 = vsel %vm12174_vm3, %v10735_v15, %v2431_v60 }
 0x3c7   :  { %v17493_v17 = vpop.permute.xlu1 %3665  ;;  %20734 = vst [vmem:[#allocation104_spill] sm:$0xff] %v17528_v35  ;;  %v4549_v42 = vsel %vm4387_vm6, %v16632_v30, %v17443_v7  ;;  %v2435_v63 = vsel %vm12174_vm3, %v2433_v49, %v2434_v47  ;;  %v17543_v39 = vrot.slane %v1783_v36, 4  ;;  %v17548_v5 = vrot.slane %v1796_v43, 5  ;;  %v11991_v49 = vld [vmem:[%s20458_s3 + $0x70] sm:$0xff] }
 0x3c8   :  { %4235 = vrot.lane.b32.xlu0 %v17360_v8, %s12052_s14  ;;  %v17546_v22 = vrot.slane %v1793_v48, 4  ;;  %v17552_v60 = vcombine.low %v1765_v20, %v1775_v50  ;;  %v4688_v30 = vsel %vm4580_vm7, %v4549_v42, %v17472_v13  ;;  %v17558_v47 = vcombine.low %v2432_v10, %v2435_v63  ;;  %v11992_v50 = vld [vmem:[%s20458_s3 + $0x60] sm:$0xff] }
 0x3c9   :  { %4377 = vrot.lane.b32.xlu1 %v17484_v4, %s12053_s24  ;;  %v17562_v7 = vcombine.low %v17480_v0, %v17489_v34  ;;  %v1789_v56 = vsel %vm12206_vm5, %v17543_v39, %v17510_v33  ;;  %v10736_v40 = vrot.slane %v17480_v0, 9  ;;  %v4546_v57 = vsel %vm4387_vm6, %v16591_v3, %v17475_v2 }
 0x3ca   :  { %v3664_v55 = vpop.permute.xlu0 %3663  ;;  %v1799_v0 = vsel %vm12206_vm5, %v17546_v22, %v17548_v5  ;;  %v4686_v3 = vsel %vm4580_vm7, %v4546_v57, %v17500_v54  ;;  %v11993_v54 = vld [vmem:[%s20458_s3 + $0x78] sm:$0xff] }
 0x3cb   :  { %v3806_v52 = vpop.permute.xlu1 %3805  ;;  %v4815_v39 = vsel %vm4709_vm8, %v4686_v3, %v3664_v55  ;;  %v11994_v55 = vld [vmem:[%s20458_s3 + $0x68] sm:$0xff] }
 0x3cc   :  { %4375 = vrot.lane.b32.xlu0 %v17365_v19, %s12053_s24 }
 0x3cd   :  { %3221 = vrot.lane.b32.xlu1 %v17459_v45, %s12048_s17 }
 0x3ce   :  { %v3804_v18 = vpop.permute.xlu0 %3803 }
 0x3cf   :  { %v3946_v26 = vpop.permute.xlu1 %3945 }
 0x3d0   :  { %3219 = vrot.lane.b32.xlu0 %v17360_v8, %s12048_s17  ;;  %v20544_v8 = vrot.slane %v17489_v34, 5 }
 0x3d1   :  { %3541 = vrot.lane.b32.xlu1 %v17484_v4, %s12047_s27 }
 0x3d2   :  { %v3944_v53 = vpop.permute.xlu0 %3943  ;;  %v2440_v13 = vrot.slane %v20544_v8, 4 }
 0x3d3   :  { %v4086_v9 = vpop.permute.xlu1 %4085 }
 0x3d4   :  { %3539 = vrot.lane.b32.xlu0 %v17365_v19, %s12047_s27  ;;  %v2441_v19 = vrot.slane %v17517_v25, 5  ;;  %v4817_v25 = vsel %vm4709_vm8, %v4688_v30, %v17493_v17 }
 0x3d5   :  { %3681 = vrot.lane.b32.xlu1 %v17528_v35, %s12046_s18  ;;  %v11397_v48 = vpop.f32.mrb[76].mxu0  ;;  %v4946_v63 = vsel %vm4838_vm9, %v4817_v25, %v3806_v52 }
 0x3d6   :  { %v6324_v15 = vadd.f32 %v16990_v6, %v11397_v48  ;;  %v6676_v36 = vsub.f32 %v11991_v49, %v11397_v48  ;;  %v6032_v20 = vpop.f32.mrb[77].mxu0  ;;  %v4084_v33 = vpop.permute.xlu0 %4083  ;;  %v5075_v30 = vsel %vm4967_vm10, %v4946_v63, %v3946_v26  ;;  %v4944_v48 = vsel %vm4838_vm9, %v4815_v39, %v3804_v18 }
 0x3d7   :  { %v4226_v43 = vpop.permute.xlu1 %4225  ;;  %v6322_v2 = vadd.f32 %v16990_v6, %v6032_v20  ;;  %v6674_v10 = vsub.f32 %v11992_v50, %v6032_v20  ;;  %v11398_v42 = vpop.f32.mrb[78].mxu0  ;;  %v5073_v63 = vsel %vm4967_vm10, %v4944_v48, %v3944_v53  ;;  %v17709_v53 = vld [vmem:[%s20455_s0 + $0x35c] sm:$0x1] }
 0x3d8   :  { %v6325_v17 = vadd.f32 %v16990_v6, %v11398_v42  ;;  %v6677_v22 = vsub.f32 %v11993_v54, %v11398_v42  ;;  %v6035_v5 = vpop.f32.mrb[79].mxu0  ;;  %3679 = vrot.lane.b32.xlu0 %v17369_v62, %s12046_s18  ;;  %v6452_v20 = vmax.f32 %v6324_v15, 0.0  ;;  %v17607_v25 = vmax.f32 %v6676_v36, 0.0 }
 0x3d9   :  { %3821 = vrot.lane.b32.xlu1 %v17552_v60, %s12049_s19  ;;  %v6323_v57 = vadd.f32 %v16990_v6, %v6035_v5  ;;  %v6675_v52 = vsub.f32 %v11994_v55, %v6035_v5  ;;  %v6450_v54 = vmax.f32 %v6322_v2, 0.0  ;;  %v17611_v8 = vmax.f32 %v6674_v10, 0.0  ;;  %v17628_v2 = vld [vmem:[%s20455_s0 + $0x348] sm:$0xf] }
 0x3da   :  { %20735 = vst [vmem:[#allocation105_spill] sm:$0xff] %v17607_v25  ;;  %v6453_v3 = vmax.f32 %v6325_v17, 0.0  ;;  %v17609_v50 = vmax.f32 %v6677_v22, 0.0  ;;  %v4224_v42 = vpop.permute.xlu0 %4223  ;;  %v5204_v6 = vsel %vm5096_vm11, %v5075_v30, %v4086_v9  ;;  %v5202_v39 = vsel %vm5096_vm11, %v5073_v63, %v4084_v33 }
 0x3db   :  { %v4366_v49 = vpop.permute.xlu1 %4365  ;;  %v6451_v26 = vmax.f32 %v6323_v57, 0.0  ;;  %v17613_v18 = vmax.f32 %v6675_v52, 0.0  ;;  %v5333_v10 = vsel %vm5225_vm13, %v5204_v6, %v4226_v43  ;;  %v5331_v5 = vsel %vm5225_vm13, %v5202_v39, %v4224_v42 }
 0x3dc   :  { %20736 = vst [vmem:[#allocation106_spill] sm:$0xff] %v17609_v50  ;;  %v17619_v15 = vpack.c.bf16 %v6453_v3, %v6452_v20  ;;  %3819 = vrot.lane.b32.xlu0 %v17459_v45, %s12049_s19  ;;  %v17641_v45 = vld [vmem:[%s20455_s0 + $0x34c] sm:$0xf]  ;;  %v5462_v22 = vsel %vm5354_vm12, %v5333_v10, %v4366_v49  ;;  %v20738_v43 = vrot.slane %v17489_v34, 5  ;;  %v17652_v57 = vcombine.low %v1789_v56, %v1799_v0  ;;  %v17680_v0 = vld [vmem:[%s20455_s0 + $0x358] sm:$0xf] }
 0x3dd   :  { %3961 = vrot.lane.b32.xlu1 %v17558_v47, %s12050_s20  ;;  %v17632_v9 = vpack.c.bf16 %v6451_v26, %v6450_v54  ;;  %v2442_v55 = vsel %vm12174_vm3, %v2440_v13, %v2441_v19  ;;  %v2516_v52 = vshrl.u32 %v17628_v2, 16  ;;  %v2519_v34 = vshll.u32 %v17628_v2, 16  ;;  %v17671_v19 = vld [vmem:[%s20455_s0 + $0x354] sm:$0xf]  ;;  %v257_v10 = vld [vmem:[%s20455_s0 + $0x350] sm:$0x1] }
 0x3de   :  { %v4364_v30 = vpop.permute.xlu0 %4363  ;;  %v2439_v33 = vsel %vm12174_vm3, %v10736_v40, %v20738_v43  ;;  %v2529_v40 = vshrl.u32 %v17641_v45, 16  ;;  %v2525_v20 = vshll.u32 %v17641_v45, 16  ;;  %v5538_v3 = vsel %vm5483_vm14, %v5462_v22, 0 }
 0x3df   :  { %20737 = vst [vmem:[#allocation107_spill] sm:$0xff] %v17632_v9  ;;  %v17636_v17 = vpop.permute.xlu1 %3209  ;;  %v5460_v48 = vsel %vm5354_vm12, %v5331_v5, %v4364_v30  ;;  %v2518_v42 = vrot.slane %v2516_v52, 4  ;;  %v2521_v54 = vrot.slane %v2519_v34, 5  ;;  %v2652_v39 = vshrl.u32 %v17671_v19, 16 }
 0x3e0   :  { %v5537_v49 = vsel %vm5483_vm14, %v5460_v48, 0  ;;  %3959 = vrot.lane.b32.xlu0 %v17484_v4, %s12050_s20  ;;  %v17675_v4 = vcombine.low %v2439_v33, %v2442_v55  ;;  %v2527_v26 = vrot.slane %v2525_v20, 5  ;;  %v2531_v6 = vrot.slane %v2529_v40, 4 }
 0x3e1   :  { %4101 = vrot.lane.b32.xlu1 %v17562_v7, %s12051_s28  ;;  %11423 = vmatprep.mubr.msk.bf16.mxu0 %vm5565_vm15, %v5537_v49  ;;  %v2655_v22 = vshll.u32 %v17671_v19, 16  ;;  %v2665_v30 = vshrl.u32 %v17680_v0, 16  ;;  %v2661_v43 = vshll.u32 %v17680_v0, 16  ;;  %v2522_v33 = vor.u32 %v2521_v54, %v2518_v42 }
 0x3e2   :  { %11424 = vmatmul.mubr.msk.bf16.gmra.mrb[104].mxu0 %vm5565_vm15, %v5538_v3  ;;  %v17666_v13 = vpop.permute.xlu0 %3207  ;;  %v2532_v48 = vor.u32 %v2531_v6, %v2527_v26  ;;  %v2535_v55 = vshll.u32 %v257_v10, 16  ;;  %v2574_v49 = vrot.slane %v17641_v45, 5  ;;  %v2654_v34 = vrot.slane %v2652_v39, 4 }
 0x3e3   :  { %v3530_v56 = vpop.permute.xlu1 %3529  ;;  %v2657_v40 = vrot.slane %v2655_v22, 5  ;;  %v17702_v3 = vrot.slane %v2661_v43, 5  ;;  %v2667_v36 = vrot.slane %v2665_v30, 4  ;;  %v2523_v42 = vrot.slane %v2522_v33, 4 }
 0x3e4   :  { %4099 = vrot.lane.b32.xlu0 %v17528_v35, %s12051_s28  ;;  %v2533_v54 = vrot.slane %v2532_v48, 4  ;;  %v2537_v6 = vrot.slane %v2535_v55, 5  ;;  %v10740_v39 = vrot.slane %v17628_v2, 9  ;;  %v2576_v43 = vrot.slane %v2574_v49, 4 }
 0x3e5   :  { %4241 = vrot.lane.b32.xlu1 %v17652_v57, %s12052_s14  ;;  %v2577_v35 = vrot.slane %v257_v10, 5  ;;  %v2658_v30 = vor.u32 %v2657_v40, %v2654_v34  ;;  %v2668_v25 = vor.u32 %v2667_v36, %v17702_v3  ;;  %v2671_v50 = vshll.u32 %v17709_v53, 16 }
 0x3e6   :  { %v17691_v5 = vpop.permute.xlu0 %3527  ;;  %v17720_v9 = vcombine.low %v17628_v2, %v17641_v45  ;;  %v2528_v33 = vsel %vm12206_vm5, %v2523_v42, %v2527_v26  ;;  %v2538_v10 = vsel %vm12206_vm5, %v2533_v54, %v2537_v6  ;;  %v2575_v36 = vsel %vm12174_vm3, %v10740_v39, %v2574_v49  ;;  %v17769_v39 = vld [vmem:[%s20457_s2] ss:$0 sm:$0xff] }
 0x3e7   :  { %v17684_v63 = vpop.permute.xlu1 %3669  ;;  %v4555_v48 = vsel %vm4387_vm6, %v16798_v58, %v17636_v17  ;;  %v2578_v2 = vsel %vm12174_vm3, %v2576_v43, %v2577_v35  ;;  %v17735_v45 = vrot.slane %v2658_v30, 4  ;;  %v17738_v26 = vrot.slane %v2668_v25, 4 }
 0x3e8   :  { %4239 = vrot.lane.b32.xlu0 %v17552_v60, %s12052_s14  ;;  %v17740_v40 = vrot.slane %v2671_v50, 5  ;;  %v17744_v49 = vcombine.low %v2528_v33, %v2538_v10  ;;  %v4692_v58 = vsel %vm4580_vm7, %v4555_v48, %v3530_v56  ;;  %v17749_v35 = vcombine.low %v2575_v36, %v2578_v2  ;;  %v11997_v48 = vld [vmem:[%s20458_s3 + $0x80] sm:$0xff] }
 0x3e9   :  { %4381 = vrot.lane.b32.xlu1 %v17675_v4, %s12053_s24  ;;  %v10952_v17 = vcombine.low %v17671_v19, %v17680_v0  ;;  %v2664_v50 = vsel %vm12206_vm5, %v17735_v45, %v17702_v3  ;;  %v4552_v6 = vsel %vm4387_vm6, %v16757_v14, %v17666_v13  ;;  %v11996_v3 = vld [vmem:[%s20458_s3 + $0x90] sm:$0xff]  ;;  %v4821_v14 = vsel %vm4709_vm8, %v4692_v58, %v17684_v63 }
 0x3ea   :  { %v3668_v20 = vpop.permute.xlu0 %3667  ;;  %v4690_v13 = vsel %vm4580_vm7, %v4552_v6, %v17691_v5  ;;  %v11998_v5 = vld [vmem:[%s20458_s3 + $0x98] sm:$0xff] }
 0x3eb   :  { %v17699_v52 = vpop.permute.xlu1 %3809 }
 0x3ec   :  { %4379 = vrot.lane.b32.xlu0 %v17558_v47, %s12053_s24  ;;  %v4950_v51 = vsel %vm4838_vm9, %v4821_v14, %v17699_v52  ;;  %v11999_v52 = vld [vmem:[%s20458_s3 + $0x88] sm:$0xff] }
 0x3ed   :  { %3225 = vrot.lane.b32.xlu1 %v17652_v57, %s12048_s17 }
 0x3ee   :  { %v3808_v62 = vpop.permute.xlu0 %3807 }
 0x3ef   :  { %v3950_v22 = vpop.permute.xlu1 %3949 }
 0x3f0   :  { %3223 = vrot.lane.b32.xlu0 %v17552_v60, %s12048_s17  ;;  %v20549_v60 = vrot.slane %v17680_v0, 5  ;;  %s12055_s17 = smov 32  }
 0x3f1   :  { %3545 = vrot.lane.b32.xlu1 %v17675_v4, %s12047_s27 }
 0x3f2   :  { %v3948_v34 = vpop.permute.xlu0 %3947  ;;  %v17760_v56 = vrot.slane %v20549_v60, 4 }
 0x3f3   :  { %v4090_v55 = vpop.permute.xlu1 %4089 }
 0x3f4   :  { %3543 = vrot.lane.b32.xlu0 %v17558_v47, %s12047_s27  ;;  %v2713_v47 = vrot.slane %v17709_v53, 5  ;;  %v2674_v53 = vsel %vm12206_vm5, %v17738_v26, %v17740_v40  ;;  %v4819_v26 = vsel %vm4709_vm8, %v4690_v13, %v3668_v20  ;;  %vm8184_vm5 = vcmask 1046528  }
 0x3f5   :  { %3685 = vrot.lane.b32.xlu1 %v17720_v9, %s12046_s18  ;;  %v11401_v42 = vpop.f32.mrb[80].mxu0  ;;  %v4948_v6 = vsel %vm4838_vm9, %v4819_v26, %v3808_v62 }
 0x3f6   :  { %v6328_v43 = vadd.f32 %v17769_v39, %v11401_v42  ;;  %v6680_v30 = vsub.f32 %v11996_v3, %v11401_v42  ;;  %v6048_v33 = vpop.f32.mrb[81].mxu0  ;;  %v4088_v10 = vpop.permute.xlu0 %4087  ;;  %v5079_v42 = vsel %vm4967_vm10, %v4950_v51, %v3950_v22  ;;  %v5077_v26 = vsel %vm4967_vm10, %v4948_v6, %v3948_v34  ;;  %v11869_v34 = vld [vmem:[%s20459_s4 + $0x100] sm:$0xff]  }
 0x3f7   :  { %v4230_v25 = vpop.permute.xlu1 %4229  ;;  %v6326_v36 = vadd.f32 %v17769_v39, %v6048_v33  ;;  %v6678_v2 = vsub.f32 %v11997_v48, %v6048_v33  ;;  %v11402_v45 = vpop.f32.mrb[82].mxu0  ;;  %v5208_v51 = vsel %vm5096_vm11, %v5079_v42, %v4090_v55  ;;  %11447 = vmatprep.subr.bf16.mxu0 %v11869_v34 }
 0x3f8   :  { %v6329_v63 = vadd.f32 %v17769_v39, %v11402_v45  ;;  %v6681_v40 = vsub.f32 %v11998_v5, %v11402_v45  ;;  %v6051_v58 = vpop.f32.mrb[83].mxu0  ;;  %3683 = vrot.lane.b32.xlu0 %v17562_v7, %s12046_s18  ;;  %v6456_v14 = vmax.f32 %v6328_v43, 0.0  ;;  %v17804_v13 = vmax.f32 %v6680_v30, 0.0  ;;  %11448 = vmatpush3.bf16.msra.mxu0 %v11869_v34  ;;  %v11874_v34 = vld [vmem:[%s20459_s4 + $0x128] sm:$0xff]  }
 0x3f9   :  { %3825 = vrot.lane.b32.xlu1 %v17744_v49, %s12049_s19  ;;  %v6327_v3 = vadd.f32 %v17769_v39, %v6051_v58  ;;  %v6679_v20 = vsub.f32 %v11999_v52, %v6051_v58  ;;  %v6454_v54 = vmax.f32 %v6326_v36, 0.0  ;;  %v17808_v60 = vmax.f32 %v6678_v2, 0.0 }
 0x3fa   :  { %v6457_v48 = vmax.f32 %v6329_v63, 0.0  ;;  %v17806_v45 = vmax.f32 %v6681_v40, 0.0  ;;  %v4228_v5 = vpop.permute.xlu0 %4227  ;;  %v5337_v36 = vsel %vm5225_vm13, %v5208_v51, %v4230_v25  ;;  %v5206_v2 = vsel %vm5096_vm11, %v5077_v26, %v4088_v10  ;;  %v20743_v51 = vld [vmem:[#allocation2_spill] sm:$0xff] }
 0x3fb   :  { %v4370_v33 = vpop.permute.xlu1 %4369  ;;  %v6455_v22 = vmax.f32 %v6327_v3, 0.0  ;;  %v17810_v62 = vmax.f32 %v6679_v20, 0.0  ;;  %v5335_v42 = vsel %vm5225_vm13, %v5206_v2, %v4228_v5  ;;  %v10956_v25 = vcombine.low %v2664_v50, %v2674_v53 }
 0x3fc   :  { %v17816_v43 = vpack.c.bf16 %v6457_v48, %v6456_v14  ;;  %v6895_v30 = vpack.c.bf16 %v17806_v45, %v17804_v13  ;;  %3823 = vrot.lane.b32.xlu0 %v17652_v57, %s12049_s19  ;;  %v5466_v58 = vsel %vm5354_vm12, %v5337_v36, %v4370_v33  ;;  %v20739_v10 = vrot.slane %v17680_v0, 5  ;;  %v11872_v33 = vld [vmem:[%s20459_s4 + $0x118] sm:$0xff]   ;;  %s12058_s19 = smov 64  }
 0x3fd   :  { %3965 = vrot.lane.b32.xlu1 %v17749_v35, %s12050_s20  ;;  %v17824_v63 = vpack.c.bf16 %v6455_v22, %v6454_v54  ;;  %v6894_v40 = vpack.c.bf16 %v17810_v62, %v17808_v60  ;;  %v20740_v3 = vrot.slane %v17671_v19, 9  ;;  %v2714_v20 = vsel %vm12174_vm3, %v17760_v56, %v2713_v47  ;;  %v20742_v22 = vld [vmem:[#allocation3_spill] sm:$0xff]  ;;  %v11880_v13 = vld [vmem:[%s20459_s4 + $0x18] sm:$0xff]  }
 0x3fe   :  { %v4368_v6 = vpop.permute.xlu0 %4367  ;;  %v20744_v26 = vpack.c.bf16 %v20742_v22, %v20743_v51 }
 0x3ff   :  { %v3214_v55 = vpop.permute.xlu1 %3213  ;;  %v5464_v57 = vsel %vm5354_vm12, %v5335_v42, %v4368_v6  ;;  %v2711_v52 = vsel %vm12174_vm3, %v20740_v3, %v20739_v10  ;;  %vm7689_vm3 = vsmask.f32 256 }
 0x400   :  { %v5539_v54 = vsel %vm5483_vm14, %v5464_v57, 0  ;;  %3963 = vrot.lane.b32.xlu0 %v17675_v4, %s12050_s20  ;;  %v11870_v4 = vld [vmem:[%s20459_s4 + $0x108] sm:$0xff]   ;;  %v10960_v0 = vcombine.low %v2711_v52, %v2714_v20  ;;  %v11875_v57 = vld [vmem:[%s20459_s4 + $0x130] sm:$0xff]   ;;  %vm18266_vm4 = vmand %vm7688_vm2, %vm7689_vm3 }
 0x401   :  { %4105 = vrot.lane.b32.xlu1 %v10952_v17, %s12051_s28  ;;  %v5540_v17 = vsel %vm5483_vm14, %v5466_v58, 0  ;;  %11427 = vmatprep.mubr.msk.bf16.mxu0 %vm5565_vm15, %v5539_v54 }
 0x402   :  { %11428 = vmatmul.mubr.msk.bf16.gmra.mrb[108].mxu0 %vm5565_vm15, %v5540_v17  ;;  %v3212_v19 = vpop.permute.xlu0 %3211  ;;  %11449 = vmatprep.subr.bf16.mxu0 %v11870_v4  ;;  %v12001_v17 = vld [vmem:[%s20458_s3 + $0xa0] sm:$0xff] }
 0x403   :  { %v3534_v50 = vpop.permute.xlu1 %3533  ;;  %11450 = vmatpush3.bf16.msra.mxu0 %v11870_v4 }
 0x404   :  { %4103 = vrot.lane.b32.xlu0 %v17720_v9, %s12051_s28  ;;  %11451 = vmatprep.subr.bf16.mxu0 %v11871_v16  ;;  %v20741_v9 = vpack.c.bf16 %v17031_v44, %v17029_v29  ;;  %v4561_v29 = vsel %vm4387_vm6, %v16974_v21, %v3214_v55  ;;  %v20745_v44 = vld [vmem:[#allocation6_spill] sm:$0xff]  ;;  %v4558_v21 = vsel %vm4387_vm6, %v16941_v32, %v3212_v19 }
 0x405   :  { %4245 = vrot.lane.b32.xlu1 %v10956_v25, %s12052_s14  ;;  %v4696_v42 = vsel %vm4580_vm7, %v4561_v29, %v3534_v50  ;;  %v20748_v19 = vpack.c.bf16 %v17231_v38, %v17229_v24 }
 0x406   :  { %v3532_v47 = vpop.permute.xlu0 %3531 }
 0x407   :  { %v3674_v56 = vpop.permute.xlu1 %3673  ;;  %11452 = vmatpush3.bf16.msra.mxu0 %v11871_v16  ;;  %v4694_v54 = vsel %vm4580_vm7, %v4558_v21, %v3532_v47 }
 0x408   :  { %4243 = vrot.lane.b32.xlu0 %v17744_v49, %s12052_s14  ;;  %11453 = vmatprep.subr.bf16.mxu0 %v11872_v33  ;;  %v11873_v49 = vld [vmem:[%s20459_s4 + $0x120] sm:$0xff]   ;;  %v4825_v25 = vsel %vm4709_vm8, %v4696_v42, %v3674_v56  ;;  %v12002_v56 = vld [vmem:[%s20458_s3 + $0xb8] sm:$0xff]  ;;  %v20751_v42 = vld [vmem:[#allocation8_spill] sm:$0xff] }
 0x409   :  { %4385 = vrot.lane.b32.xlu1 %v10960_v0, %s12053_s24 }
 0x40a   :  { %v3672_v14 = vpop.permute.xlu0 %3671 }
 0x40b   :  { %v3814_v53 = vpop.permute.xlu1 %3813  ;;  %11454 = vmatpush3.bf16.msra.mxu0 %v11872_v33  ;;  %v4823_v0 = vsel %vm4709_vm8, %v4694_v54, %v3672_v14  ;;  %v20749_v33 = vpack.c.bf16 %v17027_v1, %v17025_v31  ;;  %v12003_v14 = vld [vmem:[%s20458_s3 + $0xa8] sm:$0xff] }
 0x40c   :  { %4383 = vrot.lane.b32.xlu0 %v17749_v35, %s12053_s24  ;;  %11455 = vmatprep.subr.bf16.mxu0 %v11873_v49  ;;  %v20746_v35 = vld [vmem:[#allocation4_spill] sm:$0xff]  ;;  %v4954_v32 = vsel %vm4838_vm9, %v4825_v25, %v3814_v53 }
 0x40d   :  { %7046 = vrot.lane.b32.xlu1 %v20741_v9, %s12055_s17  ;;  %v20747_v36 = vpack.c.bf16 %v20745_v44, %v20746_v35 }
 0x40e   :  { %v3812_v5 = vpop.permute.xlu0 %3811 }
 0x40f   :  { %v3954_v48 = vpop.permute.xlu1 %3953  ;;  %11456 = vmatpush3.bf16.msra.mxu0 %v11873_v49  ;;  %v4952_v1 = vsel %vm4838_vm9, %v4823_v0, %v3812_v5 }
 0x410   :  { %6950 = vrot.lane.b32.xlu0 %v20747_v36, %s12056_s25  ;;  %11457 = vmatprep.subr.bf16.mxu0 %v11874_v34  ;;  %v5083_v24 = vsel %vm4967_vm10, %v4954_v32, %v3954_v48 }
 0x411   :  { %6952 = vrot.lane.b32.xlu1 %v20744_v26, %s12056_s25 }
 0x412   :  { %v3952_v58 = vpop.permute.xlu0 %3951 }
 0x413   :  { %v4094_v2 = vpop.permute.xlu1 %4093  ;;  %11458 = vmatpush3.bf16.msra.mxu0 %v11874_v34  ;;  %v20750_v34 = vld [vmem:[#allocation9_spill] sm:$0xff]  ;;  %v5081_v25 = vsel %vm4967_vm10, %v4952_v1, %v3952_v58 }
 0x414   :  { %7142 = vrot.lane.b32.xlu0 %v17050_v41, %s12057_s29  ;;  %v12000_v41 = vld [vmem:[%s20458_s3 + $0xb0] sm:$0xff]  ;;  %11459 = vmatprep.subr.bf16.mxu0 %v11875_v57  ;;  %v20752_v21 = vpack.c.bf16 %v20750_v34, %v20751_v42  ;;  %v20769_v34 = vld [vmem:[#allocation21_spill] sm:$0xff] }
 0x415   :  { %7144 = vrot.lane.b32.xlu1 %v17037_v27, %s12057_s29  ;;  %v11405_v55 = vpop.f32.mrb[84].mxu0 }
 0x416   :  { %v6332_v27 = vadd.f32 %v17769_v39, %v11405_v55  ;;  %v6684_v10 = vsub.f32 %v12000_v41, %v11405_v55  ;;  %v6064_v3 = vpop.f32.mrb[85].mxu0  ;;  %v4092_v52 = vpop.permute.xlu0 %4091  ;;  %v11876_v55 = vld [vmem:[%s20459_s4 + $0x138] sm:$0xff]   ;;  %v20754_v41 = vld [vmem:[#allocation10_spill] sm:$0xff] }
 0x417   :  { %v4234_v6 = vpop.permute.xlu1 %4233  ;;  %v6330_v20 = vadd.f32 %v17769_v39, %v6064_v3  ;;  %v6682_v50 = vsub.f32 %v12001_v17, %v6064_v3  ;;  %v11406_v4 = vpop.f32.mrb[86].mxu0  ;;  %11460 = vmatpush3.bf16.msra.mxu0 %v11875_v57  ;;  %v5212_v57 = vsel %vm5096_vm11, %v5083_v24, %v4094_v2  ;;  %v5210_v32 = vsel %vm5096_vm11, %v5081_v25, %v4092_v52 }
 0x418   :  { %v6333_v16 = vadd.f32 %v17769_v39, %v11406_v4  ;;  %v6685_v47 = vsub.f32 %v12002_v56, %v11406_v4  ;;  %v6067_v53 = vpop.f32.mrb[87].mxu0  ;;  %7048 = vrot.lane.b32.xlu0 %v20749_v33, %s12055_s17  ;;  %v6460_v38 = vmax.f32 %v6332_v27, 0.0  ;;  %v17926_v51 = vmax.f32 %v6684_v10, 0.0  ;;  %v20753_v27 = vld [vmem:[#allocation12_spill] sm:$0xff]  ;;  %11461 = vmatprep.subr.bf16.mxu0 %v11876_v55  ;;  %v20759_v33 = vld [vmem:[#allocation14_spill] sm:$0xff] }
 0x419   :  { %7050 = vrot.lane.b32.xlu1 %v20748_v19, %s12055_s17  ;;  %v6331_v9 = vadd.f32 %v17769_v39, %v6067_v53  ;;  %v6683_v49 = vsub.f32 %v12003_v14, %v6067_v53  ;;  %v6458_v26 = vmax.f32 %v6330_v20, 0.0  ;;  %v17931_v35 = vmax.f32 %v6682_v50, 0.0  ;;  %v20758_v53 = vld [vmem:[#allocation15_spill] sm:$0xff] }
 0x41a   :  { %v6461_v29 = vmax.f32 %v6333_v16, 0.0  ;;  %v17928_v44 = vmax.f32 %v6685_v47, 0.0  ;;  %v4232_v31 = vpop.permute.xlu0 %4231  ;;  %v20755_v10 = vpack.c.bf16 %v20753_v27, %v20754_v41  ;;  %v5341_v3 = vsel %vm5225_vm13, %v5212_v57, %v4234_v6  ;;  %v20775_v27 = vld [vmem:[#allocation98_spill] sm:$0xff] }
 0x41b   :  { %v4374_v22 = vpop.permute.xlu1 %4373  ;;  %v6459_v48 = vmax.f32 %v6331_v9, 0.0  ;;  %v17933_v36 = vmax.f32 %v6683_v49, 0.0  ;;  %v5339_v50 = vsel %vm5225_vm13, %v5210_v32, %v4232_v31  ;;  %11462 = vmatpush3.bf16.msra.mxu0 %v11876_v55  ;;  %v20756_v56 = vpack.c.bf16 %v17420_v37, %v17418_v11  ;;  %v20762_v9 = vld [vmem:[#allocation16_spill] sm:$0xff]  ;;  %v20768_v31 = vld [vmem:[#allocation99_spill] sm:$0xff] }
 0x41c   :  { %v17944_v54 = vpack.c.bf16 %v6461_v29, %v6460_v38  ;;  %6954 = vrot.lane.b32.xlu0 %v20755_v10, %s12056_s25  ;;  %v5470_v17 = vsel %vm5354_vm12, %v5341_v3, %v4374_v22  ;;  %v20760_v24 = vpack.c.bf16 %v20758_v53, %v20759_v33  ;;  %v20761_v38 = vld [vmem:[#allocation18_spill] sm:$0xff]  ;;  %v20764_v37 = vpack.c.bf16 %v17613_v18, %v17611_v8  ;;  %v20765_v22 = vld [vmem:[#allocation103_spill] sm:$0xff]  ;;  %v20772_v8 = vld [vmem:[#allocation24_spill] sm:$0xff] }
 0x41d   :  { %6956 = vrot.lane.b32.xlu1 %v20752_v21, %s12056_s25  ;;  %v17954_v20 = vpack.c.bf16 %v6459_v48, %v6458_v26  ;;  %v5542_v52 = vsel %vm5483_vm14, %v5470_v17, 0  ;;  %v20763_v14 = vpack.c.bf16 %v20761_v38, %v20762_v9  ;;  %v20766_v26 = vld [vmem:[#allocation102_spill] sm:$0xff]  ;;  %v12004_v3 = vld [vmem:[%s20458_s3 + $0xd0] sm:$0xff]  ;;  %v20776_v33 = vld [vmem:[#allocation107_spill] sm:$0xff] }
 0x41e   :  { %v4372_v4 = vpop.permute.xlu0 %4371  ;;  %v20767_v29 = vpack.c.bf16 %v20765_v22, %v20766_v26  ;;  %v20773_v18 = vld [vmem:[#allocation22_spill] sm:$0xff]  ;;  %v12007_v9 = vld [vmem:[%s20458_s3 + $0xc8] sm:$0xff] }
 0x41f   :  { %v3218_v58 = vpop.permute.xlu1 %3217  ;;  %v5468_v19 = vsel %vm5354_vm12, %v5339_v50, %v4372_v4  ;;  %v20774_v55 = vpack.c.bf16 %v20772_v8, %v20773_v18  ;;  %v20777_v8 = vld [vmem:[#allocation106_spill] sm:$0xff]  ;;  %v20778_v18 = vld [vmem:[#allocation105_spill] sm:$0xff] }
 0x420   :  { %v5541_v6 = vsel %vm5483_vm14, %v5468_v19, 0  ;;  %7146 = vrot.lane.b32.xlu0 %v17250_v12, %s12057_s29  ;;  %v4567_v1 = vsel %vm4387_vm6, %v20768_v31, %v3218_v58 }
 0x421   :  { %7148 = vrot.lane.b32.xlu1 %v17237_v28, %s12057_s29  ;;  %11431 = vmatprep.mubr.msk.bf16.mxu0 %vm5565_vm15, %v5541_v6  ;;  %v20757_v28 = vpack.c.bf16 %v17227_v61, %v17225_v59  ;;  %v12005_v6 = vld [vmem:[%s20458_s3 + $0xc0] sm:$0xff] }
 0x422   :  { %11432 = vmatmul.mubr.msk.bf16.gmra.mrb[112].mxu0 %vm5565_vm15, %v5542_v52  ;;  %v3216_v16 = vpop.permute.xlu0 %3215 }
 0x423   :  { %v3538_v0 = vpop.permute.xlu1 %3537  ;;  %v4564_v41 = vsel %vm4387_vm6, %v20775_v27, %v3216_v16 }
 0x424   :  { %7052 = vrot.lane.b32.xlu0 %v20757_v28, %s12055_s17  ;;  %v4700_v21 = vsel %vm4580_vm7, %v4567_v1, %v3538_v0 }
 0x425   :  { %7054 = vrot.lane.b32.xlu1 %v20756_v56, %s12055_s17 }
 0x426   :  { %v3536_v12 = vpop.permute.xlu0 %3535 }
 0x427   :  { %v3678_v47 = vpop.permute.xlu1 %3677  ;;  %v4698_v4 = vsel %vm4580_vm7, %v4564_v41, %v3536_v12 }
 0x428   :  { %6958 = vrot.lane.b32.xlu0 %v20763_v14, %s12056_s25  ;;  %v4829_v50 = vsel %vm4709_vm8, %v4700_v21, %v3678_v47  ;;  %v12006_v47 = vld [vmem:[%s20458_s3 + $0xd8] sm:$0xff] }
 0x429   :  { %6960 = vrot.lane.b32.xlu1 %v20760_v24, %s12056_s25 }
 0x42a   :  { %v3676_v11 = vpop.permute.xlu0 %3675 }
 0x42b   :  { %v3818_v49 = vpop.permute.xlu1 %3817  ;;  %v4827_v56 = vsel %vm4709_vm8, %v4698_v4, %v3676_v11 }
 0x42c   :  { %7150 = vrot.lane.b32.xlu0 %v17439_v46, %s12057_s29  ;;  %v20770_v46 = vld [vmem:[#allocation20_spill] sm:$0xff]  ;;  %v4958_v16 = vsel %vm4838_vm9, %v4829_v50, %v3818_v49 }
 0x42d   :  { %7152 = vrot.lane.b32.xlu1 %v17426_v23, %s12057_s29  ;;  %v20771_v42 = vpack.c.bf16 %v20769_v34, %v20770_v46 }
 0x42e   :  { %v3816_v61 = vpop.permute.xlu0 %3815 }
 0x42f   :  { %v3958_v59 = vpop.permute.xlu1 %3957  ;;  %v4956_v38 = vsel %vm4838_vm9, %v4827_v56, %v3816_v61 }
 0x430   :  { %7056 = vrot.lane.b32.xlu0 %v20767_v29, %s12055_s17  ;;  %v5087_v24 = vsel %vm4967_vm10, %v4958_v16, %v3958_v59  ;;  %v11877_v16 = vld [vmem:[%s20459_s4] sm:$0xff]  }
 0x431   :  { %7058 = vrot.lane.b32.xlu1 %v20764_v37, %s12055_s17  ;;  %9252 = vmatpush1.bf16.msra.mxu1 %v11877_v16 }
 0x432   :  { %v3956_v23 = vpop.permute.xlu0 %3955 }
 0x433   :  { %v4098_v48 = vpop.permute.xlu1 %4097  ;;  %v5085_v46 = vsel %vm4967_vm10, %v4956_v38, %v3956_v23 }
 0x434   :  { %6962 = vrot.lane.b32.xlu0 %v20774_v55, %s12056_s25  ;;  %v5216_v34 = vsel %vm5096_vm11, %v5087_v24, %v4098_v48  ;;  %v20779_v55 = vpack.c.bf16 %v20777_v8, %v20778_v18  ;;  %v12009_v18 = vld [vmem:[%s20458_s3 + $0xe0] sm:$0xff] }
 0x435   :  { %6964 = vrot.lane.b32.xlu1 %v20771_v42, %s12056_s25  ;;  %v11409_v57 = vpop.f32.mrb[88].mxu0 }
 0x436   :  { %v6336_v10 = vadd.f32 %v17769_v39, %v11409_v57  ;;  %v6688_v32 = vsub.f32 %v12004_v3, %v11409_v57  ;;  %v6080_v58 = vpop.f32.mrb[89].mxu0  ;;  %v4096_v17 = vpop.permute.xlu0 %4095 }
 0x437   :  { %v4238_v25 = vpop.permute.xlu1 %4237  ;;  %v6334_v19 = vadd.f32 %v17769_v39, %v6080_v58  ;;  %v6686_v52 = vsub.f32 %v12005_v6, %v6080_v58  ;;  %v11410_v0 = vpop.f32.mrb[90].mxu0  ;;  %v5214_v27 = vsel %vm5096_vm11, %v5085_v46, %v4096_v17 }
 0x438   :  { %v6337_v28 = vadd.f32 %v17769_v39, %v11410_v0  ;;  %v6689_v12 = vsub.f32 %v12006_v47, %v11410_v0  ;;  %v6083_v53 = vpop.f32.mrb[91].mxu0  ;;  %7154 = vrot.lane.b32.xlu0 %v20776_v33, %s12057_s29  ;;  %v6464_v11 = vmax.f32 %v6336_v10, 0.0  ;;  %v18036_v37 = vmax.f32 %v6688_v32, 0.0  ;;  %v20780_v32 = vld [vmem:[#allocation30_spill] sm:$0xff]  ;;  %v20784_v33 = vld [vmem:[#allocation101_spill] sm:$0xff] }
 0x439   :  { %7156 = vrot.lane.b32.xlu1 %v17619_v15, %s12057_s29  ;;  %v6335_v15 = vadd.f32 %v17769_v39, %v6083_v53  ;;  %v6687_v14 = vsub.f32 %v12007_v9, %v6083_v53  ;;  %v6462_v31 = vmax.f32 %v6334_v19, 0.0  ;;  %v18040_v1 = vmax.f32 %v6686_v52, 0.0  ;;  %v11879_v53 = vld [vmem:[%s20459_s4 + $0x10] sm:$0xff]  }
 0x43a   :  { %v6465_v22 = vmax.f32 %v6337_v28, 0.0  ;;  %v18038_v26 = vmax.f32 %v6689_v12, 0.0  ;;  %v4236_v29 = vpop.permute.xlu0 %4235  ;;  %v5345_v57 = vsel %vm5225_vm13, %v5216_v34, %v4238_v25  ;;  %v20781_v25 = vld [vmem:[#allocation28_spill] sm:$0xff]  ;;  %v20783_v19 = vmov 0  }
 0x43b   :  { %v4378_v49 = vpop.permute.xlu1 %4377  ;;  %v6463_v59 = vmax.f32 %v6335_v15, 0.0  ;;  %v18042_v61 = vmax.f32 %v6687_v14, 0.0  ;;  %v5343_v23 = vsel %vm5225_vm13, %v5214_v27, %v4236_v29  ;;  %v20782_v58 = vpack.c.bf16 %v20780_v32, %v20781_v25  ;;  %9253 = vmatprep.subr.bf16.mxu1 %v20783_v19  ;;  %v20785_v14 = vld [vmem:[#allocation100_spill] sm:$0xff] }
 0x43c   :  { %v18050_v42 = vpack.c.bf16 %v6465_v22, %v6464_v11  ;;  %7060 = vrot.lane.b32.xlu0 %v20779_v55, %s12055_s17  ;;  %v5474_v48 = vsel %vm5354_vm12, %v5345_v57, %v4378_v49  ;;  %v18078_v6 = vrot.slane %v20783_v19, 1  ;;  %v12008_v22 = vld [vmem:[%s20458_s3 + $0xf0] sm:$0xff] }
 0x43d   :  { %7062 = vrot.lane.b32.xlu1 %v6894_v40, %s12055_s17  ;;  %v18060_v60 = vpack.c.bf16 %v6463_v59, %v6462_v31  ;;  %v5544_v17 = vsel %vm5483_vm14, %v5474_v48, 0 }
 0x43e   :  { %v4376_v41 = vpop.permute.xlu0 %4375 }
 0x43f   :  { %v3222_v40 = vpop.permute.xlu1 %3221  ;;  %v5472_v10 = vsel %vm5354_vm12, %v5343_v23, %v4376_v41  ;;  %v12010_v23 = vld [vmem:[%s20458_s3 + $0xf8] sm:$0xff] }
 0x440   :  { %v5543_v3 = vsel %vm5483_vm14, %v5472_v10, 0  ;;  %6966 = vrot.lane.b32.xlu0 %v20782_v58, %s12056_s25  ;;  %v4573_v24 = vsel %vm4387_vm6, %v20784_v33, %v3222_v40  ;;  %v12011_v58 = vld [vmem:[%s20458_s3 + $0xe8] sm:$0xff] }
 0x441   :  { %11435 = vmatprep.mubr.msk.bf16.mxu0 %vm5565_vm15, %v5543_v3 }
 0x442   :  { %11436 = vmatmul.mubr.msk.bf16.gmra.mrb[116].mxu0 %vm5565_vm15, %v5544_v17  ;;  %v3220_v4 = vpop.permute.xlu0 %3219 }
 0x443   :  { %v3542_v50 = vpop.permute.xlu1 %3541  ;;  %v4570_v49 = vsel %vm4387_vm6, %v20785_v14, %v3220_v4  ;;  %v11881_v4 = vld [vmem:[%s20459_s4 + $0x20] sm:$0xff]  }
 0x444   :  { %7158 = vrot.lane.b32.xlu0 %v17824_v63, %s12057_s29  ;;  %v11878_v63 = vld [vmem:[%s20459_s4 + $0x8] sm:$0xff]   ;;  %v4704_v45 = vsel %vm4580_vm7, %v4573_v24, %v3542_v50 }
 0x445   :  { %9254 = vmatpush1.bf16.msra.mxu1 %v11878_v63 }
 0x446   :  { %v3540_v0 = vpop.permute.xlu0 %3539  ;;  %9255 = vmatprep.subr.bf16.mxu1 %v20783_v19 }
 0x447   :  { %v3682_v52 = vpop.permute.xlu1 %3681  ;;  %v4702_v46 = vsel %vm4580_vm7, %v4570_v49, %v3540_v0 }
 0x448   :  { %8311 = vrot.lane.b32.xlu0 %v18078_v6, %s12058_s19  ;;  %v4833_v34 = vsel %vm4709_vm8, %v4704_v45, %v3682_v52 }
 0x449   :  { %9256 = vmatpush1.bf16.msra.mxu1 %v11879_v53 }
 0x44a   :  { %v3680_v28 = vpop.permute.xlu0 %3679  ;;  %9257 = vmatprep.subr.bf16.mxu1 %v20783_v19 }
 0x44b   :  { %v3822_v56 = vpop.permute.xlu1 %3821  ;;  %v4831_v40 = vsel %vm4709_vm8, %v4702_v46, %v3680_v28 }
 0x44c   :  { %7064 = vrot.lane.b32.xlu0 %v6895_v30, %s12055_s17  ;;  %v4962_v27 = vsel %vm4838_vm9, %v4833_v34, %v3822_v56 }
 0x44d   :  { %9258 = vmatpush1.bf16.msra.mxu1 %v11880_v13 }
 0x44e   :  { %v3820_v12 = vpop.permute.xlu0 %3819  ;;  %9259 = vmatprep.subr.bf16.mxu1 %v20783_v19 }
 0x44f   :  { %v3962_v47 = vpop.permute.xlu1 %3961  ;;  %v4960_v32 = vsel %vm4838_vm9, %v4831_v40, %v3820_v12  ;;  %v11885_v40 = vld [vmem:[%s20459_s4 + $0x40] sm:$0xff]  }
 0x450   :  { %v5091_v3 = vsel %vm4967_vm10, %v4962_v27, %v3962_v47 }
 0x451   :  { %9260 = vmatpush1.bf16.msra.mxu1 %v11881_v4 }
 0x452   :  { %v3960_v15 = vpop.permute.xlu0 %3959  ;;  %9261 = vmatprep.subr.bf16.mxu1 %v20783_v19 }
 0x453   :  { %v4102_v38 = vpop.permute.xlu1 %4101  ;;  %v5089_v24 = vsel %vm4967_vm10, %v4960_v32, %v3960_v15  ;;  %v11887_v32 = vld [vmem:[%s20459_s4 + $0x50] sm:$0xff]  }
 0x454   :  { %v5220_v33 = vsel %vm5096_vm11, %v5091_v3, %v4102_v38  ;;  %v11882_v38 = vld [vmem:[%s20459_s4 + $0x28] sm:$0xff]  }
 0x455   :  { %v11413_v30 = vpop.f32.mrb[92].mxu0  ;;  %9262 = vmatpush1.bf16.msra.mxu1 %v11882_v38 }
 0x456   :  { %v6340_v11 = vadd.f32 %v17769_v39, %v11413_v30  ;;  %v6692_v29 = vsub.f32 %v12008_v22, %v11413_v30  ;;  %v6096_v31 = vpop.f32.mrb[93].mxu0  ;;  %v4100_v59 = vpop.permute.xlu0 %4099  ;;  %9263 = vmatprep.subr.bf16.mxu1 %v20783_v19 }
 0x457   :  { %v4242_v9 = vpop.permute.xlu1 %4241  ;;  %v6338_v8 = vadd.f32 %v17769_v39, %v6096_v31  ;;  %v6690_v55 = vsub.f32 %v12009_v18, %v6096_v31  ;;  %v11414_v57 = vpop.f32.mrb[94].mxu0  ;;  %v5218_v14 = vsel %vm5096_vm11, %v5089_v24, %v4100_v59 }
 0x458   :  { %v6341_v48 = vadd.f32 %v17769_v39, %v11414_v57  ;;  %v6693_v41 = vsub.f32 %v12010_v23, %v11414_v57  ;;  %v6099_v10 = vpop.f32.mrb[95].mxu0  ;;  %v6468_v52 = vmax.f32 %v6340_v11, 0.0  ;;  %v18132_v0 = vmax.f32 %v6692_v29, 0.0 }
 0x459   :  { %v6339_v25 = vadd.f32 %v17769_v39, %v6099_v10  ;;  %v6691_v17 = vsub.f32 %v12011_v58, %v6099_v10  ;;  %v6466_v63 = vmax.f32 %v6338_v8, 0.0  ;;  %v18136_v47 = vmax.f32 %v6690_v55, 0.0  ;;  %v11884_v55 = vld [vmem:[%s20459_s4 + $0x38] sm:$0xff]  }
 0x45a   :  { %v6469_v16 = vmax.f32 %v6341_v48, 0.0  ;;  %v18134_v56 = vmax.f32 %v6693_v41, 0.0  ;;  %v4240_v28 = vpop.permute.xlu0 %4239  ;;  %v5349_v30 = vsel %vm5225_vm13, %v5220_v33, %v4242_v9  ;;  %v11883_v9 = vld [vmem:[%s20459_s4 + $0x30] sm:$0xff]   ;;  %v11886_v41 = vld [vmem:[%s20459_s4 + $0x48] sm:$0xff]  }
 0x45b   :  { %v4382_v50 = vpop.permute.xlu1 %4381  ;;  %v6467_v12 = vmax.f32 %v6339_v25, 0.0  ;;  %v18138_v53 = vmax.f32 %v6691_v17, 0.0  ;;  %v5347_v29 = vsel %vm5225_vm13, %v5218_v14, %v4240_v28  ;;  %9264 = vmatpush1.bf16.msra.mxu1 %v11883_v9  ;;  %v20786_v28 = vld [vmem:[#allocation104_spill] sm:$0xff] }
 0x45c   :  { %v18142_v13 = vpack.c.bf16 %v6469_v16, %v6468_v52  ;;  %v5478_v15 = vsel %vm5354_vm12, %v5349_v30, %v4382_v50  ;;  %9265 = vmatprep.subr.bf16.mxu1 %v20783_v19  ;;  %v11888_v50 = vld [vmem:[%s20459_s4 + $0x58] sm:$0xff]  }
 0x45d   :  { %v18149_v49 = vpack.c.bf16 %v6467_v12, %v6466_v63  ;;  %v5546_v46 = vsel %vm5483_vm14, %v5478_v15, 0  ;;  %v12013_v15 = vld [vmem:[%s20458_s3] sm:$0xff] }
 0x45e   :  { %v4380_v31 = vpop.permute.xlu0 %4379 }
 0x45f   :  { %v3226_v22 = vpop.permute.xlu1 %3225  ;;  %v5476_v34 = vsel %vm5354_vm12, %v5347_v29, %v4380_v31  ;;  %9266 = vmatpush1.bf16.msra.mxu1 %v11884_v55 }
 0x460   :  { %v5545_v59 = vsel %vm5483_vm14, %v5476_v34, 0  ;;  %9267 = vmatprep.subr.bf16.mxu1 %v20783_v19  ;;  %v4579_v25 = vsel %vm4387_vm6, %v17562_v7, %v3226_v22  ;;  %v12012_v7 = vld [vmem:[%s20458_s3 + $0x10] sm:$0xff] }
 0x461   :  { %11439 = vmatprep.mubr.msk.bf16.mxu0 %vm5565_vm15, %v5545_v59 }
 0x462   :  { %11440 = vmatmul.mubr.msk.bf16.gmra.mrb[120].mxu0 %vm5565_vm15, %v5546_v46  ;;  %v3224_v18 = vpop.permute.xlu0 %3223  ;;  %v12014_v46 = vld [vmem:[%s20458_s3 + $0x18] sm:$0xff] }
 0x463   :  { %v3546_v8 = vpop.permute.xlu1 %3545  ;;  %9268 = vmatpush1.bf16.msra.mxu1 %v11885_v40  ;;  %v4576_v63 = vsel %vm4387_vm6, %v20786_v28, %v3224_v18  ;;  %v12015_v40 = vld [vmem:[%s20458_s3 + $0x8] sm:$0xff]  ;;  %vm8505_vm6 = vcmask 523264  }
 0x464   :  { %9269 = vmatprep.subr.bf16.mxu1 %v20783_v19  ;;  %v4708_v4 = vsel %vm4580_vm7, %v4579_v25, %v3546_v8 }
 0x466   :  { %v3544_v27 = vpop.permute.xlu0 %3543 }
 0x467   :  { %v3686_v57 = vpop.permute.xlu1 %3685  ;;  %9270 = vmatpush1.bf16.msra.mxu1 %v11886_v41  ;;  %v4706_v22 = vsel %vm4580_vm7, %v4576_v63, %v3544_v27  ;;  %v11889_v41 = vld [vmem:[%s20459_s4 + $0x60] sm:$0xff]   ;;  %vm7755_vm7 = vsmask.f32 7424 }
 0x468   :  { %9271 = vmatprep.subr.bf16.mxu1 %v20783_v19  ;;  %v4837_v14 = vsel %vm4709_vm8, %v4708_v4, %v3686_v57 }
 0x46a   :  { %v3684_v23 = vpop.permute.xlu0 %3683 }
 0x46b   :  { %v3826_v48 = vpop.permute.xlu1 %3825  ;;  %9272 = vmatpush1.bf16.msra.mxu1 %v11887_v32  ;;  %v4835_v9 = vsel %vm4709_vm8, %v4706_v22, %v3684_v23  ;;  %vm18738_vm8 = vmneg %vm8505_vm6 }
 0x46c   :  { %9273 = vmatprep.subr.bf16.mxu1 %v20783_v19  ;;  %v4966_v34 = vsel %vm4838_vm9, %v4837_v14, %v3826_v48 }
 0x46e   :  { %v3824_v3 = vpop.permute.xlu0 %3823 }
 0x46f   :  { %v3966_v10 = vpop.permute.xlu1 %3965  ;;  %9274 = vmatpush1.bf16.msra.mxu1 %v11888_v50  ;;  %v4964_v57 = vsel %vm4838_vm9, %v4835_v9, %v3824_v3  ;;  %vm12061_vm9 = vmmov 0  }
 0x470   :  { %9275 = vmatprep.subr.bf16.mxu1 %v20783_v19  ;;  %v5095_v55 = vsel %vm4967_vm10, %v4966_v34, %v3966_v10 }
 0x472   :  { %v3964_v17 = vpop.permute.xlu0 %3963 }
 0x473   :  { %v4106_v58 = vpop.permute.xlu1 %4105  ;;  %9276 = vmatpush1.bf16.msra.mxu1 %v11889_v41 }
 0x474   :  { %v5224_v63 = vsel %vm5096_vm11, %v5095_v55, %v4106_v58  ;;  %9277 = vmatprep.subr.bf16.mxu1 %v20783_v19  ;;  %v11890_v58 = vld [vmem:[%s20459_s4 + $0x68] sm:$0xff]   ;;  %v11892_v55 = vld [vmem:[%s20459_s4 + $0x78] sm:$0xff]  }
 0x475   :  { %v11417_v52 = vpop.f32.mrb[96].mxu0 }
 0x476   :  { %v6344_v12 = vadd.f32 %v17769_v39, %v11417_v52  ;;  %v6696_v33 = vsub.f32 %v12012_v7, %v11417_v52  ;;  %v6112_v24 = vpop.f32.mrb[97].mxu0  ;;  %v4104_v30 = vpop.permute.xlu0 %4103  ;;  %v5093_v7 = vsel %vm4967_vm10, %v4964_v57, %v3964_v17 }
 0x477   :  { %v4246_v16 = vpop.permute.xlu1 %4245  ;;  %v6342_v38 = vadd.f32 %v17769_v39, %v6112_v24  ;;  %v6694_v29 = vsub.f32 %v12013_v15, %v6112_v24  ;;  %v11418_v31 = vpop.f32.mrb[98].mxu0  ;;  %v5222_v14 = vsel %vm5096_vm11, %v5093_v7, %v4104_v30  ;;  %9278 = vmatpush1.bf16.msra.mxu1 %v11890_v58 }
 0x478   :  { %v6345_v59 = vadd.f32 %v17769_v39, %v11418_v31  ;;  %v6697_v8 = vsub.f32 %v12014_v46, %v11418_v31  ;;  %v6115_v18 = vpop.f32.mrb[99].mxu0  ;;  %v6472_v32 = vmax.f32 %v6344_v12, 0.0  ;;  %v18218_v25 = vmax.f32 %v6696_v33, 0.0  ;;  %9279 = vmatprep.subr.bf16.mxu1 %v20783_v19 }
 0x479   :  { %v6343_v27 = vadd.f32 %v17769_v39, %v6115_v18  ;;  %v6695_v48 = vsub.f32 %v12015_v40, %v6115_v18  ;;  %v6470_v3 = vmax.f32 %v6342_v38, 0.0  ;;  %v18222_v52 = vmax.f32 %v6694_v29, 0.0 }
 0x47a   :  { %v6473_v50 = vmax.f32 %v6345_v59, 0.0  ;;  %v18220_v4 = vmax.f32 %v6697_v8, 0.0  ;;  %v4244_v10 = vpop.permute.xlu0 %4243  ;;  %v5353_v33 = vsel %vm5225_vm13, %v5224_v63, %v4246_v16  ;;  %v11891_v16 = vld [vmem:[%s20459_s4 + $0x70] sm:$0xff]   ;;  %v20787_v8 = vld [vmem:[#allocation7_spill] sm:$0xff] }
 0x47b   :  { %v4386_v23 = vpop.permute.xlu1 %4385  ;;  %v6471_v39 = vmax.f32 %v6343_v27, 0.0  ;;  %v18224_v28 = vmax.f32 %v6695_v48, 0.0  ;;  %v5351_v29 = vsel %vm5225_vm13, %v5222_v14, %v4244_v10  ;;  %9280 = vmatpush1.bf16.msra.mxu1 %v11891_v16  ;;  %v20791_v16 = vld [vmem:[#allocation13_spill] sm:$0xff] }
 0x47c   :  { %v18228_v24 = vpack.c.bf16 %v6473_v50, %v6472_v32  ;;  %v5482_v17 = vsel %vm5354_vm12, %v5353_v33, %v4386_v23  ;;  %9281 = vmatprep.subr.bf16.mxu1 %v20783_v19  ;;  %v20788_v32 = vld [vmem:[#allocation5_spill] sm:$0xff] }
 0x47d   :  { %v18235_v22 = vpack.c.bf16 %v6471_v39, %v6470_v3  ;;  %v5548_v9 = vsel %vm5483_vm14, %v5482_v17, 0 }
 0x47e   :  { %v4384_v31 = vpop.permute.xlu0 %4383 }
 0x47f   :  { %v7047_v15 = vpop.permute.xlu1 %7046  ;;  %v5480_v34 = vsel %vm5354_vm12, %v5351_v29, %v4384_v31  ;;  %9282 = vmatpush1.bf16.msra.mxu1 %v11892_v55 }
 0x480   :  { %v5547_v30 = vsel %vm5483_vm14, %v5480_v34, 0  ;;  %9540 = vmatprep.subr.bf16.mxu1 %v20783_v19 }
 0x481   :  { %11443 = vmatprep.mubr.msk.bf16.mxu0 %vm5565_vm15, %v5547_v30 }
 0x482   :  { %11444 = vmatmul.mubr.msk.bf16.gmra.mrb[124].mxu0 %vm5565_vm15, %v5548_v9  ;;  %v6951_v46 = vpop.permute.xlu0 %6950 }
 0x483   :  { %v6953_v59 = vpop.permute.xlu1 %6952  ;;  %v7209_v18 = vsel %vm7206_vm0, %v20787_v8, %v6951_v46 }
 0x484   :  { %v7304_v27 = vsel %vm5565_vm15, %v7209_v18, %v7047_v15  ;;  %v7212_v50 = vsel %vm7206_vm0, %v20788_v32, %v6953_v59  ;;  %v20793_v32 = vld [vmem:[#allocation26_spill] sm:$0xff] }
 0x486   :  { %v7143_v40 = vpop.permute.xlu0 %7142 }
 0x487   :  { %v7145_v57 = vpop.permute.xlu1 %7144  ;;  %v7369_v48 = vsel %vm7367_vm1, %v7304_v27, %v7143_v40 }
 0x488   :  { %v7432_v23 = vshrl.u32 %v7369_v48, 16  ;;  %v7435_v3 = vshll.u32 %v7369_v48, 16 }
 0x48a   :  { %v7434_v10 = vrot.slane %v7432_v23, 7  ;;  %v7049_v39 = vpop.permute.xlu0 %7048  ;;  %v20792_v23 = vld [vmem:[#allocation27_spill] sm:$0xff] }
 0x48b   :  { %v7051_v41 = vpop.permute.xlu1 %7050  ;;  %v7306_v63 = vsel %vm5565_vm15, %v7212_v50, %v7049_v39  ;;  %v20794_v50 = vpack.c.bf16 %v20792_v23, %v20793_v32 }
 0x48c   :  { %v7437_v7 = vor.u32 %v7435_v3, %v7434_v10  ;;  %v7371_v33 = vsel %vm7367_vm1, %v7306_v63, %v7145_v57  ;;  %v18280_v9 = vsel %vm18266_vm4, %v7434_v10, 0 }
 0x48d   :  { %v7438_v15 = vshrl.u32 %v7371_v33, 16  ;;  %v7441_v34 = vshll.u32 %v7371_v33, 16  ;;  %v7771_v40 = vshll.u32 %v18280_v9, 16  ;;  %v20795_v33 = vld [vmem:[#allocation11_spill] sm:$0xff] }
 0x48e   :  { %v6955_v17 = vpop.permute.xlu0 %6954  ;;  %v18272_v29 = vsel %vm18266_vm4, 0, %v7437_v7 }
 0x48f   :  { %v6957_v58 = vpop.permute.xlu1 %6956  ;;  %v7440_v31 = vrot.slane %v7438_v15, 7  ;;  %v7215_v30 = vsel %vm7206_vm0, %v20791_v16, %v6955_v17  ;;  %8373 = vrot.lane.b32.xlu1 %v18272_v29, %s12058_s19  ;;  %v7766_v59 = vshll.u32 %v18272_v29, 16  ;;  %v7764_v3 = vshrl.u32 %v18272_v29, 16 }
 0x490   :  { %v7308_v55 = vsel %vm5565_vm15, %v7215_v30, %v7051_v41  ;;  %v7218_v15 = vsel %vm7206_vm0, %v20795_v33, %v6957_v58 }
 0x491   :  { %v7443_v46 = vor.u32 %v7441_v34, %v7440_v31  ;;  %v7724_v8 = vsel %vm18266_vm4, %v7440_v31, 0  ;;  %v7768_v27 = vrot.slane %v7766_v59, 1 }
 0x492   :  { %v7147_v57 = vpop.permute.xlu0 %7146  ;;  %v8191_v63 = vrot.slane %v7724_v8, 1  ;;  %v7783_v7 = vshll.u32 %v7724_v8, 16  ;;  %v12017_v8 = vld [vmem:[%s20458_s3 + $0x30] sm:$0xff] }
 0x493   :  { %v7149_v18 = vpop.permute.xlu1 %7148  ;;  %v7373_v48 = vsel %vm7367_vm1, %v7308_v55, %v7147_v57  ;;  %6968 = vrot.lane.b32.xlu1 %v20794_v50, %s12056_s25  ;;  %v18294_v10 = vsel %vm18266_vm4, 0, %v7443_v46  ;;  %v7769_v16 = vor.u32 %v7768_v27, %v7764_v3  ;;  %v18306_v46 = vld [vmem:[%s20457_s2] ss:$0 sm:$0xff]  ;;  %v7773_v27 = vrot.slane %v7771_v40, 1 }
 0x494   :  { %v7444_v41 = vshrl.u32 %v7373_v48, 16  ;;  %8375 = vrot.lane.b32.xlu0 %v18294_v10, %s12058_s19  ;;  %v8190_v39 = vrot.slane %v18294_v10, 1  ;;  %v7447_v17 = vshll.u32 %v7373_v48, 16  ;;  %v7778_v30 = vshll.u32 %v18294_v10, 16  ;;  %v12018_v50 = vld [vmem:[%s20458_s3 + $0x20] sm:$0xff] }
 0x495   :  { %v11421_v31 = vpop.f32.mrb[100].mxu0  ;;  %v18358_v5 = vsel %vm7755_vm7, %v7769_v16, %v7773_v27 }
 0x496   :  { %v7446_v59 = vrot.slane %v7444_v41, 7  ;;  %v6348_v55 = vadd.f32 %v18306_v46, %v11421_v31  ;;  %v6700_v57 = vsub.f32 %v12017_v8, %v11421_v31  ;;  %v6128_v58 = vpop.f32.mrb[101].mxu0  ;;  %v7053_v48 = vpop.permute.xlu0 %7052  ;;  %v18313_v23 = vsel %vm8184_vm5, %v8190_v39, %v8191_v63  ;;  %v20796_v63 = vld [vmem:[#allocation36_spill] sm:$0xff]  ;;  %v20797_v8 = vld [vmem:[#allocation34_spill] sm:$0xff]  ;;  %20800 = vst [vmem:[#allocation3_spill] sm:$0xff] %v18358_v5 }
 0x497   :  { %v7055_v34 = vpop.permute.xlu1 %7054  ;;  %v6346_v32 = vadd.f32 %v18306_v46, %v6128_v58  ;;  %v6698_v3 = vsub.f32 %v12018_v50, %v6128_v58  ;;  %v7310_v41 = vsel %vm5565_vm15, %v7218_v15, %v7053_v48  ;;  %v11422_v33 = vpop.f32.mrb[102].mxu0  ;;  %7160 = vrot.lane.b32.xlu1 %v17816_v43, %s12057_s29  ;;  %11463 = vmatprep.mubr.msk.bf16.mxu0 %vm8505_vm6, %v18313_v23  ;;  %v7776_v15 = vshrl.u32 %v18294_v10, 16 }
 0x498   :  { %v7449_v31 = vor.u32 %v7447_v17, %v7446_v59  ;;  %v18326_v40 = vsel %vm18266_vm4, %v7446_v59, 0  ;;  %v6131_v39 = vpop.f32.mrb[103].mxu0  ;;  %v20798_v12 = vpack.c.bf16 %v20796_v63, %v20797_v8  ;;  %v7785_v58 = vrot.slane %v7783_v7, 1  ;;  %v12019_v63 = vld [vmem:[%s20458_s3 + $0x38] sm:$0xff] }
 0x499   :  { %v8194_v48 = vrot.slane %v18326_v40, 1  ;;  %v6476_v43 = vmax.f32 %v6348_v55, 0.0  ;;  %v18334_v50 = vmax.f32 %v6700_v57, 0.0  ;;  %v7780_v17 = vrot.slane %v7778_v30, 1 }
 0x49a   :  { %6970 = vrot.lane.b32.xlu0 %v20798_v12, %s12056_s25  ;;  %v6474_v45 = vmax.f32 %v6346_v32, 0.0  ;;  %v7375_v59 = vsel %vm7367_vm1, %v7310_v41, %v7149_v18  ;;  %v6349_v11 = vadd.f32 %v18306_v46, %v11422_v33  ;;  %v6701_v12 = vsub.f32 %v12019_v63, %v11422_v33  ;;  %v6959_v8 = vpop.permute.xlu0 %6958  ;;  %v12020_v41 = vld [vmem:[%s20458_s3 + $0x28] sm:$0xff] }
 0x49b   :  { %v6961_v38 = vpop.permute.xlu1 %6960  ;;  %v18343_v7 = vsel %vm18266_vm4, 0, %v7449_v31  ;;  %v18345_v55 = vmax.f32 %v6698_v3, 0.0  ;;  %v7450_v57 = vshrl.u32 %v7375_v59, 16  ;;  %v6347_v30 = vadd.f32 %v18306_v46, %v6131_v39  ;;  %v20799_v63 = vld [vmem:[#allocation19_spill] sm:$0xff]  ;;  %8313 = vrot.lane.b32.xlu1 %v18358_v5, %s12058_s19  ;;  %v20814_v5 = vld [vmem:[#allocation42_spill] sm:$0xff] }
 0x49c   :  { %v7453_v32 = vshll.u32 %v7375_v59, 16  ;;  %v6477_v21 = vmax.f32 %v6349_v11, 0.0  ;;  %v18348_v18 = vmax.f32 %v6701_v12, 0.0  ;;  %v6699_v62 = vsub.f32 %v12020_v41, %v6131_v39  ;;  %v20802_v41 = vld [vmem:[#allocation17_spill] sm:$0xff] }
 0x49d   :  { %v7452_v33 = vrot.slane %v7450_v57, 7  ;;  %v6475_v31 = vmax.f32 %v6347_v30, 0.0  ;;  %v7221_v3 = vsel %vm7206_vm0, %v20799_v63, %v6959_v8  ;;  %v7781_v30 = vor.u32 %v7780_v17, %v7776_v15 }
 0x49e   :  { %7162 = vrot.lane.b32.xlu0 %v17954_v20, %s12057_s29  ;;  %v18360_v11 = vpack.c.bf16 %v6477_v21, %v6476_v43  ;;  %v18364_v2 = vmax.f32 %v6699_v62, 0.0  ;;  %v8193_v20 = vrot.slane %v18343_v7, 1  ;;  %v7151_v39 = vpop.permute.xlu0 %7150  ;;  %v7312_v21 = vsel %vm5565_vm15, %v7221_v3, %v7055_v34 }
 0x49f   :  { %v7153_v59 = vpop.permute.xlu1 %7152  ;;  %v7455_v57 = vor.u32 %v7453_v32, %v7452_v33  ;;  %v18371_v8 = vsel %vm18266_vm4, %v7452_v33, 0  ;;  %v18373_v16 = vpack.c.bf16 %v6475_v31, %v6474_v45  ;;  %v7377_v43 = vsel %vm7367_vm1, %v7312_v21, %v7151_v39 }
 0x4a0   :  { %v18379_v62 = vsel %vm8184_vm5, %v8193_v20, %v8194_v48  ;;  %v7456_v45 = vshrl.u32 %v7377_v43, 16  ;;  %v7224_v34 = vsel %vm7206_vm0, %v20802_v41, %v6961_v38  ;;  %v20803_v33 = vpack.c.bf16 %v17933_v36, %v17931_v35 }
 0x4a1   :  { %20801 = vst [vmem:[#allocation2_spill] sm:$0xff] %v18379_v62  ;;  %v18384_v32 = vsel %vm18266_vm4, 0, %v7455_v57  ;;  %11464 = vmatmul.mubr.msk.bf16.vlgmr.msra.gmra.mrb[128].mxu0 %vm8505_vm6, %v18379_v62  ;;  %v18395_v48 = vsel %vm7755_vm7, %v7781_v30, %v7785_v58  ;;  %v8197_v31 = vrot.slane %v18371_v8, 1  ;;  %v7459_v3 = vshll.u32 %v7377_v43, 16 }
 0x4a2   :  { %7066 = vrot.lane.b32.xlu1 %v20803_v33, %s12055_s17  ;;  %20804 = vst [vmem:[#allocation6_spill] sm:$0xff] %v18395_v48  ;;  %v7057_v15 = vpop.permute.xlu0 %7056  ;;  %v8196_v17 = vrot.slane %v18384_v32, 1  ;;  %v7458_v63 = vrot.slane %v7456_v45, 7  ;;  %8315 = vrot.lane.b32.xlu0 %v18395_v48, %s12058_s19  ;;  %v7790_v21 = vshll.u32 %v18343_v7, 16  ;;  %v20806_v41 = vpack.c.bf16 %v17928_v44, %v17926_v51  ;;  %v20809_v51 = vld [vmem:[#allocation32_spill] sm:$0xff] }
 0x4a3   :  { %v7059_v20 = vpop.permute.xlu1 %7058  ;;  %v7314_v38 = vsel %vm5565_vm15, %v7224_v34, %v7057_v15  ;;  %v20807_v34 = vld [vmem:[#allocation25_spill] sm:$0xff] }
 0x4a4   :  { %v7379_v39 = vsel %vm7367_vm1, %v7314_v38, %v7153_v59  ;;  %v18404_v35 = vsel %vm8184_vm5, %v8196_v17, %v8197_v31  ;;  %v7461_v36 = vor.u32 %v7459_v3, %v7458_v63  ;;  %v18408_v58 = vsel %vm18266_vm4, %v7458_v63, 0 }
 0x4a5   :  { %20805 = vst [vmem:[#allocation4_spill] sm:$0xff] %v18404_v35  ;;  %v7462_v57 = vshrl.u32 %v7379_v39, 16  ;;  %11467 = vmatprep.mubr.msk.bf16.mxu0 %vm8505_vm6, %v18404_v35  ;;  %v7465_v45 = vshll.u32 %v7379_v39, 16  ;;  %v8200_v15 = vrot.slane %v18408_v58, 1  ;;  %v7792_v38 = vrot.slane %v7790_v21, 1 }
 0x4a6   :  { %8377 = vrot.lane.b32.xlu1 %v18343_v7, %s12058_s19  ;;  %v6963_v43 = vpop.permute.xlu0 %6962  ;;  %v18417_v59 = vsel %vm18266_vm4, 0, %v7461_v36  ;;  %7068 = vrot.lane.b32.xlu0 %v20806_v41, %s12055_s17  ;;  %v7802_v39 = vshll.u32 %v18384_v32, 16  ;;  %v20808_v36 = vld [vmem:[#allocation33_spill] sm:$0xff] }
 0x4a7   :  { %v7464_v30 = vrot.slane %v7462_v57, 7  ;;  %v7227_v33 = vsel %vm7206_vm0, %v20807_v34, %v6963_v43  ;;  %v8199_v17 = vrot.slane %v18417_v59, 1  ;;  %v6965_v3 = vpop.permute.xlu1 %6964  ;;  %v20810_v44 = vpack.c.bf16 %v20808_v36, %v20809_v51  ;;  %v20812_v36 = vld [vmem:[#allocation23_spill] sm:$0xff] }
 0x4a8   :  { %v7316_v43 = vsel %vm5565_vm15, %v7227_v33, %v7059_v20  ;;  %v7788_v34 = vshrl.u32 %v18343_v7, 16  ;;  %v7230_v51 = vsel %vm7206_vm0, %v20812_v36, %v6965_v3  ;;  %v7800_v3 = vshrl.u32 %v18384_v32, 16 }
 0x4a9   :  { %v7467_v31 = vor.u32 %v7465_v45, %v7464_v30  ;;  %v18429_v63 = vsel %vm18266_vm4, %v7464_v30, 0  ;;  %v18437_v57 = vsel %vm8184_vm5, %v8199_v17, %v8200_v15  ;;  %v7795_v45 = vshll.u32 %v18326_v40, 16 }
 0x4aa   :  { %6972 = vrot.lane.b32.xlu1 %v20810_v44, %s12056_s25  ;;  %20811 = vst [vmem:[#allocation9_spill] sm:$0xff] %v18437_v57  ;;  %v7155_v41 = vpop.permute.xlu0 %7154  ;;  %8379 = vrot.lane.b32.xlu0 %v18384_v32, %s12058_s19  ;;  %v8203_v33 = vrot.slane %v18429_v63, 1  ;;  %v7793_v40 = vor.u32 %v7792_v38, %v7788_v34  ;;  %v7804_v17 = vrot.slane %v7802_v39, 1  ;;  %v20815_v38 = vld [vmem:[#allocation40_spill] sm:$0xff] }
 0x4ab   :  { %v18443_v30 = vsel %vm18266_vm4, 0, %v7467_v31  ;;  %11468 = vmatmul.mubr.msk.bf16.gmra.mrb[132].mxu0 %vm8505_vm6, %v18437_v57  ;;  %v7381_v21 = vsel %vm7367_vm1, %v7316_v43, %v7155_v41  ;;  %v7807_v31 = vshll.u32 %v18371_v8, 16  ;;  %v7797_v27 = vrot.slane %v7795_v45, 1  ;;  %v7157_v48 = vpop.permute.xlu1 %7156 }
 0x4ac   :  { %v7468_v15 = vshrl.u32 %v7381_v21, 16  ;;  %v8202_v20 = vrot.slane %v18443_v30, 1  ;;  %v7471_v12 = vshll.u32 %v7381_v21, 16  ;;  %v20816_v39 = vpack.c.bf16 %v20814_v5, %v20815_v38 }
 0x4ad   :  { %v7805_v5 = vor.u32 %v7804_v17, %v7800_v3  ;;  %v7809_v36 = vrot.slane %v7807_v31, 1 }
 0x4ae   :  { %v7470_v44 = vrot.slane %v7468_v15, 7  ;;  %7164 = vrot.lane.b32.xlu1 %v17944_v54, %s12057_s29  ;;  %v7061_v43 = vpop.permute.xlu0 %7060  ;;  %v18459_v41 = vsel %vm8184_vm5, %v8202_v20, %v8203_v33  ;;  %6974 = vrot.lane.b32.xlu0 %v20816_v39, %s12056_s25  ;;  %v18475_v15 = vsel %vm7755_vm7, %v7793_v40, %v7797_v27 }
 0x4af   :  { %20813 = vst [vmem:[#allocation8_spill] sm:$0xff] %v18459_v41  ;;  %v7318_v8 = vsel %vm5565_vm15, %v7230_v51, %v7061_v43  ;;  %11471 = vmatprep.mubr.msk.bf16.mxu0 %vm8505_vm6, %v18459_v41  ;;  %20817 = vst [vmem:[#allocation12_spill] sm:$0xff] %v18475_v15  ;;  %v7063_v17 = vpop.permute.xlu1 %7062  ;;  %v18494_v39 = vsel %vm7755_vm7, %v7805_v5, %v7809_v36 }
 0x4b0   :  { %v7473_v21 = vor.u32 %v7471_v12, %v7470_v44  ;;  %v18471_v54 = vsel %vm18266_vm4, %v7470_v44, 0  ;;  %v7383_v45 = vsel %vm7367_vm1, %v7318_v8, %v7157_v48  ;;  %v20818_v48 = vld [vmem:[#allocation31_spill] sm:$0xff]  ;;  %20819 = vst [vmem:[#allocation10_spill] sm:$0xff] %v18494_v39 }
 0x4b1   :  { %v7474_v34 = vshrl.u32 %v7383_v45, 16  ;;  %v8206_v33 = vrot.slane %v18471_v54, 1  ;;  %v7477_v44 = vshll.u32 %v7383_v45, 16 }
 0x4b2   :  { %v18479_v20 = vsel %vm18266_vm4, 0, %v7473_v21  ;;  %8317 = vrot.lane.b32.xlu1 %v18475_v15, %s12058_s19  ;;  %v6967_v12 = vpop.permute.xlu0 %6966  ;;  %7166 = vrot.lane.b32.xlu0 %v18060_v60, %s12057_s29  ;;  %v20821_v60 = vpack.c.bf16 %v18042_v61, %v18040_v1  ;;  %v12021_v21 = vld [vmem:[%s20458_s3 + $0x50] sm:$0xff]  ;;  %v12022_v61 = vld [vmem:[%s20458_s3 + $0x40] sm:$0xff] }
 0x4b3   :  { %v7476_v51 = vrot.slane %v7474_v34, 7  ;;  %v7233_v27 = vsel %vm7206_vm0, %v20818_v48, %v6967_v12  ;;  %v8205_v40 = vrot.slane %v18479_v20, 1 }
 0x4b4   :  { %v7320_v5 = vsel %vm5565_vm15, %v7233_v27, %v7063_v17 }
 0x4b5   :  { %v7479_v43 = vor.u32 %v7477_v44, %v7476_v51  ;;  %v18491_v38 = vsel %vm18266_vm4, %v7476_v51, 0  ;;  %v11425_v31 = vpop.f32.mrb[104].mxu0  ;;  %v18497_v8 = vsel %vm8184_vm5, %v8205_v40, %v8206_v33 }
 0x4b6   :  { %20820 = vst [vmem:[#allocation15_spill] sm:$0xff] %v18497_v8  ;;  %7070 = vrot.lane.b32.xlu1 %v20821_v60, %s12055_s17  ;;  %v6352_v3 = vadd.f32 %v18306_v46, %v11425_v31  ;;  %v6704_v45 = vsub.f32 %v12021_v21, %v11425_v31  ;;  %v6144_v34 = vpop.f32.mrb[105].mxu0  ;;  %11472 = vmatmul.mubr.msk.bf16.gmra.mrb[136].mxu0 %vm8505_vm6, %v18497_v8  ;;  %v7159_v33 = vpop.permute.xlu0 %7158  ;;  %v8209_v17 = vrot.slane %v18491_v38, 1 }
 0x4b7   :  { %v18512_v12 = vsel %vm18266_vm4, 0, %v7479_v43  ;;  %8319 = vrot.lane.b32.xlu0 %v18494_v39, %s12058_s19  ;;  %v6350_v1 = vadd.f32 %v18306_v46, %v6144_v34  ;;  %v6702_v36 = vsub.f32 %v12022_v61, %v6144_v34  ;;  %v7385_v51 = vsel %vm7367_vm1, %v7320_v5, %v7159_v33  ;;  %v11426_v44 = vpop.f32.mrb[106].mxu0  ;;  %v12023_v39 = vld [vmem:[%s20458_s3 + $0x58] sm:$0xff]  ;;  %v12024_v5 = vld [vmem:[%s20458_s3 + $0x48] sm:$0xff] }
 0x4b8   :  { %v6480_v48 = vmax.f32 %v6352_v3, 0.0  ;;  %v7480_v27 = vshrl.u32 %v7385_v51, 16  ;;  %v6147_v40 = vpop.f32.mrb[107].mxu0  ;;  %v7814_v43 = vshll.u32 %v18417_v59, 16  ;;  %v18523_v31 = vmax.f32 %v6704_v45, 0.0 }
 0x4b9   :  { %v7483_v60 = vshll.u32 %v7385_v51, 16  ;;  %v6353_v21 = vadd.f32 %v18306_v46, %v11426_v44  ;;  %v6705_v34 = vsub.f32 %v12023_v39, %v11426_v44  ;;  %v6351_v3 = vadd.f32 %v18306_v46, %v6147_v40 }
 0x4ba   :  { %v7482_v61 = vrot.slane %v7480_v27, 7  ;;  %8381 = vrot.lane.b32.xlu1 %v18417_v59, %s12058_s19  ;;  %v6703_v45 = vsub.f32 %v12024_v5, %v6147_v40  ;;  %v8208_v33 = vrot.slane %v18512_v12, 1  ;;  %v6478_v51 = vmax.f32 %v6350_v1, 0.0 }
 0x4bb   :  { %v18536_v15 = vmax.f32 %v6702_v36, 0.0  ;;  %v6481_v8 = vmax.f32 %v6353_v21, 0.0  ;;  %v18538_v19 = vmax.f32 %v6705_v34, 0.0  ;;  %v20822_v39 = vpack.c.bf16 %v18038_v26, %v18036_v37  ;;  %v20823_v34 = vld [vmem:[#allocation39_spill] sm:$0xff] }
 0x4bc   :  { %v7485_v44 = vor.u32 %v7483_v60, %v7482_v61  ;;  %v18546_v27 = vsel %vm18266_vm4, %v7482_v61, 0  ;;  %v6479_v41 = vmax.f32 %v6351_v3, 0.0  ;;  %v18548_v40 = vmax.f32 %v6703_v45, 0.0  ;;  %v20824_v61 = vld [vmem:[#allocation38_spill] sm:$0xff] }
 0x4bd   :  { %7072 = vrot.lane.b32.xlu0 %v20822_v39, %s12055_s17  ;;  %v18550_v5 = vpack.c.bf16 %v6481_v8, %v6480_v48  ;;  %v7816_v36 = vrot.slane %v7814_v43, 1  ;;  %v7826_v21 = vshll.u32 %v18443_v30, 16  ;;  %v20825_v8 = vpack.c.bf16 %v20823_v34, %v20824_v61 }
 0x4be   :  { %v18557_v37 = vsel %vm18266_vm4, 0, %v7485_v44  ;;  %v18559_v26 = vpack.c.bf16 %v6479_v41, %v6478_v51  ;;  %v18568_v48 = vsel %vm8184_vm5, %v8208_v33, %v8209_v17  ;;  %v7819_v43 = vshll.u32 %v18408_v58, 16  ;;  %v20826_v33 = vld [vmem:[#allocation48_spill] sm:$0xff]  ;;  %v20827_v44 = vld [vmem:[#allocation46_spill] sm:$0xff] }
 0x4bf   :  { %6976 = vrot.lane.b32.xlu1 %v20825_v8, %s12056_s25  ;;  %v8212_v3 = vrot.slane %v18546_v27, 1  ;;  %11475 = vmatprep.mubr.msk.bf16.mxu0 %vm8505_vm6, %v18568_v48  ;;  %v8211_v41 = vrot.slane %v18557_v37, 1  ;;  %v7812_v45 = vshrl.u32 %v18417_v59, 16  ;;  %v7828_v58 = vrot.slane %v7826_v21, 1 }
 0x4c0   :  { %v7821_v17 = vrot.slane %v7819_v43, 1  ;;  %v20828_v34 = vpack.c.bf16 %v20826_v33, %v20827_v44  ;;  %v7824_v61 = vshrl.u32 %v18443_v30, 16  ;;  %v7831_v8 = vshll.u32 %v18429_v63, 16 }
 0x4c1   :  { %8383 = vrot.lane.b32.xlu0 %v18443_v30, %s12058_s19  ;;  %v18579_v51 = vsel %vm8184_vm5, %v8211_v41, %v8212_v3  ;;  %v7817_v39 = vor.u32 %v7816_v36, %v7812_v45  ;;  %v20830_v21 = vpack.c.bf16 %v18138_v53, %v18136_v47  ;;  %v7838_v63 = vshll.u32 %v18479_v20, 16  ;;  %v20833_v53 = vld [vmem:[#allocation45_spill] sm:$0xff]  ;;  %v20834_v45 = vld [vmem:[#allocation44_spill] sm:$0xff] }
 0x4c2   :  { %11476 = vmatmul.mubr.msk.bf16.gmra.mrb[140].mxu0 %vm8505_vm6, %v18579_v51  ;;  %v7833_v36 = vrot.slane %v7831_v8, 1  ;;  %v7850_v47 = vshll.u32 %v18512_v12, 16 }
 0x4c3   :  { %7168 = vrot.lane.b32.xlu1 %v18050_v42, %s12057_s29  ;;  %v18592_v3 = vsel %vm7755_vm7, %v7817_v39, %v7821_v17  ;;  %v7829_v42 = vor.u32 %v7828_v58, %v7824_v61  ;;  %v7840_v41 = vrot.slane %v7838_v63, 1  ;;  %v20835_v39 = vpack.c.bf16 %v20833_v53, %v20834_v45  ;;  %v12027_v45 = vld [vmem:[%s20458_s3 + $0x78] sm:$0xff] }
 0x4c4   :  { %20829 = vst [vmem:[#allocation14_spill] sm:$0xff] %v18592_v3  ;;  %v7843_v58 = vshll.u32 %v18471_v54, 16  ;;  %v7836_v17 = vshrl.u32 %v18479_v20, 16 }
 0x4c5   :  { %6978 = vrot.lane.b32.xlu0 %v20828_v34, %s12056_s25  ;;  %v18603_v43 = vsel %vm7755_vm7, %v7829_v42, %v7833_v36  ;;  %v7852_v34 = vrot.slane %v7850_v47, 1  ;;  %v20836_v42 = vld [vmem:[#allocation54_spill] sm:$0xff]  ;;  %v20837_v36 = vld [vmem:[#allocation52_spill] sm:$0xff]  ;;  %v7848_v47 = vshrl.u32 %v18512_v12, 16 }
 0x4c6   :  { %20831 = vst [vmem:[#allocation18_spill] sm:$0xff] %v18603_v43  ;;  %v7841_v44 = vor.u32 %v7840_v41, %v7836_v17  ;;  %v7845_v54 = vrot.slane %v7843_v58, 1  ;;  %v7855_v17 = vshll.u32 %v18491_v38, 16 }
 0x4c7   :  { %8321 = vrot.lane.b32.xlu1 %v18592_v3, %s12058_s19 }
 0x4c9   :  { %7170 = vrot.lane.b32.xlu0 %v18149_v49, %s12057_s29  ;;  %v20832_v49 = vpack.c.bf16 %v18134_v56, %v18132_v0  ;;  %v12025_v56 = vld [vmem:[%s20458_s3 + $0x70] sm:$0xff] }
 0x4cb   :  { %7074 = vrot.lane.b32.xlu1 %v20830_v21, %s12055_s17  ;;  %v20838_v21 = vpack.c.bf16 %v20836_v42, %v20837_v36  ;;  %v7853_v36 = vor.u32 %v7852_v34, %v7848_v47 }
 0x4cd   :  { %8323 = vrot.lane.b32.xlu0 %v18603_v43, %s12058_s19 }
 0x4cf   :  { %8385 = vrot.lane.b32.xlu1 %v18479_v20, %s12058_s19 }
 0x4d1   :  { %7076 = vrot.lane.b32.xlu0 %v20832_v49, %s12055_s17 }
 0x4d3   :  { %6980 = vrot.lane.b32.xlu1 %v20835_v39, %s12056_s25 }
 0x4d5   :  { %8387 = vrot.lane.b32.xlu0 %v18512_v12, %s12058_s19  ;;  %v11429_v33 = vpop.f32.mrb[108].mxu0 }
 0x4d6   :  { %v6356_v0 = vadd.f32 %v18306_v46, %v11429_v33  ;;  %v6708_v61 = vsub.f32 %v12025_v56, %v11429_v33  ;;  %v6160_v8 = vpop.f32.mrb[109].mxu0  ;;  %v18644_v33 = vsel %vm7755_vm7, %v7841_v44, %v7845_v54 }
 0x4d7   :  { %7172 = vrot.lane.b32.xlu1 %v18142_v13, %s12057_s29  ;;  %v6354_v63 = vadd.f32 %v18306_v46, %v6160_v8  ;;  %v12026_v13 = vld [vmem:[%s20458_s3 + $0x60] sm:$0xff]  ;;  %v11430_v41 = vpop.f32.mrb[110].mxu0  ;;  %20839 = vst [vmem:[#allocation16_spill] sm:$0xff] %v18644_v33 }
 0x4d8   :  { %v6706_v49 = vsub.f32 %v12026_v13, %v6160_v8  ;;  %v6357_v53 = vadd.f32 %v18306_v46, %v11430_v41  ;;  %v6709_v39 = vsub.f32 %v12027_v45, %v11430_v41  ;;  %v6163_v58 = vpop.f32.mrb[111].mxu0  ;;  %v12028_v8 = vld [vmem:[%s20458_s3 + $0x68] sm:$0xff]  ;;  %v18650_v13 = vmax.f32 %v6708_v61, 0.0 }
 0x4d9   :  { %6982 = vrot.lane.b32.xlu0 %v20838_v21, %s12056_s25  ;;  %v6355_v56 = vadd.f32 %v18306_v46, %v6163_v58  ;;  %v6707_v42 = vsub.f32 %v12028_v8, %v6163_v58  ;;  %v6484_v21 = vmax.f32 %v6356_v0, 0.0  ;;  %v6482_v38 = vmax.f32 %v6354_v63, 0.0 }
 0x4da   :  { %v6485_v1 = vmax.f32 %v6357_v53, 0.0  ;;  %v18652_v60 = vmax.f32 %v6709_v39, 0.0  ;;  %v18656_v44 = vmax.f32 %v6706_v49, 0.0  ;;  %v7857_v0 = vrot.slane %v7855_v17, 1 }
 0x4db   :  { %8325 = vrot.lane.b32.xlu1 %v18644_v33, %s12058_s19  ;;  %v6483_v54 = vmax.f32 %v6355_v56, 0.0  ;;  %v18658_v41 = vmax.f32 %v6707_v42, 0.0  ;;  %v20840_v63 = vpack.c.bf16 %v18224_v28, %v18222_v52  ;;  %v20843_v52 = vld [vmem:[#allocation51_spill] sm:$0xff]  ;;  %v20844_v28 = vld [vmem:[#allocation50_spill] sm:$0xff]  ;;  %v7867_v58 = vshll.u32 %v18546_v27, 16 }
 0x4dc   :  { %v18662_v45 = vpack.c.bf16 %v6485_v1, %v6484_v21  ;;  %v18675_v49 = vsel %vm7755_vm7, %v7853_v36, %v7857_v0  ;;  %v20842_v1 = vpack.c.bf16 %v18220_v4, %v18218_v25  ;;  %v20845_v39 = vpack.c.bf16 %v20843_v52, %v20844_v28  ;;  %v12029_v36 = vld [vmem:[%s20458_s3 + $0x90] sm:$0xff]  ;;  %v12032_v52 = vld [vmem:[%s20458_s3 + $0x88] sm:$0xff] }
 0x4dd   :  { %7174 = vrot.lane.b32.xlu0 %v18235_v22, %s12057_s29  ;;  %v18666_v61 = vpack.c.bf16 %v6483_v54, %v6482_v38  ;;  %20841 = vst [vmem:[#allocation103_spill] sm:$0xff] %v18675_v49  ;;  %v7862_v22 = vshll.u32 %v18557_v37, 16  ;;  %v7860_v17 = vshrl.u32 %v18557_v37, 16  ;;  %v7869_v8 = vrot.slane %v7867_v58, 1  ;;  %v12030_v54 = vld [vmem:[%s20458_s3 + $0x80] sm:$0xff] }
 0x4de   :  { %v20847_v25 = vpack.c.bf16 %v18364_v2, %v18345_v55  ;;  %v12031_v55 = vld [vmem:[%s20458_s3 + $0x98] sm:$0xff] }
 0x4df   :  { %7078 = vrot.lane.b32.xlu1 %v20840_v63, %s12055_s17  ;;  %v7864_v53 = vrot.slane %v7862_v22, 1 }
 0x4e1   :  { %8327 = vrot.lane.b32.xlu0 %v18675_v49, %s12058_s19  ;;  %v7865_v56 = vor.u32 %v7864_v53, %v7860_v17 }
 0x4e3   :  { %8389 = vrot.lane.b32.xlu1 %v18557_v37, %s12058_s19  ;;  %v18695_v42 = vsel %vm7755_vm7, %v7865_v56, %v7869_v8 }
 0x4e4   :  { %20846 = vst [vmem:[#allocation102_spill] sm:$0xff] %v18695_v42 }
 0x4e5   :  { %7080 = vrot.lane.b32.xlu0 %v20842_v1, %s12055_s17 }
 0x4e7   :  { %6984 = vrot.lane.b32.xlu1 %v20845_v39, %s12056_s25 }
 0x4eb   :  { %7176 = vrot.lane.b32.xlu1 %v18228_v24, %s12057_s29 }
 0x4ef   :  { %8329 = vrot.lane.b32.xlu1 %v18695_v42, %s12058_s19 }
 0x4f3   :  { %7082 = vrot.lane.b32.xlu1 %v20847_v25, %s12055_s17 }
 0x4f5   :  { %v11433_v4 = vpop.f32.mrb[112].mxu0 }
 0x4f6   :  { %v6360_v27 = vadd.f32 %v18306_v46, %v11433_v4  ;;  %v6712_v24 = vsub.f32 %v12029_v36, %v11433_v4  ;;  %v6176_v21 = vpop.f32.mrb[113].mxu0 }
 0x4f7   :  { %v6358_v38 = vadd.f32 %v18306_v46, %v6176_v21  ;;  %v6710_v0 = vsub.f32 %v12030_v54, %v6176_v21  ;;  %v11434_v63 = vpop.f32.mrb[114].mxu0  ;;  %v18727_v21 = vpop.permute.xlu0 %8311 }
 0x4f8   :  { %v6361_v2 = vadd.f32 %v18306_v46, %v11434_v63  ;;  %v6713_v22 = vsub.f32 %v12031_v55, %v11434_v63  ;;  %v6179_v1 = vpop.f32.mrb[115].mxu0  ;;  %v6488_v39 = vmax.f32 %v6360_v27, 0.0  ;;  %v18719_v58 = vmax.f32 %v6712_v24, 0.0  ;;  %20848 = vst [vmem:[#allocation99_spill] sm:$0xff] %v18727_v21 }
 0x4f9   :  { %v6359_v53 = vadd.f32 %v18306_v46, %v6179_v1  ;;  %v6711_v28 = vsub.f32 %v12032_v52, %v6179_v1  ;;  %v6486_v8 = vmax.f32 %v6358_v38, 0.0  ;;  %v18723_v25 = vmax.f32 %v6710_v0, 0.0  ;;  %v20852_v52 = vld [vmem:[#allocation29_spill] sm:$0xff] }
 0x4fa   :  { %v6489_v17 = vmax.f32 %v6361_v2, 0.0  ;;  %v18721_v56 = vmax.f32 %v6713_v22, 0.0  ;;  %v20849_v38 = vmov 0  ;;  %v8187_v22 = vrot.slane %v18272_v29, 1 }
 0x4fb   :  { %v6487_v4 = vmax.f32 %v6359_v53, 0.0  ;;  %v18725_v36 = vmax.f32 %v6711_v28, 0.0  ;;  %v20850_v38 = vsel %vm18738_vm8, 4294967295, %v20849_v38  ;;  %v7065_v0 = vpop.permute.xlu0 %7064  ;;  %v8188_v1 = vrot.slane %v18280_v9, 1 }
 0x4fc   :  { %v18729_v54 = vpack.c.bf16 %v6489_v17, %v6488_v39  ;;  %20851 = vst [vmem:[#allocation21_spill] sm:$0xff] %v20850_v38 }
 0x4fd   :  { %v18733_v55 = vpack.c.bf16 %v6487_v4, %v6486_v8  ;;  %v18752_v17 = vsel %vm8184_vm5, %v8187_v22, %v8188_v1 }
 0x4fe   :  { %20853 = vst [vmem:[#allocation20_spill] sm:$0xff] %v18752_v17 }
 0x501   :  { %v8374_v24 = vpop.permute.xlu1 %8373 }
 0x502   :  { %v8601_v2 = vsel %vm8505_vm6, %v18078_v6, %v8374_v24 }
 0x503   :  { %9283 = vmatprep.mubr.bf16.mxu1 %v8601_v2 }
 0x504   :  { %11070 = vmatmul.mubr.msk.bf16.vlgmr.msra.gmra.mrb[0].mxu1 %vm18738_vm8, %v18727_v21 }
 0x505   :  { %v6969_v53 = vpop.permute.xlu1 %6968  ;;  %v21001_v14 = vld [vmem:[#allocation20_spill] sm:$0xff] }
 0x506   :  { %v7236_v28 = vsel %vm7206_vm0, %v20852_v52, %v6969_v53  ;;  %v8376_v39 = vpop.permute.xlu0 %8375 }
 0x507   :  { %v8605_v8 = vsel %vm8505_vm6, %v18752_v17, %v8376_v39  ;;  %v7322_v24 = vsel %vm5565_vm15, %v7236_v28, %v7065_v0 }
 0x508   :  { %9291 = vmatprep.mubr.bf16.mxu1 %v8605_v8 }
 0x509   :  { %v7161_v4 = vpop.permute.xlu1 %7160 }
 0x50a   :  { %v7387_v9 = vsel %vm7367_vm1, %v7322_v24, %v7161_v4 }
 0x50b   :  { %v7486_v63 = vshrl.u32 %v7387_v9, 16  ;;  %v7489_v34 = vshll.u32 %v7387_v9, 16 }
 0x50c   :  { %v6971_v2 = vpop.permute.xlu0 %6970 }
 0x50d   :  { %v7488_v27 = vrot.slane %v7486_v63, 7  ;;  %v8314_v22 = vpop.permute.xlu1 %8313 }
 0x50e   :  { %v8510_v39 = vsel %vm8505_vm6, %v18272_v29, %v8314_v22 }
 0x50f   :  { %v7491_v47 = vor.u32 %v7489_v34, %v7488_v27  ;;  %v7732_v53 = vsel %vm18266_vm4, %v7488_v27, 0  ;;  %9292 = vmatmul.mubr.bf16.gmra.mrb[4].mxu1 %v8510_v39  ;;  %v20855_v27 = vld [vmem:[#allocation37_spill] sm:$0xff] }
 0x510   :  { %v7163_v52 = vpop.permute.xlu0 %7162  ;;  %v7879_v1 = vshll.u32 %v7732_v53, 16  ;;  %v8215_v0 = vrot.slane %v7732_v53, 1  ;;  %v7239_v28 = vsel %vm7206_vm0, %v20855_v27, %v6971_v2  ;;  %v12033_v2 = vld [vmem:[%s20458_s3 + $0xb0] sm:$0xff]  ;;  %v20857_v27 = vld [vmem:[#allocation57_spill] sm:$0xff] }
 0x511   :  { %v18764_v8 = vsel %vm18266_vm4, 0, %v7491_v47 }
 0x512   :  { %20854 = vst [vmem:[#allocation24_spill] sm:$0xff] %v18764_v8  ;;  %8391 = vrot.lane.b32.xlu0 %v18764_v8, %s12058_s19  ;;  %v8214_v34 = vrot.slane %v18764_v8, 1  ;;  %v7874_v63 = vshll.u32 %v18764_v8, 16  ;;  %v7881_v29 = vrot.slane %v7879_v1, 1  ;;  %v7872_v22 = vshrl.u32 %v18764_v8, 16  ;;  %v20856_v1 = vld [vmem:[#allocation60_spill] sm:$0xff] }
 0x513   :  { %v12036_v8 = vld [vmem:[%s20458_s3 + $0xa8] sm:$0xff] }
 0x514   :  { %v7067_v4 = vpop.permute.xlu1 %7066  ;;  %v18773_v24 = vsel %vm8184_vm5, %v8214_v34, %v8215_v0  ;;  %v8316_v9 = vpop.permute.xlu0 %8315 }
 0x515   :  { %v7324_v47 = vsel %vm5565_vm15, %v7239_v28, %v7067_v4  ;;  %v11437_v53 = vpop.f32.mrb[116].mxu0  ;;  %11479 = vmatprep.mubr.msk.bf16.mxu0 %vm8505_vm6, %v18773_v24  ;;  %v20858_v28 = vpack.c.bf16 %v20856_v1, %v20857_v27  ;;  %v7876_v4 = vrot.slane %v7874_v63, 1  ;;  %v18794_v3 = vsel %vm8505_vm6, %v18294_v10, %v8316_v9  ;;  %v12035_v63 = vld [vmem:[%s20458_s3 + $0xb8] sm:$0xff] }
 0x516   :  { %v7389_v39 = vsel %vm7367_vm1, %v7324_v47, %v7163_v52  ;;  %v6364_v42 = vadd.f32 %v18306_v46, %v11437_v53  ;;  %v6716_v0 = vsub.f32 %v12033_v2, %v11437_v53  ;;  %v6192_v34 = vpop.f32.mrb[117].mxu0  ;;  %v12034_v52 = vld [vmem:[%s20458_s3 + $0xa0] sm:$0xff]  ;;  %20859 = vst [vmem:[#allocation22_spill] sm:$0xff] %v18794_v3 }
 0x517   :  { %6986 = vrot.lane.b32.xlu0 %v20858_v28, %s12056_s25  ;;  %v7492_v49 = vshrl.u32 %v7389_v39, 16  ;;  %v6362_v33 = vadd.f32 %v18306_v46, %v6192_v34  ;;  %v6714_v47 = vsub.f32 %v12034_v52, %v6192_v34  ;;  %v11438_v43 = vpop.f32.mrb[118].mxu0  ;;  %v7495_v53 = vshll.u32 %v7389_v39, 16 }
 0x518   :  { %v6492_v2 = vmax.f32 %v6364_v42, 0.0  ;;  %v8378_v17 = vpop.permute.xlu1 %8377  ;;  %v6365_v1 = vadd.f32 %v18306_v46, %v11438_v43  ;;  %v6717_v27 = vsub.f32 %v12035_v63, %v11438_v43  ;;  %v6195_v28 = vpop.f32.mrb[119].mxu0  ;;  %v18800_v21 = vmax.f32 %v6716_v0, 0.0 }
 0x519   :  { %v7494_v38 = vrot.slane %v7492_v49, 7  ;;  %v6490_v34 = vmax.f32 %v6362_v33, 0.0  ;;  %v7069_v52 = vpop.permute.xlu0 %7068  ;;  %v8609_v10 = vsel %vm8505_vm6, %v18313_v23, %v8378_v17  ;;  %v6363_v42 = vadd.f32 %v18306_v46, %v6195_v28 }
 0x51a   :  { %v6493_v9 = vmax.f32 %v6365_v1, 0.0  ;;  %v18804_v39 = vmax.f32 %v6717_v27, 0.0  ;;  %9299 = vmatprep.mubr.bf16.mxu1 %v8609_v10  ;;  %v6715_v43 = vsub.f32 %v12036_v8, %v6195_v28  ;;  %v18814_v0 = vmax.f32 %v6714_v47, 0.0  ;;  %v20860_v28 = vld [vmem:[#allocation35_spill] sm:$0xff] }
 0x51b   :  { %7178 = vrot.lane.b32.xlu0 %v18373_v16, %s12057_s29  ;;  %v7497_v49 = vor.u32 %v7495_v53, %v7494_v38  ;;  %v7733_v33 = vsel %vm18266_vm4, %v7494_v38, 0  ;;  %9300 = vmatmul.mubr.bf16.gmra.mrb[8].mxu1 %v18794_v3  ;;  %v7877_v17 = vor.u32 %v7876_v4, %v7872_v22  ;;  %v6491_v27 = vmax.f32 %v6363_v42, 0.0 }
 0x51c   :  { %v18817_v1 = vpack.c.bf16 %v6493_v9, %v6492_v2  ;;  %v18821_v10 = vmax.f32 %v6715_v43, 0.0  ;;  %v6973_v8 = vpop.permute.xlu1 %6972 }
 0x51d   :  { %v7242_v16 = vsel %vm7206_vm0, %v20860_v28, %v6973_v8  ;;  %v8380_v53 = vpop.permute.xlu0 %8379  ;;  %v18827_v38 = vsel %vm18266_vm4, 0, %v7497_v49  ;;  %v18829_v47 = vpack.c.bf16 %v6491_v27, %v6490_v34  ;;  %v18838_v2 = vsel %vm7755_vm7, %v7877_v17, %v7881_v29 }
 0x51e   :  { %8393 = vrot.lane.b32.xlu1 %v18827_v38, %s12058_s19  ;;  %v8613_v4 = vsel %vm8505_vm6, %v18379_v62, %v8380_v53  ;;  %20861 = vst [vmem:[#allocation98_spill] sm:$0xff] %v18838_v2  ;;  %v8217_v9 = vrot.slane %v18827_v38, 1  ;;  %v8218_v34 = vrot.slane %v7733_v33, 1  ;;  %v7886_v42 = vshll.u32 %v18827_v38, 16  ;;  %v20862_v53 = vld [vmem:[#allocation58_spill] sm:$0xff] }
 0x51f   :  { %9307 = vmatprep.mubr.bf16.mxu1 %v8613_v4  ;;  %8331 = vrot.lane.b32.xlu0 %v18838_v2, %s12058_s19  ;;  %v7326_v49 = vsel %vm5565_vm15, %v7242_v16, %v7069_v52  ;;  %v20863_v4 = vld [vmem:[#allocation56_spill] sm:$0xff]  ;;  %v20865_v52 = vpack.c.bf16 %v18348_v18, %v18334_v50  ;;  %v7884_v16 = vshrl.u32 %v18827_v38, 16  ;;  %v20867_v18 = vld [vmem:[#allocation43_spill] sm:$0xff] }
 0x520   :  { %v7165_v43 = vpop.permute.xlu1 %7164  ;;  %v18847_v8 = vsel %vm8184_vm5, %v8217_v9, %v8218_v34  ;;  %v7888_v29 = vrot.slane %v7886_v42, 1  ;;  %v20864_v63 = vpack.c.bf16 %v20862_v53, %v20863_v4  ;;  %v7891_v9 = vshll.u32 %v7733_v33, 16 }
 0x521   :  { %v7391_v27 = vsel %vm7367_vm1, %v7326_v49, %v7165_v43  ;;  %v6975_v28 = vpop.permute.xlu0 %6974  ;;  %11480 = vmatmul.mubr.msk.bf16.gmra.mrb[144].mxu0 %vm8505_vm6, %v18847_v8 }
 0x522   :  { %v7498_v17 = vshrl.u32 %v7391_v27, 16  ;;  %6988 = vrot.lane.b32.xlu1 %v20864_v63, %s12056_s25  ;;  %v7501_v43 = vshll.u32 %v7391_v27, 16  ;;  %v7889_v2 = vor.u32 %v7888_v29, %v7884_v16  ;;  %v7893_v50 = vrot.slane %v7891_v9, 1 }
 0x523   :  { %7084 = vrot.lane.b32.xlu0 %v20865_v52, %s12055_s17  ;;  %v7245_v33 = vsel %vm7206_vm0, %v20867_v18, %v6975_v28 }
 0x524   :  { %v7500_v34 = vrot.slane %v7498_v17, 7  ;;  %v8318_v42 = vpop.permute.xlu1 %8317 }
 0x525   :  { %v7167_v49 = vpop.permute.xlu0 %7166  ;;  %v18862_v22 = vsel %vm8505_vm6, %v18343_v7, %v8318_v42  ;;  %v20869_v42 = vld [vmem:[#allocation66_spill] sm:$0xff] }
 0x526   :  { %20866 = vst [vmem:[#allocation107_spill] sm:$0xff] %v18862_v22  ;;  %v7503_v3 = vor.u32 %v7501_v43, %v7500_v34  ;;  %v7734_v63 = vsel %vm18266_vm4, %v7500_v34, 0  ;;  %7180 = vrot.lane.b32.xlu1 %v18360_v11, %s12057_s29  ;;  %9308 = vmatmul.mubr.bf16.gmra.mrb[12].mxu1 %v18862_v22  ;;  %v18879_v11 = vsel %vm7755_vm7, %v7889_v2, %v7893_v50  ;;  %v20870_v50 = vld [vmem:[#allocation63_spill] sm:$0xff] }
 0x527   :  { %v8221_v7 = vrot.slane %v7734_v63, 1  ;;  %20868 = vst [vmem:[#allocation106_spill] sm:$0xff] %v18879_v11 }
 0x528   :  { %v7071_v27 = vpop.permute.xlu1 %7070  ;;  %v18873_v17 = vsel %vm18266_vm4, 0, %v7503_v3 }
 0x529   :  { %v7328_v29 = vsel %vm5565_vm15, %v7245_v33, %v7071_v27  ;;  %8395 = vrot.lane.b32.xlu0 %v18873_v17, %s12058_s19  ;;  %v8320_v53 = vpop.permute.xlu0 %8319  ;;  %v8220_v4 = vrot.slane %v18873_v17, 1  ;;  %v7898_v3 = vshll.u32 %v18873_v17, 16  ;;  %v7903_v27 = vshll.u32 %v7734_v63, 16 }
 0x52a   :  { %v7393_v52 = vsel %vm7367_vm1, %v7328_v29, %v7167_v49  ;;  %8333 = vrot.lane.b32.xlu1 %v18879_v11, %s12058_s19  ;;  %v20871_v49 = vpack.c.bf16 %v20869_v42, %v20870_v50  ;;  %v18903_v29 = vsel %vm8505_vm6, %v18384_v32, %v8320_v53 }
 0x52b   :  { %v7504_v28 = vshrl.u32 %v7393_v52, 16  ;;  %v18887_v16 = vsel %vm8184_vm5, %v8220_v4, %v8221_v7  ;;  %v7900_v34 = vrot.slane %v7898_v3, 1  ;;  %v7507_v43 = vshll.u32 %v7393_v52, 16  ;;  %20873 = vst [vmem:[#allocation105_spill] sm:$0xff] %v18903_v29 }
 0x52c   :  { %v8382_v9 = vpop.permute.xlu1 %8381  ;;  %11483 = vmatprep.mubr.msk.bf16.mxu0 %vm8505_vm6, %v18887_v16  ;;  %v20872_v7 = vpack.c.bf16 %v18548_v40, %v18536_v15  ;;  %v7896_v4 = vshrl.u32 %v18873_v17, 16  ;;  %v7905_v40 = vrot.slane %v7903_v27, 1 }
 0x52d   :  { %v7506_v2 = vrot.slane %v7504_v28, 7  ;;  %6990 = vrot.lane.b32.xlu0 %v20871_v49, %s12056_s25  ;;  %v8617_v33 = vsel %vm8505_vm6, %v18404_v35, %v8382_v9  ;;  %v20874_v9 = vld [vmem:[#allocation41_spill] sm:$0xff] }
 0x52e   :  { %7086 = vrot.lane.b32.xlu1 %v20872_v7, %s12055_s17  ;;  %9315 = vmatprep.mubr.bf16.mxu1 %v8617_v33  ;;  %v7901_v63 = vor.u32 %v7900_v34, %v7896_v4 }
 0x52f   :  { %v7073_v18 = vpop.permute.xlu0 %7072  ;;  %v7509_v52 = vor.u32 %v7507_v43, %v7506_v2  ;;  %v7735_v3 = vsel %vm18266_vm4, %v7506_v2, 0  ;;  %9316 = vmatmul.mubr.bf16.gmra.mrb[16].mxu1 %v18903_v29 }
 0x530   :  { %v8224_v2 = vrot.slane %v7735_v3, 1  ;;  %v7915_v50 = vshll.u32 %v7735_v3, 16  ;;  %v18925_v33 = vsel %vm7755_vm7, %v7901_v63, %v7905_v40 }
 0x531   :  { %v6977_v28 = vpop.permute.xlu1 %6976  ;;  %7182 = vrot.lane.b32.xlu0 %v18559_v26, %s12057_s29  ;;  %v18915_v32 = vsel %vm18266_vm4, 0, %v7509_v52  ;;  %20875 = vst [vmem:[#allocation30_spill] sm:$0xff] %v18925_v33 }
 0x532   :  { %v7248_v42 = vsel %vm7206_vm0, %v20874_v9, %v6977_v28  ;;  %8397 = vrot.lane.b32.xlu1 %v18915_v32, %s12058_s19  ;;  %v8223_v34 = vrot.slane %v18915_v32, 1  ;;  %v7910_v43 = vshll.u32 %v18915_v32, 16  ;;  %v20877_v9 = vld [vmem:[#allocation62_spill] sm:$0xff]  ;;  %v7908_v40 = vshrl.u32 %v18915_v32, 16 }
 0x533   :  { %v8384_v15 = vpop.permute.xlu0 %8383  ;;  %v7330_v49 = vsel %vm5565_vm15, %v7248_v42, %v7073_v18  ;;  %v20876_v18 = vld [vmem:[#allocation64_spill] sm:$0xff] }
 0x534   :  { %v8621_v53 = vsel %vm8505_vm6, %v18437_v57, %v8384_v15  ;;  %v18928_v27 = vsel %vm8184_vm5, %v8223_v34, %v8224_v2  ;;  %v7912_v3 = vrot.slane %v7910_v43, 1  ;;  %v20878_v63 = vpack.c.bf16 %v20876_v18, %v20877_v9  ;;  %v12037_v34 = vld [vmem:[%s20458_s3 + $0xd0] sm:$0xff]  ;;  %v12038_v18 = vld [vmem:[%s20458_s3 + $0xc0] sm:$0xff] }
 0x535   :  { %9323 = vmatprep.mubr.bf16.mxu1 %v8621_v53  ;;  %v7169_v26 = vpop.permute.xlu1 %7168  ;;  %8335 = vrot.lane.b32.xlu0 %v18925_v33, %s12058_s19  ;;  %v11441_v52 = vpop.f32.mrb[120].mxu0 }
 0x536   :  { %v7395_v7 = vsel %vm7367_vm1, %v7330_v49, %v7169_v26  ;;  %11484 = vmatmul.mubr.msk.bf16.gmra.mrb[148].mxu0 %vm8505_vm6, %v18928_v27  ;;  %6992 = vrot.lane.b32.xlu1 %v20878_v63, %s12056_s25  ;;  %v6368_v42 = vadd.f32 %v18306_v46, %v11441_v52  ;;  %v6208_v15 = vpop.f32.mrb[121].mxu0  ;;  %v6720_v2 = vsub.f32 %v12037_v34, %v11441_v52  ;;  %v7917_v49 = vrot.slane %v7915_v50, 1  ;;  %v20879_v52 = vld [vmem:[#allocation49_spill] sm:$0xff] }
 0x537   :  { %v6979_v4 = vpop.permute.xlu0 %6978  ;;  %v7510_v28 = vshrl.u32 %v7395_v7, 16  ;;  %v7513_v53 = vshll.u32 %v7395_v7, 16  ;;  %v6366_v26 = vadd.f32 %v18306_v46, %v6208_v15  ;;  %v11442_v43 = vpop.f32.mrb[122].mxu0  ;;  %v6718_v9 = vsub.f32 %v12038_v18, %v6208_v15  ;;  %v12039_v7 = vld [vmem:[%s20458_s3 + $0xd8] sm:$0xff] }
 0x538   :  { %v6369_v63 = vadd.f32 %v18306_v46, %v11442_v43  ;;  %v6721_v29 = vsub.f32 %v12039_v7, %v11442_v43  ;;  %v6211_v22 = vpop.f32.mrb[123].mxu0  ;;  %v7251_v34 = vsel %vm7206_vm0, %v20879_v52, %v6979_v4  ;;  %v6496_v57 = vmax.f32 %v6368_v42, 0.0 }
 0x539   :  { %v7512_v33 = vrot.slane %v7510_v28, 7  ;;  %v8322_v11 = vpop.permute.xlu1 %8321  ;;  %v20880_v50 = vpack.c.bf16 %v18538_v19, %v18523_v31  ;;  %v7913_v18 = vor.u32 %v7912_v3, %v7908_v40  ;;  %v18962_v35 = vmax.f32 %v6720_v2, 0.0 }
 0x53a   :  { %v18960_v15 = vsel %vm8505_vm6, %v18417_v59, %v8322_v11  ;;  %v6497_v43 = vmax.f32 %v6369_v63, 0.0  ;;  %v18964_v7 = vmax.f32 %v6721_v29, 0.0  ;;  %7184 = vrot.lane.b32.xlu1 %v18550_v5, %s12057_s29  ;;  %v6494_v31 = vmax.f32 %v6366_v26, 0.0  ;;  %v12040_v59 = vld [vmem:[%s20458_s3 + $0xc8] sm:$0xff] }
 0x53b   :  { %7088 = vrot.lane.b32.xlu0 %v20880_v50, %s12055_s17  ;;  %v7171_v28 = vpop.permute.xlu0 %7170  ;;  %v7515_v62 = vor.u32 %v7513_v53, %v7512_v33  ;;  %9324 = vmatmul.mubr.bf16.gmra.mrb[20].mxu1 %v18960_v15  ;;  %v7736_v19 = vsel %vm18266_vm4, %v7512_v33, 0  ;;  %v6367_v4 = vadd.f32 %v18306_v46, %v6211_v22  ;;  %v6719_v11 = vsub.f32 %v12040_v59, %v6211_v22 }
 0x53c   :  { %v18975_v3 = vmax.f32 %v6718_v9, 0.0  ;;  %v18977_v29 = vpack.c.bf16 %v6497_v43, %v6496_v57  ;;  %v18991_v57 = vsel %vm7755_vm7, %v7913_v18, %v7917_v49  ;;  %v8227_v2 = vrot.slane %v7736_v19, 1 }
 0x53d   :  { %v7075_v42 = vpop.permute.xlu1 %7074  ;;  %v18983_v40 = vsel %vm18266_vm4, 0, %v7515_v62  ;;  %v6495_v33 = vmax.f32 %v6367_v4, 0.0  ;;  %v18985_v53 = vmax.f32 %v6719_v11, 0.0  ;;  %20881 = vst [vmem:[#allocation28_spill] sm:$0xff] %v18991_v57  ;;  %v20883_v4 = vld [vmem:[#allocation69_spill] sm:$0xff] }
 0x53e   :  { %v7332_v46 = vsel %vm5565_vm15, %v7251_v34, %v7075_v42  ;;  %8337 = vrot.lane.b32.xlu1 %v18991_v57, %s12058_s19  ;;  %v8226_v62 = vrot.slane %v18983_v40, 1  ;;  %v7922_v49 = vshll.u32 %v18983_v40, 16  ;;  %v20885_v42 = vld [vmem:[#allocation8_spill] sm:$0xff] }
 0x53f   :  { %8399 = vrot.lane.b32.xlu0 %v18983_v40, %s12058_s19  ;;  %v8324_v22 = vpop.permute.xlu0 %8323  ;;  %v7397_v26 = vsel %vm7367_vm1, %v7332_v46, %v7171_v28  ;;  %v18997_v9 = vpack.c.bf16 %v6495_v33, %v6494_v31  ;;  %v11893_v28 = vld [vmem:[%s20459_s4 + $0x80] sm:$0xff]   ;;  %v20882_v31 = vld [vmem:[#allocation72_spill] sm:$0xff]  ;;  %v7927_v46 = vshll.u32 %v7736_v19, 16 }
 0x540   :  { %v7516_v52 = vshrl.u32 %v7397_v26, 16  ;;  %v19002_v50 = vsel %vm8184_vm5, %v8226_v62, %v8227_v2  ;;  %v7519_v43 = vshll.u32 %v7397_v26, 16  ;;  %v20884_v59 = vpack.c.bf16 %v20882_v31, %v20883_v4  ;;  %9541 = vmatpush1.bf16.msra.mxu1 %v11893_v28 }
 0x541   :  { %v8386_v34 = vpop.permute.xlu1 %8385  ;;  %11487 = vmatprep.mubr.msk.bf16.mxu0 %vm8505_vm6, %v19002_v50  ;;  %v20886_v2 = vpack.c.bf16 %v18658_v41, %v18656_v44  ;;  %v19022_v26 = vsel %vm8505_vm6, %v18443_v30, %v8324_v22  ;;  %v7920_v62 = vshrl.u32 %v18983_v40, 16  ;;  %v20888_v22 = vmov 0  }
 0x542   :  { %v7518_v18 = vrot.slane %v7516_v52, 7  ;;  %v8625_v33 = vsel %vm8505_vm6, %v20885_v42, %v8386_v34  ;;  %v7924_v52 = vrot.slane %v7922_v49, 1  ;;  %9542 = vmatprep.subr.bf16.mxu1 %v20888_v22  ;;  %v7929_v49 = vrot.slane %v7927_v46, 1 }
 0x543   :  { %6994 = vrot.lane.b32.xlu0 %v20884_v59, %s12056_s25  ;;  %v7077_v11 = vpop.permute.xlu0 %7076  ;;  %7090 = vrot.lane.b32.xlu1 %v20886_v2, %s12055_s17  ;;  %v20887_v59 = vld [vmem:[#allocation47_spill] sm:$0xff] }
 0x544   :  { %9331 = vmatprep.mubr.bf16.mxu1 %v8625_v33  ;;  %v7521_v31 = vor.u32 %v7519_v43, %v7518_v18  ;;  %v7737_v4 = vsel %vm18266_vm4, %v7518_v18, 0  ;;  %v7925_v34 = vor.u32 %v7924_v52, %v7920_v62  ;;  %v20889_v18 = vld [vmem:[#allocation15_spill] sm:$0xff] }
 0x545   :  { %9332 = vmatmul.mubr.bf16.gmra.mrb[24].mxu1 %v19022_v26  ;;  %v6981_v19 = vpop.permute.xlu1 %6980  ;;  %v8230_v33 = vrot.slane %v7737_v4, 1 }
 0x546   :  { %v7254_v44 = vsel %vm7206_vm0, %v20887_v59, %v6981_v19  ;;  %v19034_v41 = vsel %vm18266_vm4, 0, %v7521_v31  ;;  %v19045_v52 = vsel %vm7755_vm7, %v7925_v34, %v7929_v49  ;;  %v7939_v49 = vshll.u32 %v7737_v4, 16 }
 0x547   :  { %7186 = vrot.lane.b32.xlu0 %v18666_v61, %s12057_s29  ;;  %v8388_v30 = vpop.permute.xlu0 %8387  ;;  %8401 = vrot.lane.b32.xlu1 %v19034_v41, %s12058_s19  ;;  %v8229_v43 = vrot.slane %v19034_v41, 1  ;;  %v7934_v61 = vshll.u32 %v19034_v41, 16  ;;  %v7334_v62 = vsel %vm5565_vm15, %v7254_v44, %v7077_v11  ;;  %20890 = vst [vmem:[#allocation101_spill] sm:$0xff] %v19045_v52  ;;  %v20892_v11 = vld [vmem:[#allocation68_spill] sm:$0xff]  ;;  %v7932_v34 = vshrl.u32 %v19034_v41, 16 }
 0x548   :  { %v8629_v28 = vsel %vm8505_vm6, %v20889_v18, %v8388_v30  ;;  %v7941_v4 = vrot.slane %v7939_v49, 1 }
 0x549   :  { %9339 = vmatprep.mubr.bf16.mxu1 %v8629_v28  ;;  %v7173_v2 = vpop.permute.xlu1 %7172  ;;  %v19048_v46 = vsel %vm8184_vm5, %v8229_v43, %v8230_v33  ;;  %v7936_v59 = vrot.slane %v7934_v61, 1  ;;  %v20891_v28 = vld [vmem:[#allocation70_spill] sm:$0xff] }
 0x54a   :  { %v7399_v31 = vsel %vm7367_vm1, %v7334_v62, %v7173_v2  ;;  %11488 = vmatmul.mubr.msk.bf16.gmra.mrb[152].mxu0 %vm8505_vm6, %v19048_v46  ;;  %v20893_v44 = vpack.c.bf16 %v20891_v28, %v20892_v11  ;;  %v20894_v62 = vpack.c.bf16 %v18652_v60, %v18650_v13 }
 0x54b   :  { %8339 = vrot.lane.b32.xlu0 %v19045_v52, %s12058_s19  ;;  %v6983_v19 = vpop.permute.xlu0 %6982  ;;  %v7522_v30 = vshrl.u32 %v7399_v31, 16  ;;  %v7525_v33 = vshll.u32 %v7399_v31, 16  ;;  %v7937_v63 = vor.u32 %v7936_v59, %v7932_v34  ;;  %v20896_v31 = vld [vmem:[#allocation55_spill] sm:$0xff] }
 0x54c   :  { %6996 = vrot.lane.b32.xlu1 %v20893_v44, %s12056_s25  ;;  %v7257_v60 = vsel %vm7206_vm0, %v20896_v31, %v6983_v19 }
 0x54d   :  { %v7524_v43 = vrot.slane %v7522_v30, 7  ;;  %v8326_v2 = vpop.permute.xlu1 %8325 }
 0x54e   :  { %v19066_v61 = vsel %vm8505_vm6, %v18479_v20, %v8326_v2  ;;  %v20899_v2 = vld [vmem:[#allocation75_spill] sm:$0xff] }
 0x54f   :  { %7092 = vrot.lane.b32.xlu0 %v20894_v62, %s12055_s17  ;;  %v7175_v5 = vpop.permute.xlu0 %7174  ;;  %20895 = vst [vmem:[#allocation100_spill] sm:$0xff] %v19066_v61  ;;  %v7527_v52 = vor.u32 %v7525_v33, %v7524_v43  ;;  %v19070_v28 = vsel %vm18266_vm4, %v7524_v43, 0  ;;  %9340 = vmatmul.mubr.bf16.gmra.mrb[28].mxu1 %v19066_v61 }
 0x550   :  { %7188 = vrot.lane.b32.xlu1 %v18662_v45, %s12057_s29  ;;  %v8306_v59 = vrot.slane %v19070_v28, 1  ;;  %v19086_v45 = vsel %vm7755_vm7, %v7937_v63, %v7941_v4  ;;  %v11894_v63 = vld [vmem:[%s20459_s4 + $0x88] sm:$0xff]  }
 0x551   :  { %v7079_v13 = vpop.permute.xlu1 %7078  ;;  %v19079_v20 = vsel %vm18266_vm4, 0, %v7527_v52  ;;  %20897 = vst [vmem:[#allocation104_spill] sm:$0xff] %v19086_v45  ;;  %9543 = vmatpush1.bf16.msra.mxu1 %v11894_v63 }
 0x552   :  { %v7336_v30 = vsel %vm5565_vm15, %v7257_v60, %v7079_v13  ;;  %v8305_v11 = vrot.slane %v19079_v20, 1  ;;  %v20901_v60 = vpack.c.bf16 %v18725_v36, %v18723_v25  ;;  %9544 = vmatprep.subr.bf16.mxu1 %v20888_v22 }
 0x553   :  { %8403 = vrot.lane.b32.xlu0 %v19079_v20, %s12058_s19  ;;  %v7401_v44 = vsel %vm7367_vm1, %v7336_v30, %v7175_v5  ;;  %v8328_v52 = vpop.permute.xlu0 %8327  ;;  %v20898_v5 = vld [vmem:[#allocation78_spill] sm:$0xff] }
 0x554   :  { %8341 = vrot.lane.b32.xlu1 %v19086_v45, %s12058_s19  ;;  %v7528_v19 = vshrl.u32 %v7401_v44, 16  ;;  %v19093_v34 = vsel %vm8184_vm5, %v8305_v11, %v8306_v59  ;;  %v7531_v33 = vshll.u32 %v7401_v44, 16  ;;  %v20900_v62 = vpack.c.bf16 %v20898_v5, %v20899_v2  ;;  %v12041_v59 = vld [vmem:[%s20457_s2] ss:$0 sm:$0xff]  ;;  %v12042_v11 = vld [vmem:[%s20458_s3 + $0xf0] sm:$0xff]  ;;  %v20903_v45 = vld [vmem:[#allocation53_spill] sm:$0xff] }
 0x555   :  { %v8390_v49 = vpop.permute.xlu1 %8389  ;;  %11491 = vmatprep.mubr.msk.bf16.mxu0 %vm8505_vm6, %v19093_v34  ;;  %v11445_v31 = vpop.f32.mrb[124].mxu0  ;;  %v19114_v13 = vsel %vm8505_vm6, %v18512_v12, %v8328_v52  ;;  %v12043_v12 = vld [vmem:[%s20458_s3 + $0xe0] sm:$0xff] }
 0x556   :  { %v7530_v43 = vrot.slane %v7528_v19, 7  ;;  %v8633_v4 = vsel %vm8505_vm6, %v18568_v48, %v8390_v49  ;;  %11492 = vmatmul.mubr.msk.bf16.gmra.mrb[156].mxu0 %vm8505_vm6, %v18078_v6  ;;  %20902 = vst [vmem:[#allocation7_spill] sm:$0xff] %v19114_v13  ;;  %v6372_v30 = vadd.f32 %v12041_v59, %v11445_v31  ;;  %v6724_v44 = vsub.f32 %v12042_v11, %v11445_v31  ;;  %v6224_v19 = vpop.f32.mrb[125].mxu0 }
 0x557   :  { %6998 = vrot.lane.b32.xlu0 %v20900_v62, %s12056_s25  ;;  %9347 = vmatprep.mubr.bf16.mxu1 %v8633_v4  ;;  %v6370_v25 = vadd.f32 %v12041_v59, %v6224_v19  ;;  %v6722_v36 = vsub.f32 %v12043_v12, %v6224_v19  ;;  %v11446_v52 = vpop.f32.mrb[126].mxu0  ;;  %v12044_v4 = vld [vmem:[%s20458_s3 + $0xf8] sm:$0xff]  ;;  %v7081_v12 = vpop.permute.xlu0 %7080 }
 0x558   :  { %7094 = vrot.lane.b32.xlu1 %v20901_v60, %s12055_s17  ;;  %v7533_v49 = vor.u32 %v7531_v33, %v7530_v43  ;;  %9348 = vmatmul.mubr.bf16.gmra.mrb[32].mxu1 %v19114_v13  ;;  %v19128_v5 = vsel %vm18266_vm4, %v7530_v43, 0  ;;  %v6373_v62 = vadd.f32 %v12041_v59, %v11446_v52  ;;  %v6725_v33 = vsub.f32 %v12044_v4, %v11446_v52  ;;  %v6227_v31 = vpop.f32.mrb[127].mxu0 }
 0x559   :  { %v6985_v2 = vpop.permute.xlu1 %6984  ;;  %v6500_v60 = vmax.f32 %v6372_v30, 0.0  ;;  %v19133_v11 = vmax.f32 %v6724_v44, 0.0  ;;  %v6371_v63 = vadd.f32 %v12041_v59, %v6227_v31  ;;  %v19151_v44 = vmax.f32 %v6722_v36, 0.0 }
 0x55a   :  { %v7260_v19 = vsel %vm7206_vm0, %v20903_v45, %v6985_v2  ;;  %v19141_v43 = vsel %vm18266_vm4, 0, %v7533_v49  ;;  %v6501_v57 = vmax.f32 %v6373_v62, 0.0  ;;  %v19144_v52 = vmax.f32 %v6725_v33, 0.0  ;;  %v12045_v45 = vld [vmem:[%s20458_s3 + $0xe8] sm:$0xff] }
 0x55b   :  { %7190 = vrot.lane.b32.xlu0 %v18733_v55, %s12057_s29  ;;  %v6723_v30 = vsub.f32 %v12045_v45, %v6227_v31  ;;  %v6498_v55 = vmax.f32 %v6370_v25, 0.0  ;;  %v7338_v49 = vsel %vm5565_vm15, %v7260_v19, %v7081_v12  ;;  %v7946_v2 = vshll.u32 %v19141_v43, 16  ;;  %v20904_v31 = vld [vmem:[#allocation76_spill] sm:$0xff]  ;;  %v20905_v25 = vld [vmem:[#allocation74_spill] sm:$0xff] }
 0x55c   :  { %8405 = vrot.lane.b32.xlu1 %v19141_v43, %s12058_s19  ;;  %v19155_v4 = vpack.c.bf16 %v6501_v57, %v6500_v60  ;;  %v6499_v33 = vmax.f32 %v6371_v63, 0.0  ;;  %v20906_v36 = vpack.c.bf16 %v20904_v31, %v20905_v25  ;;  %v7944_v19 = vshrl.u32 %v19141_v43, 16 }
 0x55d   :  { %v19159_v13 = vmax.f32 %v6723_v30, 0.0  ;;  %v7177_v59 = vpop.permute.xlu1 %7176  ;;  %v7948_v12 = vrot.slane %v7946_v2, 1  ;;  %v20907_v63 = vpack.c.bf16 %v18721_v56, %v18719_v58  ;;  %v7951_v30 = vshll.u32 %v19128_v5, 16 }
 0x55e   :  { %v7403_v61 = vsel %vm7367_vm1, %v7338_v49, %v7177_v59  ;;  %v19167_v45 = vpack.c.bf16 %v6499_v33, %v6498_v55 }
 0x55f   :  { %7000 = vrot.lane.b32.xlu0 %v20906_v36, %s12056_s25  ;;  %v7534_v60 = vshrl.u32 %v7403_v61, 16  ;;  %v7537_v59 = vshll.u32 %v7403_v61, 16  ;;  %v7949_v31 = vor.u32 %v7948_v12, %v7944_v19  ;;  %v7953_v33 = vrot.slane %v7951_v30, 1  ;;  %v11895_v12 = vld [vmem:[%s20459_s4 + $0x90] sm:$0xff]   ;;  %v20911_v30 = vld [vmem:[#allocation81_spill] sm:$0xff] }
 0x560   :  { %7096 = vrot.lane.b32.xlu1 %v20907_v63, %s12055_s17  ;;  %v20910_v63 = vld [vmem:[#allocation84_spill] sm:$0xff]  ;;  %9545 = vmatpush1.bf16.msra.mxu1 %v11895_v12 }
 0x561   :  { %v7536_v49 = vrot.slane %v7534_v60, 7  ;;  %v19181_v25 = vsel %vm7755_vm7, %v7949_v31, %v7953_v33  ;;  %v20909_v60 = vpack.c.bf16 %v18821_v10, %v18814_v0  ;;  %9546 = vmatprep.subr.bf16.mxu1 %v20888_v22  ;;  %v11896_v0 = vld [vmem:[%s20459_s4 + $0x98] sm:$0xff]  }
 0x562   :  { %20908 = vst [vmem:[#allocation5_spill] sm:$0xff] %v19181_v25 }
 0x563   :  { %7192 = vrot.lane.b32.xlu0 %v18729_v54, %s12057_s29  ;;  %v7539_v2 = vor.u32 %v7537_v59, %v7536_v49  ;;  %v7740_v55 = vsel %vm18266_vm4, %v7536_v49, 0  ;;  %v20912_v49 = vpack.c.bf16 %v20910_v63, %v20911_v30 }
 0x564   :  { %v8236_v56 = vrot.slane %v7740_v55, 1  ;;  %v7963_v59 = vshll.u32 %v7740_v55, 16  ;;  %9547 = vmatpush1.bf16.msra.mxu1 %v11896_v0 }
 0x565   :  { %v19185_v58 = vsel %vm18266_vm4, 0, %v7539_v2  ;;  %9548 = vmatprep.subr.bf16.mxu1 %v20888_v22 }
 0x566   :  { %8407 = vrot.lane.b32.xlu1 %v19185_v58, %s12058_s19  ;;  %v8235_v54 = vrot.slane %v19185_v58, 1  ;;  %v7958_v61 = vshll.u32 %v19185_v58, 16  ;;  %v7956_v31 = vshrl.u32 %v19185_v58, 16  ;;  %v7965_v33 = vrot.slane %v7963_v59, 1 }
 0x567   :  { %8343 = vrot.lane.b32.xlu0 %v19181_v25, %s12058_s19 }
 0x568   :  { %v19194_v36 = vsel %vm8184_vm5, %v8235_v54, %v8236_v56  ;;  %v7960_v19 = vrot.slane %v7958_v61, 1 }
 0x569   :  { %11495 = vmatprep.mubr.msk.bf16.mxu0 %vm8505_vm6, %v19194_v36 }
 0x56a   :  { %7002 = vrot.lane.b32.xlu1 %v20912_v49, %s12056_s25  ;;  %v7961_v2 = vor.u32 %v7960_v19, %v7956_v31  ;;  %v11897_v19 = vld [vmem:[%s20459_s4 + $0xa0] sm:$0xff]  }
 0x56b   :  { %7098 = vrot.lane.b32.xlu0 %v20909_v60, %s12055_s17  ;;  %9549 = vmatpush1.bf16.msra.mxu1 %v11897_v19 }
 0x56c   :  { %v19217_v10 = vsel %vm7755_vm7, %v7961_v2, %v7965_v33  ;;  %9550 = vmatprep.subr.bf16.mxu1 %v20888_v22  ;;  %v20923_v2 = vld [vmem:[#allocation61_spill] sm:$0xff] }
 0x56d   :  { %20913 = vst [vmem:[#allocation13_spill] sm:$0xff] %v19217_v10 }
 0x56e   :  { %7194 = vrot.lane.b32.xlu1 %v18829_v47, %s12057_s29  ;;  %v20916_v47 = vpack.c.bf16 %v18804_v39, %v18800_v21  ;;  %v8330_v21 = vpop.permute.xlu1 %8329 }
 0x56f   :  { %v19250_v59 = vsel %vm8505_vm6, %v18557_v37, %v8330_v21  ;;  %v11898_v37 = vld [vmem:[%s20459_s4 + $0xa8] sm:$0xff]  }
 0x570   :  { %9551 = vmatpush1.bf16.msra.mxu1 %v11898_v37  ;;  %v20929_v37 = vld [vmem:[#allocation59_spill] sm:$0xff] }
 0x571   :  { %9552 = vmatprep.subr.bf16.mxu1 %v20888_v22 }
 0x572   :  { %8345 = vrot.lane.b32.xlu1 %v19217_v10, %s12058_s19  ;;  %v7083_v19 = vpop.permute.xlu1 %7082 }
 0x574   :  { %v19222_v55 = vpop.f32.mrb[128].mxu0 }
 0x575   :  { %20914 = vst [vmem:[#allocation27_spill] sm:$0xff] %v19222_v55  ;;  %v19224_v56 = vpop.f32.mrb[129].mxu0 }
 0x576   :  { %20915 = vst [vmem:[#allocation26_spill] sm:$0xff] %v19224_v56  ;;  %7100 = vrot.lane.b32.xlu1 %v20916_v47, %s12055_s17  ;;  %v19230_v54 = vpop.f32.mrb[130].mxu0 }
 0x577   :  { %20917 = vst [vmem:[#allocation11_spill] sm:$0xff] %v19230_v54  ;;  %v19232_v61 = vpop.f32.mrb[131].mxu0 }
 0x578   :  { %20918 = vst [vmem:[#allocation36_spill] sm:$0xff] %v19232_v61 }
 0x57e   :  { %v19238_v12 = vpop.f32.mrb[132].mxu0 }
 0x57f   :  { %20919 = vst [vmem:[#allocation34_spill] sm:$0xff] %v19238_v12  ;;  %v19240_v60 = vpop.f32.mrb[133].mxu0 }
 0x580   :  { %20920 = vst [vmem:[#allocation19_spill] sm:$0xff] %v19240_v60  ;;  %v19242_v63 = vpop.f32.mrb[134].mxu0 }
 0x581   :  { %20921 = vst [vmem:[#allocation17_spill] sm:$0xff] %v19242_v63  ;;  %v19244_v30 = vpop.f32.mrb[135].mxu0 }
 0x582   :  { %20922 = vst [vmem:[#allocation25_spill] sm:$0xff] %v19244_v30 }
 0x584   :  { %v8392_v39 = vpop.permute.xlu0 %8391 }
 0x585   :  { %v8637_v49 = vsel %vm8505_vm6, %v18579_v51, %v8392_v39 }
 0x586   :  { %9355 = vmatprep.mubr.bf16.mxu1 %v8637_v49 }
 0x587   :  { %9356 = vmatmul.mubr.bf16.gmra.mrb[36].mxu1 %v19250_v59 }
 0x589   :  { %v6987_v31 = vpop.permute.xlu0 %6986  ;;  %v19255_v0 = vpop.f32.mrb[136].mxu0 }
 0x58a   :  { %v7263_v33 = vsel %vm7206_vm0, %v20923_v2, %v6987_v31  ;;  %20924 = vst [vmem:[#allocation33_spill] sm:$0xff] %v19255_v0  ;;  %v19257_v47 = vpop.f32.mrb[137].mxu0 }
 0x58b   :  { %20925 = vst [vmem:[#allocation32_spill] sm:$0xff] %v19257_v47  ;;  %v19259_v62 = vpop.f32.mrb[138].mxu0  ;;  %v7340_v39 = vsel %vm5565_vm15, %v7263_v33, %v7083_v19  ;;  %v20928_v19 = vld [vmem:[#allocation24_spill] sm:$0xff] }
 0x58c   :  { %20926 = vst [vmem:[#allocation23_spill] sm:$0xff] %v19259_v62  ;;  %v19261_v57 = vpop.f32.mrb[139].mxu0 }
 0x58d   :  { %20927 = vst [vmem:[#allocation42_spill] sm:$0xff] %v19261_v57  ;;  %v7179_v49 = vpop.permute.xlu0 %7178 }
 0x58e   :  { %v7405_v21 = vsel %vm7367_vm1, %v7340_v39, %v7179_v49 }
 0x58f   :  { %v7540_v63 = vshrl.u32 %v7405_v21, 16  ;;  %v7543_v2 = vshll.u32 %v7405_v21, 16 }
 0x590   :  { %v8394_v0 = vpop.permute.xlu1 %8393 }
 0x591   :  { %v7542_v31 = vrot.slane %v7540_v63, 7  ;;  %v8641_v62 = vsel %vm8505_vm6, %v18773_v24, %v8394_v0  ;;  %v8332_v57 = vpop.permute.xlu0 %8331 }
 0x592   :  { %9363 = vmatprep.mubr.bf16.mxu1 %v8641_v62  ;;  %v19275_v12 = vsel %vm8505_vm6, %v20928_v19, %v8332_v57 }
 0x593   :  { %v7545_v47 = vor.u32 %v7543_v2, %v7542_v31  ;;  %v7741_v33 = vsel %vm18266_vm4, %v7542_v31, 0  ;;  %9364 = vmatmul.mubr.bf16.gmra.mrb[40].mxu1 %v19275_v12 }
 0x594   :  { %v6989_v39 = vpop.permute.xlu1 %6988  ;;  %v8239_v49 = vrot.slane %v7741_v33, 1  ;;  %v7975_v54 = vshll.u32 %v7741_v33, 16 }
 0x595   :  { %v19280_v63 = vsel %vm18266_vm4, 0, %v7545_v47  ;;  %v7266_v0 = vsel %vm7206_vm0, %v20929_v37, %v6989_v39  ;;  %v7085_v21 = vpop.permute.xlu0 %7084  ;;  %v19284_v2 = vpop.f32.mrb[140].mxu0 }
 0x596   :  { %20930 = vst [vmem:[#allocation40_spill] sm:$0xff] %v19284_v2  ;;  %8409 = vrot.lane.b32.xlu0 %v19280_v63, %s12058_s19  ;;  %v8238_v62 = vrot.slane %v19280_v63, 1  ;;  %v7342_v57 = vsel %vm5565_vm15, %v7266_v0, %v7085_v21  ;;  %v19290_v31 = vpop.f32.mrb[141].mxu0  ;;  %v7970_v19 = vshll.u32 %v19280_v63, 16  ;;  %v20934_v0 = vld [vmem:[#allocation82_spill] sm:$0xff]  ;;  %v20935_v21 = vld [vmem:[#allocation80_spill] sm:$0xff] }
 0x597   :  { %20931 = vst [vmem:[#allocation31_spill] sm:$0xff] %v19290_v31  ;;  %v19293_v47 = vpop.f32.mrb[142].mxu0  ;;  %v20936_v31 = vpack.c.bf16 %v20934_v0, %v20935_v21  ;;  %v7977_v33 = vrot.slane %v7975_v54, 1 }
 0x598   :  { %20932 = vst [vmem:[#allocation39_spill] sm:$0xff] %v19293_v47  ;;  %v19296_v30 = vsel %vm8184_vm5, %v8238_v62, %v8239_v49  ;;  %v7181_v39 = vpop.permute.xlu1 %7180  ;;  %v19298_v37 = vpop.f32.mrb[143].mxu0  ;;  %v7972_v2 = vrot.slane %v7970_v19, 1  ;;  %v7968_v47 = vshrl.u32 %v19280_v63, 16 }
 0x599   :  { %20933 = vst [vmem:[#allocation38_spill] sm:$0xff] %v19298_v37  ;;  %11496 = vmatmul.mubr.msk.bf16.gmra.mrb[160].mxu0 %vm8505_vm6, %v19296_v30  ;;  %v7407_v60 = vsel %vm7367_vm1, %v7342_v57, %v7181_v39 }
 0x59a   :  { %7004 = vrot.lane.b32.xlu0 %v20936_v31, %s12056_s25  ;;  %v7546_v55 = vshrl.u32 %v7407_v60, 16  ;;  %v7549_v61 = vshll.u32 %v7407_v60, 16  ;;  %v7973_v10 = vor.u32 %v7972_v2, %v7968_v47  ;;  %v20937_v60 = vld [vmem:[#allocation67_spill] sm:$0xff] }
 0x59b   :  { %v8396_v49 = vpop.permute.xlu0 %8395 }
 0x59c   :  { %v7548_v62 = vrot.slane %v7546_v55, 7  ;;  %v8334_v56 = vpop.permute.xlu1 %8333  ;;  %v8645_v37 = vsel %vm8505_vm6, %v18847_v8, %v8396_v49 }
 0x59d   :  { %9371 = vmatprep.mubr.bf16.mxu1 %v8645_v37  ;;  %v19312_v57 = vsel %vm8505_vm6, %v18827_v38, %v8334_v56  ;;  %v19326_v38 = vsel %vm7755_vm7, %v7973_v10, %v7977_v33 }
 0x59e   :  { %7196 = vrot.lane.b32.xlu0 %v18817_v1, %s12057_s29  ;;  %v7551_v31 = vor.u32 %v7549_v61, %v7548_v62  ;;  %v7742_v19 = vsel %vm18266_vm4, %v7548_v62, 0  ;;  %9372 = vmatmul.mubr.bf16.gmra.mrb[44].mxu1 %v19312_v57  ;;  %20938 = vst [vmem:[#allocation48_spill] sm:$0xff] %v19326_v38  ;;  %v11899_v62 = vld [vmem:[%s20459_s4 + $0xb0] sm:$0xff]  }
 0x59f   :  { %v6991_v55 = vpop.permute.xlu0 %6990  ;;  %v8242_v1 = vrot.slane %v7742_v19, 1  ;;  %9553 = vmatpush1.bf16.msra.mxu1 %v11899_v62 }
 0x5a0   :  { %v7269_v39 = vsel %vm7206_vm0, %v20937_v60, %v6991_v55  ;;  %v7087_v2 = vpop.permute.xlu1 %7086  ;;  %v19323_v47 = vsel %vm18266_vm4, 0, %v7551_v31  ;;  %v20939_v31 = vld [vmem:[#allocation90_spill] sm:$0xff]  ;;  %v20940_v55 = vld [vmem:[#allocation87_spill] sm:$0xff]  ;;  %9554 = vmatprep.subr.bf16.mxu1 %v20888_v22 }
 0x5a1   :  { %8411 = vrot.lane.b32.xlu1 %v19323_v47, %s12058_s19  ;;  %v8241_v56 = vrot.slane %v19323_v47, 1  ;;  %v7982_v54 = vshll.u32 %v19323_v47, 16  ;;  %v7344_v61 = vsel %vm5565_vm15, %v7269_v39, %v7087_v2  ;;  %v20941_v60 = vpack.c.bf16 %v20939_v31, %v20940_v55 }
 0x5a2   :  { %8347 = vrot.lane.b32.xlu0 %v19326_v38, %s12058_s19  ;;  %v20942_v2 = vpack.c.bf16 %v18985_v53, %v18975_v3  ;;  %v20969_v38 = vld [vmem:[#allocation85_spill] sm:$0xff] }
 0x5a3   :  { %v7183_v37 = vpop.permute.xlu0 %7182  ;;  %v19336_v0 = vsel %vm8184_vm5, %v8241_v56, %v8242_v1  ;;  %v7984_v49 = vrot.slane %v7982_v54, 1  ;;  %v7987_v1 = vshll.u32 %v7742_v19, 16  ;;  %v7980_v56 = vshrl.u32 %v19323_v47, 16  ;;  %v20943_v19 = vld [vmem:[#allocation65_spill] sm:$0xff] }
 0x5a4   :  { %v7409_v10 = vsel %vm7367_vm1, %v7344_v61, %v7183_v37  ;;  %v8398_v21 = vpop.permute.xlu1 %8397  ;;  %11499 = vmatprep.mubr.msk.bf16.mxu0 %vm8505_vm6, %v19336_v0 }
 0x5a5   :  { %v7552_v33 = vshrl.u32 %v7409_v10, 16  ;;  %7006 = vrot.lane.b32.xlu1 %v20941_v60, %s12056_s25  ;;  %v8649_v39 = vsel %vm8505_vm6, %v18887_v16, %v8398_v21  ;;  %v7555_v61 = vshll.u32 %v7409_v10, 16  ;;  %v7985_v21 = vor.u32 %v7984_v49, %v7980_v56 }
 0x5a6   :  { %7102 = vrot.lane.b32.xlu0 %v20942_v2, %s12055_s17  ;;  %9379 = vmatprep.mubr.bf16.mxu1 %v8649_v39  ;;  %v7989_v53 = vrot.slane %v7987_v1, 1 }
 0x5a7   :  { %v7554_v54 = vrot.slane %v7552_v33, 7  ;;  %v8336_v37 = vpop.permute.xlu0 %8335 }
 0x5a8   :  { %v6993_v31 = vpop.permute.xlu1 %6992  ;;  %v19358_v55 = vsel %vm8505_vm6, %v18873_v17, %v8336_v37 }
 0x5a9   :  { %v7557_v60 = vor.u32 %v7555_v61, %v7554_v54  ;;  %v7743_v3 = vsel %vm18266_vm4, %v7554_v54, 0  ;;  %7198 = vrot.lane.b32.xlu1 %v18997_v9, %s12057_s29  ;;  %9380 = vmatmul.mubr.bf16.gmra.mrb[48].mxu1 %v19358_v55  ;;  %v7272_v10 = vsel %vm7206_vm0, %v20943_v19, %v6993_v31  ;;  %v19375_v9 = vsel %vm7755_vm7, %v7985_v21, %v7989_v53  ;;  %v20945_v19 = vld [vmem:[#allocation88_spill] sm:$0xff] }
 0x5aa   :  { %v8245_v17 = vrot.slane %v7743_v3, 1  ;;  %20944 = vst [vmem:[#allocation46_spill] sm:$0xff] %v19375_v9 }
 0x5ab   :  { %v19369_v33 = vsel %vm18266_vm4, 0, %v7557_v60 }
 0x5ac   :  { %v7185_v39 = vpop.permute.xlu1 %7184  ;;  %8413 = vrot.lane.b32.xlu0 %v19369_v33, %s12058_s19  ;;  %v8244_v2 = vrot.slane %v19369_v33, 1  ;;  %v7994_v56 = vshll.u32 %v19369_v33, 16 }
 0x5ad   :  { %v7089_v62 = vpop.permute.xlu0 %7088  ;;  %8349 = vrot.lane.b32.xlu1 %v19375_v9, %s12058_s19 }
 0x5ae   :  { %v7346_v49 = vsel %vm5565_vm15, %v7272_v10, %v7089_v62  ;;  %v19383_v61 = vsel %vm8184_vm5, %v8244_v2, %v8245_v17  ;;  %v7996_v31 = vrot.slane %v7994_v56, 1  ;;  %v20946_v10 = vld [vmem:[#allocation86_spill] sm:$0xff]  ;;  %v20948_v17 = vpack.c.bf16 %v18964_v7, %v18962_v35 }
 0x5af   :  { %v7411_v1 = vsel %vm7367_vm1, %v7346_v49, %v7185_v39  ;;  %11500 = vmatmul.mubr.msk.bf16.gmra.mrb[164].mxu0 %vm8505_vm6, %v19383_v61  ;;  %v20947_v62 = vpack.c.bf16 %v20945_v19, %v20946_v10  ;;  %v7999_v39 = vshll.u32 %v7743_v3, 16  ;;  %v20949_v19 = vld [vmem:[#allocation73_spill] sm:$0xff] }
 0x5b0   :  { %v7558_v54 = vshrl.u32 %v7411_v1, 16  ;;  %v7561_v60 = vshll.u32 %v7411_v1, 16  ;;  %v8338_v53 = vpop.permute.xlu1 %8337  ;;  %v7992_v1 = vshrl.u32 %v19369_v33, 16 }
 0x5b1   :  { %v8400_v37 = vpop.permute.xlu0 %8399  ;;  %7008 = vrot.lane.b32.xlu0 %v20947_v62, %s12056_s25  ;;  %7104 = vrot.lane.b32.xlu1 %v20948_v17, %s12055_s17  ;;  %v19399_v2 = vsel %vm8505_vm6, %v18915_v32, %v8338_v53  ;;  %v8001_v7 = vrot.slane %v7999_v39, 1 }
 0x5b2   :  { %v7560_v21 = vrot.slane %v7558_v54, 7  ;;  %v8653_v49 = vsel %vm8505_vm6, %v18928_v27, %v8400_v37  ;;  %v7997_v3 = vor.u32 %v7996_v31, %v7992_v1 }
 0x5b3   :  { %9387 = vmatprep.mubr.bf16.mxu1 %v8653_v49 }
 0x5b4   :  { %v7563_v56 = vor.u32 %v7561_v60, %v7560_v21  ;;  %v7744_v54 = vsel %vm18266_vm4, %v7560_v21, 0  ;;  %9388 = vmatmul.mubr.bf16.gmra.mrb[52].mxu1 %v19399_v2  ;;  %v19419_v49 = vsel %vm7755_vm7, %v7997_v3, %v8001_v7  ;;  %v20951_v3 = vld [vmem:[#allocation96_spill] sm:$0xff] }
 0x5b5   :  { %v6995_v37 = vpop.permute.xlu0 %6994  ;;  %v7091_v35 = vpop.permute.xlu1 %7090  ;;  %7200 = vrot.lane.b32.xlu0 %v18977_v29, %s12057_s29  ;;  %v8248_v60 = vrot.slane %v7744_v54, 1  ;;  %20950 = vst [vmem:[#allocation45_spill] sm:$0xff] %v19419_v49  ;;  %v8011_v7 = vshll.u32 %v7744_v54, 16 }
 0x5b6   :  { %v7275_v10 = vsel %vm7206_vm0, %v20949_v19, %v6995_v37  ;;  %v19411_v32 = vsel %vm18266_vm4, 0, %v7563_v56  ;;  %v11900_v56 = vld [vmem:[%s20459_s4 + $0xb8] sm:$0xff]  }
 0x5b7   :  { %8415 = vrot.lane.b32.xlu1 %v19411_v32, %s12058_s19  ;;  %v8247_v21 = vrot.slane %v19411_v32, 1  ;;  %v8006_v31 = vshll.u32 %v19411_v32, 16  ;;  %v7348_v53 = vsel %vm5565_vm15, %v7275_v10, %v7091_v35  ;;  %v20952_v19 = vld [vmem:[#allocation93_spill] sm:$0xff]  ;;  %9555 = vmatpush1.bf16.msra.mxu1 %v11900_v56 }
 0x5b8   :  { %v20953_v10 = vpack.c.bf16 %v20951_v3, %v20952_v19  ;;  %9556 = vmatprep.subr.bf16.mxu1 %v20888_v22 }
 0x5b9   :  { %v7187_v62 = vpop.permute.xlu0 %7186  ;;  %v19422_v29 = vsel %vm8184_vm5, %v8247_v21, %v8248_v60  ;;  %v8402_v39 = vpop.permute.xlu1 %8401  ;;  %8351 = vrot.lane.b32.xlu0 %v19419_v49, %s12058_s19  ;;  %v8008_v1 = vrot.slane %v8006_v31, 1  ;;  %v8004_v60 = vshrl.u32 %v19411_v32, 16  ;;  %v20954_v49 = vpack.c.bf16 %v19159_v13, %v19151_v44 }
 0x5ba   :  { %v7413_v17 = vsel %vm7367_vm1, %v7348_v53, %v7187_v62  ;;  %11503 = vmatprep.mubr.msk.bf16.mxu0 %vm8505_vm6, %v19422_v29  ;;  %v8657_v35 = vsel %vm8505_vm6, %v19002_v50, %v8402_v39 }
 0x5bb   :  { %v7564_v37 = vshrl.u32 %v7413_v17, 16  ;;  %7010 = vrot.lane.b32.xlu1 %v20953_v10, %s12056_s25  ;;  %9395 = vmatprep.mubr.bf16.mxu1 %v8657_v35  ;;  %v7567_v31 = vshll.u32 %v7413_v17, 16  ;;  %v8009_v54 = vor.u32 %v8008_v1, %v8004_v60  ;;  %v8013_v17 = vrot.slane %v8011_v7, 1 }
 0x5bd   :  { %v7566_v21 = vrot.slane %v7564_v37, 7  ;;  %v8340_v53 = vpop.permute.xlu0 %8339  ;;  %7106 = vrot.lane.b32.xlu0 %v20954_v49, %s12055_s17  ;;  %v20955_v37 = vld [vmem:[#allocation71_spill] sm:$0xff] }
 0x5be   :  { %v6997_v62 = vpop.permute.xlu1 %6996  ;;  %v19446_v3 = vsel %vm8505_vm6, %v18983_v40, %v8340_v53 }
 0x5bf   :  { %v7569_v39 = vor.u32 %v7567_v31, %v7566_v21  ;;  %v7745_v56 = vsel %vm18266_vm4, %v7566_v21, 0  ;;  %7202 = vrot.lane.b32.xlu1 %v19167_v45, %s12057_s29  ;;  %9396 = vmatmul.mubr.bf16.gmra.mrb[56].mxu1 %v19446_v3  ;;  %v7278_v19 = vsel %vm7206_vm0, %v20955_v37, %v6997_v62  ;;  %v19463_v45 = vsel %vm7755_vm7, %v8009_v54, %v8013_v17  ;;  %v11901_v62 = vld [vmem:[%s20459_s4 + $0xc0] sm:$0xff]  }
 0x5c0   :  { %v8251_v40 = vrot.slane %v7745_v56, 1  ;;  %20956 = vst [vmem:[#allocation44_spill] sm:$0xff] %v19463_v45  ;;  %v20957_v37 = vld [vmem:[#allocation94_spill] sm:$0xff]  ;;  %9557 = vmatpush1.bf16.msra.mxu1 %v11901_v62 }
 0x5c1   :  { %v7093_v13 = vpop.permute.xlu0 %7092  ;;  %v19457_v44 = vsel %vm18266_vm4, 0, %v7569_v39  ;;  %9558 = vmatprep.subr.bf16.mxu1 %v20888_v22 }
 0x5c2   :  { %v7350_v49 = vsel %vm5565_vm15, %v7278_v19, %v7093_v13  ;;  %v7189_v1 = vpop.permute.xlu1 %7188  ;;  %8417 = vrot.lane.b32.xlu0 %v19457_v44, %s12058_s19  ;;  %v8250_v10 = vrot.slane %v19457_v44, 1  ;;  %v8018_v7 = vshll.u32 %v19457_v44, 16  ;;  %v20958_v19 = vld [vmem:[#allocation92_spill] sm:$0xff] }
 0x5c3   :  { %v7415_v35 = vsel %vm7367_vm1, %v7350_v49, %v7189_v1  ;;  %8353 = vrot.lane.b32.xlu1 %v19463_v45, %s12058_s19  ;;  %v20959_v13 = vpack.c.bf16 %v20957_v37, %v20958_v19  ;;  %v8023_v49 = vshll.u32 %v7745_v56, 16  ;;  %v20960_v1 = vpack.c.bf16 %v19144_v52, %v19133_v11  ;;  %v20962_v37 = vld [vmem:[#allocation79_spill] sm:$0xff] }
 0x5c4   :  { %v7570_v60 = vshrl.u32 %v7415_v35, 16  ;;  %v19471_v21 = vsel %vm8184_vm5, %v8250_v10, %v8251_v40  ;;  %v8020_v53 = vrot.slane %v8018_v7, 1  ;;  %v7573_v39 = vshll.u32 %v7415_v35, 16 }
 0x5c5   :  { %11504 = vmatmul.mubr.msk.bf16.gmra.mrb[168].mxu0 %vm8505_vm6, %v19471_v21  ;;  %v8404_v31 = vpop.permute.xlu0 %8403  ;;  %v8016_v35 = vshrl.u32 %v19457_v44, 16 }
 0x5c6   :  { %v7572_v54 = vrot.slane %v7570_v60, 7  ;;  %v8342_v17 = vpop.permute.xlu1 %8341  ;;  %7012 = vrot.lane.b32.xlu0 %v20959_v13, %s12056_s25  ;;  %v8661_v40 = vsel %vm8505_vm6, %v19048_v46, %v8404_v31 }
 0x5c7   :  { %7108 = vrot.lane.b32.xlu1 %v20960_v1, %s12055_s17  ;;  %9403 = vmatprep.mubr.bf16.mxu1 %v8661_v40  ;;  %v19490_v10 = vsel %vm8505_vm6, %v19034_v41, %v8342_v17  ;;  %v8021_v56 = vor.u32 %v8020_v53, %v8016_v35 }
 0x5c8   :  { %20961 = vst [vmem:[#allocation54_spill] sm:$0xff] %v19490_v10  ;;  %v7575_v7 = vor.u32 %v7573_v39, %v7572_v54  ;;  %v7746_v60 = vsel %vm18266_vm4, %v7572_v54, 0  ;;  %9404 = vmatmul.mubr.bf16.gmra.mrb[60].mxu1 %v19490_v10  ;;  %v8025_v39 = vrot.slane %v8023_v49, 1 }
 0x5c9   :  { %v6999_v31 = vpop.permute.xlu0 %6998  ;;  %v8254_v54 = vrot.slane %v7746_v60, 1  ;;  %v8035_v62 = vshll.u32 %v7746_v60, 16 }
 0x5ca   :  { %v7281_v11 = vsel %vm7206_vm0, %v20962_v37, %v6999_v31  ;;  %v7095_v52 = vpop.permute.xlu1 %7094  ;;  %7204 = vrot.lane.b32.xlu0 %v19155_v4, %s12057_s29  ;;  %v19502_v41 = vsel %vm18266_vm4, 0, %v7575_v7  ;;  %v19511_v4 = vsel %vm7755_vm7, %v8021_v56, %v8025_v39  ;;  %v20964_v39 = vld [vmem:[#allocation99_spill] sm:$0xff] }
 0x5cb   :  { %8419 = vrot.lane.b32.xlu1 %v19502_v41, %s12058_s19  ;;  %v8253_v53 = vrot.slane %v19502_v41, 1  ;;  %v8030_v17 = vshll.u32 %v19502_v41, 16  ;;  %v7352_v19 = vsel %vm5565_vm15, %v7281_v11, %v7095_v52  ;;  %20963 = vst [vmem:[#allocation52_spill] sm:$0xff] %v19511_v4  ;;  %v8028_v35 = vshrl.u32 %v19502_v41, 16 }
 0x5cc   :  { %v8037_v56 = vrot.slane %v8035_v62, 1  ;;  %v11902_v62 = vld [vmem:[%s20459_s4 + $0xc8] sm:$0xff]  }
 0x5cd   :  { %v7191_v13 = vpop.permute.xlu0 %7190  ;;  %v19514_v40 = vsel %vm8184_vm5, %v8253_v53, %v8254_v54  ;;  %v8032_v7 = vrot.slane %v8030_v17, 1  ;;  %9559 = vmatpush1.bf16.msra.mxu1 %v11902_v62 }
 0x5ce   :  { %v7417_v49 = vsel %vm7367_vm1, %v7352_v19, %v7191_v13  ;;  %v8406_v1 = vpop.permute.xlu1 %8405  ;;  %8355 = vrot.lane.b32.xlu0 %v19511_v4, %s12058_s19  ;;  %11507 = vmatprep.mubr.msk.bf16.mxu0 %vm8505_vm6, %v19514_v40  ;;  %v20966_v19 = vld [vmem:[#allocation77_spill] sm:$0xff] }
 0x5cf   :  { %v7576_v60 = vshrl.u32 %v7417_v49, 16  ;;  %v8664_v31 = vsel %vm8505_vm6, %v18078_v6, %v8406_v1  ;;  %v8033_v37 = vor.u32 %v8032_v7, %v8028_v35  ;;  %v7579_v52 = vshll.u32 %v7417_v49, 16  ;;  %9560 = vmatprep.subr.bf16.mxu1 %v20888_v22 }
 0x5d0   :  { %9411 = vmatprep.mubr.bf16.mxu1 %v8664_v31  ;;  %v8232_v35 = vrot.slane %v19141_v43, 1 }
 0x5d1   :  { %v7578_v11 = vrot.slane %v7576_v60, 7  ;;  %11072 = vmatmul.mubr.msk.bf16.gmra.mrb[64].mxu1 %vm18738_vm8, %v20964_v39  ;;  %v7001_v53 = vpop.permute.xlu0 %7000  ;;  %v19530_v17 = vsel %vm7755_vm7, %v8033_v37, %v8037_v56 }
 0x5d2   :  { %v7284_v13 = vsel %vm7206_vm0, %v20966_v19, %v7001_v53  ;;  %v7097_v4 = vpop.permute.xlu1 %7096  ;;  %20967 = vst [vmem:[#allocation51_spill] sm:$0xff] %v19530_v17  ;;  %8357 = vrot.lane.b32.xlu0 %v19530_v17, %s12058_s19 }
 0x5d3   :  { %v7581_v1 = vor.u32 %v7579_v52, %v7578_v11  ;;  %v7747_v49 = vsel %vm18266_vm4, %v7578_v11, 0  ;;  %v7354_v7 = vsel %vm5565_vm15, %v7284_v13, %v7097_v4  ;;  %v8233_v52 = vrot.slane %v19128_v5, 1 }
 0x5d4   :  { %v8257_v56 = vrot.slane %v7747_v49, 1  ;;  %v8047_v53 = vshll.u32 %v7747_v49, 16 }
 0x5d5   :  { %v7193_v60 = vpop.permute.xlu0 %7192  ;;  %v19543_v31 = vsel %vm18266_vm4, 0, %v7581_v1  ;;  %v19556_v62 = vsel %vm8184_vm5, %v8232_v35, %v8233_v52 }
 0x5d6   :  { %v7419_v37 = vsel %vm7367_vm1, %v7354_v7, %v7193_v60  ;;  %8421 = vrot.lane.b32.xlu1 %v19543_v31, %s12058_s19  ;;  %v8256_v11 = vrot.slane %v19543_v31, 1  ;;  %v8042_v4 = vshll.u32 %v19543_v31, 16  ;;  %v8040_v45 = vshrl.u32 %v19543_v31, 16 }
 0x5d7   :  { %v7582_v19 = vshrl.u32 %v7419_v37, 16  ;;  %v7585_v17 = vshll.u32 %v7419_v37, 16 }
 0x5d8   :  { %v19553_v13 = vsel %vm8184_vm5, %v8256_v11, %v8257_v56  ;;  %v8408_v7 = vpop.permute.xlu1 %8407  ;;  %v8044_v5 = vrot.slane %v8042_v4, 1  ;;  %v8049_v11 = vrot.slane %v8047_v53, 1 }
 0x5d9   :  { %v7584_v1 = vrot.slane %v7582_v19, 7  ;;  %11508 = vmatmul.mubr.msk.bf16.gmra.mrb[172].mxu0 %vm8505_vm6, %v19553_v13  ;;  %v8344_v60 = vpop.permute.xlu0 %8343  ;;  %v8668_v49 = vsel %vm8505_vm6, %v19556_v62, %v8408_v7 }
 0x5da   :  { %v8555_v56 = vsel %vm8505_vm6, %v19141_v43, %v8344_v60  ;;  %9419 = vmatprep.mubr.bf16.mxu1 %v8668_v49  ;;  %v8045_v37 = vor.u32 %v8044_v5, %v8040_v45 }
 0x5db   :  { %v7587_v9 = vor.u32 %v7585_v17, %v7584_v1  ;;  %v7748_v35 = vsel %vm18266_vm4, %v7584_v1, 0  ;;  %9420 = vmatmul.mubr.bf16.gmra.mrb[68].mxu1 %v8555_v56 }
 0x5dc   :  { %v7003_v52 = vpop.permute.xlu1 %7002  ;;  %v19568_v19 = vsel %vm7755_vm7, %v8045_v37, %v8049_v11  ;;  %v8260_v7 = vrot.slane %v7748_v35, 1  ;;  %v8059_v53 = vshll.u32 %v7748_v35, 16  ;;  %v11903_v11 = vld [vmem:[%s20459_s4 + $0xd0] sm:$0xff]  }
 0x5dd   :  { %20968 = vst [vmem:[#allocation50_spill] sm:$0xff] %v19568_v19  ;;  %v19572_v4 = vsel %vm18266_vm4, 0, %v7587_v9  ;;  %v7287_v43 = vsel %vm7206_vm0, %v20969_v38, %v7003_v52  ;;  %8359 = vrot.lane.b32.xlu0 %v19568_v19, %s12058_s19  ;;  %v7099_v17 = vpop.permute.xlu0 %7098  ;;  %9561 = vmatpush1.bf16.msra.mxu1 %v11903_v11 }
 0x5de   :  { %8423 = vrot.lane.b32.xlu1 %v19572_v4, %s12058_s19  ;;  %v8259_v45 = vrot.slane %v19572_v4, 1  ;;  %v8054_v1 = vshll.u32 %v19572_v4, 16  ;;  %v7356_v9 = vsel %vm5565_vm15, %v7287_v43, %v7099_v17  ;;  %v8052_v38 = vshrl.u32 %v19572_v4, 16  ;;  %9562 = vmatprep.subr.bf16.mxu1 %v20888_v22 }
 0x5df   :  { %v8061_v35 = vrot.slane %v8059_v53, 1 }
 0x5e0   :  { %v19583_v60 = vsel %vm8184_vm5, %v8259_v45, %v8260_v7  ;;  %v7195_v5 = vpop.permute.xlu1 %7194  ;;  %v8056_v49 = vrot.slane %v8054_v1, 1 }
 0x5e1   :  { %11511 = vmatprep.mubr.msk.bf16.mxu0 %vm8505_vm6, %v19583_v60  ;;  %v7421_v56 = vsel %vm7367_vm1, %v7356_v9, %v7195_v5 }
 0x5e2   :  { %v7588_v37 = vshrl.u32 %v7421_v56, 16  ;;  %v8057_v52 = vor.u32 %v8056_v49, %v8052_v38  ;;  %v7591_v45 = vshll.u32 %v7421_v56, 16 }
 0x5e4   :  { %v7590_v7 = vrot.slane %v7588_v37, 7  ;;  %v19594_v43 = vsel %vm7755_vm7, %v8057_v52, %v8061_v35 }
 0x5e5   :  { %20970 = vst [vmem:[#allocation29_spill] sm:$0xff] %v19594_v43  ;;  %8361 = vrot.lane.b32.xlu0 %v19594_v43, %s12058_s19 }
 0x5e6   :  { %v7593_v17 = vor.u32 %v7591_v45, %v7590_v7  ;;  %v7749_v1 = vsel %vm18266_vm4, %v7590_v7, 0  ;;  %v11904_v45 = vld [vmem:[%s20459_s4 + $0xd8] sm:$0xff]  }
 0x5e7   :  { %v8071_v9 = vshll.u32 %v7749_v1, 16  ;;  %v8263_v5 = vrot.slane %v7749_v1, 1  ;;  %9563 = vmatpush1.bf16.msra.mxu1 %v11904_v45 }
 0x5e8   :  { %v19603_v53 = vsel %vm18266_vm4, 0, %v7593_v17  ;;  %9564 = vmatprep.subr.bf16.mxu1 %v20888_v22 }
 0x5e9   :  { %8425 = vrot.lane.b32.xlu1 %v19603_v53, %s12058_s19  ;;  %v8262_v38 = vrot.slane %v19603_v53, 1  ;;  %v8066_v49 = vshll.u32 %v19603_v53, 16  ;;  %v8064_v11 = vshrl.u32 %v19603_v53, 16  ;;  %v8073_v37 = vrot.slane %v8071_v9, 1 }
 0x5eb   :  { %v19610_v56 = vsel %vm8184_vm5, %v8262_v38, %v8263_v5  ;;  %v8068_v35 = vrot.slane %v8066_v49, 1  ;;  %v11905_v38 = vld [vmem:[%s20459_s4 + $0xe0] sm:$0xff]   ;;  %v8346_v49 = vpop.permute.xlu1 %8345 }
 0x5ec   :  { %11512 = vmatmul.mubr.msk.bf16.gmra.mrb[176].mxu0 %vm8505_vm6, %v19610_v56  ;;  %9565 = vmatpush1.bf16.msra.mxu1 %v11905_v38  ;;  %v19644_v45 = vsel %vm8505_vm6, %v19185_v58, %v8346_v49 }
 0x5ed   :  { %v8069_v52 = vor.u32 %v8068_v35, %v8064_v11  ;;  %9566 = vmatprep.subr.bf16.mxu1 %v20888_v22  ;;  %20978 = vst [vmem:[#allocation66_spill] sm:$0xff] %v19644_v45 }
 0x5ef   :  { %v19616_v7 = vsel %vm7755_vm7, %v8069_v52, %v8073_v37 }
 0x5f0   :  { %20971 = vst [vmem:[#allocation37_spill] sm:$0xff] %v19616_v7  ;;  %8363 = vrot.lane.b32.xlu0 %v19616_v7, %s12058_s19 }
 0x5f4   :  { %v19624_v17 = vpop.f32.mrb[144].mxu0 }
 0x5f5   :  { %20972 = vst [vmem:[#allocation60_spill] sm:$0xff] %v19624_v17  ;;  %v19626_v1 = vpop.f32.mrb[145].mxu0 }
 0x5f6   :  { %20973 = vst [vmem:[#allocation57_spill] sm:$0xff] %v19626_v1  ;;  %v19628_v5 = vpop.f32.mrb[146].mxu0 }
 0x5f7   :  { %20974 = vst [vmem:[#allocation35_spill] sm:$0xff] %v19628_v5  ;;  %v19630_v9 = vpop.f32.mrb[147].mxu0 }
 0x5f8   :  { %20975 = vst [vmem:[#allocation58_spill] sm:$0xff] %v19630_v9  ;;  %v20981_v9 = vld [vmem:[#allocation83_spill] sm:$0xff] }
 0x608   :  { %v8410_v11 = vpop.permute.xlu0 %8409 }
 0x609   :  { %v19636_v35 = vpop.f32.mrb[148].mxu0  ;;  %v8672_v37 = vsel %vm8505_vm6, %v19194_v36, %v8410_v11  ;;  %v11906_v11 = vld [vmem:[%s20459_s4 + $0xe8] sm:$0xff]  }
 0x60a   :  { %20976 = vst [vmem:[#allocation56_spill] sm:$0xff] %v19636_v35  ;;  %v19640_v52 = vpop.f32.mrb[149].mxu0  ;;  %9427 = vmatprep.mubr.bf16.mxu1 %v8672_v37  ;;  %9567 = vmatpush1.bf16.msra.mxu1 %v11906_v11 }
 0x60b   :  { %20977 = vst [vmem:[#allocation43_spill] sm:$0xff] %v19640_v52  ;;  %v19646_v5 = vpop.f32.mrb[150].mxu0  ;;  %9428 = vmatmul.mubr.bf16.gmra.mrb[72].mxu1 %v19644_v45  ;;  %v7101_v52 = vpop.permute.xlu1 %7100  ;;  %9568 = vmatprep.subr.bf16.mxu1 %v20888_v22 }
 0x60c   :  { %20979 = vst [vmem:[#allocation63_spill] sm:$0xff] %v19646_v5  ;;  %v19649_v38 = vpop.f32.mrb[151].mxu0  ;;  %v7005_v17 = vpop.permute.xlu0 %7004 }
 0x60d   :  { %20980 = vst [vmem:[#allocation41_spill] sm:$0xff] %v19649_v38  ;;  %v7290_v35 = vsel %vm7206_vm0, %v20981_v9, %v7005_v17 }
 0x60e   :  { %v7358_v37 = vsel %vm5565_vm15, %v7290_v35, %v7101_v52 }
 0x610   :  { %v7197_v1 = vpop.permute.xlu0 %7196 }
 0x611   :  { %v7423_v58 = vsel %vm7367_vm1, %v7358_v37, %v7197_v1 }
 0x612   :  { %v7594_v49 = vshrl.u32 %v7423_v58, 16  ;;  %v7597_v38 = vshll.u32 %v7423_v58, 16  ;;  %v20983_v58 = vld [vmem:[#allocation91_spill] sm:$0xff] }
 0x613   :  { %v8412_v7 = vpop.permute.xlu1 %8411 }
 0x614   :  { %v7596_v5 = vrot.slane %v7594_v49, 7  ;;  %v8348_v43 = vpop.permute.xlu0 %8347  ;;  %v8676_v17 = vsel %vm8505_vm6, %v19296_v30, %v8412_v7 }
 0x615   :  { %v19663_v9 = vsel %vm8505_vm6, %v19280_v63, %v8348_v43  ;;  %9435 = vmatprep.mubr.bf16.mxu1 %v8676_v17 }
 0x616   :  { %20982 = vst [vmem:[#allocation64_spill] sm:$0xff] %v19663_v9  ;;  %v7599_v19 = vor.u32 %v7597_v38, %v7596_v5  ;;  %v7750_v35 = vsel %vm18266_vm4, %v7596_v5, 0  ;;  %9436 = vmatmul.mubr.bf16.gmra.mrb[76].mxu1 %v19663_v9 }
 0x617   :  { %v7007_v1 = vpop.permute.xlu1 %7006  ;;  %v8266_v37 = vrot.slane %v7750_v35, 1  ;;  %v8083_v43 = vshll.u32 %v7750_v35, 16 }
 0x618   :  { %v7103_v52 = vpop.permute.xlu0 %7102  ;;  %v19670_v11 = vsel %vm18266_vm4, 0, %v7599_v19  ;;  %v7293_v7 = vsel %vm7206_vm0, %v20983_v58, %v7007_v1 }
 0x619   :  { %8427 = vrot.lane.b32.xlu1 %v19670_v11, %s12058_s19  ;;  %v8265_v63 = vrot.slane %v19670_v11, 1  ;;  %v7360_v5 = vsel %vm5565_vm15, %v7293_v7, %v7103_v52  ;;  %v8078_v38 = vshll.u32 %v19670_v11, 16  ;;  %v8076_v19 = vshrl.u32 %v19670_v11, 16 }
 0x61a   :  { %v8085_v25 = vrot.slane %v8083_v43, 1 }
 0x61b   :  { %v19680_v49 = vsel %vm8184_vm5, %v8265_v63, %v8266_v37  ;;  %v7199_v17 = vpop.permute.xlu1 %7198  ;;  %v8080_v1 = vrot.slane %v8078_v38, 1  ;;  %v11907_v63 = vld [vmem:[%s20459_s4 + $0xf0] sm:$0xff]  }
 0x61c   :  { %11515 = vmatprep.mubr.msk.bf16.mxu0 %vm8505_vm6, %v19680_v49  ;;  %v7425_v58 = vsel %vm7367_vm1, %v7360_v5, %v7199_v17  ;;  %9569 = vmatpush1.bf16.msra.mxu1 %v11907_v63 }
 0x61d   :  { %v19686_v9 = vpop.f32.mrb[152].mxu0  ;;  %v7600_v35 = vshrl.u32 %v7425_v58, 16  ;;  %v8081_v52 = vor.u32 %v8080_v1, %v8076_v19  ;;  %v7603_v39 = vshll.u32 %v7425_v58, 16  ;;  %9570 = vmatprep.subr.bf16.mxu1 %v20888_v22 }
 0x61e   :  { %20984 = vst [vmem:[#allocation62_spill] sm:$0xff] %v19686_v9  ;;  %v19688_v45 = vpop.f32.mrb[153].mxu0  ;;  %v8414_v37 = vpop.permute.xlu0 %8413 }
 0x61f   :  { %20985 = vst [vmem:[#allocation49_spill] sm:$0xff] %v19688_v45  ;;  %v19690_v7 = vpop.f32.mrb[154].mxu0  ;;  %v7602_v54 = vrot.slane %v7600_v35, 7  ;;  %v8350_v38 = vpop.permute.xlu1 %8349  ;;  %v8680_v5 = vsel %vm8505_vm6, %v19336_v0, %v8414_v37  ;;  %v19700_v43 = vsel %vm7755_vm7, %v8081_v52, %v8085_v25  ;;  %v20990_v35 = vld [vmem:[#allocation89_spill] sm:$0xff] }
 0x620   :  { %20986 = vst [vmem:[#allocation72_spill] sm:$0xff] %v19690_v7  ;;  %v19695_v10 = vpop.f32.mrb[155].mxu0  ;;  %20988 = vst [vmem:[#allocation8_spill] sm:$0xff] %v19700_v43  ;;  %9443 = vmatprep.mubr.bf16.mxu1 %v8680_v5  ;;  %v19704_v17 = vsel %vm8505_vm6, %v19323_v47, %v8350_v38  ;;  %8365 = vrot.lane.b32.xlu0 %v19700_v43, %s12058_s19 }
 0x621   :  { %20987 = vst [vmem:[#allocation69_spill] sm:$0xff] %v19695_v10  ;;  %20989 = vst [vmem:[#allocation47_spill] sm:$0xff] %v19704_v17  ;;  %v7605_v19 = vor.u32 %v7603_v39, %v7602_v54  ;;  %v7751_v1 = vsel %vm18266_vm4, %v7602_v54, 0  ;;  %9444 = vmatmul.mubr.bf16.gmra.mrb[80].mxu1 %v19704_v17 }
 0x622   :  { %v8269_v47 = vrot.slane %v7751_v1, 1  ;;  %v8095_v54 = vshll.u32 %v7751_v1, 16 }
 0x623   :  { %v7009_v58 = vpop.permute.xlu0 %7008  ;;  %v7105_v52 = vpop.permute.xlu1 %7104  ;;  %v19715_v37 = vsel %vm18266_vm4, 0, %v7605_v19 }
 0x624   :  { %v7296_v25 = vsel %vm7206_vm0, %v20990_v35, %v7009_v58  ;;  %8429 = vrot.lane.b32.xlu1 %v19715_v37, %s12058_s19  ;;  %v8268_v39 = vrot.slane %v19715_v37, 1  ;;  %v8090_v38 = vshll.u32 %v19715_v37, 16  ;;  %v8088_v22 = vshrl.u32 %v19715_v37, 16 }
 0x625   :  { %v7362_v63 = vsel %vm5565_vm15, %v7296_v25, %v7105_v52  ;;  %v8097_v25 = vrot.slane %v8095_v54, 1 }
 0x626   :  { %v19724_v58 = vsel %vm8184_vm5, %v8268_v39, %v8269_v47  ;;  %v8092_v7 = vrot.slane %v8090_v38, 1 }
 0x627   :  { %v7201_v5 = vpop.permute.xlu0 %7200  ;;  %11516 = vmatmul.mubr.msk.bf16.gmra.mrb[180].mxu0 %vm8505_vm6, %v19724_v58 }
 0x628   :  { %v7427_v19 = vsel %vm7367_vm1, %v7362_v63, %v7201_v5  ;;  %v8093_v52 = vor.u32 %v8092_v7, %v8088_v22 }
 0x629   :  { %v8416_v35 = vpop.permute.xlu1 %8415  ;;  %v7606_v9 = vshrl.u32 %v7427_v19, 16  ;;  %v19732_v10 = vpop.f32.mrb[156].mxu0  ;;  %v7609_v63 = vshll.u32 %v7427_v19, 16  ;;  %v20997_v19 = vld [vmem:[#allocation97_spill] sm:$0xff] }
 0x62a   :  { %v8684_v1 = vsel %vm8505_vm6, %v19383_v61, %v8416_v35  ;;  %20991 = vst [vmem:[#allocation15_spill] sm:$0xff] %v19732_v10  ;;  %v19734_v47 = vpop.f32.mrb[157].mxu0  ;;  %v19739_v17 = vsel %vm7755_vm7, %v8093_v52, %v8097_v25 }
 0x62b   :  { %9451 = vmatprep.mubr.bf16.mxu1 %v8684_v1  ;;  %20992 = vst [vmem:[#allocation70_spill] sm:$0xff] %v19734_v47  ;;  %v7608_v39 = vrot.slane %v7606_v9, 7  ;;  %v8352_v5 = vpop.permute.xlu0 %8351  ;;  %v19736_v45 = vpop.f32.mrb[158].mxu0  ;;  %20994 = vst [vmem:[#allocation55_spill] sm:$0xff] %v19739_v17  ;;  %8367 = vrot.lane.b32.xlu0 %v19739_v17, %s12058_s19  ;;  %v11908_v9 = vld [vmem:[%s20459_s4 + $0xf8] sm:$0xff]  }
 0x62c   :  { %20993 = vst [vmem:[#allocation68_spill] sm:$0xff] %v19736_v45  ;;  %v19743_v38 = vsel %vm8505_vm6, %v19369_v33, %v8352_v5  ;;  %v19745_v35 = vpop.f32.mrb[159].mxu0  ;;  %9571 = vmatpush1.bf16.msra.mxu1 %v11908_v9 }
 0x62d   :  { %v7011_v43 = vpop.permute.xlu1 %7010  ;;  %20995 = vst [vmem:[#allocation78_spill] sm:$0xff] %v19743_v38  ;;  %20996 = vst [vmem:[#allocation75_spill] sm:$0xff] %v19745_v35  ;;  %v7611_v54 = vor.u32 %v7609_v63, %v7608_v39  ;;  %v7752_v7 = vsel %vm18266_vm4, %v7608_v39, 0  ;;  %9452 = vmatmul.mubr.bf16.gmra.mrb[84].mxu1 %v19743_v38 }
 0x62e   :  { %v7299_v22 = vsel %vm7206_vm0, %v20997_v19, %v7011_v43  ;;  %v8272_v25 = vrot.slane %v7752_v7, 1  ;;  %v8107_v5 = vshll.u32 %v7752_v7, 16 }
 0x62f   :  { %v7107_v33 = vpop.permute.xlu0 %7106  ;;  %v19759_v1 = vsel %vm18266_vm4, 0, %v7611_v54 }
 0x630   :  { %v7364_v52 = vsel %vm5565_vm15, %v7299_v22, %v7107_v33  ;;  %8431 = vrot.lane.b32.xlu1 %v19759_v1, %s12058_s19  ;;  %v8271_v63 = vrot.slane %v19759_v1, 1  ;;  %v8102_v43 = vshll.u32 %v19759_v1, 16  ;;  %v8100_v22 = vshrl.u32 %v19759_v1, 16 }
 0x631   :  { %v7203_v39 = vpop.permute.xlu1 %7202  ;;  %v8109_v9 = vrot.slane %v8107_v5, 1  ;;  %v21000_v5 = vld [vmem:[#allocation95_spill] sm:$0xff] }
 0x632   :  { %v7429_v45 = vsel %vm7367_vm1, %v7364_v52, %v7203_v39  ;;  %v19768_v10 = vsel %vm8184_vm5, %v8271_v63, %v8272_v25  ;;  %v8104_v33 = vrot.slane %v8102_v43, 1 }
 0x633   :  { %v7612_v19 = vshrl.u32 %v7429_v45, 16  ;;  %11519 = vmatprep.mubr.msk.bf16.mxu0 %vm8505_vm6, %v19768_v10  ;;  %v7615_v47 = vshll.u32 %v7429_v45, 16 }
 0x634   :  { %v8418_v54 = vpop.permute.xlu0 %8417  ;;  %v8105_v25 = vor.u32 %v8104_v33, %v8100_v22 }
 0x635   :  { %v7614_v35 = vrot.slane %v7612_v19, 7  ;;  %v8354_v17 = vpop.permute.xlu1 %8353  ;;  %v8688_v7 = vsel %vm8505_vm6, %v19422_v29, %v8418_v54 }
 0x636   :  { %9459 = vmatprep.mubr.bf16.mxu1 %v8688_v7  ;;  %v19777_v52 = vsel %vm8505_vm6, %v19411_v32, %v8354_v17  ;;  %v19783_v43 = vsel %vm7755_vm7, %v8105_v25, %v8109_v9 }
 0x637   :  { %20998 = vst [vmem:[#allocation53_spill] sm:$0xff] %v19777_v52  ;;  %v7617_v39 = vor.u32 %v7615_v47, %v7614_v35  ;;  %v7753_v63 = vsel %vm18266_vm4, %v7614_v35, 0  ;;  %9460 = vmatmul.mubr.bf16.gmra.mrb[88].mxu1 %v19777_v52  ;;  %20999 = vst [vmem:[#allocation76_spill] sm:$0xff] %v19783_v43  ;;  %8369 = vrot.lane.b32.xlu0 %v19783_v43, %s12058_s19 }
 0x638   :  { %v7013_v45 = vpop.permute.xlu0 %7012  ;;  %v8275_v17 = vrot.slane %v7753_v63, 1  ;;  %v8119_v35 = vshll.u32 %v7753_v63, 16 }
 0x639   :  { %v7302_v19 = vsel %vm7206_vm0, %v21000_v5, %v7013_v45  ;;  %v7109_v54 = vpop.permute.xlu1 %7108  ;;  %v19791_v32 = vsel %vm18266_vm4, 0, %v7617_v39 }
 0x63a   :  { %8433 = vrot.lane.b32.xlu1 %v19791_v32, %s12058_s19  ;;  %v8274_v47 = vrot.slane %v19791_v32, 1  ;;  %v8114_v22 = vshll.u32 %v19791_v32, 16  ;;  %v7366_v33 = vsel %vm5565_vm15, %v7302_v19, %v7109_v54  ;;  %v8112_v39 = vshrl.u32 %v19791_v32, 16 }
 0x63b   :  { %v8121_v52 = vrot.slane %v8119_v35, 1 }
 0x63c   :  { %v7205_v7 = vpop.permute.xlu0 %7204  ;;  %v19799_v9 = vsel %vm8184_vm5, %v8274_v47, %v8275_v17  ;;  %v8116_v5 = vrot.slane %v8114_v22, 1 }
 0x63d   :  { %v7431_v25 = vsel %vm7367_vm1, %v7366_v33, %v7205_v7  ;;  %v8420_v45 = vpop.permute.xlu1 %8419  ;;  %11520 = vmatmul.mubr.msk.bf16.gmra.mrb[184].mxu0 %vm8505_vm6, %v19799_v9 }
 0x63e   :  { %v7618_v43 = vshrl.u32 %v7431_v25, 16  ;;  %v8692_v63 = vsel %vm8505_vm6, %v19471_v21, %v8420_v45  ;;  %v8117_v19 = vor.u32 %v8116_v5, %v8112_v39  ;;  %v7621_v38 = vshll.u32 %v7431_v25, 16  ;;  %v21002_v39 = vld [vmem:[#allocation4_spill] sm:$0xff]  ;;  %v21003_v5 = vld [vmem:[#allocation2_spill] sm:$0xff] }
 0x63f   :  { %9467 = vmatprep.mubr.bf16.mxu1 %v8692_v63 }
 0x640   :  { %v7620_v54 = vrot.slane %v7618_v43, 7  ;;  %v8356_v17 = vpop.permute.xlu0 %8355  ;;  %v19808_v47 = vsel %vm7755_vm7, %v8117_v19, %v8121_v52 }
 0x641   :  { %v19812_v33 = vsel %vm8505_vm6, %v19457_v44, %v8356_v17  ;;  %8371 = vrot.lane.b32.xlu0 %v19808_v47, %s12058_s19 }
 0x642   :  { %v7623_v7 = vor.u32 %v7621_v38, %v7620_v54  ;;  %v19816_v22 = vsel %vm18266_vm4, %v7620_v54, 0  ;;  %9468 = vmatmul.mubr.bf16.gmra.mrb[92].mxu1 %v19812_v33 }
 0x643   :  { %v8309_v52 = vrot.slane %v19816_v22, 1 }
 0x644   :  { %v19823_v43 = vsel %vm18266_vm4, 0, %v7623_v7  ;;  %v8358_v38 = vpop.permute.xlu0 %8357  ;;  %v8285_v7 = vshll.u32 %v19070_v28, 16 }
 0x645   :  { %8435 = vrot.lane.b32.xlu1 %v19823_v43, %s12058_s19  ;;  %v8308_v44 = vrot.slane %v19823_v43, 1  ;;  %8439 = vrot.lane.b32.xlu0 %v18313_v23, %s12058_s19  ;;  %v19846_v23 = vsel %vm8505_vm6, %v19502_v41, %v8358_v38 }
 0x647   :  { %v19832_v35 = vsel %vm8184_vm5, %v8308_v44, %v8309_v52 }
 0x648   :  { %v8422_v25 = vpop.permute.xlu1 %8421  ;;  %11523 = vmatprep.mubr.msk.bf16.mxu0 %vm8505_vm6, %v19832_v35 }
 0x649   :  { %8437 = vrot.lane.b32.xlu1 %v21001_v14, %s12058_s19  ;;  %v8696_v45 = vsel %vm8505_vm6, %v19514_v40, %v8422_v25  ;;  %11524 = vmatmul.mubr.msk.bf16.gmra.mrb[188].mxu0 %vm8505_vm6, %v18078_v6  ;;  %v21004_v6 = vld [vmem:[#allocation9_spill] sm:$0xff] }
 0x64a   :  { %8443 = vrot.lane.b32.xlu0 %v21002_v39, %s12058_s19  ;;  %9475 = vmatprep.mubr.bf16.mxu1 %v8696_v45 }
 0x64b   :  { %9476 = vmatmul.mubr.bf16.gmra.mrb[96].mxu1 %v19846_v23 }
 0x64d   :  { %8441 = vrot.lane.b32.xlu1 %v21003_v5, %s12058_s19 }
 0x64e   :  { %8447 = vrot.lane.b32.xlu0 %v20885_v42, %s12058_s19  ;;  %v8280_v42 = vshll.u32 %v19079_v20, 16 }
 0x64f   :  { %v8360_v63 = vpop.permute.xlu0 %8359 }
 0x650   :  { %v8424_v19 = vpop.permute.xlu1 %8423  ;;  %v19861_v41 = vsel %vm8505_vm6, %v19543_v31, %v8360_v63  ;;  %v8282_v31 = vrot.slane %v8280_v42, 1 }
 0x651   :  { %8445 = vrot.lane.b32.xlu1 %v21004_v6, %s12058_s19  ;;  %v8700_v54 = vsel %vm8505_vm6, %v19553_v13, %v8424_v19 }
 0x652   :  { %8451 = vrot.lane.b32.xlu0 %v18568_v48, %s12058_s19  ;;  %9483 = vmatprep.mubr.bf16.mxu1 %v8700_v54 }
 0x653   :  { %9484 = vmatmul.mubr.bf16.gmra.mrb[100].mxu1 %v19861_v41 }
 0x655   :  { %8449 = vrot.lane.b32.xlu1 %v20889_v18, %s12058_s19 }
 0x656   :  { %8455 = vrot.lane.b32.xlu0 %v18773_v24, %s12058_s19  ;;  %v8278_v24 = vshrl.u32 %v19079_v20, 16 }
 0x657   :  { %v8362_v48 = vpop.permute.xlu0 %8361 }
 0x659   :  { %8453 = vrot.lane.b32.xlu1 %v18579_v51, %s12058_s19  ;;  %v19882_v51 = vsel %vm8505_vm6, %v19572_v4, %v8362_v48 }
 0x65a   :  { %8459 = vrot.lane.b32.xlu0 %v18887_v16, %s12058_s19  ;;  %v8283_v16 = vor.u32 %v8282_v31, %v8278_v24 }
 0x65b   :  { %v8426_v17 = vpop.permute.xlu1 %8425 }
 0x65c   :  { %v8704_v18 = vsel %vm8505_vm6, %v19583_v60, %v8426_v17 }
 0x65d   :  { %8457 = vrot.lane.b32.xlu1 %v18847_v8, %s12058_s19  ;;  %9491 = vmatprep.mubr.bf16.mxu1 %v8704_v18  ;;  %v8287_v8 = vrot.slane %v8285_v7, 1 }
 0x65e   :  { %8463 = vrot.lane.b32.xlu0 %v19002_v50, %s12058_s19  ;;  %9492 = vmatmul.mubr.bf16.gmra.mrb[104].mxu1 %v19882_v51 }
 0x65f   :  { %v19891_v28 = vsel %vm7755_vm7, %v8283_v16, %v8287_v8  ;;  %v21005_v16 = vld [vmem:[#allocation22_spill] sm:$0xff] }
 0x661   :  { %8461 = vrot.lane.b32.xlu1 %v18928_v27, %s12058_s19 }
 0x662   :  { %8465 = vrot.lane.b32.xlu0 %v19048_v46, %s12058_s19 }
 0x665   :  { %8501 = vrot.lane.b32.xlu1 %v19891_v28, %s12058_s19 }
 0x666   :  { %8469 = vrot.lane.b32.xlu0 %v19556_v62, %s12058_s19 }
 0x669   :  { %8467 = vrot.lane.b32.xlu1 %v19093_v34, %s12058_s19  ;;  %v8292_v34 = vshll.u32 %v19823_v43, 16 }
 0x66a   :  { %8473 = vrot.lane.b32.xlu0 %v19296_v30, %s12058_s19  ;;  %v8297_v30 = vshll.u32 %v19816_v22, 16  ;;  %v8364_v22 = vpop.permute.xlu0 %8363 }
 0x66b   :  { %v19957_v38 = vsel %vm8505_vm6, %v19603_v53, %v8364_v22 }
 0x66c   :  { %v19903_v27 = vpop.f32.mrb[160].mxu0 }
 0x66d   :  { %8471 = vrot.lane.b32.xlu1 %v19194_v36, %s12058_s19  ;;  %v19907_v50 = vpop.f32.mrb[161].mxu0  ;;  %v8294_v36 = vrot.slane %v8292_v34, 1  ;;  %v21006_v34 = vld [vmem:[#allocation3_spill] sm:$0xff] }
 0x66e   :  { %8477 = vrot.lane.b32.xlu0 %v19383_v61, %s12058_s19  ;;  %v19909_v46 = vpop.f32.mrb[162].mxu0 }
 0x66f   :  { %v19911_v4 = vpop.f32.mrb[163].mxu0 }
 0x671   :  { %8475 = vrot.lane.b32.xlu1 %v19336_v0, %s12058_s19  ;;  %v8290_v0 = vshrl.u32 %v19823_v43, 16 }
 0x672   :  { %8481 = vrot.lane.b32.xlu0 %v19471_v21, %s12058_s19 }
 0x673   :  { %v8295_v61 = vor.u32 %v8294_v36, %v8290_v0 }
 0x675   :  { %8479 = vrot.lane.b32.xlu1 %v19422_v29, %s12058_s19  ;;  %v8299_v29 = vrot.slane %v8297_v30, 1 }
 0x676   :  { %8485 = vrot.lane.b32.xlu0 %v19553_v13, %s12058_s19 }
 0x677   :  { %v19935_v21 = vsel %vm7755_vm7, %v8295_v61, %v8299_v29  ;;  %v21007_v61 = vld [vmem:[#allocation107_spill] sm:$0xff]  ;;  %v21008_v29 = vld [vmem:[#allocation6_spill] sm:$0xff] }
 0x679   :  { %8483 = vrot.lane.b32.xlu1 %v19514_v40, %s12058_s19 }
 0x67a   :  { %8489 = vrot.lane.b32.xlu0 %v19610_v56, %s12058_s19 }
 0x67d   :  { %8487 = vrot.lane.b32.xlu1 %v19583_v60, %s12058_s19 }
 0x67e   :  { %8493 = vrot.lane.b32.xlu0 %v19724_v58, %s12058_s19 }
 0x681   :  { %8491 = vrot.lane.b32.xlu1 %v19680_v49, %s12058_s19 }
 0x682   :  { %8503 = vrot.lane.b32.xlu0 %v19935_v21, %s12058_s19  ;;  %v19939_v40 = vpop.f32.mrb[164].mxu0 }
 0x683   :  { %v19941_v13 = vpop.f32.mrb[165].mxu0 }
 0x684   :  { %v19947_v62 = vpop.f32.mrb[166].mxu0 }
 0x685   :  { %8495 = vrot.lane.b32.xlu1 %v19768_v10, %s12058_s19  ;;  %v19949_v60 = vpop.f32.mrb[167].mxu0 }
 0x686   :  { %8499 = vrot.lane.b32.xlu0 %v19832_v35, %s12058_s19 }
 0x689   :  { %8497 = vrot.lane.b32.xlu1 %v19799_v9, %s12058_s19 }
 0x68b   :  { %v8428_v52 = vpop.permute.xlu1 %8427 }
 0x68c   :  { %v8708_v44 = vsel %vm8505_vm6, %v19610_v56, %v8428_v52  ;;  %v21009_v52 = vld [vmem:[#allocation105_spill] sm:$0xff] }
 0x68d   :  { %9499 = vmatprep.mubr.bf16.mxu1 %v8708_v44 }
 0x68e   :  { %9500 = vmatmul.mubr.bf16.gmra.mrb[108].mxu1 %v19957_v38 }
 0x692   :  { %v8366_v35 = vpop.permute.xlu0 %8365 }
 0x693   :  { %v19970_v56 = vsel %vm8505_vm6, %v19670_v11, %v8366_v35  ;;  %v21010_v35 = vld [vmem:[#allocation12_spill] sm:$0xff] }
 0x696   :  { %v8430_v14 = vpop.permute.xlu1 %8429 }
 0x697   :  { %v8712_v39 = vsel %vm8505_vm6, %v19680_v49, %v8430_v14 }
 0x698   :  { %v19960_v25 = vpop.f32.mrb[168].mxu0  ;;  %9507 = vmatprep.mubr.bf16.mxu1 %v8712_v39 }
 0x699   :  { %v19962_v45 = vpop.f32.mrb[169].mxu0  ;;  %9508 = vmatmul.mubr.bf16.gmra.mrb[112].mxu1 %v19970_v56 }
 0x69a   :  { %v19966_v5 = vpop.f32.mrb[170].mxu0 }
 0x69b   :  { %v19973_v53 = vpop.f32.mrb[171].mxu0 }
 0x69d   :  { %v8368_v63 = vpop.permute.xlu0 %8367 }
 0x69e   :  { %v19979_v49 = vsel %vm8505_vm6, %v19715_v37, %v8368_v63  ;;  %v21011_v63 = vld [vmem:[#allocation10_spill] sm:$0xff] }
 0x6a2   :  { %v8432_v19 = vpop.permute.xlu1 %8431 }
 0x6a3   :  { %v8716_v6 = vsel %vm8505_vm6, %v19724_v58, %v8432_v19 }
 0x6a4   :  { %9515 = vmatprep.mubr.bf16.mxu1 %v8716_v6 }
 0x6a5   :  { %9516 = vmatmul.mubr.bf16.gmra.mrb[116].mxu1 %v19979_v49 }
 0x6a9   :  { %v8370_v54 = vpop.permute.xlu0 %8369 }
 0x6aa   :  { %v19992_v58 = vsel %vm8505_vm6, %v19759_v1, %v8370_v54  ;;  %v21012_v54 = vld [vmem:[#allocation14_spill] sm:$0xff] }
 0x6ac   :  { %v19982_v42 = vpop.f32.mrb[172].mxu0  ;;  %v8434_v11 = vpop.permute.xlu1 %8433 }
 0x6ad   :  { %v19984_v48 = vpop.f32.mrb[173].mxu0  ;;  %v8720_v17 = vsel %vm8505_vm6, %v19768_v10, %v8434_v11 }
 0x6ae   :  { %9523 = vmatprep.mubr.bf16.mxu1 %v8720_v17  ;;  %v19988_v31 = vpop.f32.mrb[174].mxu0  ;;  %v21013_v17 = vld [vmem:[#allocation100_spill] sm:$0xff] }
 0x6af   :  { %9524 = vmatmul.mubr.bf16.gmra.mrb[120].mxu1 %v19992_v58  ;;  %v19995_v37 = vpop.f32.mrb[175].mxu0 }
 0x6b3   :  { %v8372_v18 = vpop.permute.xlu0 %8371 }
 0x6b4   :  { %v20001_v10 = vsel %vm8505_vm6, %v19791_v32, %v8372_v18 }
 0x6b7   :  { %v8436_v7 = vpop.permute.xlu1 %8435  ;;  %v8440_v32 = vpop.permute.xlu0 %8439 }
 0x6b8   :  { %v8724_v24 = vsel %vm8505_vm6, %v19799_v9, %v8436_v7  ;;  %v8732_v22 = vsel %vm8505_vm6, %v21008_v29, %v8440_v32  ;;  %v21014_v7 = vld [vmem:[#allocation18_spill] sm:$0xff] }
 0x6b9   :  { %9531 = vmatprep.mubr.bf16.mxu1 %v8724_v24 }
 0x6ba   :  { %9532 = vmatmul.mubr.bf16.gmra.mrb[124].mxu1 %v20001_v10 }
 0x6bb   :  { %9572 = vmatprep.mubr.bf16.mxu1 %v21005_v16  ;;  %v8438_v1 = vpop.permute.xlu1 %8437 }
 0x6bc   :  { %v8728_v36 = vsel %vm8505_vm6, %v21006_v34, %v8438_v1  ;;  %v8444_v39 = vpop.permute.xlu0 %8443  ;;  %v21016_v1 = vld [vmem:[#allocation16_spill] sm:$0xff] }
 0x6bd   :  { %v8740_v19 = vsel %vm8505_vm6, %v21011_v63, %v8444_v39  ;;  %v21019_v39 = vld [vmem:[#allocation98_spill] sm:$0xff] }
 0x6bf   :  { %v20005_v8 = vpop.f32.mrb[176].mxu0  ;;  %v8442_v44 = vpop.permute.xlu1 %8441 }
 0x6c0   :  { %v20009_v30 = vpop.f32.mrb[177].mxu0  ;;  %v8736_v14 = vsel %vm8505_vm6, %v21010_v35, %v8442_v44  ;;  %v8448_v18 = vpop.permute.xlu0 %8447  ;;  %v21018_v35 = vld [vmem:[#allocation102_spill] sm:$0xff] }
 0x6c1   :  { %v20011_v0 = vpop.f32.mrb[178].mxu0  ;;  %v8748_v24 = vsel %vm8505_vm6, %v21014_v7, %v8448_v18  ;;  %v21021_v7 = vld [vmem:[#allocation30_spill] sm:$0xff] }
 0x6c2   :  { %9573 = vmatmul.mubr.bf16.vlgmr.msra.gmra.mrb[0].mxu1 %v8728_v36  ;;  %v20013_v9 = vpop.f32.mrb[179].mxu0  ;;  %v21017_v36 = vld [vmem:[#allocation103_spill] sm:$0xff] }
 0x6c3   :  { %9580 = vmatprep.mubr.bf16.mxu1 %v21007_v61  ;;  %v8446_v6 = vpop.permute.xlu1 %8445 }
 0x6c4   :  { %v8744_v11 = vsel %vm8505_vm6, %v21012_v54, %v8446_v6  ;;  %v21020_v54 = vld [vmem:[#allocation106_spill] sm:$0xff] }
 0x6c7   :  { %v8450_v16 = vpop.permute.xlu1 %8449 }
 0x6c8   :  { %v8752_v34 = vsel %vm8505_vm6, %v21016_v1, %v8450_v16  ;;  %v21023_v1 = vld [vmem:[#allocation54_spill] sm:$0xff] }
 0x6ca   :  { %9581 = vmatmul.mubr.bf16.gmra.mrb[4].mxu1 %v8732_v22 }
 0x6cb   :  { %9588 = vmatprep.mubr.bf16.mxu1 %v21009_v52  ;;  %v8454_v22 = vpop.permute.xlu1 %8453 }
 0x6d2   :  { %9589 = vmatmul.mubr.bf16.gmra.mrb[8].mxu1 %v8736_v14  ;;  %v8760_v14 = vsel %vm8505_vm6, %v21018_v35, %v8454_v22  ;;  %v21025_v35 = vld [vmem:[#allocation104_spill] sm:$0xff] }
 0x6d3   :  { %9596 = vmatprep.mubr.bf16.mxu1 %v18960_v15  ;;  %v21015_v15 = vld [vmem:[#allocation7_spill] sm:$0xff] }
 0x6da   :  { %9597 = vmatmul.mubr.bf16.gmra.mrb[12].mxu1 %v8740_v19 }
 0x6db   :  { %9604 = vmatprep.mubr.bf16.mxu1 %v19022_v26  ;;  %v8452_v26 = vpop.permute.xlu0 %8451 }
 0x6dc   :  { %v8756_v61 = vsel %vm8505_vm6, %v21017_v36, %v8452_v26  ;;  %v21024_v36 = vld [vmem:[#allocation101_spill] sm:$0xff] }
 0x6e2   :  { %9605 = vmatmul.mubr.bf16.gmra.mrb[16].mxu1 %v8744_v11 }
 0x6e3   :  { %9612 = vmatprep.mubr.bf16.mxu1 %v21013_v17 }
 0x6ea   :  { %9613 = vmatmul.mubr.bf16.gmra.mrb[20].mxu1 %v8748_v24 }
 0x6eb   :  { %9620 = vmatprep.mubr.bf16.mxu1 %v21015_v15  ;;  %v21022_v15 = vld [vmem:[#allocation28_spill] sm:$0xff] }
 0x6f2   :  { %9621 = vmatmul.mubr.bf16.gmra.mrb[24].mxu1 %v8752_v34 }
 0x6f3   :  { %9628 = vmatprep.mubr.bf16.mxu1 %v19250_v59  ;;  %v8456_v59 = vpop.permute.xlu0 %8455 }
 0x6f4   :  { %v8764_v63 = vsel %vm8505_vm6, %v21019_v39, %v8456_v59  ;;  %v21056_v59 = vld [vmem:[#allocation42_spill] sm:$0xff] }
 0x6f7   :  { %v8460_v18 = vpop.permute.xlu0 %8459 }
 0x6f8   :  { %v8772_v24 = vsel %vm8505_vm6, %v21021_v7, %v8460_v18  ;;  %v21030_v18 = vld [vmem:[#allocation64_spill] sm:$0xff] }
 0x6fa   :  { %9629 = vmatmul.mubr.bf16.gmra.mrb[28].mxu1 %v8756_v61  ;;  %v20037_v32 = vpop.f32.mrb[180].mxu0 }
 0x6fb   :  { %9636 = vmatprep.mubr.bf16.mxu1 %v19275_v12  ;;  %v20039_v29 = vpop.f32.mrb[181].mxu0  ;;  %v8458_v12 = vpop.permute.xlu1 %8457 }
 0x6fc   :  { %v20041_v52 = vpop.f32.mrb[182].mxu0  ;;  %v8768_v11 = vsel %vm8505_vm6, %v21020_v54, %v8458_v12  ;;  %v8464_v34 = vpop.permute.xlu0 %8463  ;;  %v21028_v12 = vld [vmem:[#allocation66_spill] sm:$0xff] }
 0x6fd   :  { %v20043_v44 = vpop.f32.mrb[183].mxu0 }
 0x700   :  { %v8466_v22 = vpop.permute.xlu0 %8465 }
 0x702   :  { %9637 = vmatmul.mubr.bf16.gmra.mrb[32].mxu1 %v8760_v14  ;;  %v21026_v14 = vld [vmem:[#allocation99_spill] sm:$0xff] }
 0x703   :  { %9644 = vmatprep.mubr.bf16.mxu1 %v19312_v57 }
 0x704   :  { %v8470_v54 = vpop.permute.xlu0 %8469 }
 0x70a   :  { %9645 = vmatmul.mubr.bf16.gmra.mrb[36].mxu1 %v8764_v63 }
 0x70b   :  { %9652 = vmatprep.mubr.bf16.mxu1 %v19358_v55  ;;  %v8462_v55 = vpop.permute.xlu1 %8461 }
 0x70c   :  { %v8776_v16 = vsel %vm8505_vm6, %v21022_v15, %v8462_v55  ;;  %v21032_v15 = vld [vmem:[#allocation47_spill] sm:$0xff] }
 0x70f   :  { %v8502_v26 = vpop.permute.xlu1 %8501 }
 0x710   :  { %v20051_v19 = vpop.f32.mrb[184].mxu0  ;;  %v8855_v61 = vsel %vm8505_vm6, %v19079_v20, %v8502_v26 }
 0x711   :  { %v20053_v6 = vpop.f32.mrb[185].mxu0 }
 0x712   :  { %9653 = vmatmul.mubr.bf16.gmra.mrb[40].mxu1 %v8768_v11  ;;  %v20057_v17 = vpop.f32.mrb[186].mxu0  ;;  %v21029_v11 = vld [vmem:[#allocation5_spill] sm:$0xff] }
 0x713   :  { %9660 = vmatprep.mubr.bf16.mxu1 %v19399_v2  ;;  %v20060_v57 = vpop.f32.mrb[187].mxu0  ;;  %v8780_v2 = vsel %vm8505_vm6, %v21024_v36, %v8464_v34  ;;  %v8468_v39 = vpop.permute.xlu1 %8467  ;;  %v8792_v20 = vsel %vm8505_vm6, %v21029_v11, %v8470_v54  ;;  %v21034_v34 = vld [vmem:[#allocation78_spill] sm:$0xff]  ;;  %v21039_v11 = vld [vmem:[#allocation52_spill] sm:$0xff] }
 0x714   :  { %v8788_v63 = vsel %vm8505_vm6, %v19891_v28, %v8468_v39  ;;  %v21035_v36 = vld [vmem:[#allocation46_spill] sm:$0xff] }
 0x717   :  { %v8472_v7 = vpop.permute.xlu1 %8471 }
 0x71a   :  { %9661 = vmatmul.mubr.bf16.gmra.mrb[44].mxu1 %v8772_v24  ;;  %v21031_v24 = vld [vmem:[#allocation13_spill] sm:$0xff] }
 0x71b   :  { %9668 = vmatprep.mubr.bf16.mxu1 %v19446_v3  ;;  %v8784_v3 = vsel %vm8505_vm6, %v21025_v35, %v8466_v22  ;;  %v8796_v55 = vsel %vm8505_vm6, %v21031_v24, %v8472_v7  ;;  %v8476_v26 = vpop.permute.xlu1 %8475  ;;  %v21037_v35 = vld [vmem:[#allocation45_spill] sm:$0xff]  ;;  %v21040_v7 = vld [vmem:[#allocation51_spill] sm:$0xff] }
 0x71f   :  { %v8480_v39 = vpop.permute.xlu1 %8479 }
 0x722   :  { %9669 = vmatmul.mubr.bf16.gmra.mrb[48].mxu1 %v8776_v16  ;;  %v8474_v16 = vpop.permute.xlu0 %8473 }
 0x723   :  { %9676 = vmatprep.mubr.bf16.mxu1 %v21023_v1  ;;  %v21033_v1 = vld [vmem:[#allocation48_spill] sm:$0xff] }
 0x724   :  { %v8800_v28 = vsel %vm8505_vm6, %v21033_v1, %v8474_v16  ;;  %v21042_v16 = vld [vmem:[#allocation29_spill] sm:$0xff] }
 0x726   :  { %v8478_v22 = vpop.permute.xlu0 %8477 }
 0x72a   :  { %9677 = vmatmul.mubr.bf16.gmra.mrb[52].mxu1 %v8780_v2  ;;  %v8804_v2 = vsel %vm8505_vm6, %v21035_v36, %v8476_v26  ;;  %v8482_v54 = vpop.permute.xlu0 %8481 }
 0x72b   :  { %9684 = vmatprep.mubr.bf16.mxu1 %v8855_v61  ;;  %v21036_v61 = vld [vmem:[#allocation53_spill] sm:$0xff] }
 0x732   :  { %9685 = vmatmul.mubr.bf16.gmra.mrb[56].mxu1 %v8784_v3  ;;  %v8808_v3 = vsel %vm8505_vm6, %v21037_v35, %v8478_v22  ;;  %v21044_v22 = vld [vmem:[#allocation26_spill] sm:$0xff] }
 0x733   :  { %11074 = vmatprep.mubr.msk.bf16.mxu1 %vm18738_vm8, %v21026_v14 }
 0x73a   :  { %9693 = vmatmul.mubr.bf16.gmra.mrb[60].mxu1 %v8788_v63  ;;  %v21038_v63 = vld [vmem:[#allocation44_spill] sm:$0xff] }
 0x73b   :  { %9700 = vmatprep.mubr.bf16.mxu1 %v21028_v12  ;;  %v8812_v12 = vsel %vm8505_vm6, %v21038_v63, %v8480_v39  ;;  %v21045_v39 = vld [vmem:[#allocation8_spill] sm:$0xff] }
 0x742   :  { %9701 = vmatmul.mubr.bf16.gmra.mrb[64].mxu1 %v8792_v20  ;;  %v8816_v20 = vsel %vm8505_vm6, %v21039_v11, %v8482_v54 }
 0x743   :  { %9708 = vmatprep.mubr.bf16.mxu1 %v21030_v18  ;;  %v8484_v18 = vpop.permute.xlu1 %8483 }
 0x744   :  { %v8820_v24 = vsel %vm8505_vm6, %v21040_v7, %v8484_v18 }
 0x74a   :  { %9709 = vmatmul.mubr.bf16.gmra.mrb[68].mxu1 %v8796_v55  ;;  %v21041_v55 = vld [vmem:[#allocation50_spill] sm:$0xff] }
 0x74b   :  { %9716 = vmatprep.mubr.bf16.mxu1 %v21032_v15 }
 0x752   :  { %9717 = vmatmul.mubr.bf16.gmra.mrb[72].mxu1 %v8800_v28  ;;  %v21043_v28 = vld [vmem:[#allocation37_spill] sm:$0xff] }
 0x753   :  { %9724 = vmatprep.mubr.bf16.mxu1 %v21034_v34 }
 0x75a   :  { %9725 = vmatmul.mubr.bf16.gmra.mrb[76].mxu1 %v8804_v2 }
 0x75b   :  { %9732 = vmatprep.mubr.bf16.mxu1 %v21036_v61 }
 0x762   :  { %9733 = vmatmul.mubr.bf16.gmra.mrb[80].mxu1 %v8808_v3 }
 0x763   :  { %9740 = vmatprep.mubr.bf16.mxu1 %v19812_v33  ;;  %v8486_v33 = vpop.permute.xlu0 %8485 }
 0x764   :  { %v8824_v15 = vsel %vm8505_vm6, %v21041_v55, %v8486_v33 }
 0x76a   :  { %9741 = vmatmul.mubr.bf16.gmra.mrb[84].mxu1 %v8812_v12 }
 0x76b   :  { %9748 = vmatprep.mubr.bf16.mxu1 %v19846_v23  ;;  %v8488_v23 = vpop.permute.xlu1 %8487 }
 0x76c   :  { %v8828_v1 = vsel %vm8505_vm6, %v21042_v16, %v8488_v23 }
 0x76f   :  { %v8492_v26 = vpop.permute.xlu1 %8491 }
 0x770   :  { %v8836_v63 = vsel %vm8505_vm6, %v21045_v39, %v8492_v26  ;;  %v21050_v39 = vld [vmem:[#allocation19_spill] sm:$0xff] }
 0x772   :  { %9749 = vmatmul.mubr.bf16.gmra.mrb[88].mxu1 %v8816_v20 }
 0x773   :  { %9756 = vmatprep.mubr.bf16.mxu1 %v19861_v41  ;;  %v8490_v41 = vpop.permute.xlu0 %8489 }
 0x774   :  { %v8832_v34 = vsel %vm8505_vm6, %v21043_v28, %v8490_v41  ;;  %v21048_v41 = vld [vmem:[#allocation55_spill] sm:$0xff] }
 0x777   :  { %v8494_v18 = vpop.permute.xlu0 %8493 }
 0x778   :  { %v8840_v28 = vsel %vm8505_vm6, %v21048_v41, %v8494_v18 }
 0x77a   :  { %9757 = vmatmul.mubr.bf16.gmra.mrb[92].mxu1 %v8820_v24 }
 0x77b   :  { %9764 = vmatprep.mubr.bf16.mxu1 %v19882_v51  ;;  %v20116_v51 = vld [vmem:[%s20460_s5] ss:$0 sm:$0xff] }
 0x782   :  { %9765 = vmatmul.mubr.bf16.gmra.mrb[96].mxu1 %v8824_v15  ;;  %v21047_v15 = vld [vmem:[#allocation27_spill] sm:$0xff] }
 0x783   :  { %9772 = vmatprep.mubr.bf16.mxu1 %v19957_v38 }
 0x78a   :  { %9773 = vmatmul.mubr.bf16.gmra.mrb[100].mxu1 %v8828_v1 }
 0x78b   :  { %9780 = vmatprep.mubr.bf16.mxu1 %v19970_v56 }
 0x792   :  { %9781 = vmatmul.mubr.bf16.gmra.mrb[104].mxu1 %v8832_v34  ;;  %v21049_v34 = vld [vmem:[#allocation11_spill] sm:$0xff] }
 0x793   :  { %9788 = vmatprep.mubr.bf16.mxu1 %v19979_v49  ;;  %v21046_v49 = vld [vmem:[#allocation36_spill] sm:$0xff] }
 0x795   :  { %v9574_v38 = vpop.f32.mrb[0].mxu1 }
 0x796   :  { %v11587_v36 = vadd.f32 %v20116_v51, %v9574_v38  ;;  %v9576_v2 = vpop.f32.mrb[1].mxu1 }
 0x797   :  { %v9577_v61 = vpop.f32.mrb[2].mxu1  ;;  %v8496_v2 = vpop.permute.xlu1 %8495 }
 0x798   :  { %v9864_v56 = vadd.f32 %v11587_v36, %v21044_v22  ;;  %v11588_v35 = vadd.f32 %v20116_v51, %v9577_v61  ;;  %v9579_v3 = vpop.f32.mrb[3].mxu1 }
 0x79a   :  { %v9867_v12 = vadd.f32 %v11588_v35, %v21046_v49  ;;  %9789 = vmatmul.mubr.bf16.gmra.mrb[108].mxu1 %v8836_v63  ;;  %v10118_v54 = vmax.f32 %v9864_v56, 0.0  ;;  %v8504_v35 = vpop.permute.xlu0 %8503 }
 0x79b   :  { %9796 = vmatprep.mubr.bf16.mxu1 %v19992_v58  ;;  %v8858_v18 = vsel %vm8505_vm6, %v19823_v43, %v8504_v35  ;;  %v21054_v43 = vld [vmem:[#allocation17_spill] sm:$0xff] }
 0x79c   :  { %v10119_v11 = vmax.f32 %v9867_v12, 0.0 }
 0x79d   :  { %v9582_v20 = vpop.f32.mrb[4].mxu1 }
 0x79e   :  { %v20125_v7 = vpack.c.bf16 %v10119_v11, %v10118_v54  ;;  %v11589_v24 = vadd.f32 %v20116_v51, %v9582_v20  ;;  %v9584_v33 = vpop.f32.mrb[5].mxu1  ;;  %v21051_v54 = vld [vmem:[#allocation76_spill] sm:$0xff]  ;;  %v8500_v35 = vpop.permute.xlu0 %8499 }
 0x79f   :  { %v9585_v55 = vpop.f32.mrb[6].mxu1  ;;  %v8844_v11 = vsel %vm8505_vm6, %v21051_v54, %v8496_v2 }
 0x7a0   :  { %v9872_v23 = vadd.f32 %v11589_v24, %v21047_v15  ;;  %v11590_v16 = vadd.f32 %v20116_v51, %v9585_v55  ;;  %v9587_v1 = vpop.f32.mrb[7].mxu1  ;;  %v8498_v15 = vpop.permute.xlu1 %8497 }
 0x7a2   :  { %v9875_v58 = vadd.f32 %v11590_v16, %v21049_v34  ;;  %9797 = vmatmul.mubr.bf16.gmra.mrb[112].mxu1 %v8840_v28  ;;  %v10120_v38 = vmax.f32 %v9872_v23, 0.0  ;;  %v21053_v28 = vld [vmem:[#allocation34_spill] sm:$0xff] }
 0x7a3   :  { %9804 = vmatprep.mubr.bf16.mxu1 %v20001_v10  ;;  %v21052_v10 = vld [vmem:[#allocation25_spill] sm:$0xff] }
 0x7a4   :  { %v10121_v26 = vmax.f32 %v9875_v58, 0.0 }
 0x7a5   :  { %v9590_v36 = vpop.f32.mrb[8].mxu1 }
 0x7a6   :  { %v20134_v61 = vpack.c.bf16 %v10121_v26, %v10120_v38  ;;  %v11591_v22 = vadd.f32 %v20116_v51, %v9590_v36  ;;  %v9592_v56 = vpop.f32.mrb[9].mxu1  ;;  %v8848_v26 = vsel %vm8505_vm6, %v19808_v47, %v8498_v15 }
 0x7a7   :  { %v9593_v3 = vpop.f32.mrb[10].mxu1 }
 0x7a8   :  { %v9880_v63 = vadd.f32 %v11591_v22, %v21050_v39  ;;  %v11592_v49 = vadd.f32 %v20116_v51, %v9593_v3  ;;  %v9595_v12 = vpop.f32.mrb[11].mxu1 }
 0x7a9   :  { %v21055_v12 = vld [vmem:[#allocation32_spill] sm:$0xff] }
 0x7aa   :  { %v9883_v20 = vadd.f32 %v11592_v49, %v21052_v10  ;;  %9805 = vmatmul.mubr.bf16.gmra.mrb[116].mxu1 %v8844_v11  ;;  %v10122_v24 = vmax.f32 %v9880_v63, 0.0  ;;  %v8852_v10 = vsel %vm8505_vm6, %v19935_v21, %v8500_v35  ;;  %v21059_v35 = vld [vmem:[#allocation31_spill] sm:$0xff] }
 0x7ab   :  { %9812 = vmatprep.mubr.bf16.mxu1 %v8858_v18 }
 0x7ac   :  { %v10123_v33 = vmax.f32 %v9883_v20, 0.0 }
 0x7ad   :  { %v9598_v55 = vpop.f32.mrb[12].mxu1 }
 0x7ae   :  { %v20144_v23 = vpack.c.bf16 %v10123_v33, %v10122_v24  ;;  %v11593_v16 = vadd.f32 %v20116_v51, %v9598_v55  ;;  %v9600_v1 = vpop.f32.mrb[13].mxu1 }
 0x7af   :  { %v9601_v41 = vpop.f32.mrb[14].mxu1  ;;  %v21057_v1 = vld [vmem:[#allocation33_spill] sm:$0xff] }
 0x7b0   :  { %v9888_v34 = vadd.f32 %v11593_v16, %v21053_v28  ;;  %v11594_v58 = vadd.f32 %v20116_v51, %v9601_v41  ;;  %v9603_v38 = vpop.f32.mrb[15].mxu1 }
 0x7b2   :  { %v9891_v36 = vadd.f32 %v11594_v58, %v21054_v43  ;;  %9813 = vmatmul.mubr.bf16.gmra.mrb[120].mxu1 %v8848_v26  ;;  %v10124_v2 = vmax.f32 %v9888_v34, 0.0  ;;  %v21058_v58 = vld [vmem:[#allocation23_spill] sm:$0xff] }
 0x7b3   :  { %11076 = vmatprep.mubr.msk.bf16.mxu1 %vm18738_vm8, %v21026_v14 }
 0x7b4   :  { %v10125_v22 = vmax.f32 %v9891_v36, 0.0 }
 0x7b5   :  { %v9606_v56 = vpop.f32.mrb[16].mxu1 }
 0x7b6   :  { %v20155_v3 = vpack.c.bf16 %v10125_v22, %v10124_v2  ;;  %v11595_v39 = vadd.f32 %v20116_v51, %v9606_v56  ;;  %v9608_v63 = vpop.f32.mrb[17].mxu1 }
 0x7b7   :  { %v9609_v49 = vpop.f32.mrb[18].mxu1 }
 0x7b8   :  { %v9896_v54 = vadd.f32 %v11595_v39, %v21055_v12  ;;  %v11596_v47 = vadd.f32 %v20116_v51, %v9609_v49  ;;  %v9611_v11 = vpop.f32.mrb[19].mxu1  ;;  %v21060_v12 = vld [vmem:[#allocation38_spill] sm:$0xff] }
 0x7ba   :  { %v9899_v14 = vadd.f32 %v11596_v47, %v21056_v59  ;;  %9821 = vmatmul.mubr.bf16.gmra.mrb[124].mxu1 %v8852_v10  ;;  %v10126_v20 = vmax.f32 %v9896_v54, 0.0 }
 0x7bc   :  { %v10127_v18 = vmax.f32 %v9899_v14, 0.0 }
 0x7bd   :  { %v9614_v24 = vpop.f32.mrb[20].mxu1 }
 0x7be   :  { %v20163_v33 = vpack.c.bf16 %v10127_v18, %v10126_v20  ;;  %v11597_v55 = vadd.f32 %v20116_v51, %v9614_v24  ;;  %v9616_v15 = vpop.f32.mrb[21].mxu1  ;;  %v21061_v24 = vld [vmem:[#allocation40_spill] sm:$0xff] }
 0x7bf   :  { %v9617_v16 = vpop.f32.mrb[22].mxu1 }
 0x7c0   :  { %v9904_v41 = vadd.f32 %v11597_v55, %v21057_v1  ;;  %v11598_v28 = vadd.f32 %v20116_v51, %v9617_v16  ;;  %v9619_v34 = vpop.f32.mrb[23].mxu1  ;;  %v21062_v1 = vld [vmem:[#allocation39_spill] sm:$0xff] }
 0x7c2   :  { %v9907_v38 = vadd.f32 %v11598_v28, %v21058_v58  ;;  %v10128_v21 = vmax.f32 %v9904_v41, 0.0 }
 0x7c4   :  { %v10129_v26 = vmax.f32 %v9907_v38, 0.0 }
 0x7c5   :  { %v9622_v43 = vpop.f32.mrb[24].mxu1 }
 0x7c6   :  { %v20169_v36 = vpack.c.bf16 %v10129_v26, %v10128_v21  ;;  %v11599_v2 = vadd.f32 %v20116_v51, %v9622_v43  ;;  %v9624_v22 = vpop.f32.mrb[25].mxu1 }
 0x7c7   :  { %v9625_v56 = vpop.f32.mrb[26].mxu1 }
 0x7c8   :  { %v9912_v39 = vadd.f32 %v11599_v2, %v21059_v35  ;;  %v11600_v63 = vadd.f32 %v20116_v51, %v9625_v56  ;;  %v9627_v49 = vpop.f32.mrb[27].mxu1  ;;  %v21063_v2 = vld [vmem:[#allocation57_spill] sm:$0xff] }
 0x7ca   :  { %v9915_v54 = vadd.f32 %v11600_v63, %v21060_v12  ;;  %v10130_v47 = vmax.f32 %v9912_v39, 0.0  ;;  %v21064_v39 = vld [vmem:[#allocation58_spill] sm:$0xff] }
 0x7cc   :  { %v10131_v11 = vmax.f32 %v9915_v54, 0.0 }
 0x7cd   :  { %v9630_v10 = vpop.f32.mrb[28].mxu1 }
 0x7ce   :  { %v20175_v59 = vpack.c.bf16 %v10131_v11, %v10130_v47  ;;  %v11601_v14 = vadd.f32 %v20116_v51, %v9630_v10  ;;  %v9632_v20 = vpop.f32.mrb[29].mxu1 }
 0x7cf   :  { %v9633_v18 = vpop.f32.mrb[30].mxu1  ;;  %v21065_v20 = vld [vmem:[#allocation60_spill] sm:$0xff] }
 0x7d0   :  { %v9920_v55 = vadd.f32 %v11601_v14, %v21061_v24  ;;  %v11602_v15 = vadd.f32 %v20116_v51, %v9633_v18  ;;  %v9635_v16 = vpop.f32.mrb[31].mxu1 }
 0x7d2   :  { %v9923_v41 = vadd.f32 %v11602_v15, %v21062_v1  ;;  %v10132_v28 = vmax.f32 %v9920_v55, 0.0  ;;  %v12059_v15 = vmov 1966171168   ;;  %v10227_v1 = vlaneseq }
 0x7d3   :  { %v10225_v16 = vunpack.c.l.s4 %v12059_v15 }
 0x7d4   :  { %v10133_v34 = vmax.f32 %v9923_v41, 0.0  ;;  %v21066_v41 = vld [vmem:[#allocation35_spill] sm:$0xff] }
 0x7d5   :  { %v9638_v58 = vpop.f32.mrb[32].mxu1 }
 0x7d6   :  { %v20181_v38 = vpack.c.bf16 %v10133_v34, %v10132_v28  ;;  %v11603_v21 = vadd.f32 %v20116_v51, %v9638_v58  ;;  %v9640_v26 = vpop.f32.mrb[33].mxu1  ;;  %v10226_v34 = vunpack.c.0.s8 %v10225_v16  ;;  %v10228_v58 = vshrl.u32 %v10227_v1, 7 }
 0x7d7   :  { %v9641_v43 = vpop.f32.mrb[34].mxu1 }
 0x7d8   :  { %v9928_v22 = vadd.f32 %v11603_v21, %v21063_v2  ;;  %v11604_v56 = vadd.f32 %v20116_v51, %v9641_v43  ;;  %v9643_v35 = vpop.f32.mrb[35].mxu1  ;;  %v20195_v21 = vld.sshfl [vmem:[%s20461_s6] sm:$0x33 pattern:$0x75316420] }
 0x7d9   :  { %v10223_v2 = vcombine.high %v20195_v21, %v20195_v21 }
 0x7da   :  { %v9931_v63 = vadd.f32 %v11604_v56, %v21064_v39  ;;  %v10134_v49 = vmax.f32 %v9928_v22, 0.0  ;;  %v20199_v22 = vsub.s32 %v10226_v34, %v10228_v58 }
 0x7dc   :  { %v10135_v12 = vmax.f32 %v9931_v63, 0.0  ;;  %v20203_v63 = vrot.slane %v10223_v2, %v20199_v22 }
 0x7dd   :  { %v9646_v54 = vpop.f32.mrb[36].mxu1 }
 0x7de   :  { %v11605_v47 = vadd.f32 %v20116_v51, %v9646_v54  ;;  %v9648_v11 = vpop.f32.mrb[37].mxu1  ;;  %v10191_v10 = vpack.c.bf16 %v10135_v12, %v10134_v49  ;;  %v21067_v12 = vld [vmem:[#allocation43_spill] sm:$0xff]  ;;  %10276 = vmatprep.mubr.bf16.mxu0 %v20203_v63 }
 0x7df   :  { %v9649_v14 = vpop.f32.mrb[38].mxu1 }
 0x7e0   :  { %v9936_v18 = vadd.f32 %v11605_v47, %v21065_v20  ;;  %v11606_v24 = vadd.f32 %v20116_v51, %v9649_v14  ;;  %v9651_v55 = vpop.f32.mrb[39].mxu1  ;;  %11244 = vmatprep.subr.bf16.mxu0 %v10191_v10  ;;  %v21068_v10 = vld [vmem:[#allocation41_spill] sm:$0xff] }
 0x7e1   :  { %11245 = vmatpush3.bf16.msra.mxu0 %v20125_v7 }
 0x7e2   :  { %v9939_v28 = vadd.f32 %v11606_v24, %v21066_v41  ;;  %v10136_v26 = vmax.f32 %v9936_v18, 0.0  ;;  %v21069_v41 = vld [vmem:[#allocation56_spill] sm:$0xff] }
 0x7e4   :  { %v10137_v43 = vmax.f32 %v9939_v28, 0.0 }
 0x7e5   :  { %v9654_v56 = vpop.f32.mrb[40].mxu1 }
 0x7e6   :  { %v11607_v35 = vadd.f32 %v20116_v51, %v9654_v56  ;;  %v9656_v7 = vpop.f32.mrb[41].mxu1  ;;  %v10192_v39 = vpack.c.bf16 %v10137_v43, %v10136_v26  ;;  %v21070_v26 = vld [vmem:[#allocation63_spill] sm:$0xff] }
 0x7e7   :  { %v9657_v49 = vpop.f32.mrb[42].mxu1 }
 0x7e8   :  { %v9944_v54 = vadd.f32 %v11607_v35, %v21067_v12  ;;  %v11608_v47 = vadd.f32 %v20116_v51, %v9657_v49  ;;  %v9659_v11 = vpop.f32.mrb[43].mxu1  ;;  %11246 = vmatprep.subr.bf16.mxu0 %v10192_v39  ;;  %v21071_v12 = vld [vmem:[#allocation49_spill] sm:$0xff] }
 0x7e9   :  { %11247 = vmatpush3.bf16.msra.mxu0 %v20134_v61 }
 0x7ea   :  { %v9947_v14 = vadd.f32 %v11608_v47, %v21068_v10  ;;  %v10138_v20 = vmax.f32 %v9944_v54, 0.0  ;;  %v21072_v10 = vld [vmem:[#allocation69_spill] sm:$0xff] }
 0x7ec   :  { %v10139_v18 = vmax.f32 %v9947_v14, 0.0 }
 0x7ed   :  { %v9662_v24 = vpop.f32.mrb[44].mxu1 }
 0x7ee   :  { %v11609_v55 = vadd.f32 %v20116_v51, %v9662_v24  ;;  %v9664_v15 = vpop.f32.mrb[45].mxu1  ;;  %v10193_v16 = vpack.c.bf16 %v10139_v18, %v10138_v20 }
 0x7ef   :  { %v9665_v1 = vpop.f32.mrb[46].mxu1 }
 0x7f0   :  { %v9952_v28 = vadd.f32 %v11609_v55, %v21069_v41  ;;  %v11610_v34 = vadd.f32 %v20116_v51, %v9665_v1  ;;  %v9667_v58 = vpop.f32.mrb[47].mxu1  ;;  %11248 = vmatprep.subr.bf16.mxu0 %v10193_v16  ;;  %v21073_v1 = vld [vmem:[#allocation62_spill] sm:$0xff] }
 0x7f1   :  { %11249 = vmatpush3.bf16.msra.mxu0 %v20144_v23  ;;  %v21074_v58 = vld [vmem:[#allocation72_spill] sm:$0xff] }
 0x7f2   :  { %v9955_v61 = vadd.f32 %v11610_v34, %v21070_v26  ;;  %v10140_v43 = vmax.f32 %v9952_v28, 0.0 }
 0x7f4   :  { %v10141_v2 = vmax.f32 %v9955_v61, 0.0 }
 0x7f5   :  { %v9670_v56 = vpop.f32.mrb[48].mxu1 }
 0x7f6   :  { %v11611_v35 = vadd.f32 %v20116_v51, %v9670_v56  ;;  %v9672_v7 = vpop.f32.mrb[49].mxu1  ;;  %v10194_v39 = vpack.c.bf16 %v10141_v2, %v10140_v43 }
 0x7f7   :  { %v9673_v49 = vpop.f32.mrb[50].mxu1  ;;  %v20226_v7 = vpop.f32.mrb[188].mxu0 }
 0x7f8   :  { %v9960_v54 = vadd.f32 %v11611_v35, %v21071_v12  ;;  %v11612_v47 = vadd.f32 %v20116_v51, %v9673_v49  ;;  %v9675_v11 = vpop.f32.mrb[51].mxu1  ;;  %11250 = vmatprep.subr.bf16.mxu0 %v10194_v39  ;;  %v21075_v49 = vld [vmem:[#allocation70_spill] sm:$0xff] }
 0x7f9   :  { %11251 = vmatpush3.bf16.msra.mxu0 %v20155_v3  ;;  %v20230_v11 = vpop.f32.mrb[189].mxu0 }
 0x7fa   :  { %v9963_v23 = vadd.f32 %v11612_v47, %v21072_v10  ;;  %v10142_v14 = vmax.f32 %v9960_v54, 0.0 }
 0x7fc   :  { %v10143_v20 = vmax.f32 %v9963_v23, 0.0  ;;  %v20234_v23 = vpop.f32.mrb[190].mxu0 }
 0x7fd   :  { %v9678_v18 = vpop.f32.mrb[52].mxu1 }
 0x7fe   :  { %v11613_v24 = vadd.f32 %v20116_v51, %v9678_v18  ;;  %v9680_v55 = vpop.f32.mrb[53].mxu1  ;;  %v10195_v15 = vpack.c.bf16 %v10143_v20, %v10142_v14  ;;  %v20236_v14 = vpop.f32.mrb[191].mxu0 }
 0x7ff   :  { %v9681_v16 = vpop.f32.mrb[54].mxu1 }
 0x800   :  { %v9968_v41 = vadd.f32 %v11613_v24, %v21073_v1  ;;  %v11614_v28 = vadd.f32 %v20116_v51, %v9681_v16  ;;  %v9683_v34 = vpop.f32.mrb[55].mxu1  ;;  %11252 = vmatprep.subr.bf16.mxu0 %v10195_v15 }
 0x801   :  { %11253 = vmatpush3.bf16.msra.mxu0 %v20163_v33  ;;  %v21076_v33 = vld [vmem:[#allocation75_spill] sm:$0xff] }
 0x802   :  { %v9971_v3 = vadd.f32 %v11614_v28, %v21074_v58  ;;  %v10144_v26 = vmax.f32 %v9968_v41, 0.0  ;;  %v21077_v41 = vld [vmem:[#allocation15_spill] sm:$0xff] }
 0x804   :  { %v10145_v61 = vmax.f32 %v9971_v3, 0.0 }
 0x805   :  { %v9686_v43 = vpop.f32.mrb[56].mxu1 }
 0x806   :  { %v11615_v2 = vadd.f32 %v20116_v51, %v9686_v43  ;;  %v9688_v56 = vpop.f32.mrb[57].mxu1  ;;  %v10196_v35 = vpack.c.bf16 %v10145_v61, %v10144_v26 }
 0x807   :  { %v9689_v39 = vpop.f32.mrb[58].mxu1 }
 0x808   :  { %v9976_v12 = vadd.f32 %v11615_v2, %v21075_v49  ;;  %v11616_v54 = vadd.f32 %v20116_v51, %v9689_v39  ;;  %v9691_v47 = vpop.f32.mrb[59].mxu1  ;;  %11254 = vmatprep.subr.bf16.mxu0 %v10196_v35 }
 0x809   :  { %11255 = vmatpush3.bf16.msra.mxu0 %v20169_v36  ;;  %v21078_v36 = vld [vmem:[#allocation68_spill] sm:$0xff]  ;;  %v20248_v47 = vrot.slane %v20195_v21, %v20199_v22 }
 0x80a   :  { %v9979_v10 = vadd.f32 %v11616_v54, %v21076_v33  ;;  %v10146_v20 = vmax.f32 %v9976_v12, 0.0 }
 0x80c   :  { %v10147_v18 = vmax.f32 %v9979_v10, 0.0 }
 0x80d   :  { %v9694_v24 = vpop.f32.mrb[60].mxu1 }
 0x80e   :  { %v11617_v55 = vadd.f32 %v20116_v51, %v9694_v24  ;;  %v9696_v15 = vpop.f32.mrb[61].mxu1  ;;  %v10197_v16 = vpack.c.bf16 %v10147_v18, %v10146_v20 }
 0x80f   :  { %v9697_v1 = vpop.f32.mrb[62].mxu1 }
 0x810   :  { %v9984_v28 = vadd.f32 %v11617_v55, %v21077_v41  ;;  %v11618_v34 = vadd.f32 %v20116_v51, %v9697_v1  ;;  %v9699_v58 = vpop.f32.mrb[63].mxu1  ;;  %11256 = vmatprep.subr.bf16.mxu0 %v10197_v16 }
 0x811   :  { %11257 = vmatpush3.bf16.msra.mxu0 %v20175_v59  ;;  %v10239_v59 = vcombine.high %v20203_v63, %v20203_v63 }
 0x812   :  { %v9987_v3 = vadd.f32 %v11618_v34, %v21078_v36  ;;  %v10148_v26 = vmax.f32 %v9984_v28, 0.0 }
 0x814   :  { %v10149_v61 = vmax.f32 %v9987_v3, 0.0 }
 0x815   :  { %v9702_v43 = vpop.f32.mrb[64].mxu1 }
 0x816   :  { %v11619_v2 = vadd.f32 %v20116_v51, %v9702_v43  ;;  %v9704_v56 = vpop.f32.mrb[65].mxu1  ;;  %v10198_v35 = vpack.c.bf16 %v10149_v61, %v10148_v26 }
 0x817   :  { %v9705_v39 = vpop.f32.mrb[66].mxu1 }
 0x818   :  { %v9992_v49 = vadd.f32 %v11619_v2, %v19907_v50  ;;  %v11620_v12 = vadd.f32 %v20116_v51, %v9705_v39  ;;  %v9707_v54 = vpop.f32.mrb[67].mxu1  ;;  %11258 = vmatprep.subr.bf16.mxu0 %v10198_v35 }
 0x819   :  { %11259 = vmatpush3.bf16.msra.mxu0 %v20181_v38 }
 0x81a   :  { %v9995_v33 = vadd.f32 %v11620_v12, %v19911_v4  ;;  %v10150_v10 = vmax.f32 %v9992_v49, 0.0 }
 0x81c   :  { %v10151_v20 = vmax.f32 %v9995_v33, 0.0  ;;  %10277 = vmatmul.mubr.bf16.vlgmr.msra.gmra.mrb[192].mxu0 %v20248_v47 }
 0x81d   :  { %v9710_v50 = vpop.f32.mrb[68].mxu1  ;;  %10316 = vmatprep.mubr.bf16.mxu0 %v10239_v59 }
 0x81e   :  { %v20255_v18 = vpack.c.bf16 %v10151_v20, %v10150_v10  ;;  %v11621_v24 = vadd.f32 %v20116_v51, %v9710_v50  ;;  %v9712_v55 = vpop.f32.mrb[69].mxu1 }
 0x81f   :  { %v9713_v21 = vpop.f32.mrb[70].mxu1 }
 0x820   :  { %v10000_v22 = vadd.f32 %v11621_v24, %v19903_v27  ;;  %v11622_v38 = vadd.f32 %v20116_v51, %v9713_v21  ;;  %v9715_v15 = vpop.f32.mrb[71].mxu1 }
 0x822   :  { %v10003_v63 = vadd.f32 %v11622_v38, %v19909_v46  ;;  %v10152_v4 = vmax.f32 %v10000_v22, 0.0 }
 0x824   :  { %v10153_v16 = vmax.f32 %v10003_v63, 0.0 }
 0x825   :  { %v9718_v1 = vpop.f32.mrb[72].mxu1 }
 0x826   :  { %v20261_v41 = vpack.c.bf16 %v10153_v16, %v10152_v4  ;;  %v11623_v28 = vadd.f32 %v20116_v51, %v9718_v1  ;;  %v9720_v34 = vpop.f32.mrb[73].mxu1 }
 0x827   :  { %v9721_v58 = vpop.f32.mrb[74].mxu1 }
 0x828   :  { %v10008_v36 = vadd.f32 %v11623_v28, %v19941_v13  ;;  %v11624_v3 = vadd.f32 %v20116_v51, %v9721_v58  ;;  %v9723_v26 = vpop.f32.mrb[75].mxu1 }
 0x82a   :  { %v10011_v27 = vadd.f32 %v11624_v3, %v19949_v60  ;;  %v10154_v61 = vmax.f32 %v10008_v36, 0.0 }
 0x82c   :  { %v10155_v43 = vmax.f32 %v10011_v27, 0.0 }
 0x82d   :  { %v9726_v2 = vpop.f32.mrb[76].mxu1 }
 0x82e   :  { %v20267_v46 = vpack.c.bf16 %v10155_v43, %v10154_v61  ;;  %v11625_v56 = vadd.f32 %v20116_v51, %v9726_v2  ;;  %v9728_v35 = vpop.f32.mrb[77].mxu1 }
 0x82f   :  { %v9729_v39 = vpop.f32.mrb[78].mxu1 }
 0x830   :  { %v10016_v49 = vadd.f32 %v11625_v56, %v19939_v40  ;;  %v11626_v12 = vadd.f32 %v20116_v51, %v9729_v39  ;;  %v9731_v54 = vpop.f32.mrb[79].mxu1 }
 0x832   :  { %v10019_v13 = vadd.f32 %v11626_v12, %v19947_v62  ;;  %v10156_v59 = vmax.f32 %v10016_v49, 0.0 }
 0x834   :  { %v10157_v33 = vmax.f32 %v10019_v13, 0.0 }
 0x835   :  { %v9734_v10 = vpop.f32.mrb[80].mxu1 }
 0x836   :  { %v20273_v60 = vpack.c.bf16 %v10157_v33, %v10156_v59  ;;  %v11627_v20 = vadd.f32 %v20116_v51, %v9734_v10  ;;  %v9736_v50 = vpop.f32.mrb[81].mxu1 }
 0x837   :  { %v9737_v24 = vpop.f32.mrb[82].mxu1 }
 0x838   :  { %v10024_v55 = vadd.f32 %v11627_v20, %v19962_v45  ;;  %v11628_v21 = vadd.f32 %v20116_v51, %v9737_v24  ;;  %v9739_v22 = vpop.f32.mrb[83].mxu1 }
 0x83a   :  { %v10027_v40 = vadd.f32 %v11628_v21, %v19973_v53  ;;  %v10158_v38 = vmax.f32 %v10024_v55, 0.0 }
 0x83c   :  { %v10159_v15 = vmax.f32 %v10027_v40, 0.0 }
 0x83d   :  { %v9742_v63 = vpop.f32.mrb[84].mxu1 }
 0x83e   :  { %v20279_v62 = vpack.c.bf16 %v10159_v15, %v10158_v38  ;;  %v11629_v4 = vadd.f32 %v20116_v51, %v9742_v63  ;;  %v9744_v16 = vpop.f32.mrb[85].mxu1 }
 0x83f   :  { %v9745_v1 = vpop.f32.mrb[86].mxu1 }
 0x840   :  { %v10032_v28 = vadd.f32 %v11629_v4, %v19960_v25  ;;  %v11630_v34 = vadd.f32 %v20116_v51, %v9745_v1  ;;  %v9747_v58 = vpop.f32.mrb[87].mxu1 }
 0x842   :  { %v10035_v45 = vadd.f32 %v11630_v34, %v19966_v5  ;;  %v10160_v36 = vmax.f32 %v10032_v28, 0.0 }
 0x844   :  { %v10161_v3 = vmax.f32 %v10035_v45, 0.0 }
 0x845   :  { %v9750_v26 = vpop.f32.mrb[88].mxu1 }
 0x846   :  { %v20285_v53 = vpack.c.bf16 %v10161_v3, %v10160_v36  ;;  %v11631_v27 = vadd.f32 %v20116_v51, %v9750_v26  ;;  %v9752_v61 = vpop.f32.mrb[89].mxu1 }
 0x847   :  { %v9753_v43 = vpop.f32.mrb[90].mxu1 }
 0x848   :  { %v10040_v2 = vadd.f32 %v11631_v27, %v19984_v48  ;;  %v11632_v56 = vadd.f32 %v20116_v51, %v9753_v43  ;;  %v9755_v35 = vpop.f32.mrb[91].mxu1 }
 0x84a   :  { %v10043_v25 = vadd.f32 %v11632_v56, %v19995_v37  ;;  %v10162_v39 = vmax.f32 %v10040_v2, 0.0 }
 0x84c   :  { %v10163_v49 = vmax.f32 %v10043_v25, 0.0 }
 0x84d   :  { %v9758_v12 = vpop.f32.mrb[92].mxu1 }
 0x84e   :  { %v20291_v5 = vpack.c.bf16 %v10163_v49, %v10162_v39  ;;  %v11633_v54 = vadd.f32 %v20116_v51, %v9758_v12  ;;  %v9760_v13 = vpop.f32.mrb[93].mxu1 }
 0x84f   :  { %v9761_v59 = vpop.f32.mrb[94].mxu1 }
 0x850   :  { %v10048_v33 = vadd.f32 %v11633_v54, %v19982_v42  ;;  %v11634_v10 = vadd.f32 %v20116_v51, %v9761_v59  ;;  %v9763_v20 = vpop.f32.mrb[95].mxu1 }
 0x852   :  { %v10051_v48 = vadd.f32 %v11634_v10, %v19988_v31  ;;  %v10164_v50 = vmax.f32 %v10048_v33, 0.0 }
 0x854   :  { %v10165_v24 = vmax.f32 %v10051_v48, 0.0 }
 0x855   :  { %v9766_v55 = vpop.f32.mrb[96].mxu1 }
 0x856   :  { %v20297_v37 = vpack.c.bf16 %v10165_v24, %v10164_v50  ;;  %v11635_v21 = vadd.f32 %v20116_v51, %v9766_v55  ;;  %v9768_v22 = vpop.f32.mrb[97].mxu1 }
 0x857   :  { %v9769_v40 = vpop.f32.mrb[98].mxu1 }
 0x858   :  { %v10056_v38 = vadd.f32 %v11635_v21, %v20009_v30  ;;  %v11636_v15 = vadd.f32 %v20116_v51, %v9769_v40  ;;  %v9771_v63 = vpop.f32.mrb[99].mxu1 }
 0x85a   :  { %v10059_v42 = vadd.f32 %v11636_v15, %v20013_v9  ;;  %v10166_v4 = vmax.f32 %v10056_v38, 0.0 }
 0x85c   :  { %v10167_v16 = vmax.f32 %v10059_v42, 0.0 }
 0x85d   :  { %v9774_v1 = vpop.f32.mrb[100].mxu1 }
 0x85e   :  { %v11637_v31 = vadd.f32 %v20116_v51, %v9774_v1  ;;  %v9776_v28 = vpop.f32.mrb[101].mxu1  ;;  %v10207_v34 = vpack.c.bf16 %v10167_v16, %v10166_v4 }
 0x85f   :  { %v9777_v58 = vpop.f32.mrb[102].mxu1 }
 0x860   :  { %v10064_v45 = vadd.f32 %v11637_v31, %v20005_v8  ;;  %v11638_v36 = vadd.f32 %v20116_v51, %v9777_v58  ;;  %v9779_v3 = vpop.f32.mrb[103].mxu1  ;;  %11266 = vmatprep.subr.bf16.mxu0 %v10207_v34 }
 0x861   :  { %11267 = vmatpush3.bf16.msra.mxu0 %v20255_v18 }
 0x862   :  { %v10067_v30 = vadd.f32 %v11638_v36, %v20011_v0  ;;  %v10168_v26 = vmax.f32 %v10064_v45, 0.0 }
 0x864   :  { %v10169_v9 = vmax.f32 %v10067_v30, 0.0 }
 0x865   :  { %v9782_v27 = vpop.f32.mrb[104].mxu1 }
 0x866   :  { %v11639_v61 = vadd.f32 %v20116_v51, %v9782_v27  ;;  %v9784_v43 = vpop.f32.mrb[105].mxu1  ;;  %v10208_v2 = vpack.c.bf16 %v10169_v9, %v10168_v26 }
 0x867   :  { %v9785_v56 = vpop.f32.mrb[106].mxu1 }
 0x868   :  { %v10072_v35 = vadd.f32 %v11639_v61, %v20039_v29  ;;  %v11640_v8 = vadd.f32 %v20116_v51, %v9785_v56  ;;  %v9787_v25 = vpop.f32.mrb[107].mxu1  ;;  %11268 = vmatprep.subr.bf16.mxu0 %v10208_v2 }
 0x869   :  { %11269 = vmatpush3.bf16.msra.mxu0 %v20261_v41 }
 0x86a   :  { %v10075_v18 = vadd.f32 %v11640_v8, %v20043_v44  ;;  %v10170_v39 = vmax.f32 %v10072_v35, 0.0 }
 0x86c   :  { %v10171_v0 = vmax.f32 %v10075_v18, 0.0 }
 0x86d   :  { %v9790_v49 = vpop.f32.mrb[108].mxu1 }
 0x86e   :  { %v11641_v12 = vadd.f32 %v20116_v51, %v9790_v49  ;;  %v9792_v54 = vpop.f32.mrb[109].mxu1  ;;  %v10209_v13 = vpack.c.bf16 %v10171_v0, %v10170_v39  ;;  %v10238_v39 = vcombine.high %v20248_v47, %v20248_v47  ;;  %v11911_v47 = vld [vmem:[%s20462_s7 + $0x10] sm:$0xff]   ;;  %v11914_v0 = vld [vmem:[%s20462_s7 + $0x28] sm:$0xff]  }
 0x86f   :  { %v9793_v59 = vpop.f32.mrb[110].mxu1 }
 0x870   :  { %v10080_v33 = vadd.f32 %v11641_v12, %v20037_v32  ;;  %v11642_v29 = vadd.f32 %v20116_v51, %v9793_v59  ;;  %v9795_v10 = vpop.f32.mrb[111].mxu1  ;;  %11270 = vmatprep.subr.bf16.mxu0 %v10209_v13 }
 0x871   :  { %11271 = vmatpush3.bf16.msra.mxu0 %v20267_v46 }
 0x872   :  { %v10083_v41 = vadd.f32 %v11642_v29, %v20041_v52  ;;  %v10172_v20 = vmax.f32 %v10080_v33, 0.0  ;;  %v11915_v33 = vld [vmem:[%s20462_s7 + $0x30] sm:$0xff]   ;;  %v11916_v29 = vld [vmem:[%s20462_s7 + $0x38] sm:$0xff]  }
 0x874   :  { %v10173_v44 = vmax.f32 %v10083_v41, 0.0 }
 0x875   :  { %v9798_v48 = vpop.f32.mrb[112].mxu1 }
 0x876   :  { %v11643_v50 = vadd.f32 %v20116_v51, %v9798_v48  ;;  %v9800_v24 = vpop.f32.mrb[113].mxu1  ;;  %v10210_v55 = vpack.c.bf16 %v10173_v44, %v10172_v20 }
 0x877   :  { %v9801_v21 = vpop.f32.mrb[114].mxu1  ;;  %v11917_v24 = vld [vmem:[%s20463_s9] sm:$0xff]  }
 0x878   :  { %v10088_v22 = vadd.f32 %v11643_v50, %v20053_v6  ;;  %v11644_v32 = vadd.f32 %v20116_v51, %v9801_v21  ;;  %v9803_v40 = vpop.f32.mrb[115].mxu1  ;;  %11272 = vmatprep.subr.bf16.mxu0 %v10210_v55  ;;  %v11918_v21 = vld [vmem:[%s20463_s9 + $0x8] sm:$0xff]  }
 0x879   :  { %11273 = vmatpush3.bf16.msra.mxu0 %v20273_v60  ;;  %v11921_v40 = vld [vmem:[%s20463_s9 + $0x20] sm:$0xff]  }
 0x87a   :  { %v10091_v46 = vadd.f32 %v11644_v32, %v20060_v57  ;;  %v10174_v38 = vmax.f32 %v10088_v22, 0.0  ;;  %v11919_v22 = vld [vmem:[%s20463_s9 + $0x10] sm:$0xff]   ;;  %v11920_v32 = vld [vmem:[%s20463_s9 + $0x18] sm:$0xff]  }
 0x87c   :  { %v10175_v52 = vmax.f32 %v10091_v46, 0.0  ;;  %v11922_v46 = vld [vmem:[%s20463_s9 + $0x28] sm:$0xff]  }
 0x87d   :  { %v9806_v15 = vpop.f32.mrb[116].mxu1 }
 0x87e   :  { %v11645_v63 = vadd.f32 %v20116_v51, %v9806_v15  ;;  %v9808_v42 = vpop.f32.mrb[117].mxu1  ;;  %v10211_v4 = vpack.c.bf16 %v10175_v52, %v10174_v38  ;;  %v11923_v38 = vld [vmem:[%s20463_s9 + $0x30] sm:$0xff]   ;;  %v11924_v52 = vld [vmem:[%s20463_s9 + $0x38] sm:$0xff]   ;;  %v11110_v15 = vld [vmem:[%s20465_s8] ss:$0 sm:$0xff] }
 0x87f   :  { %v9809_v16 = vpop.f32.mrb[118].mxu1 }
 0x880   :  { %v10096_v1 = vadd.f32 %v11645_v63, %v20051_v19  ;;  %v11646_v6 = vadd.f32 %v20116_v51, %v9809_v16  ;;  %v9811_v31 = vpop.f32.mrb[119].mxu1  ;;  %11274 = vmatprep.subr.bf16.mxu0 %v10211_v4 }
 0x881   :  { %11275 = vmatpush3.bf16.msra.mxu0 %v20279_v62  ;;  %v11925_v31 = vld [vmem:[%s20464_s11] sm:$0xff]  }
 0x882   :  { %v10099_v60 = vadd.f32 %v11646_v6, %v20057_v17  ;;  %v10176_v28 = vmax.f32 %v10096_v1, 0.0 }
 0x884   :  { %v10177_v57 = vmax.f32 %v10099_v60, 0.0 }
 0x885   :  { %v9814_v34 = vpop.f32.mrb[120].mxu1 }
 0x886   :  { %v11647_v58 = vadd.f32 %v20116_v51, %v9814_v34  ;;  %v9816_v45 = vpop.f32.mrb[121].mxu1  ;;  %v10212_v36 = vpack.c.bf16 %v10177_v57, %v10176_v28  ;;  %v11926_v28 = vld [vmem:[%s20464_s11 + $0x8] sm:$0xff]   ;;  %v11927_v57 = vld [vmem:[%s20464_s11 + $0x10] sm:$0xff]   ;;  %v11928_v34 = vld [vmem:[%s20464_s11 + $0x18] sm:$0xff]  }
 0x887   :  { %v9817_v3 = vpop.f32.mrb[122].mxu1  ;;  %v11930_v45 = vld [vmem:[%s20464_s11 + $0x28] sm:$0xff]  }
 0x888   :  { %v11648_v30 = vadd.f32 %v20116_v51, %v9817_v3  ;;  %v10104_v19 = vadd.f32 %v11647_v58, %v20230_v11  ;;  %v9819_v26 = vpop.f32.mrb[123].mxu1  ;;  %11276 = vmatprep.subr.bf16.mxu0 %v10212_v36  ;;  %v11929_v58 = vld [vmem:[%s20464_s11 + $0x20] sm:$0xff]   ;;  %v11931_v36 = vld [vmem:[%s20464_s11 + $0x30] sm:$0xff]   ;;  %v11932_v3 = vld [vmem:[%s20464_s11 + $0x38] sm:$0xff]  }
 0x889   :  { %11277 = vmatpush3.bf16.msra.mxu0 %v20285_v53 }
 0x88a   :  { %v10107_v62 = vadd.f32 %v11648_v30, %v20236_v14  ;;  %v10178_v9 = vmax.f32 %v10104_v19, 0.0  ;;  %v11119_v30 = vld [vmem:[%s20466_s10] ss:$0 sm:$0xff] }
 0x88c   :  { %v10179_v17 = vmax.f32 %v10107_v62, 0.0 }
 0x88d   :  { %v9822_v27 = vpop.f32.mrb[124].mxu1 }
 0x88e   :  { %v10213_v61 = vpack.c.bf16 %v10179_v17, %v10178_v9  ;;  %v11649_v43 = vadd.f32 %v20116_v51, %v9822_v27  ;;  %v9824_v2 = vpop.f32.mrb[125].mxu1 }
 0x88f   :  { %v9825_v56 = vpop.f32.mrb[126].mxu1 }
 0x890   :  { %v10112_v35 = vadd.f32 %v11649_v43, %v20226_v7  ;;  %v11650_v8 = vadd.f32 %v20116_v51, %v9825_v56  ;;  %v9827_v25 = vpop.f32.mrb[127].mxu1  ;;  %11278 = vmatprep.subr.bf16.mxu0 %v10213_v61  ;;  %v11909_v7 = vld [vmem:[%s20462_s7] sm:$0xff]   ;;  %v12060_v51 = vmov 0.0  }
 0x891   :  { %11279 = vmatpush3.bf16.msra.mxu0 %v20291_v5  ;;  %v11912_v5 = vld [vmem:[%s20462_s7 + $0x18] sm:$0xff]   ;;  %v11128_v43 = vld [vmem:[%s20467_s12] ss:$0 sm:$0xff] }
 0x892   :  { %v10115_v11 = vadd.f32 %v11650_v8, %v20234_v23  ;;  %v10180_v53 = vmax.f32 %v10112_v35, 0.0  ;;  %v11910_v23 = vld [vmem:[%s20462_s7 + $0x8] sm:$0xff]  }
 0x894   :  { %v10181_v14 = vmax.f32 %v10115_v11, 0.0 }
 0x896   :  { %v10214_v18 = vpack.c.bf16 %v10181_v14, %v10180_v53 }
 0x898   :  { %11280 = vmatprep.subr.bf16.mxu0 %v10214_v18 }
 0x899   :  { %11281 = vmatpush3.bf16.msra.mxu0 %v20297_v37  ;;  %v11913_v37 = vld [vmem:[%s20462_s7 + $0x20] sm:$0xff]  }
 0x89a   :  { %11527 = vmatprep.subr.bf16.mxu0 %v12060_v51 }
 0x89c   :  { %10317 = vmatmul.mubr.bf16.vlgmr.msra.gmra.mrb[196].mxu0 %v10238_v39 }
 0x89d   :  { %11528 = vmatpush3.bf16.msra.mxu0 %v11909_v7  ;;  %11543 = vmatprep.mubr.msk.bf16.mxu0 %vm12061_vm9, %v12060_v51 }
 0x89e   :  { %11529 = vmatprep.subr.bf16.mxu0 %v12060_v51 }
 0x8a1   :  { %11530 = vmatpush3.bf16.msra.mxu0 %v11910_v23 }
 0x8a2   :  { %11531 = vmatprep.subr.bf16.mxu0 %v12060_v51 }
 0x8a5   :  { %11532 = vmatpush3.bf16.msra.mxu0 %v11911_v47 }
 0x8a6   :  { %11533 = vmatprep.subr.bf16.mxu0 %v12060_v51 }
 0x8a9   :  { %11534 = vmatpush3.bf16.msra.mxu0 %v11912_v5 }
 0x8aa   :  { %11535 = vmatprep.subr.bf16.mxu0 %v12060_v51 }
 0x8ad   :  { %11536 = vmatpush3.bf16.msra.mxu0 %v11913_v37 }
 0x8ae   :  { %11537 = vmatprep.subr.bf16.mxu0 %v12060_v51 }
 0x8b1   :  { %11538 = vmatpush3.bf16.msra.mxu0 %v11914_v0 }
 0x8b2   :  { %11539 = vmatprep.subr.bf16.mxu0 %v12060_v51 }
 0x8b5   :  { %11540 = vmatpush3.bf16.msra.mxu0 %v11915_v33 }
 0x8b6   :  { %11541 = vmatprep.subr.bf16.mxu0 %v12060_v51 }
 0x8b9   :  { %11542 = vmatpush3.bf16.msra.mxu0 %v11916_v29 }
 0x8ba   :  { %11547 = vmatprep.subr.bf16.mxu0 %v12060_v51 }
 0x8ef   :  { %v11260_v49 = vpop.f32.mrb[192].mxu0 }
 0x8f0   :  { %v11261_v12 = vpop.f32.mrb[193].mxu0 }
 0x8f1   :  { %v11262_v54 = vadd.f32 %v11261_v12, %v11260_v49  ;;  %v11263_v13 = vpop.f32.mrb[194].mxu0 }
 0x8f2   :  { %v11264_v59 = vpop.f32.mrb[195].mxu0 }
 0x96f   :  { %v11282_v10 = vpop.f32.mrb[196].mxu0 }
 0x970   :  { %v11283_v41 = vpop.f32.mrb[197].mxu0 }
 0x971   :  { %v11284_v20 = vadd.f32 %v11283_v41, %v11282_v10  ;;  %v11285_v44 = vpop.f32.mrb[198].mxu0 }
 0x972   :  { %v11286_v48 = vpop.f32.mrb[199].mxu0 }
 0x973   :  { %v10319_v50 = vadd.f32 %v11284_v20, %v11262_v54 }
 0x975   :  { %v10324_v55 = vpack.c.bf16 %v10319_v50, %v10319_v50 }
 0x977   :  { %11544 = vmatmul.mubr.bf16.vlgmr.msra.gmra.mrb[200].mxu0 %v10324_v55 }
 0x978   :  { %11548 = vmatpush3.bf16.msra.mxu0 %v11917_v24  ;;  %11563 = vmatprep.mubr.msk.bf16.mxu0 %vm12061_vm9, %v12060_v51 }
 0x979   :  { %11549 = vmatprep.subr.bf16.mxu0 %v12060_v51 }
 0x97c   :  { %11550 = vmatpush3.bf16.msra.mxu0 %v11918_v21 }
 0x97d   :  { %11551 = vmatprep.subr.bf16.mxu0 %v12060_v51 }
 0x980   :  { %11552 = vmatpush3.bf16.msra.mxu0 %v11919_v22 }
 0x981   :  { %11553 = vmatprep.subr.bf16.mxu0 %v12060_v51 }
 0x984   :  { %11554 = vmatpush3.bf16.msra.mxu0 %v11920_v32 }
 0x985   :  { %11555 = vmatprep.subr.bf16.mxu0 %v12060_v51 }
 0x988   :  { %11556 = vmatpush3.bf16.msra.mxu0 %v11921_v40 }
 0x989   :  { %11557 = vmatprep.subr.bf16.mxu0 %v12060_v51 }
 0x98c   :  { %11558 = vmatpush3.bf16.msra.mxu0 %v11922_v46 }
 0x98d   :  { %11559 = vmatprep.subr.bf16.mxu0 %v12060_v51 }
 0x990   :  { %11560 = vmatpush3.bf16.msra.mxu0 %v11923_v38 }
 0x991   :  { %11561 = vmatprep.subr.bf16.mxu0 %v12060_v51 }
 0x994   :  { %11562 = vmatpush3.bf16.msra.mxu0 %v11924_v52 }
 0x995   :  { %11567 = vmatprep.subr.bf16.mxu0 %v12060_v51 }
 0xa4a   :  { %v10430_v63 = vpop.f32.mrb[200].mxu0 }
 0xa4b   :  { %v10431_v42 = vadd.f32 %v11110_v15, %v10430_v63  ;;  %v11545_v4 = vpop.f32.mrb[201].mxu0 }
 0xa4c   :  { %v10433_v16 = vpop.f32.mrb[202].mxu0 }
 0xa4d   :  { %v10436_v1 = vmax.f32 %v10431_v42, 0.0  ;;  %v11546_v6 = vpop.f32.mrb[203].mxu0 }
 0xa4f   :  { %v10437_v60 = vpack.c.bf16 %v10436_v1, %v10436_v1 }
 0xa51   :  { %11564 = vmatmul.mubr.bf16.vlgmr.msra.gmra.mrb[204].mxu0 %v10437_v60 }
 0xa52   :  { %11568 = vmatpush3.bf16.msra.mxu0 %v11925_v31  ;;  %11583 = vmatprep.mubr.msk.bf16.mxu0 %vm12061_vm9, %v12060_v51 }
 0xa53   :  { %11569 = vmatprep.subr.bf16.mxu0 %v12060_v51 }
 0xa56   :  { %11570 = vmatpush3.bf16.msra.mxu0 %v11926_v28 }
 0xa57   :  { %11571 = vmatprep.subr.bf16.mxu0 %v12060_v51 }
 0xa5a   :  { %11572 = vmatpush3.bf16.msra.mxu0 %v11927_v57 }
 0xa5b   :  { %11573 = vmatprep.subr.bf16.mxu0 %v12060_v51 }
 0xa5e   :  { %11574 = vmatpush3.bf16.msra.mxu0 %v11928_v34 }
 0xa5f   :  { %11575 = vmatprep.subr.bf16.mxu0 %v12060_v51 }
 0xa62   :  { %11576 = vmatpush3.bf16.msra.mxu0 %v11929_v58 }
 0xa63   :  { %11577 = vmatprep.subr.bf16.mxu0 %v12060_v51 }
 0xa66   :  { %11578 = vmatpush3.bf16.msra.mxu0 %v11930_v45 }
 0xa67   :  { %11579 = vmatprep.subr.bf16.mxu0 %v12060_v51 }
 0xa6a   :  { %11580 = vmatpush3.bf16.msra.mxu0 %v11931_v36 }
 0xa6b   :  { %11581 = vmatprep.subr.bf16.mxu0 %v12060_v51 }
 0xa6e   :  { %11582 = vmatpush3.bf16.msra.mxu0 %v11932_v3 }
 0xb24   :  { %v10543_v19 = vpop.f32.mrb[204].mxu0 }
 0xb25   :  { %v10544_v26 = vadd.f32 %v11119_v30, %v10543_v19  ;;  %v11565_v62 = vpop.f32.mrb[205].mxu0 }
 0xb26   :  { %v10546_v9 = vpop.f32.mrb[206].mxu0 }
 0xb27   :  { %v10549_v17 = vmax.f32 %v10544_v26, 0.0  ;;  %v11566_v27 = vpop.f32.mrb[207].mxu0 }
 0xb29   :  { %v10550_v61 = vpack.c.bf16 %v10549_v17, %v10549_v17 }
 0xb2b   :  { %11584 = vmatmul.mubr.bf16.vlgmr.msra.gmra.mrb[208].mxu0 %v10550_v61 }
 0xbfe   :  { %v10656_v2 = vpop.f32.mrb[208].mxu0 }
 0xbff   :  { %v10657_v56 = vadd.f32 %v11128_v43, %v10656_v2  ;;  %v11585_v35 = vpop.f32.mrb[209].mxu0 }
 0xc00   :  { %v10659_v8 = vpop.f32.mrb[210].mxu0 }
 0xc01   :  { %v11137_v25 = vmul.f32 -1.442695, %v10657_v56  ;;  %v11586_v11 = vpop.f32.mrb[211].mxu0 }
 0xc03   :  { %11933 = vpow2.f32 %v11137_v25 }
 0xc0d   :  { %v11934_v53 = vpop.eup %11933 }
 0xc0e   :  { %v10665_v14 = vadd.f32 1.0, %v11934_v53 }
 0xc10   :  { %11935 = vrcp.f32 %v10665_v14 }
 0xc1a   :  { %v11936_v18 = vpop.eup %11935 }
 0xc1b   :  { %10668 = vst [vmem:[%s20468_s13] sm:$0x3] %v11936_v18 }

</bundles_post_ra>
